<compile_context>
chip_gen: v7x
topology: tpu7x:2x2x1
jax: 0.10.0
libtpu: 0.0.40
codegen_flags: <defaults>
</compile_context>

<pallas_src>
import functools
import math

import jax
import jax.numpy as jnp
from jax import lax
from jax.experimental import pallas as pl
from jax.experimental.pallas import tpu as pltpu

NEG_INF = -1e9  # additive stand-in for PyTorch's -inf causal mask

PARAM_ORDER = (
    # encoder stacks: leading axis = encoder layer index
    "e_wqkv", "e_bqkv", "e_wo", "e_bo",
    "e_ln1g", "e_ln1b",
    "e_w1", "e_b1", "e_w2", "e_b2",
    "e_ln2g", "e_ln2b",
    # decoder stacks: leading axis = decoder layer index
    "d_wqkv", "d_bqkv", "d_wo", "d_bo",
    "d_cwq", "d_cbq", "d_cwkv", "d_cbkv", "d_cwo", "d_cbo",
    "d_w1", "d_b1", "d_w2", "d_b2",
    "d_ln1g", "d_ln1b", "d_ln2g", "d_ln2b", "d_ln3g", "d_ln3b",
    # final norms + classification head
    "encn_g", "encn_b", "decn_g", "decn_b", "fc_w", "fc_b",
)


# ------------------------------ fused kernel ------------------------------

def _transformer_kernel(*refs, nhead, eps, causal_encoder):
    """Whole nn.Transformer forward (+ Linear head) fused in one kernel.

    All weights/activations stay VMEM-resident; matmuls run on the MXU with
    f32 accumulation; softmax / LayerNorm epilogues run on the VPU/EUP in f32.
    """
    src_ref, tgt_ref = refs[0], refs[1]
    p = dict(zip(PARAM_ORDER, refs[2:2 + len(PARAM_ORDER)]))
    out_ref = refs[-1]

    n, s, e = src_ref.shape
    t = tgt_ref.shape[1]
    num_enc = p["e_wqkv"].shape[0]
    num_dec = p["d_wqkv"].shape[0]
    dh = e // nhead
    scale = 1.0 / math.sqrt(dh)

    def layer_norm(x, g, b):
        mean = jnp.mean(x, axis=-1, keepdims=True)
        var = jnp.mean(jnp.square(x - mean), axis=-1, keepdims=True)
        return (x - mean) * lax.rsqrt(var + eps) * g + b

    def causal_bias(rows, cols):
        r = lax.broadcasted_iota(jnp.int32, (rows, cols), 0)
        c = lax.broadcasted_iota(jnp.int32, (rows, cols), 1)
        return jnp.where(c > r, jnp.float32(NEG_INF), jnp.float32(0.0))

    def attention(q_proj, kv_proj, wo, bo, nb, tq, tk, causal):
        # q_proj: (nb*tq, e); kv_proj: (nb*tk, 2e) laid out as [K | V].
        # Heads are static lane slices; the out-projection is folded in per
        # head (sum_h head_h @ Wo[h*dh:(h+1)*dh, :]) so a head-major layout
        # is never materialized.
        bias = causal_bias(tq, tk) if causal else None
        acc = None
        for h in range(nhead):
            qh = q_proj[:, h * dh:(h + 1) * dh].reshape(nb, tq, dh)
            kh = kv_proj[:, h * dh:(h + 1) * dh].reshape(nb, tk, dh)
            vh = kv_proj[:, e + h * dh:e + (h + 1) * dh].reshape(nb, tk, dh)
            scores = jnp.einsum("bqd,bkd->bqk", qh, kh,
                                preferred_element_type=jnp.float32) * scale
            if bias is not None:
                scores = scores + bias
            m = jnp.max(scores, axis=-1, keepdims=True)
            prob = jnp.exp(scores - m)
            denom = jnp.sum(prob, axis=-1, keepdims=True)
            prob = prob * pl.reciprocal(denom, approx=True)   # EUP divide
            oh = jnp.einsum("bqk,bkd->bqd", prob, vh,
                            preferred_element_type=jnp.float32)
            contrib = jnp.dot(oh.reshape(nb * tq, dh),
                              wo[h * dh:(h + 1) * dh, :],
                              preferred_element_type=jnp.float32)
            acc = contrib if acc is None else acc + contrib
        return acc + bo

    def ffn(x, w1, b1, w2, b2):
        h = jnp.dot(x, w1, preferred_element_type=jnp.float32) + b1
        h = jnp.maximum(h, 0.0)                                # relu
        return jnp.dot(h, w2, preferred_element_type=jnp.float32) + b2

    def encoder_layer(x, l):
        # post-norm (norm_first=False): x = norm1(x + SA(x)); x = norm2(x + FF(x))
        proj = jnp.dot(x, p["e_wqkv"][l],
                       preferred_element_type=jnp.float32) + p["e_bqkv"][l]
        sa = attention(proj[:, :e], proj[:, e:], p["e_wo"][l], p["e_bo"][l],
                       n, s, s, causal_encoder)
        x = layer_norm(x + sa, p["e_ln1g"][l], p["e_ln1b"][l])
        ff = ffn(x, p["e_w1"][l], p["e_b1"][l], p["e_w2"][l], p["e_b2"][l])
        x = layer_norm(x + ff, p["e_ln2g"][l], p["e_ln2b"][l])
        return x

    def decoder_layer(x, mem, l):
        proj = jnp.dot(x, p["d_wqkv"][l],
                       preferred_element_type=jnp.float32) + p["d_bqkv"][l]
        sa = attention(proj[:, :e], proj[:, e:], p["d_wo"][l], p["d_bo"][l],
                       n, t, t, True)                          # causal tgt mask
        x = layer_norm(x + sa, p["d_ln1g"][l], p["d_ln1b"][l])
        qc = jnp.dot(x, p["d_cwq"][l],
                     preferred_element_type=jnp.float32) + p["d_cbq"][l]
        kvc = jnp.dot(mem, p["d_cwkv"][l],
                      preferred_element_type=jnp.float32) + p["d_cbkv"][l]
        ca = attention(qc, kvc, p["d_cwo"][l], p["d_cbo"][l],
                       n, t, s, False)                         # memory_mask=None
        x = layer_norm(x + ca, p["d_ln2g"][l], p["d_ln2b"][l])
        ff = ffn(x, p["d_w1"][l], p["d_b1"][l], p["d_w2"][l], p["d_b2"][l])
        x = layer_norm(x + ff, p["d_ln3g"][l], p["d_ln3b"][l])
        return x

    # TODO(synk): dropout layers omitted (inference / eval-mode semantics).

    # Encoder stack + final encoder LayerNorm (nn.Transformer default)
    mem = src_ref[...].astype(jnp.float32).reshape(n * s, e)
    for l in range(num_enc):
        mem = encoder_layer(mem, l)
    mem = layer_norm(mem, p["encn_g"][...], p["encn_b"][...])

    # Decoder stack + final decoder LayerNorm
    x = tgt_ref[...].astype(jnp.float32).reshape(n * t, e)
    for l in range(num_dec):
        x = decoder_layer(x, mem, l)
    x = layer_norm(x, p["decn_g"][...], p["decn_b"][...])

    # f_c = Linear(d_model, output_dimension) + Identity (softmax_ouput=False)
    y = jnp.dot(x, p["fc_w"][...],
                preferred_element_type=jnp.float32) + p["fc_b"][...]
    out_ref[...] = y.reshape(n, t, out_ref.shape[-1]).astype(out_ref.dtype)


def transformer_forward(src, tgt, params, *, nhead, eps, causal_encoder=False):
    """src: (N, S, E), tgt: (N, T, E) -> (N, T, output_dimension)."""
    n = src.shape[0]
    t = tgt.shape[1]
    out_dim = params["fc_w"].shape[1]
    args = (src, tgt) + tuple(params[k] for k in PARAM_ORDER)
    vmem = pl.BlockSpec(memory_space=pltpu.MemorySpace.VMEM)
    kernel = functools.partial(_transformer_kernel, nhead=nhead, eps=eps,
                               causal_encoder=causal_encoder)
    return pl.pallas_call(
        kernel,
        out_shape=jax.ShapeDtypeStruct((n, t, out_dim), src.dtype),
        in_specs=[vmem] * len(args),
        out_specs=vmem,
    )(*args)


# ------------------------ deterministic param init ------------------------

def _init_linear(key, fan_in, fan_out):
    kw, kb = jax.random.split(key)
    w = jax.random.normal(kw, (fan_in, fan_out), jnp.float32) * (1.0 / math.sqrt(fan_in))
    b = jax.random.normal(kb, (1, fan_out), jnp.float32) * 0.01
    return w, b


def init_params(key, d_model, nhead, num_enc, num_dec, dff, out_dim):
    e = d_model
    stacks = {k: [] for k in PARAM_ORDER[:-6]}   # per-layer stacked params

    def ln_pair():
        return jnp.ones((1, e), jnp.float32), jnp.zeros((1, e), jnp.float32)

    for i in range(num_enc):
        k = jax.random.fold_in(key, 100 + i)
        kq, kk, kv, ko, k1, k2 = jax.random.split(k, 6)
        wq, bq = _init_linear(kq, e, e)
        wk, bk = _init_linear(kk, e, e)
        wv, bv = _init_linear(kv, e, e)
        wo, bo = _init_linear(ko, e, e)
        w1, b1 = _init_linear(k1, e, dff)
        w2, b2 = _init_linear(k2, dff, e)
        g1, be1 = ln_pair(); g2, be2 = ln_pair()
        stacks["e_wqkv"].append(jnp.concatenate([wq, wk, wv], axis=1))
        stacks["e_bqkv"].append(jnp.concatenate([bq, bk, bv], axis=1))
        stacks["e_wo"].append(wo); stacks["e_bo"].append(bo)
        stacks["e_ln1g"].append(g1); stacks["e_ln1b"].append(be1)
        stacks["e_w1"].append(w1); stacks["e_b1"].append(b1)
        stacks["e_w2"].append(w2); stacks["e_b2"].append(b2)
        stacks["e_ln2g"].append(g2); stacks["e_ln2b"].append(be2)

    for i in range(num_dec):
        k = jax.random.fold_in(key, 200 + i)
        kq, kk, kv, ko, kcq, kck, kcv, kco, k1, k2 = jax.random.split(k, 10)
        wq, bq = _init_linear(kq, e, e)
        wk, bk = _init_linear(kk, e, e)
        wv, bv = _init_linear(kv, e, e)
        wo, bo = _init_linear(ko, e, e)
        cwq, cbq = _init_linear(kcq, e, e)
        cwk, cbk = _init_linear(kck, e, e)
        cwv, cbv = _init_linear(kcv, e, e)
        cwo, cbo = _init_linear(kco, e, e)
        w1, b1 = _init_linear(k1, e, dff)
        w2, b2 = _init_linear(k2, dff, e)
        g1, be1 = ln_pair(); g2, be2 = ln_pair(); g3, be3 = ln_pair()
        stacks["d_wqkv"].append(jnp.concatenate([wq, wk, wv], axis=1))
        stacks["d_bqkv"].append(jnp.concatenate([bq, bk, bv], axis=1))
        stacks["d_wo"].append(wo); stacks["d_bo"].append(bo)
        stacks["d_cwq"].append(cwq); stacks["d_cbq"].append(cbq)
        stacks["d_cwkv"].append(jnp.concatenate([cwk, cwv], axis=1))
        stacks["d_cbkv"].append(jnp.concatenate([cbk, cbv], axis=1))
        stacks["d_cwo"].append(cwo); stacks["d_cbo"].append(cbo)
        stacks["d_w1"].append(w1); stacks["d_b1"].append(b1)
        stacks["d_w2"].append(w2); stacks["d_b2"].append(b2)
        stacks["d_ln1g"].append(g1); stacks["d_ln1b"].append(be1)
        stacks["d_ln2g"].append(g2); stacks["d_ln2b"].append(be2)
        stacks["d_ln3g"].append(g3); stacks["d_ln3b"].append(be3)

    params = {k: jnp.stack(v, axis=0) for k, v in stacks.items()}
    params["encn_g"], params["encn_b"] = ln_pair()
    params["decn_g"], params["decn_b"] = ln_pair()
    kfc = jax.random.fold_in(key, 999)
    params["fc_w"], params["fc_b"] = _init_linear(kfc, e, out_dim)
    return params


# ---------------------------------- main -----------------------------------

if __name__ == "__main__":
    # Small config consistent with the module's constructor
    D_MODEL = 32
    OUTPUT_DIM = 5
    NHEAD = 4
    NUM_ENC = 2
    NUM_DEC = 2
    DIM_FF = 64
    EPS = 1e-5
    N, S, T = 2, 8, 8  # batch, src seq, tgt seq

    key = jax.random.PRNGKey(0)
    k_src, k_tgt, k_par = jax.random.split(key, 3)
    src = jax.random.normal(k_src, (N, S, D_MODEL), jnp.float32)
    tgt = jax.random.normal(k_tgt, (N, T, D_MODEL), jnp.float32)

    params = init_params(k_par, D_MODEL, NHEAD, NUM_ENC, NUM_DEC, DIM_FF, OUTPUT_DIM)

    out = transformer_forward(src, tgt, params, nhead=NHEAD, eps=EPS,
                              causal_encoder=False)
    out = jax.block_until_ready(out)
    assert out.shape == (N, T, OUTPUT_DIM)
    assert bool(jnp.all(jnp.isfinite(out)))
    print("KERNEL_OK")
</pallas_src>

<mosaic_0001>
module attributes {stable_mosaic.version = 11 : i64} {
  func.func @_transformer_kernel(%arg0: memref<2x8x32xf32, #tpu.memory_space<vmem>>, %arg1: memref<2x8x32xf32, #tpu.memory_space<vmem>>, %arg2: memref<2x32x96xf32, #tpu.memory_space<vmem>>, %arg3: memref<2x1x96xf32, #tpu.memory_space<vmem>>, %arg4: memref<2x32x32xf32, #tpu.memory_space<vmem>>, %arg5: memref<2x1x32xf32, #tpu.memory_space<vmem>>, %arg6: memref<2x1x32xf32, #tpu.memory_space<vmem>>, %arg7: memref<2x1x32xf32, #tpu.memory_space<vmem>>, %arg8: memref<2x32x64xf32, #tpu.memory_space<vmem>>, %arg9: memref<2x1x64xf32, #tpu.memory_space<vmem>>, %arg10: memref<2x64x32xf32, #tpu.memory_space<vmem>>, %arg11: memref<2x1x32xf32, #tpu.memory_space<vmem>>, %arg12: memref<2x1x32xf32, #tpu.memory_space<vmem>>, %arg13: memref<2x1x32xf32, #tpu.memory_space<vmem>>, %arg14: memref<2x32x96xf32, #tpu.memory_space<vmem>>, %arg15: memref<2x1x96xf32, #tpu.memory_space<vmem>>, %arg16: memref<2x32x32xf32, #tpu.memory_space<vmem>>, %arg17: memref<2x1x32xf32, #tpu.memory_space<vmem>>, %arg18: memref<2x32x32xf32, #tpu.memory_space<vmem>>, %arg19: memref<2x1x32xf32, #tpu.memory_space<vmem>>, %arg20: memref<2x32x64xf32, #tpu.memory_space<vmem>>, %arg21: memref<2x1x64xf32, #tpu.memory_space<vmem>>, %arg22: memref<2x32x32xf32, #tpu.memory_space<vmem>>, %arg23: memref<2x1x32xf32, #tpu.memory_space<vmem>>, %arg24: memref<2x32x64xf32, #tpu.memory_space<vmem>>, %arg25: memref<2x1x64xf32, #tpu.memory_space<vmem>>, %arg26: memref<2x64x32xf32, #tpu.memory_space<vmem>>, %arg27: memref<2x1x32xf32, #tpu.memory_space<vmem>>, %arg28: memref<2x1x32xf32, #tpu.memory_space<vmem>>, %arg29: memref<2x1x32xf32, #tpu.memory_space<vmem>>, %arg30: memref<2x1x32xf32, #tpu.memory_space<vmem>>, %arg31: memref<2x1x32xf32, #tpu.memory_space<vmem>>, %arg32: memref<2x1x32xf32, #tpu.memory_space<vmem>>, %arg33: memref<2x1x32xf32, #tpu.memory_space<vmem>>, %arg34: memref<1x32xf32, #tpu.memory_space<vmem>>, %arg35: memref<1x32xf32, #tpu.memory_space<vmem>>, %arg36: memref<1x32xf32, #tpu.memory_space<vmem>>, %arg37: memref<1x32xf32, #tpu.memory_space<vmem>>, %arg38: memref<32x5xf32, #tpu.memory_space<vmem>>, %arg39: memref<1x5xf32, #tpu.memory_space<vmem>>, %arg40: memref<2x8x5xf32, #tpu.memory_space<vmem>>) attributes {dimension_semantics = [], scalar_prefetch = 0 : i64, scratch_operands = 0 : i64, tpu.core_type = #tpu.core_type<tc>} {
    %c0 = arith.constant 0 : index
    %c0_0 = arith.constant 0 : index
    %c0_1 = arith.constant 0 : index
    %0 = vector.load %arg0[%c0, %c0_0, %c0_1] : memref<2x8x32xf32, #tpu.memory_space<vmem>>, vector<2x8x32xf32>
    %1 = vector.shape_cast %0 : vector<2x8x32xf32> to vector<16x32xf32>
    %c0_2 = arith.constant 0 : index
    %c0_3 = arith.constant 0 : index
    %c0_4 = arith.constant 0 : index
    %2 = vector.load %arg2[%c0_2, %c0_3, %c0_4] : memref<2x32x96xf32, #tpu.memory_space<vmem>>, vector<1x32x96xf32>
    %3 = vector.shape_cast %2 : vector<1x32x96xf32> to vector<32x96xf32>
    %cst = arith.constant dense<0.000000e+00> : vector<16x96xf32>
    %4 = tpu.matmul %1, %3, %cst {dimension_numbers = #tpu.dot_dimension_numbers<[1], [0], [0], [1], [0, 0, 1, 1], [], []>} : vector<16x32xf32>, vector<32x96xf32>, vector<16x96xf32> -> vector<16x96xf32>
    %c0_5 = arith.constant 0 : index
    %c0_6 = arith.constant 0 : index
    %c0_7 = arith.constant 0 : index
    %5 = vector.load %arg3[%c0_5, %c0_6, %c0_7] : memref<2x1x96xf32, #tpu.memory_space<vmem>>, vector<1x1x96xf32>
    %6 = vector.shape_cast %5 : vector<1x1x96xf32> to vector<1x96xf32>
    %7 = vector.broadcast %6 : vector<1x96xf32> to vector<16x96xf32>
    %8 = arith.addf %4, %7 : vector<16x96xf32>
    %9 = vector.extract_strided_slice %8 {offsets = [0, 0], sizes = [16, 32], strides = [1, 1]} : vector<16x96xf32> to vector<16x32xf32>
    %10 = vector.extract_strided_slice %8 {offsets = [0, 32], sizes = [16, 64], strides = [1, 1]} : vector<16x96xf32> to vector<16x64xf32>
    %c0_8 = arith.constant 0 : index
    %c0_9 = arith.constant 0 : index
    %c0_10 = arith.constant 0 : index
    %11 = vector.load %arg4[%c0_8, %c0_9, %c0_10] : memref<2x32x32xf32, #tpu.memory_space<vmem>>, vector<1x32x32xf32>
    %12 = vector.shape_cast %11 : vector<1x32x32xf32> to vector<32x32xf32>
    %c0_11 = arith.constant 0 : index
    %c0_12 = arith.constant 0 : index
    %c0_13 = arith.constant 0 : index
    %13 = vector.load %arg5[%c0_11, %c0_12, %c0_13] : memref<2x1x32xf32, #tpu.memory_space<vmem>>, vector<1x1x32xf32>
    %14 = vector.shape_cast %13 : vector<1x1x32xf32> to vector<1x32xf32>
    %15 = vector.extract_strided_slice %9 {offsets = [0, 0], sizes = [16, 8], strides = [1, 1]} : vector<16x32xf32> to vector<16x8xf32>
    %16 = vector.shape_cast %15 : vector<16x8xf32> to vector<2x8x8xf32>
    %17 = vector.extract_strided_slice %10 {offsets = [0, 0], sizes = [16, 8], strides = [1, 1]} : vector<16x64xf32> to vector<16x8xf32>
    %18 = vector.shape_cast %17 : vector<16x8xf32> to vector<2x8x8xf32>
    %19 = vector.extract_strided_slice %10 {offsets = [0, 32], sizes = [16, 8], strides = [1, 1]} : vector<16x64xf32> to vector<16x8xf32>
    %20 = vector.shape_cast %19 : vector<16x8xf32> to vector<2x8x8xf32>
    "tpu.trace_start"() <{level = 10 : i32, message = "bqd,bkd->bqk"}> : () -> ()
    %cst_14 = arith.constant dense<0.000000e+00> : vector<2x8x8xf32>
    %21 = tpu.matmul %16, %18, %cst_14 {dimension_numbers = #tpu.dot_dimension_numbers<[2], [2], [1], [1], [0, 0, 0, 1, 1, 1], [0], [0]>} : vector<2x8x8xf32>, vector<2x8x8xf32>, vector<2x8x8xf32> -> vector<2x8x8xf32>
    "tpu.trace_stop"() : () -> ()
    %cst_15 = arith.constant 0.353553385 : f32
    %22 = vector.broadcast %cst_15 : f32 to vector<2x8x8xf32>
    %23 = arith.mulf %21, %22 : vector<2x8x8xf32>
    %cst_16 = arith.constant dense<0xFF800000> : vector<2x8xf32>
    %24 = vector.multi_reduction <maximumf>, %23, %cst_16 [2] : vector<2x8x8xf32> to vector<2x8xf32>
    %25 = vector.shape_cast %24 : vector<2x8xf32> to vector<2x8x1xf32>
    %26 = vector.broadcast %25 : vector<2x8x1xf32> to vector<2x8x8xf32>
    %27 = arith.subf %23, %26 : vector<2x8x8xf32>
    %28 = math.exp %27 : vector<2x8x8xf32>
    %cst_17 = arith.constant dense<0.000000e+00> : vector<2x8xf32>
    %29 = vector.multi_reduction <add>, %28, %cst_17 [2] : vector<2x8x8xf32> to vector<2x8xf32>
    %30 = vector.shape_cast %29 : vector<2x8xf32> to vector<2x8x1xf32>
    %31 = tpu.reciprocal %30 {approx = true} : vector<2x8x1xf32> -> vector<2x8x1xf32>
    %32 = vector.broadcast %31 : vector<2x8x1xf32> to vector<2x8x8xf32>
    %33 = arith.mulf %28, %32 : vector<2x8x8xf32>
    "tpu.trace_start"() <{level = 10 : i32, message = "bqk,bkd->bqd"}> : () -> ()
    %cst_18 = arith.constant dense<0.000000e+00> : vector<2x8x8xf32>
    %34 = tpu.matmul %33, %20, %cst_18 {dimension_numbers = #tpu.dot_dimension_numbers<[2], [1], [1], [2], [0, 0, 0, 1, 1, 2], [0], [0]>} : vector<2x8x8xf32>, vector<2x8x8xf32>, vector<2x8x8xf32> -> vector<2x8x8xf32>
    "tpu.trace_stop"() : () -> ()
    %35 = vector.shape_cast %34 : vector<2x8x8xf32> to vector<16x8xf32>
    %36 = vector.extract_strided_slice %12 {offsets = [0, 0], sizes = [8, 32], strides = [1, 1]} : vector<32x32xf32> to vector<8x32xf32>
    %cst_19 = arith.constant dense<0.000000e+00> : vector<16x32xf32>
    %37 = tpu.matmul %35, %36, %cst_19 {dimension_numbers = #tpu.dot_dimension_numbers<[1], [0], [0], [1], [0, 0, 1, 1], [], []>} : vector<16x8xf32>, vector<8x32xf32>, vector<16x32xf32> -> vector<16x32xf32>
    %38 = vector.extract_strided_slice %9 {offsets = [0, 8], sizes = [16, 8], strides = [1, 1]} : vector<16x32xf32> to vector<16x8xf32>
    %39 = vector.shape_cast %38 : vector<16x8xf32> to vector<2x8x8xf32>
    %40 = vector.extract_strided_slice %10 {offsets = [0, 8], sizes = [16, 8], strides = [1, 1]} : vector<16x64xf32> to vector<16x8xf32>
    %41 = vector.shape_cast %40 : vector<16x8xf32> to vector<2x8x8xf32>
    %42 = vector.extract_strided_slice %10 {offsets = [0, 40], sizes = [16, 8], strides = [1, 1]} : vector<16x64xf32> to vector<16x8xf32>
    %43 = vector.shape_cast %42 : vector<16x8xf32> to vector<2x8x8xf32>
    "tpu.trace_start"() <{level = 10 : i32, message = "bqd,bkd->bqk"}> : () -> ()
    %cst_20 = arith.constant dense<0.000000e+00> : vector<2x8x8xf32>
    %44 = tpu.matmul %39, %41, %cst_20 {dimension_numbers = #tpu.dot_dimension_numbers<[2], [2], [1], [1], [0, 0, 0, 1, 1, 1], [0], [0]>} : vector<2x8x8xf32>, vector<2x8x8xf32>, vector<2x8x8xf32> -> vector<2x8x8xf32>
    "tpu.trace_stop"() : () -> ()
    %cst_21 = arith.constant 0.353553385 : f32
    %45 = vector.broadcast %cst_21 : f32 to vector<2x8x8xf32>
    %46 = arith.mulf %44, %45 : vector<2x8x8xf32>
    %cst_22 = arith.constant dense<0xFF800000> : vector<2x8xf32>
    %47 = vector.multi_reduction <maximumf>, %46, %cst_22 [2] : vector<2x8x8xf32> to vector<2x8xf32>
    %48 = vector.shape_cast %47 : vector<2x8xf32> to vector<2x8x1xf32>
    %49 = vector.broadcast %48 : vector<2x8x1xf32> to vector<2x8x8xf32>
    %50 = arith.subf %46, %49 : vector<2x8x8xf32>
    %51 = math.exp %50 : vector<2x8x8xf32>
    %cst_23 = arith.constant dense<0.000000e+00> : vector<2x8xf32>
    %52 = vector.multi_reduction <add>, %51, %cst_23 [2] : vector<2x8x8xf32> to vector<2x8xf32>
    %53 = vector.shape_cast %52 : vector<2x8xf32> to vector<2x8x1xf32>
    %54 = tpu.reciprocal %53 {approx = true} : vector<2x8x1xf32> -> vector<2x8x1xf32>
    %55 = vector.broadcast %54 : vector<2x8x1xf32> to vector<2x8x8xf32>
    %56 = arith.mulf %51, %55 : vector<2x8x8xf32>
    "tpu.trace_start"() <{level = 10 : i32, message = "bqk,bkd->bqd"}> : () -> ()
    %cst_24 = arith.constant dense<0.000000e+00> : vector<2x8x8xf32>
    %57 = tpu.matmul %56, %43, %cst_24 {dimension_numbers = #tpu.dot_dimension_numbers<[2], [1], [1], [2], [0, 0, 0, 1, 1, 2], [0], [0]>} : vector<2x8x8xf32>, vector<2x8x8xf32>, vector<2x8x8xf32> -> vector<2x8x8xf32>
    "tpu.trace_stop"() : () -> ()
    %58 = vector.shape_cast %57 : vector<2x8x8xf32> to vector<16x8xf32>
    %59 = vector.extract_strided_slice %12 {offsets = [8, 0], sizes = [8, 32], strides = [1, 1]} : vector<32x32xf32> to vector<8x32xf32>
    %cst_25 = arith.constant dense<0.000000e+00> : vector<16x32xf32>
    %60 = tpu.matmul %58, %59, %cst_25 {dimension_numbers = #tpu.dot_dimension_numbers<[1], [0], [0], [1], [0, 0, 1, 1], [], []>} : vector<16x8xf32>, vector<8x32xf32>, vector<16x32xf32> -> vector<16x32xf32>
    %61 = arith.addf %37, %60 : vector<16x32xf32>
    %62 = vector.extract_strided_slice %9 {offsets = [0, 16], sizes = [16, 8], strides = [1, 1]} : vector<16x32xf32> to vector<16x8xf32>
    %63 = vector.shape_cast %62 : vector<16x8xf32> to vector<2x8x8xf32>
    %64 = vector.extract_strided_slice %10 {offsets = [0, 16], sizes = [16, 8], strides = [1, 1]} : vector<16x64xf32> to vector<16x8xf32>
    %65 = vector.shape_cast %64 : vector<16x8xf32> to vector<2x8x8xf32>
    %66 = vector.extract_strided_slice %10 {offsets = [0, 48], sizes = [16, 8], strides = [1, 1]} : vector<16x64xf32> to vector<16x8xf32>
    %67 = vector.shape_cast %66 : vector<16x8xf32> to vector<2x8x8xf32>
    "tpu.trace_start"() <{level = 10 : i32, message = "bqd,bkd->bqk"}> : () -> ()
    %cst_26 = arith.constant dense<0.000000e+00> : vector<2x8x8xf32>
    %68 = tpu.matmul %63, %65, %cst_26 {dimension_numbers = #tpu.dot_dimension_numbers<[2], [2], [1], [1], [0, 0, 0, 1, 1, 1], [0], [0]>} : vector<2x8x8xf32>, vector<2x8x8xf32>, vector<2x8x8xf32> -> vector<2x8x8xf32>
    "tpu.trace_stop"() : () -> ()
    %cst_27 = arith.constant 0.353553385 : f32
    %69 = vector.broadcast %cst_27 : f32 to vector<2x8x8xf32>
    %70 = arith.mulf %68, %69 : vector<2x8x8xf32>
    %cst_28 = arith.constant dense<0xFF800000> : vector<2x8xf32>
    %71 = vector.multi_reduction <maximumf>, %70, %cst_28 [2] : vector<2x8x8xf32> to vector<2x8xf32>
    %72 = vector.shape_cast %71 : vector<2x8xf32> to vector<2x8x1xf32>
    %73 = vector.broadcast %72 : vector<2x8x1xf32> to vector<2x8x8xf32>
    %74 = arith.subf %70, %73 : vector<2x8x8xf32>
    %75 = math.exp %74 : vector<2x8x8xf32>
    %cst_29 = arith.constant dense<0.000000e+00> : vector<2x8xf32>
    %76 = vector.multi_reduction <add>, %75, %cst_29 [2] : vector<2x8x8xf32> to vector<2x8xf32>
    %77 = vector.shape_cast %76 : vector<2x8xf32> to vector<2x8x1xf32>
    %78 = tpu.reciprocal %77 {approx = true} : vector<2x8x1xf32> -> vector<2x8x1xf32>
    %79 = vector.broadcast %78 : vector<2x8x1xf32> to vector<2x8x8xf32>
    %80 = arith.mulf %75, %79 : vector<2x8x8xf32>
    "tpu.trace_start"() <{level = 10 : i32, message = "bqk,bkd->bqd"}> : () -> ()
    %cst_30 = arith.constant dense<0.000000e+00> : vector<2x8x8xf32>
    %81 = tpu.matmul %80, %67, %cst_30 {dimension_numbers = #tpu.dot_dimension_numbers<[2], [1], [1], [2], [0, 0, 0, 1, 1, 2], [0], [0]>} : vector<2x8x8xf32>, vector<2x8x8xf32>, vector<2x8x8xf32> -> vector<2x8x8xf32>
    "tpu.trace_stop"() : () -> ()
    %82 = vector.shape_cast %81 : vector<2x8x8xf32> to vector<16x8xf32>
    %83 = vector.extract_strided_slice %12 {offsets = [16, 0], sizes = [8, 32], strides = [1, 1]} : vector<32x32xf32> to vector<8x32xf32>
    %cst_31 = arith.constant dense<0.000000e+00> : vector<16x32xf32>
    %84 = tpu.matmul %82, %83, %cst_31 {dimension_numbers = #tpu.dot_dimension_numbers<[1], [0], [0], [1], [0, 0, 1, 1], [], []>} : vector<16x8xf32>, vector<8x32xf32>, vector<16x32xf32> -> vector<16x32xf32>
    %85 = arith.addf %61, %84 : vector<16x32xf32>
    %86 = vector.extract_strided_slice %9 {offsets = [0, 24], sizes = [16, 8], strides = [1, 1]} : vector<16x32xf32> to vector<16x8xf32>
    %87 = vector.shape_cast %86 : vector<16x8xf32> to vector<2x8x8xf32>
    %88 = vector.extract_strided_slice %10 {offsets = [0, 24], sizes = [16, 8], strides = [1, 1]} : vector<16x64xf32> to vector<16x8xf32>
    %89 = vector.shape_cast %88 : vector<16x8xf32> to vector<2x8x8xf32>
    %90 = vector.extract_strided_slice %10 {offsets = [0, 56], sizes = [16, 8], strides = [1, 1]} : vector<16x64xf32> to vector<16x8xf32>
    %91 = vector.shape_cast %90 : vector<16x8xf32> to vector<2x8x8xf32>
    "tpu.trace_start"() <{level = 10 : i32, message = "bqd,bkd->bqk"}> : () -> ()
    %cst_32 = arith.constant dense<0.000000e+00> : vector<2x8x8xf32>
    %92 = tpu.matmul %87, %89, %cst_32 {dimension_numbers = #tpu.dot_dimension_numbers<[2], [2], [1], [1], [0, 0, 0, 1, 1, 1], [0], [0]>} : vector<2x8x8xf32>, vector<2x8x8xf32>, vector<2x8x8xf32> -> vector<2x8x8xf32>
    "tpu.trace_stop"() : () -> ()
    %cst_33 = arith.constant 0.353553385 : f32
    %93 = vector.broadcast %cst_33 : f32 to vector<2x8x8xf32>
    %94 = arith.mulf %92, %93 : vector<2x8x8xf32>
    %cst_34 = arith.constant dense<0xFF800000> : vector<2x8xf32>
    %95 = vector.multi_reduction <maximumf>, %94, %cst_34 [2] : vector<2x8x8xf32> to vector<2x8xf32>
    %96 = vector.shape_cast %95 : vector<2x8xf32> to vector<2x8x1xf32>
    %97 = vector.broadcast %96 : vector<2x8x1xf32> to vector<2x8x8xf32>
    %98 = arith.subf %94, %97 : vector<2x8x8xf32>
    %99 = math.exp %98 : vector<2x8x8xf32>
    %cst_35 = arith.constant dense<0.000000e+00> : vector<2x8xf32>
    %100 = vector.multi_reduction <add>, %99, %cst_35 [2] : vector<2x8x8xf32> to vector<2x8xf32>
    %101 = vector.shape_cast %100 : vector<2x8xf32> to vector<2x8x1xf32>
    %102 = tpu.reciprocal %101 {approx = true} : vector<2x8x1xf32> -> vector<2x8x1xf32>
    %103 = vector.broadcast %102 : vector<2x8x1xf32> to vector<2x8x8xf32>
    %104 = arith.mulf %99, %103 : vector<2x8x8xf32>
    "tpu.trace_start"() <{level = 10 : i32, message = "bqk,bkd->bqd"}> : () -> ()
    %cst_36 = arith.constant dense<0.000000e+00> : vector<2x8x8xf32>
    %105 = tpu.matmul %104, %91, %cst_36 {dimension_numbers = #tpu.dot_dimension_numbers<[2], [1], [1], [2], [0, 0, 0, 1, 1, 2], [0], [0]>} : vector<2x8x8xf32>, vector<2x8x8xf32>, vector<2x8x8xf32> -> vector<2x8x8xf32>
    "tpu.trace_stop"() : () -> ()
    %106 = vector.shape_cast %105 : vector<2x8x8xf32> to vector<16x8xf32>
    %107 = vector.extract_strided_slice %12 {offsets = [24, 0], sizes = [8, 32], strides = [1, 1]} : vector<32x32xf32> to vector<8x32xf32>
    %cst_37 = arith.constant dense<0.000000e+00> : vector<16x32xf32>
    %108 = tpu.matmul %106, %107, %cst_37 {dimension_numbers = #tpu.dot_dimension_numbers<[1], [0], [0], [1], [0, 0, 1, 1], [], []>} : vector<16x8xf32>, vector<8x32xf32>, vector<16x32xf32> -> vector<16x32xf32>
    %109 = arith.addf %85, %108 : vector<16x32xf32>
    %110 = vector.broadcast %14 : vector<1x32xf32> to vector<16x32xf32>
    %111 = arith.addf %109, %110 : vector<16x32xf32>
    %112 = arith.addf %1, %111 : vector<16x32xf32>
    %c0_38 = arith.constant 0 : index
    %c0_39 = arith.constant 0 : index
    %c0_40 = arith.constant 0 : index
    %113 = vector.load %arg6[%c0_38, %c0_39, %c0_40] : memref<2x1x32xf32, #tpu.memory_space<vmem>>, vector<1x1x32xf32>
    %114 = vector.shape_cast %113 : vector<1x1x32xf32> to vector<1x32xf32>
    %c0_41 = arith.constant 0 : index
    %c0_42 = arith.constant 0 : index
    %c0_43 = arith.constant 0 : index
    %115 = vector.load %arg7[%c0_41, %c0_42, %c0_43] : memref<2x1x32xf32, #tpu.memory_space<vmem>>, vector<1x1x32xf32>
    %116 = vector.shape_cast %115 : vector<1x1x32xf32> to vector<1x32xf32>
    %cst_44 = arith.constant dense<0.000000e+00> : vector<16xf32>
    %117 = vector.multi_reduction <add>, %112, %cst_44 [1] : vector<16x32xf32> to vector<16xf32>
    %118 = vector.shape_cast %117 : vector<16xf32> to vector<16x1xf32>
    %cst_45 = arith.constant 3.200000e+01 : f32
    %119 = vector.broadcast %cst_45 : f32 to vector<16x1xf32>
    %120 = arith.divf %118, %119 : vector<16x1xf32>
    %121 = vector.broadcast %120 : vector<16x1xf32> to vector<16x32xf32>
    %122 = arith.subf %112, %121 : vector<16x32xf32>
    %123 = arith.mulf %122, %122 : vector<16x32xf32>
    %cst_46 = arith.constant dense<0.000000e+00> : vector<16xf32>
    %124 = vector.multi_reduction <add>, %123, %cst_46 [1] : vector<16x32xf32> to vector<16xf32>
    %125 = vector.shape_cast %124 : vector<16xf32> to vector<16x1xf32>
    %cst_47 = arith.constant 3.200000e+01 : f32
    %126 = vector.broadcast %cst_47 : f32 to vector<16x1xf32>
    %127 = arith.divf %125, %126 : vector<16x1xf32>
    %128 = vector.broadcast %120 : vector<16x1xf32> to vector<16x32xf32>
    %129 = arith.subf %112, %128 : vector<16x32xf32>
    %cst_48 = arith.constant 9.99999974E-6 : f32
    %130 = vector.broadcast %cst_48 : f32 to vector<16x1xf32>
    %131 = arith.addf %127, %130 : vector<16x1xf32>
    %132 = math.rsqrt %131 : vector<16x1xf32>
    %133 = vector.broadcast %132 : vector<16x1xf32> to vector<16x32xf32>
    %134 = arith.mulf %129, %133 : vector<16x32xf32>
    %135 = vector.broadcast %114 : vector<1x32xf32> to vector<16x32xf32>
    %136 = arith.mulf %134, %135 : vector<16x32xf32>
    %137 = vector.broadcast %116 : vector<1x32xf32> to vector<16x32xf32>
    %138 = arith.addf %136, %137 : vector<16x32xf32>
    %c0_49 = arith.constant 0 : index
    %c0_50 = arith.constant 0 : index
    %c0_51 = arith.constant 0 : index
    %139 = vector.load %arg8[%c0_49, %c0_50, %c0_51] : memref<2x32x64xf32, #tpu.memory_space<vmem>>, vector<1x32x64xf32>
    %140 = vector.shape_cast %139 : vector<1x32x64xf32> to vector<32x64xf32>
    %c0_52 = arith.constant 0 : index
    %c0_53 = arith.constant 0 : index
    %c0_54 = arith.constant 0 : index
    %141 = vector.load %arg9[%c0_52, %c0_53, %c0_54] : memref<2x1x64xf32, #tpu.memory_space<vmem>>, vector<1x1x64xf32>
    %142 = vector.shape_cast %141 : vector<1x1x64xf32> to vector<1x64xf32>
    %c0_55 = arith.constant 0 : index
    %c0_56 = arith.constant 0 : index
    %c0_57 = arith.constant 0 : index
    %143 = vector.load %arg10[%c0_55, %c0_56, %c0_57] : memref<2x64x32xf32, #tpu.memory_space<vmem>>, vector<1x64x32xf32>
    %144 = vector.shape_cast %143 : vector<1x64x32xf32> to vector<64x32xf32>
    %c0_58 = arith.constant 0 : index
    %c0_59 = arith.constant 0 : index
    %c0_60 = arith.constant 0 : index
    %145 = vector.load %arg11[%c0_58, %c0_59, %c0_60] : memref<2x1x32xf32, #tpu.memory_space<vmem>>, vector<1x1x32xf32>
    %146 = vector.shape_cast %145 : vector<1x1x32xf32> to vector<1x32xf32>
    %cst_61 = arith.constant dense<0.000000e+00> : vector<16x64xf32>
    %147 = tpu.matmul %138, %140, %cst_61 {dimension_numbers = #tpu.dot_dimension_numbers<[1], [0], [0], [1], [0, 0, 1, 1], [], []>} : vector<16x32xf32>, vector<32x64xf32>, vector<16x64xf32> -> vector<16x64xf32>
    %148 = vector.broadcast %142 : vector<1x64xf32> to vector<16x64xf32>
    %149 = arith.addf %147, %148 : vector<16x64xf32>
    %cst_62 = arith.constant 0.000000e+00 : f32
    %150 = vector.broadcast %cst_62 : f32 to vector<16x64xf32>
    %151 = arith.maximumf %149, %150 : vector<16x64xf32>
    %cst_63 = arith.constant dense<0.000000e+00> : vector<16x32xf32>
    %152 = tpu.matmul %151, %144, %cst_63 {dimension_numbers = #tpu.dot_dimension_numbers<[1], [0], [0], [1], [0, 0, 1, 1], [], []>} : vector<16x64xf32>, vector<64x32xf32>, vector<16x32xf32> -> vector<16x32xf32>
    %153 = vector.broadcast %146 : vector<1x32xf32> to vector<16x32xf32>
    %154 = arith.addf %152, %153 : vector<16x32xf32>
    %155 = arith.addf %138, %154 : vector<16x32xf32>
    %c0_64 = arith.constant 0 : index
    %c0_65 = arith.constant 0 : index
    %c0_66 = arith.constant 0 : index
    %156 = vector.load %arg12[%c0_64, %c0_65, %c0_66] : memref<2x1x32xf32, #tpu.memory_space<vmem>>, vector<1x1x32xf32>
    %157 = vector.shape_cast %156 : vector<1x1x32xf32> to vector<1x32xf32>
    %c0_67 = arith.constant 0 : index
    %c0_68 = arith.constant 0 : index
    %c0_69 = arith.constant 0 : index
    %158 = vector.load %arg13[%c0_67, %c0_68, %c0_69] : memref<2x1x32xf32, #tpu.memory_space<vmem>>, vector<1x1x32xf32>
    %159 = vector.shape_cast %158 : vector<1x1x32xf32> to vector<1x32xf32>
    %cst_70 = arith.constant dense<0.000000e+00> : vector<16xf32>
    %160 = vector.multi_reduction <add>, %155, %cst_70 [1] : vector<16x32xf32> to vector<16xf32>
    %161 = vector.shape_cast %160 : vector<16xf32> to vector<16x1xf32>
    %cst_71 = arith.constant 3.200000e+01 : f32
    %162 = vector.broadcast %cst_71 : f32 to vector<16x1xf32>
    %163 = arith.divf %161, %162 : vector<16x1xf32>
    %164 = vector.broadcast %163 : vector<16x1xf32> to vector<16x32xf32>
    %165 = arith.subf %155, %164 : vector<16x32xf32>
    %166 = arith.mulf %165, %165 : vector<16x32xf32>
    %cst_72 = arith.constant dense<0.000000e+00> : vector<16xf32>
    %167 = vector.multi_reduction <add>, %166, %cst_72 [1] : vector<16x32xf32> to vector<16xf32>
    %168 = vector.shape_cast %167 : vector<16xf32> to vector<16x1xf32>
    %cst_73 = arith.constant 3.200000e+01 : f32
    %169 = vector.broadcast %cst_73 : f32 to vector<16x1xf32>
    %170 = arith.divf %168, %169 : vector<16x1xf32>
    %171 = vector.broadcast %163 : vector<16x1xf32> to vector<16x32xf32>
    %172 = arith.subf %155, %171 : vector<16x32xf32>
    %cst_74 = arith.constant 9.99999974E-6 : f32
    %173 = vector.broadcast %cst_74 : f32 to vector<16x1xf32>
    %174 = arith.addf %170, %173 : vector<16x1xf32>
    %175 = math.rsqrt %174 : vector<16x1xf32>
    %176 = vector.broadcast %175 : vector<16x1xf32> to vector<16x32xf32>
    %177 = arith.mulf %172, %176 : vector<16x32xf32>
    %178 = vector.broadcast %157 : vector<1x32xf32> to vector<16x32xf32>
    %179 = arith.mulf %177, %178 : vector<16x32xf32>
    %180 = vector.broadcast %159 : vector<1x32xf32> to vector<16x32xf32>
    %181 = arith.addf %179, %180 : vector<16x32xf32>
    %c1 = arith.constant 1 : index
    %c0_75 = arith.constant 0 : index
    %c0_76 = arith.constant 0 : index
    %182 = vector.load %arg2[%c1, %c0_75, %c0_76] : memref<2x32x96xf32, #tpu.memory_space<vmem>>, vector<1x32x96xf32>
    %183 = vector.shape_cast %182 : vector<1x32x96xf32> to vector<32x96xf32>
    %cst_77 = arith.constant dense<0.000000e+00> : vector<16x96xf32>
    %184 = tpu.matmul %181, %183, %cst_77 {dimension_numbers = #tpu.dot_dimension_numbers<[1], [0], [0], [1], [0, 0, 1, 1], [], []>} : vector<16x32xf32>, vector<32x96xf32>, vector<16x96xf32> -> vector<16x96xf32>
    %c1_78 = arith.constant 1 : index
    %c0_79 = arith.constant 0 : index
    %c0_80 = arith.constant 0 : index
    %185 = vector.load %arg3[%c1_78, %c0_79, %c0_80] : memref<2x1x96xf32, #tpu.memory_space<vmem>>, vector<1x1x96xf32>
    %186 = vector.shape_cast %185 : vector<1x1x96xf32> to vector<1x96xf32>
    %187 = vector.broadcast %186 : vector<1x96xf32> to vector<16x96xf32>
    %188 = arith.addf %184, %187 : vector<16x96xf32>
    %189 = vector.extract_strided_slice %188 {offsets = [0, 0], sizes = [16, 32], strides = [1, 1]} : vector<16x96xf32> to vector<16x32xf32>
    %190 = vector.extract_strided_slice %188 {offsets = [0, 32], sizes = [16, 64], strides = [1, 1]} : vector<16x96xf32> to vector<16x64xf32>
    %c1_81 = arith.constant 1 : index
    %c0_82 = arith.constant 0 : index
    %c0_83 = arith.constant 0 : index
    %191 = vector.load %arg4[%c1_81, %c0_82, %c0_83] : memref<2x32x32xf32, #tpu.memory_space<vmem>>, vector<1x32x32xf32>
    %192 = vector.shape_cast %191 : vector<1x32x32xf32> to vector<32x32xf32>
    %c1_84 = arith.constant 1 : index
    %c0_85 = arith.constant 0 : index
    %c0_86 = arith.constant 0 : index
    %193 = vector.load %arg5[%c1_84, %c0_85, %c0_86] : memref<2x1x32xf32, #tpu.memory_space<vmem>>, vector<1x1x32xf32>
    %194 = vector.shape_cast %193 : vector<1x1x32xf32> to vector<1x32xf32>
    %195 = vector.extract_strided_slice %189 {offsets = [0, 0], sizes = [16, 8], strides = [1, 1]} : vector<16x32xf32> to vector<16x8xf32>
    %196 = vector.shape_cast %195 : vector<16x8xf32> to vector<2x8x8xf32>
    %197 = vector.extract_strided_slice %190 {offsets = [0, 0], sizes = [16, 8], strides = [1, 1]} : vector<16x64xf32> to vector<16x8xf32>
    %198 = vector.shape_cast %197 : vector<16x8xf32> to vector<2x8x8xf32>
    %199 = vector.extract_strided_slice %190 {offsets = [0, 32], sizes = [16, 8], strides = [1, 1]} : vector<16x64xf32> to vector<16x8xf32>
    %200 = vector.shape_cast %199 : vector<16x8xf32> to vector<2x8x8xf32>
    "tpu.trace_start"() <{level = 10 : i32, message = "bqd,bkd->bqk"}> : () -> ()
    %cst_87 = arith.constant dense<0.000000e+00> : vector<2x8x8xf32>
    %201 = tpu.matmul %196, %198, %cst_87 {dimension_numbers = #tpu.dot_dimension_numbers<[2], [2], [1], [1], [0, 0, 0, 1, 1, 1], [0], [0]>} : vector<2x8x8xf32>, vector<2x8x8xf32>, vector<2x8x8xf32> -> vector<2x8x8xf32>
    "tpu.trace_stop"() : () -> ()
    %cst_88 = arith.constant 0.353553385 : f32
    %202 = vector.broadcast %cst_88 : f32 to vector<2x8x8xf32>
    %203 = arith.mulf %201, %202 : vector<2x8x8xf32>
    %cst_89 = arith.constant dense<0xFF800000> : vector<2x8xf32>
    %204 = vector.multi_reduction <maximumf>, %203, %cst_89 [2] : vector<2x8x8xf32> to vector<2x8xf32>
    %205 = vector.shape_cast %204 : vector<2x8xf32> to vector<2x8x1xf32>
    %206 = vector.broadcast %205 : vector<2x8x1xf32> to vector<2x8x8xf32>
    %207 = arith.subf %203, %206 : vector<2x8x8xf32>
    %208 = math.exp %207 : vector<2x8x8xf32>
    %cst_90 = arith.constant dense<0.000000e+00> : vector<2x8xf32>
    %209 = vector.multi_reduction <add>, %208, %cst_90 [2] : vector<2x8x8xf32> to vector<2x8xf32>
    %210 = vector.shape_cast %209 : vector<2x8xf32> to vector<2x8x1xf32>
    %211 = tpu.reciprocal %210 {approx = true} : vector<2x8x1xf32> -> vector<2x8x1xf32>
    %212 = vector.broadcast %211 : vector<2x8x1xf32> to vector<2x8x8xf32>
    %213 = arith.mulf %208, %212 : vector<2x8x8xf32>
    "tpu.trace_start"() <{level = 10 : i32, message = "bqk,bkd->bqd"}> : () -> ()
    %cst_91 = arith.constant dense<0.000000e+00> : vector<2x8x8xf32>
    %214 = tpu.matmul %213, %200, %cst_91 {dimension_numbers = #tpu.dot_dimension_numbers<[2], [1], [1], [2], [0, 0, 0, 1, 1, 2], [0], [0]>} : vector<2x8x8xf32>, vector<2x8x8xf32>, vector<2x8x8xf32> -> vector<2x8x8xf32>
    "tpu.trace_stop"() : () -> ()
    %215 = vector.shape_cast %214 : vector<2x8x8xf32> to vector<16x8xf32>
    %216 = vector.extract_strided_slice %192 {offsets = [0, 0], sizes = [8, 32], strides = [1, 1]} : vector<32x32xf32> to vector<8x32xf32>
    %cst_92 = arith.constant dense<0.000000e+00> : vector<16x32xf32>
    %217 = tpu.matmul %215, %216, %cst_92 {dimension_numbers = #tpu.dot_dimension_numbers<[1], [0], [0], [1], [0, 0, 1, 1], [], []>} : vector<16x8xf32>, vector<8x32xf32>, vector<16x32xf32> -> vector<16x32xf32>
    %218 = vector.extract_strided_slice %189 {offsets = [0, 8], sizes = [16, 8], strides = [1, 1]} : vector<16x32xf32> to vector<16x8xf32>
    %219 = vector.shape_cast %218 : vector<16x8xf32> to vector<2x8x8xf32>
    %220 = vector.extract_strided_slice %190 {offsets = [0, 8], sizes = [16, 8], strides = [1, 1]} : vector<16x64xf32> to vector<16x8xf32>
    %221 = vector.shape_cast %220 : vector<16x8xf32> to vector<2x8x8xf32>
    %222 = vector.extract_strided_slice %190 {offsets = [0, 40], sizes = [16, 8], strides = [1, 1]} : vector<16x64xf32> to vector<16x8xf32>
    %223 = vector.shape_cast %222 : vector<16x8xf32> to vector<2x8x8xf32>
    "tpu.trace_start"() <{level = 10 : i32, message = "bqd,bkd->bqk"}> : () -> ()
    %cst_93 = arith.constant dense<0.000000e+00> : vector<2x8x8xf32>
    %224 = tpu.matmul %219, %221, %cst_93 {dimension_numbers = #tpu.dot_dimension_numbers<[2], [2], [1], [1], [0, 0, 0, 1, 1, 1], [0], [0]>} : vector<2x8x8xf32>, vector<2x8x8xf32>, vector<2x8x8xf32> -> vector<2x8x8xf32>
    "tpu.trace_stop"() : () -> ()
    %cst_94 = arith.constant 0.353553385 : f32
    %225 = vector.broadcast %cst_94 : f32 to vector<2x8x8xf32>
    %226 = arith.mulf %224, %225 : vector<2x8x8xf32>
    %cst_95 = arith.constant dense<0xFF800000> : vector<2x8xf32>
    %227 = vector.multi_reduction <maximumf>, %226, %cst_95 [2] : vector<2x8x8xf32> to vector<2x8xf32>
    %228 = vector.shape_cast %227 : vector<2x8xf32> to vector<2x8x1xf32>
    %229 = vector.broadcast %228 : vector<2x8x1xf32> to vector<2x8x8xf32>
    %230 = arith.subf %226, %229 : vector<2x8x8xf32>
    %231 = math.exp %230 : vector<2x8x8xf32>
    %cst_96 = arith.constant dense<0.000000e+00> : vector<2x8xf32>
    %232 = vector.multi_reduction <add>, %231, %cst_96 [2] : vector<2x8x8xf32> to vector<2x8xf32>
    %233 = vector.shape_cast %232 : vector<2x8xf32> to vector<2x8x1xf32>
    %234 = tpu.reciprocal %233 {approx = true} : vector<2x8x1xf32> -> vector<2x8x1xf32>
    %235 = vector.broadcast %234 : vector<2x8x1xf32> to vector<2x8x8xf32>
    %236 = arith.mulf %231, %235 : vector<2x8x8xf32>
    "tpu.trace_start"() <{level = 10 : i32, message = "bqk,bkd->bqd"}> : () -> ()
    %cst_97 = arith.constant dense<0.000000e+00> : vector<2x8x8xf32>
    %237 = tpu.matmul %236, %223, %cst_97 {dimension_numbers = #tpu.dot_dimension_numbers<[2], [1], [1], [2], [0, 0, 0, 1, 1, 2], [0], [0]>} : vector<2x8x8xf32>, vector<2x8x8xf32>, vector<2x8x8xf32> -> vector<2x8x8xf32>
    "tpu.trace_stop"() : () -> ()
    %238 = vector.shape_cast %237 : vector<2x8x8xf32> to vector<16x8xf32>
    %239 = vector.extract_strided_slice %192 {offsets = [8, 0], sizes = [8, 32], strides = [1, 1]} : vector<32x32xf32> to vector<8x32xf32>
    %cst_98 = arith.constant dense<0.000000e+00> : vector<16x32xf32>
    %240 = tpu.matmul %238, %239, %cst_98 {dimension_numbers = #tpu.dot_dimension_numbers<[1], [0], [0], [1], [0, 0, 1, 1], [], []>} : vector<16x8xf32>, vector<8x32xf32>, vector<16x32xf32> -> vector<16x32xf32>
    %241 = arith.addf %217, %240 : vector<16x32xf32>
    %242 = vector.extract_strided_slice %189 {offsets = [0, 16], sizes = [16, 8], strides = [1, 1]} : vector<16x32xf32> to vector<16x8xf32>
    %243 = vector.shape_cast %242 : vector<16x8xf32> to vector<2x8x8xf32>
    %244 = vector.extract_strided_slice %190 {offsets = [0, 16], sizes = [16, 8], strides = [1, 1]} : vector<16x64xf32> to vector<16x8xf32>
    %245 = vector.shape_cast %244 : vector<16x8xf32> to vector<2x8x8xf32>
    %246 = vector.extract_strided_slice %190 {offsets = [0, 48], sizes = [16, 8], strides = [1, 1]} : vector<16x64xf32> to vector<16x8xf32>
    %247 = vector.shape_cast %246 : vector<16x8xf32> to vector<2x8x8xf32>
    "tpu.trace_start"() <{level = 10 : i32, message = "bqd,bkd->bqk"}> : () -> ()
    %cst_99 = arith.constant dense<0.000000e+00> : vector<2x8x8xf32>
    %248 = tpu.matmul %243, %245, %cst_99 {dimension_numbers = #tpu.dot_dimension_numbers<[2], [2], [1], [1], [0, 0, 0, 1, 1, 1], [0], [0]>} : vector<2x8x8xf32>, vector<2x8x8xf32>, vector<2x8x8xf32> -> vector<2x8x8xf32>
    "tpu.trace_stop"() : () -> ()
    %cst_100 = arith.constant 0.353553385 : f32
    %249 = vector.broadcast %cst_100 : f32 to vector<2x8x8xf32>
    %250 = arith.mulf %248, %249 : vector<2x8x8xf32>
    %cst_101 = arith.constant dense<0xFF800000> : vector<2x8xf32>
    %251 = vector.multi_reduction <maximumf>, %250, %cst_101 [2] : vector<2x8x8xf32> to vector<2x8xf32>
    %252 = vector.shape_cast %251 : vector<2x8xf32> to vector<2x8x1xf32>
    %253 = vector.broadcast %252 : vector<2x8x1xf32> to vector<2x8x8xf32>
    %254 = arith.subf %250, %253 : vector<2x8x8xf32>
    %255 = math.exp %254 : vector<2x8x8xf32>
    %cst_102 = arith.constant dense<0.000000e+00> : vector<2x8xf32>
    %256 = vector.multi_reduction <add>, %255, %cst_102 [2] : vector<2x8x8xf32> to vector<2x8xf32>
    %257 = vector.shape_cast %256 : vector<2x8xf32> to vector<2x8x1xf32>
    %258 = tpu.reciprocal %257 {approx = true} : vector<2x8x1xf32> -> vector<2x8x1xf32>
    %259 = vector.broadcast %258 : vector<2x8x1xf32> to vector<2x8x8xf32>
    %260 = arith.mulf %255, %259 : vector<2x8x8xf32>
    "tpu.trace_start"() <{level = 10 : i32, message = "bqk,bkd->bqd"}> : () -> ()
    %cst_103 = arith.constant dense<0.000000e+00> : vector<2x8x8xf32>
    %261 = tpu.matmul %260, %247, %cst_103 {dimension_numbers = #tpu.dot_dimension_numbers<[2], [1], [1], [2], [0, 0, 0, 1, 1, 2], [0], [0]>} : vector<2x8x8xf32>, vector<2x8x8xf32>, vector<2x8x8xf32> -> vector<2x8x8xf32>
    "tpu.trace_stop"() : () -> ()
    %262 = vector.shape_cast %261 : vector<2x8x8xf32> to vector<16x8xf32>
    %263 = vector.extract_strided_slice %192 {offsets = [16, 0], sizes = [8, 32], strides = [1, 1]} : vector<32x32xf32> to vector<8x32xf32>
    %cst_104 = arith.constant dense<0.000000e+00> : vector<16x32xf32>
    %264 = tpu.matmul %262, %263, %cst_104 {dimension_numbers = #tpu.dot_dimension_numbers<[1], [0], [0], [1], [0, 0, 1, 1], [], []>} : vector<16x8xf32>, vector<8x32xf32>, vector<16x32xf32> -> vector<16x32xf32>
    %265 = arith.addf %241, %264 : vector<16x32xf32>
    %266 = vector.extract_strided_slice %189 {offsets = [0, 24], sizes = [16, 8], strides = [1, 1]} : vector<16x32xf32> to vector<16x8xf32>
    %267 = vector.shape_cast %266 : vector<16x8xf32> to vector<2x8x8xf32>
    %268 = vector.extract_strided_slice %190 {offsets = [0, 24], sizes = [16, 8], strides = [1, 1]} : vector<16x64xf32> to vector<16x8xf32>
    %269 = vector.shape_cast %268 : vector<16x8xf32> to vector<2x8x8xf32>
    %270 = vector.extract_strided_slice %190 {offsets = [0, 56], sizes = [16, 8], strides = [1, 1]} : vector<16x64xf32> to vector<16x8xf32>
    %271 = vector.shape_cast %270 : vector<16x8xf32> to vector<2x8x8xf32>
    "tpu.trace_start"() <{level = 10 : i32, message = "bqd,bkd->bqk"}> : () -> ()
    %cst_105 = arith.constant dense<0.000000e+00> : vector<2x8x8xf32>
    %272 = tpu.matmul %267, %269, %cst_105 {dimension_numbers = #tpu.dot_dimension_numbers<[2], [2], [1], [1], [0, 0, 0, 1, 1, 1], [0], [0]>} : vector<2x8x8xf32>, vector<2x8x8xf32>, vector<2x8x8xf32> -> vector<2x8x8xf32>
    "tpu.trace_stop"() : () -> ()
    %cst_106 = arith.constant 0.353553385 : f32
    %273 = vector.broadcast %cst_106 : f32 to vector<2x8x8xf32>
    %274 = arith.mulf %272, %273 : vector<2x8x8xf32>
    %cst_107 = arith.constant dense<0xFF800000> : vector<2x8xf32>
    %275 = vector.multi_reduction <maximumf>, %274, %cst_107 [2] : vector<2x8x8xf32> to vector<2x8xf32>
    %276 = vector.shape_cast %275 : vector<2x8xf32> to vector<2x8x1xf32>
    %277 = vector.broadcast %276 : vector<2x8x1xf32> to vector<2x8x8xf32>
    %278 = arith.subf %274, %277 : vector<2x8x8xf32>
    %279 = math.exp %278 : vector<2x8x8xf32>
    %cst_108 = arith.constant dense<0.000000e+00> : vector<2x8xf32>
    %280 = vector.multi_reduction <add>, %279, %cst_108 [2] : vector<2x8x8xf32> to vector<2x8xf32>
    %281 = vector.shape_cast %280 : vector<2x8xf32> to vector<2x8x1xf32>
    %282 = tpu.reciprocal %281 {approx = true} : vector<2x8x1xf32> -> vector<2x8x1xf32>
    %283 = vector.broadcast %282 : vector<2x8x1xf32> to vector<2x8x8xf32>
    %284 = arith.mulf %279, %283 : vector<2x8x8xf32>
    "tpu.trace_start"() <{level = 10 : i32, message = "bqk,bkd->bqd"}> : () -> ()
    %cst_109 = arith.constant dense<0.000000e+00> : vector<2x8x8xf32>
    %285 = tpu.matmul %284, %271, %cst_109 {dimension_numbers = #tpu.dot_dimension_numbers<[2], [1], [1], [2], [0, 0, 0, 1, 1, 2], [0], [0]>} : vector<2x8x8xf32>, vector<2x8x8xf32>, vector<2x8x8xf32> -> vector<2x8x8xf32>
    "tpu.trace_stop"() : () -> ()
    %286 = vector.shape_cast %285 : vector<2x8x8xf32> to vector<16x8xf32>
    %287 = vector.extract_strided_slice %192 {offsets = [24, 0], sizes = [8, 32], strides = [1, 1]} : vector<32x32xf32> to vector<8x32xf32>
    %cst_110 = arith.constant dense<0.000000e+00> : vector<16x32xf32>
    %288 = tpu.matmul %286, %287, %cst_110 {dimension_numbers = #tpu.dot_dimension_numbers<[1], [0], [0], [1], [0, 0, 1, 1], [], []>} : vector<16x8xf32>, vector<8x32xf32>, vector<16x32xf32> -> vector<16x32xf32>
    %289 = arith.addf %265, %288 : vector<16x32xf32>
    %290 = vector.broadcast %194 : vector<1x32xf32> to vector<16x32xf32>
    %291 = arith.addf %289, %290 : vector<16x32xf32>
    %292 = arith.addf %181, %291 : vector<16x32xf32>
    %c1_111 = arith.constant 1 : index
    %c0_112 = arith.constant 0 : index
    %c0_113 = arith.constant 0 : index
    %293 = vector.load %arg6[%c1_111, %c0_112, %c0_113] : memref<2x1x32xf32, #tpu.memory_space<vmem>>, vector<1x1x32xf32>
    %294 = vector.shape_cast %293 : vector<1x1x32xf32> to vector<1x32xf32>
    %c1_114 = arith.constant 1 : index
    %c0_115 = arith.constant 0 : index
    %c0_116 = arith.constant 0 : index
    %295 = vector.load %arg7[%c1_114, %c0_115, %c0_116] : memref<2x1x32xf32, #tpu.memory_space<vmem>>, vector<1x1x32xf32>
    %296 = vector.shape_cast %295 : vector<1x1x32xf32> to vector<1x32xf32>
    %cst_117 = arith.constant dense<0.000000e+00> : vector<16xf32>
    %297 = vector.multi_reduction <add>, %292, %cst_117 [1] : vector<16x32xf32> to vector<16xf32>
    %298 = vector.shape_cast %297 : vector<16xf32> to vector<16x1xf32>
    %cst_118 = arith.constant 3.200000e+01 : f32
    %299 = vector.broadcast %cst_118 : f32 to vector<16x1xf32>
    %300 = arith.divf %298, %299 : vector<16x1xf32>
    %301 = vector.broadcast %300 : vector<16x1xf32> to vector<16x32xf32>
    %302 = arith.subf %292, %301 : vector<16x32xf32>
    %303 = arith.mulf %302, %302 : vector<16x32xf32>
    %cst_119 = arith.constant dense<0.000000e+00> : vector<16xf32>
    %304 = vector.multi_reduction <add>, %303, %cst_119 [1] : vector<16x32xf32> to vector<16xf32>
    %305 = vector.shape_cast %304 : vector<16xf32> to vector<16x1xf32>
    %cst_120 = arith.constant 3.200000e+01 : f32
    %306 = vector.broadcast %cst_120 : f32 to vector<16x1xf32>
    %307 = arith.divf %305, %306 : vector<16x1xf32>
    %308 = vector.broadcast %300 : vector<16x1xf32> to vector<16x32xf32>
    %309 = arith.subf %292, %308 : vector<16x32xf32>
    %cst_121 = arith.constant 9.99999974E-6 : f32
    %310 = vector.broadcast %cst_121 : f32 to vector<16x1xf32>
    %311 = arith.addf %307, %310 : vector<16x1xf32>
    %312 = math.rsqrt %311 : vector<16x1xf32>
    %313 = vector.broadcast %312 : vector<16x1xf32> to vector<16x32xf32>
    %314 = arith.mulf %309, %313 : vector<16x32xf32>
    %315 = vector.broadcast %294 : vector<1x32xf32> to vector<16x32xf32>
    %316 = arith.mulf %314, %315 : vector<16x32xf32>
    %317 = vector.broadcast %296 : vector<1x32xf32> to vector<16x32xf32>
    %318 = arith.addf %316, %317 : vector<16x32xf32>
    %c1_122 = arith.constant 1 : index
    %c0_123 = arith.constant 0 : index
    %c0_124 = arith.constant 0 : index
    %319 = vector.load %arg8[%c1_122, %c0_123, %c0_124] : memref<2x32x64xf32, #tpu.memory_space<vmem>>, vector<1x32x64xf32>
    %320 = vector.shape_cast %319 : vector<1x32x64xf32> to vector<32x64xf32>
    %c1_125 = arith.constant 1 : index
    %c0_126 = arith.constant 0 : index
    %c0_127 = arith.constant 0 : index
    %321 = vector.load %arg9[%c1_125, %c0_126, %c0_127] : memref<2x1x64xf32, #tpu.memory_space<vmem>>, vector<1x1x64xf32>
    %322 = vector.shape_cast %321 : vector<1x1x64xf32> to vector<1x64xf32>
    %c1_128 = arith.constant 1 : index
    %c0_129 = arith.constant 0 : index
    %c0_130 = arith.constant 0 : index
    %323 = vector.load %arg10[%c1_128, %c0_129, %c0_130] : memref<2x64x32xf32, #tpu.memory_space<vmem>>, vector<1x64x32xf32>
    %324 = vector.shape_cast %323 : vector<1x64x32xf32> to vector<64x32xf32>
    %c1_131 = arith.constant 1 : index
    %c0_132 = arith.constant 0 : index
    %c0_133 = arith.constant 0 : index
    %325 = vector.load %arg11[%c1_131, %c0_132, %c0_133] : memref<2x1x32xf32, #tpu.memory_space<vmem>>, vector<1x1x32xf32>
    %326 = vector.shape_cast %325 : vector<1x1x32xf32> to vector<1x32xf32>
    %cst_134 = arith.constant dense<0.000000e+00> : vector<16x64xf32>
    %327 = tpu.matmul %318, %320, %cst_134 {dimension_numbers = #tpu.dot_dimension_numbers<[1], [0], [0], [1], [0, 0, 1, 1], [], []>} : vector<16x32xf32>, vector<32x64xf32>, vector<16x64xf32> -> vector<16x64xf32>
    %328 = vector.broadcast %322 : vector<1x64xf32> to vector<16x64xf32>
    %329 = arith.addf %327, %328 : vector<16x64xf32>
    %cst_135 = arith.constant 0.000000e+00 : f32
    %330 = vector.broadcast %cst_135 : f32 to vector<16x64xf32>
    %331 = arith.maximumf %329, %330 : vector<16x64xf32>
    %cst_136 = arith.constant dense<0.000000e+00> : vector<16x32xf32>
    %332 = tpu.matmul %331, %324, %cst_136 {dimension_numbers = #tpu.dot_dimension_numbers<[1], [0], [0], [1], [0, 0, 1, 1], [], []>} : vector<16x64xf32>, vector<64x32xf32>, vector<16x32xf32> -> vector<16x32xf32>
    %333 = vector.broadcast %326 : vector<1x32xf32> to vector<16x32xf32>
    %334 = arith.addf %332, %333 : vector<16x32xf32>
    %335 = arith.addf %318, %334 : vector<16x32xf32>
    %c1_137 = arith.constant 1 : index
    %c0_138 = arith.constant 0 : index
    %c0_139 = arith.constant 0 : index
    %336 = vector.load %arg12[%c1_137, %c0_138, %c0_139] : memref<2x1x32xf32, #tpu.memory_space<vmem>>, vector<1x1x32xf32>
    %337 = vector.shape_cast %336 : vector<1x1x32xf32> to vector<1x32xf32>
    %c1_140 = arith.constant 1 : index
    %c0_141 = arith.constant 0 : index
    %c0_142 = arith.constant 0 : index
    %338 = vector.load %arg13[%c1_140, %c0_141, %c0_142] : memref<2x1x32xf32, #tpu.memory_space<vmem>>, vector<1x1x32xf32>
    %339 = vector.shape_cast %338 : vector<1x1x32xf32> to vector<1x32xf32>
    %cst_143 = arith.constant dense<0.000000e+00> : vector<16xf32>
    %340 = vector.multi_reduction <add>, %335, %cst_143 [1] : vector<16x32xf32> to vector<16xf32>
    %341 = vector.shape_cast %340 : vector<16xf32> to vector<16x1xf32>
    %cst_144 = arith.constant 3.200000e+01 : f32
    %342 = vector.broadcast %cst_144 : f32 to vector<16x1xf32>
    %343 = arith.divf %341, %342 : vector<16x1xf32>
    %344 = vector.broadcast %343 : vector<16x1xf32> to vector<16x32xf32>
    %345 = arith.subf %335, %344 : vector<16x32xf32>
    %346 = arith.mulf %345, %345 : vector<16x32xf32>
    %cst_145 = arith.constant dense<0.000000e+00> : vector<16xf32>
    %347 = vector.multi_reduction <add>, %346, %cst_145 [1] : vector<16x32xf32> to vector<16xf32>
    %348 = vector.shape_cast %347 : vector<16xf32> to vector<16x1xf32>
    %cst_146 = arith.constant 3.200000e+01 : f32
    %349 = vector.broadcast %cst_146 : f32 to vector<16x1xf32>
    %350 = arith.divf %348, %349 : vector<16x1xf32>
    %351 = vector.broadcast %343 : vector<16x1xf32> to vector<16x32xf32>
    %352 = arith.subf %335, %351 : vector<16x32xf32>
    %cst_147 = arith.constant 9.99999974E-6 : f32
    %353 = vector.broadcast %cst_147 : f32 to vector<16x1xf32>
    %354 = arith.addf %350, %353 : vector<16x1xf32>
    %355 = math.rsqrt %354 : vector<16x1xf32>
    %356 = vector.broadcast %355 : vector<16x1xf32> to vector<16x32xf32>
    %357 = arith.mulf %352, %356 : vector<16x32xf32>
    %358 = vector.broadcast %337 : vector<1x32xf32> to vector<16x32xf32>
    %359 = arith.mulf %357, %358 : vector<16x32xf32>
    %360 = vector.broadcast %339 : vector<1x32xf32> to vector<16x32xf32>
    %361 = arith.addf %359, %360 : vector<16x32xf32>
    %c0_148 = arith.constant 0 : index
    %c0_149 = arith.constant 0 : index
    %362 = vector.load %arg34[%c0_148, %c0_149] : memref<1x32xf32, #tpu.memory_space<vmem>>, vector<1x32xf32>
    %c0_150 = arith.constant 0 : index
    %c0_151 = arith.constant 0 : index
    %363 = vector.load %arg35[%c0_150, %c0_151] : memref<1x32xf32, #tpu.memory_space<vmem>>, vector<1x32xf32>
    %cst_152 = arith.constant dense<0.000000e+00> : vector<16xf32>
    %364 = vector.multi_reduction <add>, %361, %cst_152 [1] : vector<16x32xf32> to vector<16xf32>
    %365 = vector.shape_cast %364 : vector<16xf32> to vector<16x1xf32>
    %cst_153 = arith.constant 3.200000e+01 : f32
    %366 = vector.broadcast %cst_153 : f32 to vector<16x1xf32>
    %367 = arith.divf %365, %366 : vector<16x1xf32>
    %368 = vector.broadcast %367 : vector<16x1xf32> to vector<16x32xf32>
    %369 = arith.subf %361, %368 : vector<16x32xf32>
    %370 = arith.mulf %369, %369 : vector<16x32xf32>
    %cst_154 = arith.constant dense<0.000000e+00> : vector<16xf32>
    %371 = vector.multi_reduction <add>, %370, %cst_154 [1] : vector<16x32xf32> to vector<16xf32>
    %372 = vector.shape_cast %371 : vector<16xf32> to vector<16x1xf32>
    %cst_155 = arith.constant 3.200000e+01 : f32
    %373 = vector.broadcast %cst_155 : f32 to vector<16x1xf32>
    %374 = arith.divf %372, %373 : vector<16x1xf32>
    %375 = vector.broadcast %367 : vector<16x1xf32> to vector<16x32xf32>
    %376 = arith.subf %361, %375 : vector<16x32xf32>
    %cst_156 = arith.constant 9.99999974E-6 : f32
    %377 = vector.broadcast %cst_156 : f32 to vector<16x1xf32>
    %378 = arith.addf %374, %377 : vector<16x1xf32>
    %379 = math.rsqrt %378 : vector<16x1xf32>
    %380 = vector.broadcast %379 : vector<16x1xf32> to vector<16x32xf32>
    %381 = arith.mulf %376, %380 : vector<16x32xf32>
    %382 = vector.broadcast %362 : vector<1x32xf32> to vector<16x32xf32>
    %383 = arith.mulf %381, %382 : vector<16x32xf32>
    %384 = vector.broadcast %363 : vector<1x32xf32> to vector<16x32xf32>
    %385 = arith.addf %383, %384 : vector<16x32xf32>
    %c0_157 = arith.constant 0 : index
    %c0_158 = arith.constant 0 : index
    %c0_159 = arith.constant 0 : index
    %386 = vector.load %arg1[%c0_157, %c0_158, %c0_159] : memref<2x8x32xf32, #tpu.memory_space<vmem>>, vector<2x8x32xf32>
    %387 = vector.shape_cast %386 : vector<2x8x32xf32> to vector<16x32xf32>
    %c0_160 = arith.constant 0 : index
    %c0_161 = arith.constant 0 : index
    %c0_162 = arith.constant 0 : index
    %388 = vector.load %arg14[%c0_160, %c0_161, %c0_162] : memref<2x32x96xf32, #tpu.memory_space<vmem>>, vector<1x32x96xf32>
    %389 = vector.shape_cast %388 : vector<1x32x96xf32> to vector<32x96xf32>
    %cst_163 = arith.constant dense<0.000000e+00> : vector<16x96xf32>
    %390 = tpu.matmul %387, %389, %cst_163 {dimension_numbers = #tpu.dot_dimension_numbers<[1], [0], [0], [1], [0, 0, 1, 1], [], []>} : vector<16x32xf32>, vector<32x96xf32>, vector<16x96xf32> -> vector<16x96xf32>
    %c0_164 = arith.constant 0 : index
    %c0_165 = arith.constant 0 : index
    %c0_166 = arith.constant 0 : index
    %391 = vector.load %arg15[%c0_164, %c0_165, %c0_166] : memref<2x1x96xf32, #tpu.memory_space<vmem>>, vector<1x1x96xf32>
    %392 = vector.shape_cast %391 : vector<1x1x96xf32> to vector<1x96xf32>
    %393 = vector.broadcast %392 : vector<1x96xf32> to vector<16x96xf32>
    %394 = arith.addf %390, %393 : vector<16x96xf32>
    %395 = vector.extract_strided_slice %394 {offsets = [0, 0], sizes = [16, 32], strides = [1, 1]} : vector<16x96xf32> to vector<16x32xf32>
    %396 = vector.extract_strided_slice %394 {offsets = [0, 32], sizes = [16, 64], strides = [1, 1]} : vector<16x96xf32> to vector<16x64xf32>
    %c0_167 = arith.constant 0 : index
    %c0_168 = arith.constant 0 : index
    %c0_169 = arith.constant 0 : index
    %397 = vector.load %arg16[%c0_167, %c0_168, %c0_169] : memref<2x32x32xf32, #tpu.memory_space<vmem>>, vector<1x32x32xf32>
    %398 = vector.shape_cast %397 : vector<1x32x32xf32> to vector<32x32xf32>
    %c0_170 = arith.constant 0 : index
    %c0_171 = arith.constant 0 : index
    %c0_172 = arith.constant 0 : index
    %399 = vector.load %arg17[%c0_170, %c0_171, %c0_172] : memref<2x1x32xf32, #tpu.memory_space<vmem>>, vector<1x1x32xf32>
    %400 = vector.shape_cast %399 : vector<1x1x32xf32> to vector<1x32xf32>
    %401 = tpu.iota {dimensions = array<i32: 0>} : vector<8x8xi32>
    %402 = tpu.iota {dimensions = array<i32: 1>} : vector<8x8xi32>
    %403 = arith.cmpi sgt, %402, %401 : vector<8x8xi32>
    %cst_173 = arith.constant -1.000000e+09 : f32
    %cst_174 = arith.constant 0.000000e+00 : f32
    %404 = vector.broadcast %cst_173 : f32 to vector<8x8xf32>
    %405 = vector.broadcast %cst_174 : f32 to vector<8x8xf32>
    %406 = arith.select %403, %404, %405 : vector<8x8xi1>, vector<8x8xf32>
    %407 = vector.extract_strided_slice %395 {offsets = [0, 0], sizes = [16, 8], strides = [1, 1]} : vector<16x32xf32> to vector<16x8xf32>
    %408 = vector.shape_cast %407 : vector<16x8xf32> to vector<2x8x8xf32>
    %409 = vector.extract_strided_slice %396 {offsets = [0, 0], sizes = [16, 8], strides = [1, 1]} : vector<16x64xf32> to vector<16x8xf32>
    %410 = vector.shape_cast %409 : vector<16x8xf32> to vector<2x8x8xf32>
    %411 = vector.extract_strided_slice %396 {offsets = [0, 32], sizes = [16, 8], strides = [1, 1]} : vector<16x64xf32> to vector<16x8xf32>
    %412 = vector.shape_cast %411 : vector<16x8xf32> to vector<2x8x8xf32>
    "tpu.trace_start"() <{level = 10 : i32, message = "bqd,bkd->bqk"}> : () -> ()
    %cst_175 = arith.constant dense<0.000000e+00> : vector<2x8x8xf32>
    %413 = tpu.matmul %408, %410, %cst_175 {dimension_numbers = #tpu.dot_dimension_numbers<[2], [2], [1], [1], [0, 0, 0, 1, 1, 1], [0], [0]>} : vector<2x8x8xf32>, vector<2x8x8xf32>, vector<2x8x8xf32> -> vector<2x8x8xf32>
    "tpu.trace_stop"() : () -> ()
    %cst_176 = arith.constant 0.353553385 : f32
    %414 = vector.broadcast %cst_176 : f32 to vector<2x8x8xf32>
    %415 = arith.mulf %413, %414 : vector<2x8x8xf32>
    %416 = vector.shape_cast %406 : vector<8x8xf32> to vector<1x8x8xf32>
    %417 = vector.broadcast %416 : vector<1x8x8xf32> to vector<2x8x8xf32>
    %418 = arith.addf %415, %417 : vector<2x8x8xf32>
    %cst_177 = arith.constant dense<0xFF800000> : vector<2x8xf32>
    %419 = vector.multi_reduction <maximumf>, %418, %cst_177 [2] : vector<2x8x8xf32> to vector<2x8xf32>
    %420 = vector.shape_cast %419 : vector<2x8xf32> to vector<2x8x1xf32>
    %421 = vector.broadcast %420 : vector<2x8x1xf32> to vector<2x8x8xf32>
    %422 = arith.subf %418, %421 : vector<2x8x8xf32>
    %423 = math.exp %422 : vector<2x8x8xf32>
    %cst_178 = arith.constant dense<0.000000e+00> : vector<2x8xf32>
    %424 = vector.multi_reduction <add>, %423, %cst_178 [2] : vector<2x8x8xf32> to vector<2x8xf32>
    %425 = vector.shape_cast %424 : vector<2x8xf32> to vector<2x8x1xf32>
    %426 = tpu.reciprocal %425 {approx = true} : vector<2x8x1xf32> -> vector<2x8x1xf32>
    %427 = vector.broadcast %426 : vector<2x8x1xf32> to vector<2x8x8xf32>
    %428 = arith.mulf %423, %427 : vector<2x8x8xf32>
    "tpu.trace_start"() <{level = 10 : i32, message = "bqk,bkd->bqd"}> : () -> ()
    %cst_179 = arith.constant dense<0.000000e+00> : vector<2x8x8xf32>
    %429 = tpu.matmul %428, %412, %cst_179 {dimension_numbers = #tpu.dot_dimension_numbers<[2], [1], [1], [2], [0, 0, 0, 1, 1, 2], [0], [0]>} : vector<2x8x8xf32>, vector<2x8x8xf32>, vector<2x8x8xf32> -> vector<2x8x8xf32>
    "tpu.trace_stop"() : () -> ()
    %430 = vector.shape_cast %429 : vector<2x8x8xf32> to vector<16x8xf32>
    %431 = vector.extract_strided_slice %398 {offsets = [0, 0], sizes = [8, 32], strides = [1, 1]} : vector<32x32xf32> to vector<8x32xf32>
    %cst_180 = arith.constant dense<0.000000e+00> : vector<16x32xf32>
    %432 = tpu.matmul %430, %431, %cst_180 {dimension_numbers = #tpu.dot_dimension_numbers<[1], [0], [0], [1], [0, 0, 1, 1], [], []>} : vector<16x8xf32>, vector<8x32xf32>, vector<16x32xf32> -> vector<16x32xf32>
    %433 = vector.extract_strided_slice %395 {offsets = [0, 8], sizes = [16, 8], strides = [1, 1]} : vector<16x32xf32> to vector<16x8xf32>
    %434 = vector.shape_cast %433 : vector<16x8xf32> to vector<2x8x8xf32>
    %435 = vector.extract_strided_slice %396 {offsets = [0, 8], sizes = [16, 8], strides = [1, 1]} : vector<16x64xf32> to vector<16x8xf32>
    %436 = vector.shape_cast %435 : vector<16x8xf32> to vector<2x8x8xf32>
    %437 = vector.extract_strided_slice %396 {offsets = [0, 40], sizes = [16, 8], strides = [1, 1]} : vector<16x64xf32> to vector<16x8xf32>
    %438 = vector.shape_cast %437 : vector<16x8xf32> to vector<2x8x8xf32>
    "tpu.trace_start"() <{level = 10 : i32, message = "bqd,bkd->bqk"}> : () -> ()
    %cst_181 = arith.constant dense<0.000000e+00> : vector<2x8x8xf32>
    %439 = tpu.matmul %434, %436, %cst_181 {dimension_numbers = #tpu.dot_dimension_numbers<[2], [2], [1], [1], [0, 0, 0, 1, 1, 1], [0], [0]>} : vector<2x8x8xf32>, vector<2x8x8xf32>, vector<2x8x8xf32> -> vector<2x8x8xf32>
    "tpu.trace_stop"() : () -> ()
    %cst_182 = arith.constant 0.353553385 : f32
    %440 = vector.broadcast %cst_182 : f32 to vector<2x8x8xf32>
    %441 = arith.mulf %439, %440 : vector<2x8x8xf32>
    %442 = vector.shape_cast %406 : vector<8x8xf32> to vector<1x8x8xf32>
    %443 = vector.broadcast %442 : vector<1x8x8xf32> to vector<2x8x8xf32>
    %444 = arith.addf %441, %443 : vector<2x8x8xf32>
    %cst_183 = arith.constant dense<0xFF800000> : vector<2x8xf32>
    %445 = vector.multi_reduction <maximumf>, %444, %cst_183 [2] : vector<2x8x8xf32> to vector<2x8xf32>
    %446 = vector.shape_cast %445 : vector<2x8xf32> to vector<2x8x1xf32>
    %447 = vector.broadcast %446 : vector<2x8x1xf32> to vector<2x8x8xf32>
    %448 = arith.subf %444, %447 : vector<2x8x8xf32>
    %449 = math.exp %448 : vector<2x8x8xf32>
    %cst_184 = arith.constant dense<0.000000e+00> : vector<2x8xf32>
    %450 = vector.multi_reduction <add>, %449, %cst_184 [2] : vector<2x8x8xf32> to vector<2x8xf32>
    %451 = vector.shape_cast %450 : vector<2x8xf32> to vector<2x8x1xf32>
    %452 = tpu.reciprocal %451 {approx = true} : vector<2x8x1xf32> -> vector<2x8x1xf32>
    %453 = vector.broadcast %452 : vector<2x8x1xf32> to vector<2x8x8xf32>
    %454 = arith.mulf %449, %453 : vector<2x8x8xf32>
    "tpu.trace_start"() <{level = 10 : i32, message = "bqk,bkd->bqd"}> : () -> ()
    %cst_185 = arith.constant dense<0.000000e+00> : vector<2x8x8xf32>
    %455 = tpu.matmul %454, %438, %cst_185 {dimension_numbers = #tpu.dot_dimension_numbers<[2], [1], [1], [2], [0, 0, 0, 1, 1, 2], [0], [0]>} : vector<2x8x8xf32>, vector<2x8x8xf32>, vector<2x8x8xf32> -> vector<2x8x8xf32>
    "tpu.trace_stop"() : () -> ()
    %456 = vector.shape_cast %455 : vector<2x8x8xf32> to vector<16x8xf32>
    %457 = vector.extract_strided_slice %398 {offsets = [8, 0], sizes = [8, 32], strides = [1, 1]} : vector<32x32xf32> to vector<8x32xf32>
    %cst_186 = arith.constant dense<0.000000e+00> : vector<16x32xf32>
    %458 = tpu.matmul %456, %457, %cst_186 {dimension_numbers = #tpu.dot_dimension_numbers<[1], [0], [0], [1], [0, 0, 1, 1], [], []>} : vector<16x8xf32>, vector<8x32xf32>, vector<16x32xf32> -> vector<16x32xf32>
    %459 = arith.addf %432, %458 : vector<16x32xf32>
    %460 = vector.extract_strided_slice %395 {offsets = [0, 16], sizes = [16, 8], strides = [1, 1]} : vector<16x32xf32> to vector<16x8xf32>
    %461 = vector.shape_cast %460 : vector<16x8xf32> to vector<2x8x8xf32>
    %462 = vector.extract_strided_slice %396 {offsets = [0, 16], sizes = [16, 8], strides = [1, 1]} : vector<16x64xf32> to vector<16x8xf32>
    %463 = vector.shape_cast %462 : vector<16x8xf32> to vector<2x8x8xf32>
    %464 = vector.extract_strided_slice %396 {offsets = [0, 48], sizes = [16, 8], strides = [1, 1]} : vector<16x64xf32> to vector<16x8xf32>
    %465 = vector.shape_cast %464 : vector<16x8xf32> to vector<2x8x8xf32>
    "tpu.trace_start"() <{level = 10 : i32, message = "bqd,bkd->bqk"}> : () -> ()
    %cst_187 = arith.constant dense<0.000000e+00> : vector<2x8x8xf32>
    %466 = tpu.matmul %461, %463, %cst_187 {dimension_numbers = #tpu.dot_dimension_numbers<[2], [2], [1], [1], [0, 0, 0, 1, 1, 1], [0], [0]>} : vector<2x8x8xf32>, vector<2x8x8xf32>, vector<2x8x8xf32> -> vector<2x8x8xf32>
    "tpu.trace_stop"() : () -> ()
    %cst_188 = arith.constant 0.353553385 : f32
    %467 = vector.broadcast %cst_188 : f32 to vector<2x8x8xf32>
    %468 = arith.mulf %466, %467 : vector<2x8x8xf32>
    %469 = vector.shape_cast %406 : vector<8x8xf32> to vector<1x8x8xf32>
    %470 = vector.broadcast %469 : vector<1x8x8xf32> to vector<2x8x8xf32>
    %471 = arith.addf %468, %470 : vector<2x8x8xf32>
    %cst_189 = arith.constant dense<0xFF800000> : vector<2x8xf32>
    %472 = vector.multi_reduction <maximumf>, %471, %cst_189 [2] : vector<2x8x8xf32> to vector<2x8xf32>
    %473 = vector.shape_cast %472 : vector<2x8xf32> to vector<2x8x1xf32>
    %474 = vector.broadcast %473 : vector<2x8x1xf32> to vector<2x8x8xf32>
    %475 = arith.subf %471, %474 : vector<2x8x8xf32>
    %476 = math.exp %475 : vector<2x8x8xf32>
    %cst_190 = arith.constant dense<0.000000e+00> : vector<2x8xf32>
    %477 = vector.multi_reduction <add>, %476, %cst_190 [2] : vector<2x8x8xf32> to vector<2x8xf32>
    %478 = vector.shape_cast %477 : vector<2x8xf32> to vector<2x8x1xf32>
    %479 = tpu.reciprocal %478 {approx = true} : vector<2x8x1xf32> -> vector<2x8x1xf32>
    %480 = vector.broadcast %479 : vector<2x8x1xf32> to vector<2x8x8xf32>
    %481 = arith.mulf %476, %480 : vector<2x8x8xf32>
    "tpu.trace_start"() <{level = 10 : i32, message = "bqk,bkd->bqd"}> : () -> ()
    %cst_191 = arith.constant dense<0.000000e+00> : vector<2x8x8xf32>
    %482 = tpu.matmul %481, %465, %cst_191 {dimension_numbers = #tpu.dot_dimension_numbers<[2], [1], [1], [2], [0, 0, 0, 1, 1, 2], [0], [0]>} : vector<2x8x8xf32>, vector<2x8x8xf32>, vector<2x8x8xf32> -> vector<2x8x8xf32>
    "tpu.trace_stop"() : () -> ()
    %483 = vector.shape_cast %482 : vector<2x8x8xf32> to vector<16x8xf32>
    %484 = vector.extract_strided_slice %398 {offsets = [16, 0], sizes = [8, 32], strides = [1, 1]} : vector<32x32xf32> to vector<8x32xf32>
    %cst_192 = arith.constant dense<0.000000e+00> : vector<16x32xf32>
    %485 = tpu.matmul %483, %484, %cst_192 {dimension_numbers = #tpu.dot_dimension_numbers<[1], [0], [0], [1], [0, 0, 1, 1], [], []>} : vector<16x8xf32>, vector<8x32xf32>, vector<16x32xf32> -> vector<16x32xf32>
    %486 = arith.addf %459, %485 : vector<16x32xf32>
    %487 = vector.extract_strided_slice %395 {offsets = [0, 24], sizes = [16, 8], strides = [1, 1]} : vector<16x32xf32> to vector<16x8xf32>
    %488 = vector.shape_cast %487 : vector<16x8xf32> to vector<2x8x8xf32>
    %489 = vector.extract_strided_slice %396 {offsets = [0, 24], sizes = [16, 8], strides = [1, 1]} : vector<16x64xf32> to vector<16x8xf32>
    %490 = vector.shape_cast %489 : vector<16x8xf32> to vector<2x8x8xf32>
    %491 = vector.extract_strided_slice %396 {offsets = [0, 56], sizes = [16, 8], strides = [1, 1]} : vector<16x64xf32> to vector<16x8xf32>
    %492 = vector.shape_cast %491 : vector<16x8xf32> to vector<2x8x8xf32>
    "tpu.trace_start"() <{level = 10 : i32, message = "bqd,bkd->bqk"}> : () -> ()
    %cst_193 = arith.constant dense<0.000000e+00> : vector<2x8x8xf32>
    %493 = tpu.matmul %488, %490, %cst_193 {dimension_numbers = #tpu.dot_dimension_numbers<[2], [2], [1], [1], [0, 0, 0, 1, 1, 1], [0], [0]>} : vector<2x8x8xf32>, vector<2x8x8xf32>, vector<2x8x8xf32> -> vector<2x8x8xf32>
    "tpu.trace_stop"() : () -> ()
    %cst_194 = arith.constant 0.353553385 : f32
    %494 = vector.broadcast %cst_194 : f32 to vector<2x8x8xf32>
    %495 = arith.mulf %493, %494 : vector<2x8x8xf32>
    %496 = vector.shape_cast %406 : vector<8x8xf32> to vector<1x8x8xf32>
    %497 = vector.broadcast %496 : vector<1x8x8xf32> to vector<2x8x8xf32>
    %498 = arith.addf %495, %497 : vector<2x8x8xf32>
    %cst_195 = arith.constant dense<0xFF800000> : vector<2x8xf32>
    %499 = vector.multi_reduction <maximumf>, %498, %cst_195 [2] : vector<2x8x8xf32> to vector<2x8xf32>
    %500 = vector.shape_cast %499 : vector<2x8xf32> to vector<2x8x1xf32>
    %501 = vector.broadcast %500 : vector<2x8x1xf32> to vector<2x8x8xf32>
    %502 = arith.subf %498, %501 : vector<2x8x8xf32>
    %503 = math.exp %502 : vector<2x8x8xf32>
    %cst_196 = arith.constant dense<0.000000e+00> : vector<2x8xf32>
    %504 = vector.multi_reduction <add>, %503, %cst_196 [2] : vector<2x8x8xf32> to vector<2x8xf32>
    %505 = vector.shape_cast %504 : vector<2x8xf32> to vector<2x8x1xf32>
    %506 = tpu.reciprocal %505 {approx = true} : vector<2x8x1xf32> -> vector<2x8x1xf32>
    %507 = vector.broadcast %506 : vector<2x8x1xf32> to vector<2x8x8xf32>
    %508 = arith.mulf %503, %507 : vector<2x8x8xf32>
    "tpu.trace_start"() <{level = 10 : i32, message = "bqk,bkd->bqd"}> : () -> ()
    %cst_197 = arith.constant dense<0.000000e+00> : vector<2x8x8xf32>
    %509 = tpu.matmul %508, %492, %cst_197 {dimension_numbers = #tpu.dot_dimension_numbers<[2], [1], [1], [2], [0, 0, 0, 1, 1, 2], [0], [0]>} : vector<2x8x8xf32>, vector<2x8x8xf32>, vector<2x8x8xf32> -> vector<2x8x8xf32>
    "tpu.trace_stop"() : () -> ()
    %510 = vector.shape_cast %509 : vector<2x8x8xf32> to vector<16x8xf32>
    %511 = vector.extract_strided_slice %398 {offsets = [24, 0], sizes = [8, 32], strides = [1, 1]} : vector<32x32xf32> to vector<8x32xf32>
    %cst_198 = arith.constant dense<0.000000e+00> : vector<16x32xf32>
    %512 = tpu.matmul %510, %511, %cst_198 {dimension_numbers = #tpu.dot_dimension_numbers<[1], [0], [0], [1], [0, 0, 1, 1], [], []>} : vector<16x8xf32>, vector<8x32xf32>, vector<16x32xf32> -> vector<16x32xf32>
    %513 = arith.addf %486, %512 : vector<16x32xf32>
    %514 = vector.broadcast %400 : vector<1x32xf32> to vector<16x32xf32>
    %515 = arith.addf %513, %514 : vector<16x32xf32>
    %516 = arith.addf %387, %515 : vector<16x32xf32>
    %c0_199 = arith.constant 0 : index
    %c0_200 = arith.constant 0 : index
    %c0_201 = arith.constant 0 : index
    %517 = vector.load %arg28[%c0_199, %c0_200, %c0_201] : memref<2x1x32xf32, #tpu.memory_space<vmem>>, vector<1x1x32xf32>
    %518 = vector.shape_cast %517 : vector<1x1x32xf32> to vector<1x32xf32>
    %c0_202 = arith.constant 0 : index
    %c0_203 = arith.constant 0 : index
    %c0_204 = arith.constant 0 : index
    %519 = vector.load %arg29[%c0_202, %c0_203, %c0_204] : memref<2x1x32xf32, #tpu.memory_space<vmem>>, vector<1x1x32xf32>
    %520 = vector.shape_cast %519 : vector<1x1x32xf32> to vector<1x32xf32>
    %cst_205 = arith.constant dense<0.000000e+00> : vector<16xf32>
    %521 = vector.multi_reduction <add>, %516, %cst_205 [1] : vector<16x32xf32> to vector<16xf32>
    %522 = vector.shape_cast %521 : vector<16xf32> to vector<16x1xf32>
    %cst_206 = arith.constant 3.200000e+01 : f32
    %523 = vector.broadcast %cst_206 : f32 to vector<16x1xf32>
    %524 = arith.divf %522, %523 : vector<16x1xf32>
    %525 = vector.broadcast %524 : vector<16x1xf32> to vector<16x32xf32>
    %526 = arith.subf %516, %525 : vector<16x32xf32>
    %527 = arith.mulf %526, %526 : vector<16x32xf32>
    %cst_207 = arith.constant dense<0.000000e+00> : vector<16xf32>
    %528 = vector.multi_reduction <add>, %527, %cst_207 [1] : vector<16x32xf32> to vector<16xf32>
    %529 = vector.shape_cast %528 : vector<16xf32> to vector<16x1xf32>
    %cst_208 = arith.constant 3.200000e+01 : f32
    %530 = vector.broadcast %cst_208 : f32 to vector<16x1xf32>
    %531 = arith.divf %529, %530 : vector<16x1xf32>
    %532 = vector.broadcast %524 : vector<16x1xf32> to vector<16x32xf32>
    %533 = arith.subf %516, %532 : vector<16x32xf32>
    %cst_209 = arith.constant 9.99999974E-6 : f32
    %534 = vector.broadcast %cst_209 : f32 to vector<16x1xf32>
    %535 = arith.addf %531, %534 : vector<16x1xf32>
    %536 = math.rsqrt %535 : vector<16x1xf32>
    %537 = vector.broadcast %536 : vector<16x1xf32> to vector<16x32xf32>
    %538 = arith.mulf %533, %537 : vector<16x32xf32>
    %539 = vector.broadcast %518 : vector<1x32xf32> to vector<16x32xf32>
    %540 = arith.mulf %538, %539 : vector<16x32xf32>
    %541 = vector.broadcast %520 : vector<1x32xf32> to vector<16x32xf32>
    %542 = arith.addf %540, %541 : vector<16x32xf32>
    %c0_210 = arith.constant 0 : index
    %c0_211 = arith.constant 0 : index
    %c0_212 = arith.constant 0 : index
    %543 = vector.load %arg18[%c0_210, %c0_211, %c0_212] : memref<2x32x32xf32, #tpu.memory_space<vmem>>, vector<1x32x32xf32>
    %544 = vector.shape_cast %543 : vector<1x32x32xf32> to vector<32x32xf32>
    %cst_213 = arith.constant dense<0.000000e+00> : vector<16x32xf32>
    %545 = tpu.matmul %542, %544, %cst_213 {dimension_numbers = #tpu.dot_dimension_numbers<[1], [0], [0], [1], [0, 0, 1, 1], [], []>} : vector<16x32xf32>, vector<32x32xf32>, vector<16x32xf32> -> vector<16x32xf32>
    %c0_214 = arith.constant 0 : index
    %c0_215 = arith.constant 0 : index
    %c0_216 = arith.constant 0 : index
    %546 = vector.load %arg19[%c0_214, %c0_215, %c0_216] : memref<2x1x32xf32, #tpu.memory_space<vmem>>, vector<1x1x32xf32>
    %547 = vector.shape_cast %546 : vector<1x1x32xf32> to vector<1x32xf32>
    %548 = vector.broadcast %547 : vector<1x32xf32> to vector<16x32xf32>
    %549 = arith.addf %545, %548 : vector<16x32xf32>
    %c0_217 = arith.constant 0 : index
    %c0_218 = arith.constant 0 : index
    %c0_219 = arith.constant 0 : index
    %550 = vector.load %arg20[%c0_217, %c0_218, %c0_219] : memref<2x32x64xf32, #tpu.memory_space<vmem>>, vector<1x32x64xf32>
    %551 = vector.shape_cast %550 : vector<1x32x64xf32> to vector<32x64xf32>
    %cst_220 = arith.constant dense<0.000000e+00> : vector<16x64xf32>
    %552 = tpu.matmul %385, %551, %cst_220 {dimension_numbers = #tpu.dot_dimension_numbers<[1], [0], [0], [1], [0, 0, 1, 1], [], []>} : vector<16x32xf32>, vector<32x64xf32>, vector<16x64xf32> -> vector<16x64xf32>
    %c0_221 = arith.constant 0 : index
    %c0_222 = arith.constant 0 : index
    %c0_223 = arith.constant 0 : index
    %553 = vector.load %arg21[%c0_221, %c0_222, %c0_223] : memref<2x1x64xf32, #tpu.memory_space<vmem>>, vector<1x1x64xf32>
    %554 = vector.shape_cast %553 : vector<1x1x64xf32> to vector<1x64xf32>
    %555 = vector.broadcast %554 : vector<1x64xf32> to vector<16x64xf32>
    %556 = arith.addf %552, %555 : vector<16x64xf32>
    %c0_224 = arith.constant 0 : index
    %c0_225 = arith.constant 0 : index
    %c0_226 = arith.constant 0 : index
    %557 = vector.load %arg22[%c0_224, %c0_225, %c0_226] : memref<2x32x32xf32, #tpu.memory_space<vmem>>, vector<1x32x32xf32>
    %558 = vector.shape_cast %557 : vector<1x32x32xf32> to vector<32x32xf32>
    %c0_227 = arith.constant 0 : index
    %c0_228 = arith.constant 0 : index
    %c0_229 = arith.constant 0 : index
    %559 = vector.load %arg23[%c0_227, %c0_228, %c0_229] : memref<2x1x32xf32, #tpu.memory_space<vmem>>, vector<1x1x32xf32>
    %560 = vector.shape_cast %559 : vector<1x1x32xf32> to vector<1x32xf32>
    %561 = vector.extract_strided_slice %549 {offsets = [0, 0], sizes = [16, 8], strides = [1, 1]} : vector<16x32xf32> to vector<16x8xf32>
    %562 = vector.shape_cast %561 : vector<16x8xf32> to vector<2x8x8xf32>
    %563 = vector.extract_strided_slice %556 {offsets = [0, 0], sizes = [16, 8], strides = [1, 1]} : vector<16x64xf32> to vector<16x8xf32>
    %564 = vector.shape_cast %563 : vector<16x8xf32> to vector<2x8x8xf32>
    %565 = vector.extract_strided_slice %556 {offsets = [0, 32], sizes = [16, 8], strides = [1, 1]} : vector<16x64xf32> to vector<16x8xf32>
    %566 = vector.shape_cast %565 : vector<16x8xf32> to vector<2x8x8xf32>
    "tpu.trace_start"() <{level = 10 : i32, message = "bqd,bkd->bqk"}> : () -> ()
    %cst_230 = arith.constant dense<0.000000e+00> : vector<2x8x8xf32>
    %567 = tpu.matmul %562, %564, %cst_230 {dimension_numbers = #tpu.dot_dimension_numbers<[2], [2], [1], [1], [0, 0, 0, 1, 1, 1], [0], [0]>} : vector<2x8x8xf32>, vector<2x8x8xf32>, vector<2x8x8xf32> -> vector<2x8x8xf32>
    "tpu.trace_stop"() : () -> ()
    %cst_231 = arith.constant 0.353553385 : f32
    %568 = vector.broadcast %cst_231 : f32 to vector<2x8x8xf32>
    %569 = arith.mulf %567, %568 : vector<2x8x8xf32>
    %cst_232 = arith.constant dense<0xFF800000> : vector<2x8xf32>
    %570 = vector.multi_reduction <maximumf>, %569, %cst_232 [2] : vector<2x8x8xf32> to vector<2x8xf32>
    %571 = vector.shape_cast %570 : vector<2x8xf32> to vector<2x8x1xf32>
    %572 = vector.broadcast %571 : vector<2x8x1xf32> to vector<2x8x8xf32>
    %573 = arith.subf %569, %572 : vector<2x8x8xf32>
    %574 = math.exp %573 : vector<2x8x8xf32>
    %cst_233 = arith.constant dense<0.000000e+00> : vector<2x8xf32>
    %575 = vector.multi_reduction <add>, %574, %cst_233 [2] : vector<2x8x8xf32> to vector<2x8xf32>
    %576 = vector.shape_cast %575 : vector<2x8xf32> to vector<2x8x1xf32>
    %577 = tpu.reciprocal %576 {approx = true} : vector<2x8x1xf32> -> vector<2x8x1xf32>
    %578 = vector.broadcast %577 : vector<2x8x1xf32> to vector<2x8x8xf32>
    %579 = arith.mulf %574, %578 : vector<2x8x8xf32>
    "tpu.trace_start"() <{level = 10 : i32, message = "bqk,bkd->bqd"}> : () -> ()
    %cst_234 = arith.constant dense<0.000000e+00> : vector<2x8x8xf32>
    %580 = tpu.matmul %579, %566, %cst_234 {dimension_numbers = #tpu.dot_dimension_numbers<[2], [1], [1], [2], [0, 0, 0, 1, 1, 2], [0], [0]>} : vector<2x8x8xf32>, vector<2x8x8xf32>, vector<2x8x8xf32> -> vector<2x8x8xf32>
    "tpu.trace_stop"() : () -> ()
    %581 = vector.shape_cast %580 : vector<2x8x8xf32> to vector<16x8xf32>
    %582 = vector.extract_strided_slice %558 {offsets = [0, 0], sizes = [8, 32], strides = [1, 1]} : vector<32x32xf32> to vector<8x32xf32>
    %cst_235 = arith.constant dense<0.000000e+00> : vector<16x32xf32>
    %583 = tpu.matmul %581, %582, %cst_235 {dimension_numbers = #tpu.dot_dimension_numbers<[1], [0], [0], [1], [0, 0, 1, 1], [], []>} : vector<16x8xf32>, vector<8x32xf32>, vector<16x32xf32> -> vector<16x32xf32>
    %584 = vector.extract_strided_slice %549 {offsets = [0, 8], sizes = [16, 8], strides = [1, 1]} : vector<16x32xf32> to vector<16x8xf32>
    %585 = vector.shape_cast %584 : vector<16x8xf32> to vector<2x8x8xf32>
    %586 = vector.extract_strided_slice %556 {offsets = [0, 8], sizes = [16, 8], strides = [1, 1]} : vector<16x64xf32> to vector<16x8xf32>
    %587 = vector.shape_cast %586 : vector<16x8xf32> to vector<2x8x8xf32>
    %588 = vector.extract_strided_slice %556 {offsets = [0, 40], sizes = [16, 8], strides = [1, 1]} : vector<16x64xf32> to vector<16x8xf32>
    %589 = vector.shape_cast %588 : vector<16x8xf32> to vector<2x8x8xf32>
    "tpu.trace_start"() <{level = 10 : i32, message = "bqd,bkd->bqk"}> : () -> ()
    %cst_236 = arith.constant dense<0.000000e+00> : vector<2x8x8xf32>
    %590 = tpu.matmul %585, %587, %cst_236 {dimension_numbers = #tpu.dot_dimension_numbers<[2], [2], [1], [1], [0, 0, 0, 1, 1, 1], [0], [0]>} : vector<2x8x8xf32>, vector<2x8x8xf32>, vector<2x8x8xf32> -> vector<2x8x8xf32>
    "tpu.trace_stop"() : () -> ()
    %cst_237 = arith.constant 0.353553385 : f32
    %591 = vector.broadcast %cst_237 : f32 to vector<2x8x8xf32>
    %592 = arith.mulf %590, %591 : vector<2x8x8xf32>
    %cst_238 = arith.constant dense<0xFF800000> : vector<2x8xf32>
    %593 = vector.multi_reduction <maximumf>, %592, %cst_238 [2] : vector<2x8x8xf32> to vector<2x8xf32>
    %594 = vector.shape_cast %593 : vector<2x8xf32> to vector<2x8x1xf32>
    %595 = vector.broadcast %594 : vector<2x8x1xf32> to vector<2x8x8xf32>
    %596 = arith.subf %592, %595 : vector<2x8x8xf32>
    %597 = math.exp %596 : vector<2x8x8xf32>
    %cst_239 = arith.constant dense<0.000000e+00> : vector<2x8xf32>
    %598 = vector.multi_reduction <add>, %597, %cst_239 [2] : vector<2x8x8xf32> to vector<2x8xf32>
    %599 = vector.shape_cast %598 : vector<2x8xf32> to vector<2x8x1xf32>
    %600 = tpu.reciprocal %599 {approx = true} : vector<2x8x1xf32> -> vector<2x8x1xf32>
    %601 = vector.broadcast %600 : vector<2x8x1xf32> to vector<2x8x8xf32>
    %602 = arith.mulf %597, %601 : vector<2x8x8xf32>
    "tpu.trace_start"() <{level = 10 : i32, message = "bqk,bkd->bqd"}> : () -> ()
    %cst_240 = arith.constant dense<0.000000e+00> : vector<2x8x8xf32>
    %603 = tpu.matmul %602, %589, %cst_240 {dimension_numbers = #tpu.dot_dimension_numbers<[2], [1], [1], [2], [0, 0, 0, 1, 1, 2], [0], [0]>} : vector<2x8x8xf32>, vector<2x8x8xf32>, vector<2x8x8xf32> -> vector<2x8x8xf32>
    "tpu.trace_stop"() : () -> ()
    %604 = vector.shape_cast %603 : vector<2x8x8xf32> to vector<16x8xf32>
    %605 = vector.extract_strided_slice %558 {offsets = [8, 0], sizes = [8, 32], strides = [1, 1]} : vector<32x32xf32> to vector<8x32xf32>
    %cst_241 = arith.constant dense<0.000000e+00> : vector<16x32xf32>
    %606 = tpu.matmul %604, %605, %cst_241 {dimension_numbers = #tpu.dot_dimension_numbers<[1], [0], [0], [1], [0, 0, 1, 1], [], []>} : vector<16x8xf32>, vector<8x32xf32>, vector<16x32xf32> -> vector<16x32xf32>
    %607 = arith.addf %583, %606 : vector<16x32xf32>
    %608 = vector.extract_strided_slice %549 {offsets = [0, 16], sizes = [16, 8], strides = [1, 1]} : vector<16x32xf32> to vector<16x8xf32>
    %609 = vector.shape_cast %608 : vector<16x8xf32> to vector<2x8x8xf32>
    %610 = vector.extract_strided_slice %556 {offsets = [0, 16], sizes = [16, 8], strides = [1, 1]} : vector<16x64xf32> to vector<16x8xf32>
    %611 = vector.shape_cast %610 : vector<16x8xf32> to vector<2x8x8xf32>
    %612 = vector.extract_strided_slice %556 {offsets = [0, 48], sizes = [16, 8], strides = [1, 1]} : vector<16x64xf32> to vector<16x8xf32>
    %613 = vector.shape_cast %612 : vector<16x8xf32> to vector<2x8x8xf32>
    "tpu.trace_start"() <{level = 10 : i32, message = "bqd,bkd->bqk"}> : () -> ()
    %cst_242 = arith.constant dense<0.000000e+00> : vector<2x8x8xf32>
    %614 = tpu.matmul %609, %611, %cst_242 {dimension_numbers = #tpu.dot_dimension_numbers<[2], [2], [1], [1], [0, 0, 0, 1, 1, 1], [0], [0]>} : vector<2x8x8xf32>, vector<2x8x8xf32>, vector<2x8x8xf32> -> vector<2x8x8xf32>
    "tpu.trace_stop"() : () -> ()
    %cst_243 = arith.constant 0.353553385 : f32
    %615 = vector.broadcast %cst_243 : f32 to vector<2x8x8xf32>
    %616 = arith.mulf %614, %615 : vector<2x8x8xf32>
    %cst_244 = arith.constant dense<0xFF800000> : vector<2x8xf32>
    %617 = vector.multi_reduction <maximumf>, %616, %cst_244 [2] : vector<2x8x8xf32> to vector<2x8xf32>
    %618 = vector.shape_cast %617 : vector<2x8xf32> to vector<2x8x1xf32>
    %619 = vector.broadcast %618 : vector<2x8x1xf32> to vector<2x8x8xf32>
    %620 = arith.subf %616, %619 : vector<2x8x8xf32>
    %621 = math.exp %620 : vector<2x8x8xf32>
    %cst_245 = arith.constant dense<0.000000e+00> : vector<2x8xf32>
    %622 = vector.multi_reduction <add>, %621, %cst_245 [2] : vector<2x8x8xf32> to vector<2x8xf32>
    %623 = vector.shape_cast %622 : vector<2x8xf32> to vector<2x8x1xf32>
    %624 = tpu.reciprocal %623 {approx = true} : vector<2x8x1xf32> -> vector<2x8x1xf32>
    %625 = vector.broadcast %624 : vector<2x8x1xf32> to vector<2x8x8xf32>
    %626 = arith.mulf %621, %625 : vector<2x8x8xf32>
    "tpu.trace_start"() <{level = 10 : i32, message = "bqk,bkd->bqd"}> : () -> ()
    %cst_246 = arith.constant dense<0.000000e+00> : vector<2x8x8xf32>
    %627 = tpu.matmul %626, %613, %cst_246 {dimension_numbers = #tpu.dot_dimension_numbers<[2], [1], [1], [2], [0, 0, 0, 1, 1, 2], [0], [0]>} : vector<2x8x8xf32>, vector<2x8x8xf32>, vector<2x8x8xf32> -> vector<2x8x8xf32>
    "tpu.trace_stop"() : () -> ()
    %628 = vector.shape_cast %627 : vector<2x8x8xf32> to vector<16x8xf32>
    %629 = vector.extract_strided_slice %558 {offsets = [16, 0], sizes = [8, 32], strides = [1, 1]} : vector<32x32xf32> to vector<8x32xf32>
    %cst_247 = arith.constant dense<0.000000e+00> : vector<16x32xf32>
    %630 = tpu.matmul %628, %629, %cst_247 {dimension_numbers = #tpu.dot_dimension_numbers<[1], [0], [0], [1], [0, 0, 1, 1], [], []>} : vector<16x8xf32>, vector<8x32xf32>, vector<16x32xf32> -> vector<16x32xf32>
    %631 = arith.addf %607, %630 : vector<16x32xf32>
    %632 = vector.extract_strided_slice %549 {offsets = [0, 24], sizes = [16, 8], strides = [1, 1]} : vector<16x32xf32> to vector<16x8xf32>
    %633 = vector.shape_cast %632 : vector<16x8xf32> to vector<2x8x8xf32>
    %634 = vector.extract_strided_slice %556 {offsets = [0, 24], sizes = [16, 8], strides = [1, 1]} : vector<16x64xf32> to vector<16x8xf32>
    %635 = vector.shape_cast %634 : vector<16x8xf32> to vector<2x8x8xf32>
    %636 = vector.extract_strided_slice %556 {offsets = [0, 56], sizes = [16, 8], strides = [1, 1]} : vector<16x64xf32> to vector<16x8xf32>
    %637 = vector.shape_cast %636 : vector<16x8xf32> to vector<2x8x8xf32>
    "tpu.trace_start"() <{level = 10 : i32, message = "bqd,bkd->bqk"}> : () -> ()
    %cst_248 = arith.constant dense<0.000000e+00> : vector<2x8x8xf32>
    %638 = tpu.matmul %633, %635, %cst_248 {dimension_numbers = #tpu.dot_dimension_numbers<[2], [2], [1], [1], [0, 0, 0, 1, 1, 1], [0], [0]>} : vector<2x8x8xf32>, vector<2x8x8xf32>, vector<2x8x8xf32> -> vector<2x8x8xf32>
    "tpu.trace_stop"() : () -> ()
    %cst_249 = arith.constant 0.353553385 : f32
    %639 = vector.broadcast %cst_249 : f32 to vector<2x8x8xf32>
    %640 = arith.mulf %638, %639 : vector<2x8x8xf32>
    %cst_250 = arith.constant dense<0xFF800000> : vector<2x8xf32>
    %641 = vector.multi_reduction <maximumf>, %640, %cst_250 [2] : vector<2x8x8xf32> to vector<2x8xf32>
    %642 = vector.shape_cast %641 : vector<2x8xf32> to vector<2x8x1xf32>
    %643 = vector.broadcast %642 : vector<2x8x1xf32> to vector<2x8x8xf32>
    %644 = arith.subf %640, %643 : vector<2x8x8xf32>
    %645 = math.exp %644 : vector<2x8x8xf32>
    %cst_251 = arith.constant dense<0.000000e+00> : vector<2x8xf32>
    %646 = vector.multi_reduction <add>, %645, %cst_251 [2] : vector<2x8x8xf32> to vector<2x8xf32>
    %647 = vector.shape_cast %646 : vector<2x8xf32> to vector<2x8x1xf32>
    %648 = tpu.reciprocal %647 {approx = true} : vector<2x8x1xf32> -> vector<2x8x1xf32>
    %649 = vector.broadcast %648 : vector<2x8x1xf32> to vector<2x8x8xf32>
    %650 = arith.mulf %645, %649 : vector<2x8x8xf32>
    "tpu.trace_start"() <{level = 10 : i32, message = "bqk,bkd->bqd"}> : () -> ()
    %cst_252 = arith.constant dense<0.000000e+00> : vector<2x8x8xf32>
    %651 = tpu.matmul %650, %637, %cst_252 {dimension_numbers = #tpu.dot_dimension_numbers<[2], [1], [1], [2], [0, 0, 0, 1, 1, 2], [0], [0]>} : vector<2x8x8xf32>, vector<2x8x8xf32>, vector<2x8x8xf32> -> vector<2x8x8xf32>
    "tpu.trace_stop"() : () -> ()
    %652 = vector.shape_cast %651 : vector<2x8x8xf32> to vector<16x8xf32>
    %653 = vector.extract_strided_slice %558 {offsets = [24, 0], sizes = [8, 32], strides = [1, 1]} : vector<32x32xf32> to vector<8x32xf32>
    %cst_253 = arith.constant dense<0.000000e+00> : vector<16x32xf32>
    %654 = tpu.matmul %652, %653, %cst_253 {dimension_numbers = #tpu.dot_dimension_numbers<[1], [0], [0], [1], [0, 0, 1, 1], [], []>} : vector<16x8xf32>, vector<8x32xf32>, vector<16x32xf32> -> vector<16x32xf32>
    %655 = arith.addf %631, %654 : vector<16x32xf32>
    %656 = vector.broadcast %560 : vector<1x32xf32> to vector<16x32xf32>
    %657 = arith.addf %655, %656 : vector<16x32xf32>
    %658 = arith.addf %542, %657 : vector<16x32xf32>
    %c0_254 = arith.constant 0 : index
    %c0_255 = arith.constant 0 : index
    %c0_256 = arith.constant 0 : index
    %659 = vector.load %arg30[%c0_254, %c0_255, %c0_256] : memref<2x1x32xf32, #tpu.memory_space<vmem>>, vector<1x1x32xf32>
    %660 = vector.shape_cast %659 : vector<1x1x32xf32> to vector<1x32xf32>
    %c0_257 = arith.constant 0 : index
    %c0_258 = arith.constant 0 : index
    %c0_259 = arith.constant 0 : index
    %661 = vector.load %arg31[%c0_257, %c0_258, %c0_259] : memref<2x1x32xf32, #tpu.memory_space<vmem>>, vector<1x1x32xf32>
    %662 = vector.shape_cast %661 : vector<1x1x32xf32> to vector<1x32xf32>
    %cst_260 = arith.constant dense<0.000000e+00> : vector<16xf32>
    %663 = vector.multi_reduction <add>, %658, %cst_260 [1] : vector<16x32xf32> to vector<16xf32>
    %664 = vector.shape_cast %663 : vector<16xf32> to vector<16x1xf32>
    %cst_261 = arith.constant 3.200000e+01 : f32
    %665 = vector.broadcast %cst_261 : f32 to vector<16x1xf32>
    %666 = arith.divf %664, %665 : vector<16x1xf32>
    %667 = vector.broadcast %666 : vector<16x1xf32> to vector<16x32xf32>
    %668 = arith.subf %658, %667 : vector<16x32xf32>
    %669 = arith.mulf %668, %668 : vector<16x32xf32>
    %cst_262 = arith.constant dense<0.000000e+00> : vector<16xf32>
    %670 = vector.multi_reduction <add>, %669, %cst_262 [1] : vector<16x32xf32> to vector<16xf32>
    %671 = vector.shape_cast %670 : vector<16xf32> to vector<16x1xf32>
    %cst_263 = arith.constant 3.200000e+01 : f32
    %672 = vector.broadcast %cst_263 : f32 to vector<16x1xf32>
    %673 = arith.divf %671, %672 : vector<16x1xf32>
    %674 = vector.broadcast %666 : vector<16x1xf32> to vector<16x32xf32>
    %675 = arith.subf %658, %674 : vector<16x32xf32>
    %cst_264 = arith.constant 9.99999974E-6 : f32
    %676 = vector.broadcast %cst_264 : f32 to vector<16x1xf32>
    %677 = arith.addf %673, %676 : vector<16x1xf32>
    %678 = math.rsqrt %677 : vector<16x1xf32>
    %679 = vector.broadcast %678 : vector<16x1xf32> to vector<16x32xf32>
    %680 = arith.mulf %675, %679 : vector<16x32xf32>
    %681 = vector.broadcast %660 : vector<1x32xf32> to vector<16x32xf32>
    %682 = arith.mulf %680, %681 : vector<16x32xf32>
    %683 = vector.broadcast %662 : vector<1x32xf32> to vector<16x32xf32>
    %684 = arith.addf %682, %683 : vector<16x32xf32>
    %c0_265 = arith.constant 0 : index
    %c0_266 = arith.constant 0 : index
    %c0_267 = arith.constant 0 : index
    %685 = vector.load %arg24[%c0_265, %c0_266, %c0_267] : memref<2x32x64xf32, #tpu.memory_space<vmem>>, vector<1x32x64xf32>
    %686 = vector.shape_cast %685 : vector<1x32x64xf32> to vector<32x64xf32>
    %c0_268 = arith.constant 0 : index
    %c0_269 = arith.constant 0 : index
    %c0_270 = arith.constant 0 : index
    %687 = vector.load %arg25[%c0_268, %c0_269, %c0_270] : memref<2x1x64xf32, #tpu.memory_space<vmem>>, vector<1x1x64xf32>
    %688 = vector.shape_cast %687 : vector<1x1x64xf32> to vector<1x64xf32>
    %c0_271 = arith.constant 0 : index
    %c0_272 = arith.constant 0 : index
    %c0_273 = arith.constant 0 : index
    %689 = vector.load %arg26[%c0_271, %c0_272, %c0_273] : memref<2x64x32xf32, #tpu.memory_space<vmem>>, vector<1x64x32xf32>
    %690 = vector.shape_cast %689 : vector<1x64x32xf32> to vector<64x32xf32>
    %c0_274 = arith.constant 0 : index
    %c0_275 = arith.constant 0 : index
    %c0_276 = arith.constant 0 : index
    %691 = vector.load %arg27[%c0_274, %c0_275, %c0_276] : memref<2x1x32xf32, #tpu.memory_space<vmem>>, vector<1x1x32xf32>
    %692 = vector.shape_cast %691 : vector<1x1x32xf32> to vector<1x32xf32>
    %cst_277 = arith.constant dense<0.000000e+00> : vector<16x64xf32>
    %693 = tpu.matmul %684, %686, %cst_277 {dimension_numbers = #tpu.dot_dimension_numbers<[1], [0], [0], [1], [0, 0, 1, 1], [], []>} : vector<16x32xf32>, vector<32x64xf32>, vector<16x64xf32> -> vector<16x64xf32>
    %694 = vector.broadcast %688 : vector<1x64xf32> to vector<16x64xf32>
    %695 = arith.addf %693, %694 : vector<16x64xf32>
    %cst_278 = arith.constant 0.000000e+00 : f32
    %696 = vector.broadcast %cst_278 : f32 to vector<16x64xf32>
    %697 = arith.maximumf %695, %696 : vector<16x64xf32>
    %cst_279 = arith.constant dense<0.000000e+00> : vector<16x32xf32>
    %698 = tpu.matmul %697, %690, %cst_279 {dimension_numbers = #tpu.dot_dimension_numbers<[1], [0], [0], [1], [0, 0, 1, 1], [], []>} : vector<16x64xf32>, vector<64x32xf32>, vector<16x32xf32> -> vector<16x32xf32>
    %699 = vector.broadcast %692 : vector<1x32xf32> to vector<16x32xf32>
    %700 = arith.addf %698, %699 : vector<16x32xf32>
    %701 = arith.addf %684, %700 : vector<16x32xf32>
    %c0_280 = arith.constant 0 : index
    %c0_281 = arith.constant 0 : index
    %c0_282 = arith.constant 0 : index
    %702 = vector.load %arg32[%c0_280, %c0_281, %c0_282] : memref<2x1x32xf32, #tpu.memory_space<vmem>>, vector<1x1x32xf32>
    %703 = vector.shape_cast %702 : vector<1x1x32xf32> to vector<1x32xf32>
    %c0_283 = arith.constant 0 : index
    %c0_284 = arith.constant 0 : index
    %c0_285 = arith.constant 0 : index
    %704 = vector.load %arg33[%c0_283, %c0_284, %c0_285] : memref<2x1x32xf32, #tpu.memory_space<vmem>>, vector<1x1x32xf32>
    %705 = vector.shape_cast %704 : vector<1x1x32xf32> to vector<1x32xf32>
    %cst_286 = arith.constant dense<0.000000e+00> : vector<16xf32>
    %706 = vector.multi_reduction <add>, %701, %cst_286 [1] : vector<16x32xf32> to vector<16xf32>
    %707 = vector.shape_cast %706 : vector<16xf32> to vector<16x1xf32>
    %cst_287 = arith.constant 3.200000e+01 : f32
    %708 = vector.broadcast %cst_287 : f32 to vector<16x1xf32>
    %709 = arith.divf %707, %708 : vector<16x1xf32>
    %710 = vector.broadcast %709 : vector<16x1xf32> to vector<16x32xf32>
    %711 = arith.subf %701, %710 : vector<16x32xf32>
    %712 = arith.mulf %711, %711 : vector<16x32xf32>
    %cst_288 = arith.constant dense<0.000000e+00> : vector<16xf32>
    %713 = vector.multi_reduction <add>, %712, %cst_288 [1] : vector<16x32xf32> to vector<16xf32>
    %714 = vector.shape_cast %713 : vector<16xf32> to vector<16x1xf32>
    %cst_289 = arith.constant 3.200000e+01 : f32
    %715 = vector.broadcast %cst_289 : f32 to vector<16x1xf32>
    %716 = arith.divf %714, %715 : vector<16x1xf32>
    %717 = vector.broadcast %709 : vector<16x1xf32> to vector<16x32xf32>
    %718 = arith.subf %701, %717 : vector<16x32xf32>
    %cst_290 = arith.constant 9.99999974E-6 : f32
    %719 = vector.broadcast %cst_290 : f32 to vector<16x1xf32>
    %720 = arith.addf %716, %719 : vector<16x1xf32>
    %721 = math.rsqrt %720 : vector<16x1xf32>
    %722 = vector.broadcast %721 : vector<16x1xf32> to vector<16x32xf32>
    %723 = arith.mulf %718, %722 : vector<16x32xf32>
    %724 = vector.broadcast %703 : vector<1x32xf32> to vector<16x32xf32>
    %725 = arith.mulf %723, %724 : vector<16x32xf32>
    %726 = vector.broadcast %705 : vector<1x32xf32> to vector<16x32xf32>
    %727 = arith.addf %725, %726 : vector<16x32xf32>
    %c1_291 = arith.constant 1 : index
    %c0_292 = arith.constant 0 : index
    %c0_293 = arith.constant 0 : index
    %728 = vector.load %arg14[%c1_291, %c0_292, %c0_293] : memref<2x32x96xf32, #tpu.memory_space<vmem>>, vector<1x32x96xf32>
    %729 = vector.shape_cast %728 : vector<1x32x96xf32> to vector<32x96xf32>
    %cst_294 = arith.constant dense<0.000000e+00> : vector<16x96xf32>
    %730 = tpu.matmul %727, %729, %cst_294 {dimension_numbers = #tpu.dot_dimension_numbers<[1], [0], [0], [1], [0, 0, 1, 1], [], []>} : vector<16x32xf32>, vector<32x96xf32>, vector<16x96xf32> -> vector<16x96xf32>
    %c1_295 = arith.constant 1 : index
    %c0_296 = arith.constant 0 : index
    %c0_297 = arith.constant 0 : index
    %731 = vector.load %arg15[%c1_295, %c0_296, %c0_297] : memref<2x1x96xf32, #tpu.memory_space<vmem>>, vector<1x1x96xf32>
    %732 = vector.shape_cast %731 : vector<1x1x96xf32> to vector<1x96xf32>
    %733 = vector.broadcast %732 : vector<1x96xf32> to vector<16x96xf32>
    %734 = arith.addf %730, %733 : vector<16x96xf32>
    %735 = vector.extract_strided_slice %734 {offsets = [0, 0], sizes = [16, 32], strides = [1, 1]} : vector<16x96xf32> to vector<16x32xf32>
    %736 = vector.extract_strided_slice %734 {offsets = [0, 32], sizes = [16, 64], strides = [1, 1]} : vector<16x96xf32> to vector<16x64xf32>
    %c1_298 = arith.constant 1 : index
    %c0_299 = arith.constant 0 : index
    %c0_300 = arith.constant 0 : index
    %737 = vector.load %arg16[%c1_298, %c0_299, %c0_300] : memref<2x32x32xf32, #tpu.memory_space<vmem>>, vector<1x32x32xf32>
    %738 = vector.shape_cast %737 : vector<1x32x32xf32> to vector<32x32xf32>
    %c1_301 = arith.constant 1 : index
    %c0_302 = arith.constant 0 : index
    %c0_303 = arith.constant 0 : index
    %739 = vector.load %arg17[%c1_301, %c0_302, %c0_303] : memref<2x1x32xf32, #tpu.memory_space<vmem>>, vector<1x1x32xf32>
    %740 = vector.shape_cast %739 : vector<1x1x32xf32> to vector<1x32xf32>
    %741 = tpu.iota {dimensions = array<i32: 0>} : vector<8x8xi32>
    %742 = tpu.iota {dimensions = array<i32: 1>} : vector<8x8xi32>
    %743 = arith.cmpi sgt, %742, %741 : vector<8x8xi32>
    %cst_304 = arith.constant -1.000000e+09 : f32
    %cst_305 = arith.constant 0.000000e+00 : f32
    %744 = vector.broadcast %cst_304 : f32 to vector<8x8xf32>
    %745 = vector.broadcast %cst_305 : f32 to vector<8x8xf32>
    %746 = arith.select %743, %744, %745 : vector<8x8xi1>, vector<8x8xf32>
    %747 = vector.extract_strided_slice %735 {offsets = [0, 0], sizes = [16, 8], strides = [1, 1]} : vector<16x32xf32> to vector<16x8xf32>
    %748 = vector.shape_cast %747 : vector<16x8xf32> to vector<2x8x8xf32>
    %749 = vector.extract_strided_slice %736 {offsets = [0, 0], sizes = [16, 8], strides = [1, 1]} : vector<16x64xf32> to vector<16x8xf32>
    %750 = vector.shape_cast %749 : vector<16x8xf32> to vector<2x8x8xf32>
    %751 = vector.extract_strided_slice %736 {offsets = [0, 32], sizes = [16, 8], strides = [1, 1]} : vector<16x64xf32> to vector<16x8xf32>
    %752 = vector.shape_cast %751 : vector<16x8xf32> to vector<2x8x8xf32>
    "tpu.trace_start"() <{level = 10 : i32, message = "bqd,bkd->bqk"}> : () -> ()
    %cst_306 = arith.constant dense<0.000000e+00> : vector<2x8x8xf32>
    %753 = tpu.matmul %748, %750, %cst_306 {dimension_numbers = #tpu.dot_dimension_numbers<[2], [2], [1], [1], [0, 0, 0, 1, 1, 1], [0], [0]>} : vector<2x8x8xf32>, vector<2x8x8xf32>, vector<2x8x8xf32> -> vector<2x8x8xf32>
    "tpu.trace_stop"() : () -> ()
    %cst_307 = arith.constant 0.353553385 : f32
    %754 = vector.broadcast %cst_307 : f32 to vector<2x8x8xf32>
    %755 = arith.mulf %753, %754 : vector<2x8x8xf32>
    %756 = vector.shape_cast %746 : vector<8x8xf32> to vector<1x8x8xf32>
    %757 = vector.broadcast %756 : vector<1x8x8xf32> to vector<2x8x8xf32>
    %758 = arith.addf %755, %757 : vector<2x8x8xf32>
    %cst_308 = arith.constant dense<0xFF800000> : vector<2x8xf32>
    %759 = vector.multi_reduction <maximumf>, %758, %cst_308 [2] : vector<2x8x8xf32> to vector<2x8xf32>
    %760 = vector.shape_cast %759 : vector<2x8xf32> to vector<2x8x1xf32>
    %761 = vector.broadcast %760 : vector<2x8x1xf32> to vector<2x8x8xf32>
    %762 = arith.subf %758, %761 : vector<2x8x8xf32>
    %763 = math.exp %762 : vector<2x8x8xf32>
    %cst_309 = arith.constant dense<0.000000e+00> : vector<2x8xf32>
    %764 = vector.multi_reduction <add>, %763, %cst_309 [2] : vector<2x8x8xf32> to vector<2x8xf32>
    %765 = vector.shape_cast %764 : vector<2x8xf32> to vector<2x8x1xf32>
    %766 = tpu.reciprocal %765 {approx = true} : vector<2x8x1xf32> -> vector<2x8x1xf32>
    %767 = vector.broadcast %766 : vector<2x8x1xf32> to vector<2x8x8xf32>
    %768 = arith.mulf %763, %767 : vector<2x8x8xf32>
    "tpu.trace_start"() <{level = 10 : i32, message = "bqk,bkd->bqd"}> : () -> ()
    %cst_310 = arith.constant dense<0.000000e+00> : vector<2x8x8xf32>
    %769 = tpu.matmul %768, %752, %cst_310 {dimension_numbers = #tpu.dot_dimension_numbers<[2], [1], [1], [2], [0, 0, 0, 1, 1, 2], [0], [0]>} : vector<2x8x8xf32>, vector<2x8x8xf32>, vector<2x8x8xf32> -> vector<2x8x8xf32>
    "tpu.trace_stop"() : () -> ()
    %770 = vector.shape_cast %769 : vector<2x8x8xf32> to vector<16x8xf32>
    %771 = vector.extract_strided_slice %738 {offsets = [0, 0], sizes = [8, 32], strides = [1, 1]} : vector<32x32xf32> to vector<8x32xf32>
    %cst_311 = arith.constant dense<0.000000e+00> : vector<16x32xf32>
    %772 = tpu.matmul %770, %771, %cst_311 {dimension_numbers = #tpu.dot_dimension_numbers<[1], [0], [0], [1], [0, 0, 1, 1], [], []>} : vector<16x8xf32>, vector<8x32xf32>, vector<16x32xf32> -> vector<16x32xf32>
    %773 = vector.extract_strided_slice %735 {offsets = [0, 8], sizes = [16, 8], strides = [1, 1]} : vector<16x32xf32> to vector<16x8xf32>
    %774 = vector.shape_cast %773 : vector<16x8xf32> to vector<2x8x8xf32>
    %775 = vector.extract_strided_slice %736 {offsets = [0, 8], sizes = [16, 8], strides = [1, 1]} : vector<16x64xf32> to vector<16x8xf32>
    %776 = vector.shape_cast %775 : vector<16x8xf32> to vector<2x8x8xf32>
    %777 = vector.extract_strided_slice %736 {offsets = [0, 40], sizes = [16, 8], strides = [1, 1]} : vector<16x64xf32> to vector<16x8xf32>
    %778 = vector.shape_cast %777 : vector<16x8xf32> to vector<2x8x8xf32>
    "tpu.trace_start"() <{level = 10 : i32, message = "bqd,bkd->bqk"}> : () -> ()
    %cst_312 = arith.constant dense<0.000000e+00> : vector<2x8x8xf32>
    %779 = tpu.matmul %774, %776, %cst_312 {dimension_numbers = #tpu.dot_dimension_numbers<[2], [2], [1], [1], [0, 0, 0, 1, 1, 1], [0], [0]>} : vector<2x8x8xf32>, vector<2x8x8xf32>, vector<2x8x8xf32> -> vector<2x8x8xf32>
    "tpu.trace_stop"() : () -> ()
    %cst_313 = arith.constant 0.353553385 : f32
    %780 = vector.broadcast %cst_313 : f32 to vector<2x8x8xf32>
    %781 = arith.mulf %779, %780 : vector<2x8x8xf32>
    %782 = vector.shape_cast %746 : vector<8x8xf32> to vector<1x8x8xf32>
    %783 = vector.broadcast %782 : vector<1x8x8xf32> to vector<2x8x8xf32>
    %784 = arith.addf %781, %783 : vector<2x8x8xf32>
    %cst_314 = arith.constant dense<0xFF800000> : vector<2x8xf32>
    %785 = vector.multi_reduction <maximumf>, %784, %cst_314 [2] : vector<2x8x8xf32> to vector<2x8xf32>
    %786 = vector.shape_cast %785 : vector<2x8xf32> to vector<2x8x1xf32>
    %787 = vector.broadcast %786 : vector<2x8x1xf32> to vector<2x8x8xf32>
    %788 = arith.subf %784, %787 : vector<2x8x8xf32>
    %789 = math.exp %788 : vector<2x8x8xf32>
    %cst_315 = arith.constant dense<0.000000e+00> : vector<2x8xf32>
    %790 = vector.multi_reduction <add>, %789, %cst_315 [2] : vector<2x8x8xf32> to vector<2x8xf32>
    %791 = vector.shape_cast %790 : vector<2x8xf32> to vector<2x8x1xf32>
    %792 = tpu.reciprocal %791 {approx = true} : vector<2x8x1xf32> -> vector<2x8x1xf32>
    %793 = vector.broadcast %792 : vector<2x8x1xf32> to vector<2x8x8xf32>
    %794 = arith.mulf %789, %793 : vector<2x8x8xf32>
    "tpu.trace_start"() <{level = 10 : i32, message = "bqk,bkd->bqd"}> : () -> ()
    %cst_316 = arith.constant dense<0.000000e+00> : vector<2x8x8xf32>
    %795 = tpu.matmul %794, %778, %cst_316 {dimension_numbers = #tpu.dot_dimension_numbers<[2], [1], [1], [2], [0, 0, 0, 1, 1, 2], [0], [0]>} : vector<2x8x8xf32>, vector<2x8x8xf32>, vector<2x8x8xf32> -> vector<2x8x8xf32>
    "tpu.trace_stop"() : () -> ()
    %796 = vector.shape_cast %795 : vector<2x8x8xf32> to vector<16x8xf32>
    %797 = vector.extract_strided_slice %738 {offsets = [8, 0], sizes = [8, 32], strides = [1, 1]} : vector<32x32xf32> to vector<8x32xf32>
    %cst_317 = arith.constant dense<0.000000e+00> : vector<16x32xf32>
    %798 = tpu.matmul %796, %797, %cst_317 {dimension_numbers = #tpu.dot_dimension_numbers<[1], [0], [0], [1], [0, 0, 1, 1], [], []>} : vector<16x8xf32>, vector<8x32xf32>, vector<16x32xf32> -> vector<16x32xf32>
    %799 = arith.addf %772, %798 : vector<16x32xf32>
    %800 = vector.extract_strided_slice %735 {offsets = [0, 16], sizes = [16, 8], strides = [1, 1]} : vector<16x32xf32> to vector<16x8xf32>
    %801 = vector.shape_cast %800 : vector<16x8xf32> to vector<2x8x8xf32>
    %802 = vector.extract_strided_slice %736 {offsets = [0, 16], sizes = [16, 8], strides = [1, 1]} : vector<16x64xf32> to vector<16x8xf32>
    %803 = vector.shape_cast %802 : vector<16x8xf32> to vector<2x8x8xf32>
    %804 = vector.extract_strided_slice %736 {offsets = [0, 48], sizes = [16, 8], strides = [1, 1]} : vector<16x64xf32> to vector<16x8xf32>
    %805 = vector.shape_cast %804 : vector<16x8xf32> to vector<2x8x8xf32>
    "tpu.trace_start"() <{level = 10 : i32, message = "bqd,bkd->bqk"}> : () -> ()
    %cst_318 = arith.constant dense<0.000000e+00> : vector<2x8x8xf32>
    %806 = tpu.matmul %801, %803, %cst_318 {dimension_numbers = #tpu.dot_dimension_numbers<[2], [2], [1], [1], [0, 0, 0, 1, 1, 1], [0], [0]>} : vector<2x8x8xf32>, vector<2x8x8xf32>, vector<2x8x8xf32> -> vector<2x8x8xf32>
    "tpu.trace_stop"() : () -> ()
    %cst_319 = arith.constant 0.353553385 : f32
    %807 = vector.broadcast %cst_319 : f32 to vector<2x8x8xf32>
    %808 = arith.mulf %806, %807 : vector<2x8x8xf32>
    %809 = vector.shape_cast %746 : vector<8x8xf32> to vector<1x8x8xf32>
    %810 = vector.broadcast %809 : vector<1x8x8xf32> to vector<2x8x8xf32>
    %811 = arith.addf %808, %810 : vector<2x8x8xf32>
    %cst_320 = arith.constant dense<0xFF800000> : vector<2x8xf32>
    %812 = vector.multi_reduction <maximumf>, %811, %cst_320 [2] : vector<2x8x8xf32> to vector<2x8xf32>
    %813 = vector.shape_cast %812 : vector<2x8xf32> to vector<2x8x1xf32>
    %814 = vector.broadcast %813 : vector<2x8x1xf32> to vector<2x8x8xf32>
    %815 = arith.subf %811, %814 : vector<2x8x8xf32>
    %816 = math.exp %815 : vector<2x8x8xf32>
    %cst_321 = arith.constant dense<0.000000e+00> : vector<2x8xf32>
    %817 = vector.multi_reduction <add>, %816, %cst_321 [2] : vector<2x8x8xf32> to vector<2x8xf32>
    %818 = vector.shape_cast %817 : vector<2x8xf32> to vector<2x8x1xf32>
    %819 = tpu.reciprocal %818 {approx = true} : vector<2x8x1xf32> -> vector<2x8x1xf32>
    %820 = vector.broadcast %819 : vector<2x8x1xf32> to vector<2x8x8xf32>
    %821 = arith.mulf %816, %820 : vector<2x8x8xf32>
    "tpu.trace_start"() <{level = 10 : i32, message = "bqk,bkd->bqd"}> : () -> ()
    %cst_322 = arith.constant dense<0.000000e+00> : vector<2x8x8xf32>
    %822 = tpu.matmul %821, %805, %cst_322 {dimension_numbers = #tpu.dot_dimension_numbers<[2], [1], [1], [2], [0, 0, 0, 1, 1, 2], [0], [0]>} : vector<2x8x8xf32>, vector<2x8x8xf32>, vector<2x8x8xf32> -> vector<2x8x8xf32>
    "tpu.trace_stop"() : () -> ()
    %823 = vector.shape_cast %822 : vector<2x8x8xf32> to vector<16x8xf32>
    %824 = vector.extract_strided_slice %738 {offsets = [16, 0], sizes = [8, 32], strides = [1, 1]} : vector<32x32xf32> to vector<8x32xf32>
    %cst_323 = arith.constant dense<0.000000e+00> : vector<16x32xf32>
    %825 = tpu.matmul %823, %824, %cst_323 {dimension_numbers = #tpu.dot_dimension_numbers<[1], [0], [0], [1], [0, 0, 1, 1], [], []>} : vector<16x8xf32>, vector<8x32xf32>, vector<16x32xf32> -> vector<16x32xf32>
    %826 = arith.addf %799, %825 : vector<16x32xf32>
    %827 = vector.extract_strided_slice %735 {offsets = [0, 24], sizes = [16, 8], strides = [1, 1]} : vector<16x32xf32> to vector<16x8xf32>
    %828 = vector.shape_cast %827 : vector<16x8xf32> to vector<2x8x8xf32>
    %829 = vector.extract_strided_slice %736 {offsets = [0, 24], sizes = [16, 8], strides = [1, 1]} : vector<16x64xf32> to vector<16x8xf32>
    %830 = vector.shape_cast %829 : vector<16x8xf32> to vector<2x8x8xf32>
    %831 = vector.extract_strided_slice %736 {offsets = [0, 56], sizes = [16, 8], strides = [1, 1]} : vector<16x64xf32> to vector<16x8xf32>
    %832 = vector.shape_cast %831 : vector<16x8xf32> to vector<2x8x8xf32>
    "tpu.trace_start"() <{level = 10 : i32, message = "bqd,bkd->bqk"}> : () -> ()
    %cst_324 = arith.constant dense<0.000000e+00> : vector<2x8x8xf32>
    %833 = tpu.matmul %828, %830, %cst_324 {dimension_numbers = #tpu.dot_dimension_numbers<[2], [2], [1], [1], [0, 0, 0, 1, 1, 1], [0], [0]>} : vector<2x8x8xf32>, vector<2x8x8xf32>, vector<2x8x8xf32> -> vector<2x8x8xf32>
    "tpu.trace_stop"() : () -> ()
    %cst_325 = arith.constant 0.353553385 : f32
    %834 = vector.broadcast %cst_325 : f32 to vector<2x8x8xf32>
    %835 = arith.mulf %833, %834 : vector<2x8x8xf32>
    %836 = vector.shape_cast %746 : vector<8x8xf32> to vector<1x8x8xf32>
    %837 = vector.broadcast %836 : vector<1x8x8xf32> to vector<2x8x8xf32>
    %838 = arith.addf %835, %837 : vector<2x8x8xf32>
    %cst_326 = arith.constant dense<0xFF800000> : vector<2x8xf32>
    %839 = vector.multi_reduction <maximumf>, %838, %cst_326 [2] : vector<2x8x8xf32> to vector<2x8xf32>
    %840 = vector.shape_cast %839 : vector<2x8xf32> to vector<2x8x1xf32>
    %841 = vector.broadcast %840 : vector<2x8x1xf32> to vector<2x8x8xf32>
    %842 = arith.subf %838, %841 : vector<2x8x8xf32>
    %843 = math.exp %842 : vector<2x8x8xf32>
    %cst_327 = arith.constant dense<0.000000e+00> : vector<2x8xf32>
    %844 = vector.multi_reduction <add>, %843, %cst_327 [2] : vector<2x8x8xf32> to vector<2x8xf32>
    %845 = vector.shape_cast %844 : vector<2x8xf32> to vector<2x8x1xf32>
    %846 = tpu.reciprocal %845 {approx = true} : vector<2x8x1xf32> -> vector<2x8x1xf32>
    %847 = vector.broadcast %846 : vector<2x8x1xf32> to vector<2x8x8xf32>
    %848 = arith.mulf %843, %847 : vector<2x8x8xf32>
    "tpu.trace_start"() <{level = 10 : i32, message = "bqk,bkd->bqd"}> : () -> ()
    %cst_328 = arith.constant dense<0.000000e+00> : vector<2x8x8xf32>
    %849 = tpu.matmul %848, %832, %cst_328 {dimension_numbers = #tpu.dot_dimension_numbers<[2], [1], [1], [2], [0, 0, 0, 1, 1, 2], [0], [0]>} : vector<2x8x8xf32>, vector<2x8x8xf32>, vector<2x8x8xf32> -> vector<2x8x8xf32>
    "tpu.trace_stop"() : () -> ()
    %850 = vector.shape_cast %849 : vector<2x8x8xf32> to vector<16x8xf32>
    %851 = vector.extract_strided_slice %738 {offsets = [24, 0], sizes = [8, 32], strides = [1, 1]} : vector<32x32xf32> to vector<8x32xf32>
    %cst_329 = arith.constant dense<0.000000e+00> : vector<16x32xf32>
    %852 = tpu.matmul %850, %851, %cst_329 {dimension_numbers = #tpu.dot_dimension_numbers<[1], [0], [0], [1], [0, 0, 1, 1], [], []>} : vector<16x8xf32>, vector<8x32xf32>, vector<16x32xf32> -> vector<16x32xf32>
    %853 = arith.addf %826, %852 : vector<16x32xf32>
    %854 = vector.broadcast %740 : vector<1x32xf32> to vector<16x32xf32>
    %855 = arith.addf %853, %854 : vector<16x32xf32>
    %856 = arith.addf %727, %855 : vector<16x32xf32>
    %c1_330 = arith.constant 1 : index
    %c0_331 = arith.constant 0 : index
    %c0_332 = arith.constant 0 : index
    %857 = vector.load %arg28[%c1_330, %c0_331, %c0_332] : memref<2x1x32xf32, #tpu.memory_space<vmem>>, vector<1x1x32xf32>
    %858 = vector.shape_cast %857 : vector<1x1x32xf32> to vector<1x32xf32>
    %c1_333 = arith.constant 1 : index
    %c0_334 = arith.constant 0 : index
    %c0_335 = arith.constant 0 : index
    %859 = vector.load %arg29[%c1_333, %c0_334, %c0_335] : memref<2x1x32xf32, #tpu.memory_space<vmem>>, vector<1x1x32xf32>
    %860 = vector.shape_cast %859 : vector<1x1x32xf32> to vector<1x32xf32>
    %cst_336 = arith.constant dense<0.000000e+00> : vector<16xf32>
    %861 = vector.multi_reduction <add>, %856, %cst_336 [1] : vector<16x32xf32> to vector<16xf32>
    %862 = vector.shape_cast %861 : vector<16xf32> to vector<16x1xf32>
    %cst_337 = arith.constant 3.200000e+01 : f32
    %863 = vector.broadcast %cst_337 : f32 to vector<16x1xf32>
    %864 = arith.divf %862, %863 : vector<16x1xf32>
    %865 = vector.broadcast %864 : vector<16x1xf32> to vector<16x32xf32>
    %866 = arith.subf %856, %865 : vector<16x32xf32>
    %867 = arith.mulf %866, %866 : vector<16x32xf32>
    %cst_338 = arith.constant dense<0.000000e+00> : vector<16xf32>
    %868 = vector.multi_reduction <add>, %867, %cst_338 [1] : vector<16x32xf32> to vector<16xf32>
    %869 = vector.shape_cast %868 : vector<16xf32> to vector<16x1xf32>
    %cst_339 = arith.constant 3.200000e+01 : f32
    %870 = vector.broadcast %cst_339 : f32 to vector<16x1xf32>
    %871 = arith.divf %869, %870 : vector<16x1xf32>
    %872 = vector.broadcast %864 : vector<16x1xf32> to vector<16x32xf32>
    %873 = arith.subf %856, %872 : vector<16x32xf32>
    %cst_340 = arith.constant 9.99999974E-6 : f32
    %874 = vector.broadcast %cst_340 : f32 to vector<16x1xf32>
    %875 = arith.addf %871, %874 : vector<16x1xf32>
    %876 = math.rsqrt %875 : vector<16x1xf32>
    %877 = vector.broadcast %876 : vector<16x1xf32> to vector<16x32xf32>
    %878 = arith.mulf %873, %877 : vector<16x32xf32>
    %879 = vector.broadcast %858 : vector<1x32xf32> to vector<16x32xf32>
    %880 = arith.mulf %878, %879 : vector<16x32xf32>
    %881 = vector.broadcast %860 : vector<1x32xf32> to vector<16x32xf32>
    %882 = arith.addf %880, %881 : vector<16x32xf32>
    %c1_341 = arith.constant 1 : index
    %c0_342 = arith.constant 0 : index
    %c0_343 = arith.constant 0 : index
    %883 = vector.load %arg18[%c1_341, %c0_342, %c0_343] : memref<2x32x32xf32, #tpu.memory_space<vmem>>, vector<1x32x32xf32>
    %884 = vector.shape_cast %883 : vector<1x32x32xf32> to vector<32x32xf32>
    %cst_344 = arith.constant dense<0.000000e+00> : vector<16x32xf32>
    %885 = tpu.matmul %882, %884, %cst_344 {dimension_numbers = #tpu.dot_dimension_numbers<[1], [0], [0], [1], [0, 0, 1, 1], [], []>} : vector<16x32xf32>, vector<32x32xf32>, vector<16x32xf32> -> vector<16x32xf32>
    %c1_345 = arith.constant 1 : index
    %c0_346 = arith.constant 0 : index
    %c0_347 = arith.constant 0 : index
    %886 = vector.load %arg19[%c1_345, %c0_346, %c0_347] : memref<2x1x32xf32, #tpu.memory_space<vmem>>, vector<1x1x32xf32>
    %887 = vector.shape_cast %886 : vector<1x1x32xf32> to vector<1x32xf32>
    %888 = vector.broadcast %887 : vector<1x32xf32> to vector<16x32xf32>
    %889 = arith.addf %885, %888 : vector<16x32xf32>
    %c1_348 = arith.constant 1 : index
    %c0_349 = arith.constant 0 : index
    %c0_350 = arith.constant 0 : index
    %890 = vector.load %arg20[%c1_348, %c0_349, %c0_350] : memref<2x32x64xf32, #tpu.memory_space<vmem>>, vector<1x32x64xf32>
    %891 = vector.shape_cast %890 : vector<1x32x64xf32> to vector<32x64xf32>
    %cst_351 = arith.constant dense<0.000000e+00> : vector<16x64xf32>
    %892 = tpu.matmul %385, %891, %cst_351 {dimension_numbers = #tpu.dot_dimension_numbers<[1], [0], [0], [1], [0, 0, 1, 1], [], []>} : vector<16x32xf32>, vector<32x64xf32>, vector<16x64xf32> -> vector<16x64xf32>
    %c1_352 = arith.constant 1 : index
    %c0_353 = arith.constant 0 : index
    %c0_354 = arith.constant 0 : index
    %893 = vector.load %arg21[%c1_352, %c0_353, %c0_354] : memref<2x1x64xf32, #tpu.memory_space<vmem>>, vector<1x1x64xf32>
    %894 = vector.shape_cast %893 : vector<1x1x64xf32> to vector<1x64xf32>
    %895 = vector.broadcast %894 : vector<1x64xf32> to vector<16x64xf32>
    %896 = arith.addf %892, %895 : vector<16x64xf32>
    %c1_355 = arith.constant 1 : index
    %c0_356 = arith.constant 0 : index
    %c0_357 = arith.constant 0 : index
    %897 = vector.load %arg22[%c1_355, %c0_356, %c0_357] : memref<2x32x32xf32, #tpu.memory_space<vmem>>, vector<1x32x32xf32>
    %898 = vector.shape_cast %897 : vector<1x32x32xf32> to vector<32x32xf32>
    %c1_358 = arith.constant 1 : index
    %c0_359 = arith.constant 0 : index
    %c0_360 = arith.constant 0 : index
    %899 = vector.load %arg23[%c1_358, %c0_359, %c0_360] : memref<2x1x32xf32, #tpu.memory_space<vmem>>, vector<1x1x32xf32>
    %900 = vector.shape_cast %899 : vector<1x1x32xf32> to vector<1x32xf32>
    %901 = vector.extract_strided_slice %889 {offsets = [0, 0], sizes = [16, 8], strides = [1, 1]} : vector<16x32xf32> to vector<16x8xf32>
    %902 = vector.shape_cast %901 : vector<16x8xf32> to vector<2x8x8xf32>
    %903 = vector.extract_strided_slice %896 {offsets = [0, 0], sizes = [16, 8], strides = [1, 1]} : vector<16x64xf32> to vector<16x8xf32>
    %904 = vector.shape_cast %903 : vector<16x8xf32> to vector<2x8x8xf32>
    %905 = vector.extract_strided_slice %896 {offsets = [0, 32], sizes = [16, 8], strides = [1, 1]} : vector<16x64xf32> to vector<16x8xf32>
    %906 = vector.shape_cast %905 : vector<16x8xf32> to vector<2x8x8xf32>
    "tpu.trace_start"() <{level = 10 : i32, message = "bqd,bkd->bqk"}> : () -> ()
    %cst_361 = arith.constant dense<0.000000e+00> : vector<2x8x8xf32>
    %907 = tpu.matmul %902, %904, %cst_361 {dimension_numbers = #tpu.dot_dimension_numbers<[2], [2], [1], [1], [0, 0, 0, 1, 1, 1], [0], [0]>} : vector<2x8x8xf32>, vector<2x8x8xf32>, vector<2x8x8xf32> -> vector<2x8x8xf32>
    "tpu.trace_stop"() : () -> ()
    %cst_362 = arith.constant 0.353553385 : f32
    %908 = vector.broadcast %cst_362 : f32 to vector<2x8x8xf32>
    %909 = arith.mulf %907, %908 : vector<2x8x8xf32>
    %cst_363 = arith.constant dense<0xFF800000> : vector<2x8xf32>
    %910 = vector.multi_reduction <maximumf>, %909, %cst_363 [2] : vector<2x8x8xf32> to vector<2x8xf32>
    %911 = vector.shape_cast %910 : vector<2x8xf32> to vector<2x8x1xf32>
    %912 = vector.broadcast %911 : vector<2x8x1xf32> to vector<2x8x8xf32>
    %913 = arith.subf %909, %912 : vector<2x8x8xf32>
    %914 = math.exp %913 : vector<2x8x8xf32>
    %cst_364 = arith.constant dense<0.000000e+00> : vector<2x8xf32>
    %915 = vector.multi_reduction <add>, %914, %cst_364 [2] : vector<2x8x8xf32> to vector<2x8xf32>
    %916 = vector.shape_cast %915 : vector<2x8xf32> to vector<2x8x1xf32>
    %917 = tpu.reciprocal %916 {approx = true} : vector<2x8x1xf32> -> vector<2x8x1xf32>
    %918 = vector.broadcast %917 : vector<2x8x1xf32> to vector<2x8x8xf32>
    %919 = arith.mulf %914, %918 : vector<2x8x8xf32>
    "tpu.trace_start"() <{level = 10 : i32, message = "bqk,bkd->bqd"}> : () -> ()
    %cst_365 = arith.constant dense<0.000000e+00> : vector<2x8x8xf32>
    %920 = tpu.matmul %919, %906, %cst_365 {dimension_numbers = #tpu.dot_dimension_numbers<[2], [1], [1], [2], [0, 0, 0, 1, 1, 2], [0], [0]>} : vector<2x8x8xf32>, vector<2x8x8xf32>, vector<2x8x8xf32> -> vector<2x8x8xf32>
    "tpu.trace_stop"() : () -> ()
    %921 = vector.shape_cast %920 : vector<2x8x8xf32> to vector<16x8xf32>
    %922 = vector.extract_strided_slice %898 {offsets = [0, 0], sizes = [8, 32], strides = [1, 1]} : vector<32x32xf32> to vector<8x32xf32>
    %cst_366 = arith.constant dense<0.000000e+00> : vector<16x32xf32>
    %923 = tpu.matmul %921, %922, %cst_366 {dimension_numbers = #tpu.dot_dimension_numbers<[1], [0], [0], [1], [0, 0, 1, 1], [], []>} : vector<16x8xf32>, vector<8x32xf32>, vector<16x32xf32> -> vector<16x32xf32>
    %924 = vector.extract_strided_slice %889 {offsets = [0, 8], sizes = [16, 8], strides = [1, 1]} : vector<16x32xf32> to vector<16x8xf32>
    %925 = vector.shape_cast %924 : vector<16x8xf32> to vector<2x8x8xf32>
    %926 = vector.extract_strided_slice %896 {offsets = [0, 8], sizes = [16, 8], strides = [1, 1]} : vector<16x64xf32> to vector<16x8xf32>
    %927 = vector.shape_cast %926 : vector<16x8xf32> to vector<2x8x8xf32>
    %928 = vector.extract_strided_slice %896 {offsets = [0, 40], sizes = [16, 8], strides = [1, 1]} : vector<16x64xf32> to vector<16x8xf32>
    %929 = vector.shape_cast %928 : vector<16x8xf32> to vector<2x8x8xf32>
    "tpu.trace_start"() <{level = 10 : i32, message = "bqd,bkd->bqk"}> : () -> ()
    %cst_367 = arith.constant dense<0.000000e+00> : vector<2x8x8xf32>
    %930 = tpu.matmul %925, %927, %cst_367 {dimension_numbers = #tpu.dot_dimension_numbers<[2], [2], [1], [1], [0, 0, 0, 1, 1, 1], [0], [0]>} : vector<2x8x8xf32>, vector<2x8x8xf32>, vector<2x8x8xf32> -> vector<2x8x8xf32>
    "tpu.trace_stop"() : () -> ()
    %cst_368 = arith.constant 0.353553385 : f32
    %931 = vector.broadcast %cst_368 : f32 to vector<2x8x8xf32>
    %932 = arith.mulf %930, %931 : vector<2x8x8xf32>
    %cst_369 = arith.constant dense<0xFF800000> : vector<2x8xf32>
    %933 = vector.multi_reduction <maximumf>, %932, %cst_369 [2] : vector<2x8x8xf32> to vector<2x8xf32>
    %934 = vector.shape_cast %933 : vector<2x8xf32> to vector<2x8x1xf32>
    %935 = vector.broadcast %934 : vector<2x8x1xf32> to vector<2x8x8xf32>
    %936 = arith.subf %932, %935 : vector<2x8x8xf32>
    %937 = math.exp %936 : vector<2x8x8xf32>
    %cst_370 = arith.constant dense<0.000000e+00> : vector<2x8xf32>
    %938 = vector.multi_reduction <add>, %937, %cst_370 [2] : vector<2x8x8xf32> to vector<2x8xf32>
    %939 = vector.shape_cast %938 : vector<2x8xf32> to vector<2x8x1xf32>
    %940 = tpu.reciprocal %939 {approx = true} : vector<2x8x1xf32> -> vector<2x8x1xf32>
    %941 = vector.broadcast %940 : vector<2x8x1xf32> to vector<2x8x8xf32>
    %942 = arith.mulf %937, %941 : vector<2x8x8xf32>
    "tpu.trace_start"() <{level = 10 : i32, message = "bqk,bkd->bqd"}> : () -> ()
    %cst_371 = arith.constant dense<0.000000e+00> : vector<2x8x8xf32>
    %943 = tpu.matmul %942, %929, %cst_371 {dimension_numbers = #tpu.dot_dimension_numbers<[2], [1], [1], [2], [0, 0, 0, 1, 1, 2], [0], [0]>} : vector<2x8x8xf32>, vector<2x8x8xf32>, vector<2x8x8xf32> -> vector<2x8x8xf32>
    "tpu.trace_stop"() : () -> ()
    %944 = vector.shape_cast %943 : vector<2x8x8xf32> to vector<16x8xf32>
    %945 = vector.extract_strided_slice %898 {offsets = [8, 0], sizes = [8, 32], strides = [1, 1]} : vector<32x32xf32> to vector<8x32xf32>
    %cst_372 = arith.constant dense<0.000000e+00> : vector<16x32xf32>
    %946 = tpu.matmul %944, %945, %cst_372 {dimension_numbers = #tpu.dot_dimension_numbers<[1], [0], [0], [1], [0, 0, 1, 1], [], []>} : vector<16x8xf32>, vector<8x32xf32>, vector<16x32xf32> -> vector<16x32xf32>
    %947 = arith.addf %923, %946 : vector<16x32xf32>
    %948 = vector.extract_strided_slice %889 {offsets = [0, 16], sizes = [16, 8], strides = [1, 1]} : vector<16x32xf32> to vector<16x8xf32>
    %949 = vector.shape_cast %948 : vector<16x8xf32> to vector<2x8x8xf32>
    %950 = vector.extract_strided_slice %896 {offsets = [0, 16], sizes = [16, 8], strides = [1, 1]} : vector<16x64xf32> to vector<16x8xf32>
    %951 = vector.shape_cast %950 : vector<16x8xf32> to vector<2x8x8xf32>
    %952 = vector.extract_strided_slice %896 {offsets = [0, 48], sizes = [16, 8], strides = [1, 1]} : vector<16x64xf32> to vector<16x8xf32>
    %953 = vector.shape_cast %952 : vector<16x8xf32> to vector<2x8x8xf32>
    "tpu.trace_start"() <{level = 10 : i32, message = "bqd,bkd->bqk"}> : () -> ()
    %cst_373 = arith.constant dense<0.000000e+00> : vector<2x8x8xf32>
    %954 = tpu.matmul %949, %951, %cst_373 {dimension_numbers = #tpu.dot_dimension_numbers<[2], [2], [1], [1], [0, 0, 0, 1, 1, 1], [0], [0]>} : vector<2x8x8xf32>, vector<2x8x8xf32>, vector<2x8x8xf32> -> vector<2x8x8xf32>
    "tpu.trace_stop"() : () -> ()
    %cst_374 = arith.constant 0.353553385 : f32
    %955 = vector.broadcast %cst_374 : f32 to vector<2x8x8xf32>
    %956 = arith.mulf %954, %955 : vector<2x8x8xf32>
    %cst_375 = arith.constant dense<0xFF800000> : vector<2x8xf32>
    %957 = vector.multi_reduction <maximumf>, %956, %cst_375 [2] : vector<2x8x8xf32> to vector<2x8xf32>
    %958 = vector.shape_cast %957 : vector<2x8xf32> to vector<2x8x1xf32>
    %959 = vector.broadcast %958 : vector<2x8x1xf32> to vector<2x8x8xf32>
    %960 = arith.subf %956, %959 : vector<2x8x8xf32>
    %961 = math.exp %960 : vector<2x8x8xf32>
    %cst_376 = arith.constant dense<0.000000e+00> : vector<2x8xf32>
    %962 = vector.multi_reduction <add>, %961, %cst_376 [2] : vector<2x8x8xf32> to vector<2x8xf32>
    %963 = vector.shape_cast %962 : vector<2x8xf32> to vector<2x8x1xf32>
    %964 = tpu.reciprocal %963 {approx = true} : vector<2x8x1xf32> -> vector<2x8x1xf32>
    %965 = vector.broadcast %964 : vector<2x8x1xf32> to vector<2x8x8xf32>
    %966 = arith.mulf %961, %965 : vector<2x8x8xf32>
    "tpu.trace_start"() <{level = 10 : i32, message = "bqk,bkd->bqd"}> : () -> ()
    %cst_377 = arith.constant dense<0.000000e+00> : vector<2x8x8xf32>
    %967 = tpu.matmul %966, %953, %cst_377 {dimension_numbers = #tpu.dot_dimension_numbers<[2], [1], [1], [2], [0, 0, 0, 1, 1, 2], [0], [0]>} : vector<2x8x8xf32>, vector<2x8x8xf32>, vector<2x8x8xf32> -> vector<2x8x8xf32>
    "tpu.trace_stop"() : () -> ()
    %968 = vector.shape_cast %967 : vector<2x8x8xf32> to vector<16x8xf32>
    %969 = vector.extract_strided_slice %898 {offsets = [16, 0], sizes = [8, 32], strides = [1, 1]} : vector<32x32xf32> to vector<8x32xf32>
    %cst_378 = arith.constant dense<0.000000e+00> : vector<16x32xf32>
    %970 = tpu.matmul %968, %969, %cst_378 {dimension_numbers = #tpu.dot_dimension_numbers<[1], [0], [0], [1], [0, 0, 1, 1], [], []>} : vector<16x8xf32>, vector<8x32xf32>, vector<16x32xf32> -> vector<16x32xf32>
    %971 = arith.addf %947, %970 : vector<16x32xf32>
    %972 = vector.extract_strided_slice %889 {offsets = [0, 24], sizes = [16, 8], strides = [1, 1]} : vector<16x32xf32> to vector<16x8xf32>
    %973 = vector.shape_cast %972 : vector<16x8xf32> to vector<2x8x8xf32>
    %974 = vector.extract_strided_slice %896 {offsets = [0, 24], sizes = [16, 8], strides = [1, 1]} : vector<16x64xf32> to vector<16x8xf32>
    %975 = vector.shape_cast %974 : vector<16x8xf32> to vector<2x8x8xf32>
    %976 = vector.extract_strided_slice %896 {offsets = [0, 56], sizes = [16, 8], strides = [1, 1]} : vector<16x64xf32> to vector<16x8xf32>
    %977 = vector.shape_cast %976 : vector<16x8xf32> to vector<2x8x8xf32>
    "tpu.trace_start"() <{level = 10 : i32, message = "bqd,bkd->bqk"}> : () -> ()
    %cst_379 = arith.constant dense<0.000000e+00> : vector<2x8x8xf32>
    %978 = tpu.matmul %973, %975, %cst_379 {dimension_numbers = #tpu.dot_dimension_numbers<[2], [2], [1], [1], [0, 0, 0, 1, 1, 1], [0], [0]>} : vector<2x8x8xf32>, vector<2x8x8xf32>, vector<2x8x8xf32> -> vector<2x8x8xf32>
    "tpu.trace_stop"() : () -> ()
    %cst_380 = arith.constant 0.353553385 : f32
    %979 = vector.broadcast %cst_380 : f32 to vector<2x8x8xf32>
    %980 = arith.mulf %978, %979 : vector<2x8x8xf32>
    %cst_381 = arith.constant dense<0xFF800000> : vector<2x8xf32>
    %981 = vector.multi_reduction <maximumf>, %980, %cst_381 [2] : vector<2x8x8xf32> to vector<2x8xf32>
    %982 = vector.shape_cast %981 : vector<2x8xf32> to vector<2x8x1xf32>
    %983 = vector.broadcast %982 : vector<2x8x1xf32> to vector<2x8x8xf32>
    %984 = arith.subf %980, %983 : vector<2x8x8xf32>
    %985 = math.exp %984 : vector<2x8x8xf32>
    %cst_382 = arith.constant dense<0.000000e+00> : vector<2x8xf32>
    %986 = vector.multi_reduction <add>, %985, %cst_382 [2] : vector<2x8x8xf32> to vector<2x8xf32>
    %987 = vector.shape_cast %986 : vector<2x8xf32> to vector<2x8x1xf32>
    %988 = tpu.reciprocal %987 {approx = true} : vector<2x8x1xf32> -> vector<2x8x1xf32>
    %989 = vector.broadcast %988 : vector<2x8x1xf32> to vector<2x8x8xf32>
    %990 = arith.mulf %985, %989 : vector<2x8x8xf32>
    "tpu.trace_start"() <{level = 10 : i32, message = "bqk,bkd->bqd"}> : () -> ()
    %cst_383 = arith.constant dense<0.000000e+00> : vector<2x8x8xf32>
    %991 = tpu.matmul %990, %977, %cst_383 {dimension_numbers = #tpu.dot_dimension_numbers<[2], [1], [1], [2], [0, 0, 0, 1, 1, 2], [0], [0]>} : vector<2x8x8xf32>, vector<2x8x8xf32>, vector<2x8x8xf32> -> vector<2x8x8xf32>
    "tpu.trace_stop"() : () -> ()
    %992 = vector.shape_cast %991 : vector<2x8x8xf32> to vector<16x8xf32>
    %993 = vector.extract_strided_slice %898 {offsets = [24, 0], sizes = [8, 32], strides = [1, 1]} : vector<32x32xf32> to vector<8x32xf32>
    %cst_384 = arith.constant dense<0.000000e+00> : vector<16x32xf32>
    %994 = tpu.matmul %992, %993, %cst_384 {dimension_numbers = #tpu.dot_dimension_numbers<[1], [0], [0], [1], [0, 0, 1, 1], [], []>} : vector<16x8xf32>, vector<8x32xf32>, vector<16x32xf32> -> vector<16x32xf32>
    %995 = arith.addf %971, %994 : vector<16x32xf32>
    %996 = vector.broadcast %900 : vector<1x32xf32> to vector<16x32xf32>
    %997 = arith.addf %995, %996 : vector<16x32xf32>
    %998 = arith.addf %882, %997 : vector<16x32xf32>
    %c1_385 = arith.constant 1 : index
    %c0_386 = arith.constant 0 : index
    %c0_387 = arith.constant 0 : index
    %999 = vector.load %arg30[%c1_385, %c0_386, %c0_387] : memref<2x1x32xf32, #tpu.memory_space<vmem>>, vector<1x1x32xf32>
    %1000 = vector.shape_cast %999 : vector<1x1x32xf32> to vector<1x32xf32>
    %c1_388 = arith.constant 1 : index
    %c0_389 = arith.constant 0 : index
    %c0_390 = arith.constant 0 : index
    %1001 = vector.load %arg31[%c1_388, %c0_389, %c0_390] : memref<2x1x32xf32, #tpu.memory_space<vmem>>, vector<1x1x32xf32>
    %1002 = vector.shape_cast %1001 : vector<1x1x32xf32> to vector<1x32xf32>
    %cst_391 = arith.constant dense<0.000000e+00> : vector<16xf32>
    %1003 = vector.multi_reduction <add>, %998, %cst_391 [1] : vector<16x32xf32> to vector<16xf32>
    %1004 = vector.shape_cast %1003 : vector<16xf32> to vector<16x1xf32>
    %cst_392 = arith.constant 3.200000e+01 : f32
    %1005 = vector.broadcast %cst_392 : f32 to vector<16x1xf32>
    %1006 = arith.divf %1004, %1005 : vector<16x1xf32>
    %1007 = vector.broadcast %1006 : vector<16x1xf32> to vector<16x32xf32>
    %1008 = arith.subf %998, %1007 : vector<16x32xf32>
    %1009 = arith.mulf %1008, %1008 : vector<16x32xf32>
    %cst_393 = arith.constant dense<0.000000e+00> : vector<16xf32>
    %1010 = vector.multi_reduction <add>, %1009, %cst_393 [1] : vector<16x32xf32> to vector<16xf32>
    %1011 = vector.shape_cast %1010 : vector<16xf32> to vector<16x1xf32>
    %cst_394 = arith.constant 3.200000e+01 : f32
    %1012 = vector.broadcast %cst_394 : f32 to vector<16x1xf32>
    %1013 = arith.divf %1011, %1012 : vector<16x1xf32>
    %1014 = vector.broadcast %1006 : vector<16x1xf32> to vector<16x32xf32>
    %1015 = arith.subf %998, %1014 : vector<16x32xf32>
    %cst_395 = arith.constant 9.99999974E-6 : f32
    %1016 = vector.broadcast %cst_395 : f32 to vector<16x1xf32>
    %1017 = arith.addf %1013, %1016 : vector<16x1xf32>
    %1018 = math.rsqrt %1017 : vector<16x1xf32>
    %1019 = vector.broadcast %1018 : vector<16x1xf32> to vector<16x32xf32>
    %1020 = arith.mulf %1015, %1019 : vector<16x32xf32>
    %1021 = vector.broadcast %1000 : vector<1x32xf32> to vector<16x32xf32>
    %1022 = arith.mulf %1020, %1021 : vector<16x32xf32>
    %1023 = vector.broadcast %1002 : vector<1x32xf32> to vector<16x32xf32>
    %1024 = arith.addf %1022, %1023 : vector<16x32xf32>
    %c1_396 = arith.constant 1 : index
    %c0_397 = arith.constant 0 : index
    %c0_398 = arith.constant 0 : index
    %1025 = vector.load %arg24[%c1_396, %c0_397, %c0_398] : memref<2x32x64xf32, #tpu.memory_space<vmem>>, vector<1x32x64xf32>
    %1026 = vector.shape_cast %1025 : vector<1x32x64xf32> to vector<32x64xf32>
    %c1_399 = arith.constant 1 : index
    %c0_400 = arith.constant 0 : index
    %c0_401 = arith.constant 0 : index
    %1027 = vector.load %arg25[%c1_399, %c0_400, %c0_401] : memref<2x1x64xf32, #tpu.memory_space<vmem>>, vector<1x1x64xf32>
    %1028 = vector.shape_cast %1027 : vector<1x1x64xf32> to vector<1x64xf32>
    %c1_402 = arith.constant 1 : index
    %c0_403 = arith.constant 0 : index
    %c0_404 = arith.constant 0 : index
    %1029 = vector.load %arg26[%c1_402, %c0_403, %c0_404] : memref<2x64x32xf32, #tpu.memory_space<vmem>>, vector<1x64x32xf32>
    %1030 = vector.shape_cast %1029 : vector<1x64x32xf32> to vector<64x32xf32>
    %c1_405 = arith.constant 1 : index
    %c0_406 = arith.constant 0 : index
    %c0_407 = arith.constant 0 : index
    %1031 = vector.load %arg27[%c1_405, %c0_406, %c0_407] : memref<2x1x32xf32, #tpu.memory_space<vmem>>, vector<1x1x32xf32>
    %1032 = vector.shape_cast %1031 : vector<1x1x32xf32> to vector<1x32xf32>
    %cst_408 = arith.constant dense<0.000000e+00> : vector<16x64xf32>
    %1033 = tpu.matmul %1024, %1026, %cst_408 {dimension_numbers = #tpu.dot_dimension_numbers<[1], [0], [0], [1], [0, 0, 1, 1], [], []>} : vector<16x32xf32>, vector<32x64xf32>, vector<16x64xf32> -> vector<16x64xf32>
    %1034 = vector.broadcast %1028 : vector<1x64xf32> to vector<16x64xf32>
    %1035 = arith.addf %1033, %1034 : vector<16x64xf32>
    %cst_409 = arith.constant 0.000000e+00 : f32
    %1036 = vector.broadcast %cst_409 : f32 to vector<16x64xf32>
    %1037 = arith.maximumf %1035, %1036 : vector<16x64xf32>
    %cst_410 = arith.constant dense<0.000000e+00> : vector<16x32xf32>
    %1038 = tpu.matmul %1037, %1030, %cst_410 {dimension_numbers = #tpu.dot_dimension_numbers<[1], [0], [0], [1], [0, 0, 1, 1], [], []>} : vector<16x64xf32>, vector<64x32xf32>, vector<16x32xf32> -> vector<16x32xf32>
    %1039 = vector.broadcast %1032 : vector<1x32xf32> to vector<16x32xf32>
    %1040 = arith.addf %1038, %1039 : vector<16x32xf32>
    %1041 = arith.addf %1024, %1040 : vector<16x32xf32>
    %c1_411 = arith.constant 1 : index
    %c0_412 = arith.constant 0 : index
    %c0_413 = arith.constant 0 : index
    %1042 = vector.load %arg32[%c1_411, %c0_412, %c0_413] : memref<2x1x32xf32, #tpu.memory_space<vmem>>, vector<1x1x32xf32>
    %1043 = vector.shape_cast %1042 : vector<1x1x32xf32> to vector<1x32xf32>
    %c1_414 = arith.constant 1 : index
    %c0_415 = arith.constant 0 : index
    %c0_416 = arith.constant 0 : index
    %1044 = vector.load %arg33[%c1_414, %c0_415, %c0_416] : memref<2x1x32xf32, #tpu.memory_space<vmem>>, vector<1x1x32xf32>
    %1045 = vector.shape_cast %1044 : vector<1x1x32xf32> to vector<1x32xf32>
    %cst_417 = arith.constant dense<0.000000e+00> : vector<16xf32>
    %1046 = vector.multi_reduction <add>, %1041, %cst_417 [1] : vector<16x32xf32> to vector<16xf32>
    %1047 = vector.shape_cast %1046 : vector<16xf32> to vector<16x1xf32>
    %cst_418 = arith.constant 3.200000e+01 : f32
    %1048 = vector.broadcast %cst_418 : f32 to vector<16x1xf32>
    %1049 = arith.divf %1047, %1048 : vector<16x1xf32>
    %1050 = vector.broadcast %1049 : vector<16x1xf32> to vector<16x32xf32>
    %1051 = arith.subf %1041, %1050 : vector<16x32xf32>
    %1052 = arith.mulf %1051, %1051 : vector<16x32xf32>
    %cst_419 = arith.constant dense<0.000000e+00> : vector<16xf32>
    %1053 = vector.multi_reduction <add>, %1052, %cst_419 [1] : vector<16x32xf32> to vector<16xf32>
    %1054 = vector.shape_cast %1053 : vector<16xf32> to vector<16x1xf32>
    %cst_420 = arith.constant 3.200000e+01 : f32
    %1055 = vector.broadcast %cst_420 : f32 to vector<16x1xf32>
    %1056 = arith.divf %1054, %1055 : vector<16x1xf32>
    %1057 = vector.broadcast %1049 : vector<16x1xf32> to vector<16x32xf32>
    %1058 = arith.subf %1041, %1057 : vector<16x32xf32>
    %cst_421 = arith.constant 9.99999974E-6 : f32
    %1059 = vector.broadcast %cst_421 : f32 to vector<16x1xf32>
    %1060 = arith.addf %1056, %1059 : vector<16x1xf32>
    %1061 = math.rsqrt %1060 : vector<16x1xf32>
    %1062 = vector.broadcast %1061 : vector<16x1xf32> to vector<16x32xf32>
    %1063 = arith.mulf %1058, %1062 : vector<16x32xf32>
    %1064 = vector.broadcast %1043 : vector<1x32xf32> to vector<16x32xf32>
    %1065 = arith.mulf %1063, %1064 : vector<16x32xf32>
    %1066 = vector.broadcast %1045 : vector<1x32xf32> to vector<16x32xf32>
    %1067 = arith.addf %1065, %1066 : vector<16x32xf32>
    %c0_422 = arith.constant 0 : index
    %c0_423 = arith.constant 0 : index
    %1068 = vector.load %arg36[%c0_422, %c0_423] : memref<1x32xf32, #tpu.memory_space<vmem>>, vector<1x32xf32>
    %c0_424 = arith.constant 0 : index
    %c0_425 = arith.constant 0 : index
    %1069 = vector.load %arg37[%c0_424, %c0_425] : memref<1x32xf32, #tpu.memory_space<vmem>>, vector<1x32xf32>
    %cst_426 = arith.constant dense<0.000000e+00> : vector<16xf32>
    %1070 = vector.multi_reduction <add>, %1067, %cst_426 [1] : vector<16x32xf32> to vector<16xf32>
    %1071 = vector.shape_cast %1070 : vector<16xf32> to vector<16x1xf32>
    %cst_427 = arith.constant 3.200000e+01 : f32
    %1072 = vector.broadcast %cst_427 : f32 to vector<16x1xf32>
    %1073 = arith.divf %1071, %1072 : vector<16x1xf32>
    %1074 = vector.broadcast %1073 : vector<16x1xf32> to vector<16x32xf32>
    %1075 = arith.subf %1067, %1074 : vector<16x32xf32>
    %1076 = arith.mulf %1075, %1075 : vector<16x32xf32>
    %cst_428 = arith.constant dense<0.000000e+00> : vector<16xf32>
    %1077 = vector.multi_reduction <add>, %1076, %cst_428 [1] : vector<16x32xf32> to vector<16xf32>
    %1078 = vector.shape_cast %1077 : vector<16xf32> to vector<16x1xf32>
    %cst_429 = arith.constant 3.200000e+01 : f32
    %1079 = vector.broadcast %cst_429 : f32 to vector<16x1xf32>
    %1080 = arith.divf %1078, %1079 : vector<16x1xf32>
    %1081 = vector.broadcast %1073 : vector<16x1xf32> to vector<16x32xf32>
    %1082 = arith.subf %1067, %1081 : vector<16x32xf32>
    %cst_430 = arith.constant 9.99999974E-6 : f32
    %1083 = vector.broadcast %cst_430 : f32 to vector<16x1xf32>
    %1084 = arith.addf %1080, %1083 : vector<16x1xf32>
    %1085 = math.rsqrt %1084 : vector<16x1xf32>
    %1086 = vector.broadcast %1085 : vector<16x1xf32> to vector<16x32xf32>
    %1087 = arith.mulf %1082, %1086 : vector<16x32xf32>
    %1088 = vector.broadcast %1068 : vector<1x32xf32> to vector<16x32xf32>
    %1089 = arith.mulf %1087, %1088 : vector<16x32xf32>
    %1090 = vector.broadcast %1069 : vector<1x32xf32> to vector<16x32xf32>
    %1091 = arith.addf %1089, %1090 : vector<16x32xf32>
    %c0_431 = arith.constant 0 : index
    %c0_432 = arith.constant 0 : index
    %1092 = vector.load %arg38[%c0_431, %c0_432] : memref<32x5xf32, #tpu.memory_space<vmem>>, vector<32x5xf32>
    %cst_433 = arith.constant dense<0.000000e+00> : vector<16x5xf32>
    %1093 = tpu.matmul %1091, %1092, %cst_433 {dimension_numbers = #tpu.dot_dimension_numbers<[1], [0], [0], [1], [0, 0, 1, 1], [], []>} : vector<16x32xf32>, vector<32x5xf32>, vector<16x5xf32> -> vector<16x5xf32>
    %c0_434 = arith.constant 0 : index
    %c0_435 = arith.constant 0 : index
    %1094 = vector.load %arg39[%c0_434, %c0_435] : memref<1x5xf32, #tpu.memory_space<vmem>>, vector<1x5xf32>
    %1095 = vector.broadcast %1094 : vector<1x5xf32> to vector<16x5xf32>
    %1096 = arith.addf %1093, %1095 : vector<16x5xf32>
    %1097 = vector.shape_cast %1096 : vector<16x5xf32> to vector<2x8x5xf32>
    %c0_436 = arith.constant 0 : index
    %c0_437 = arith.constant 0 : index
    %c0_438 = arith.constant 0 : index
    %1098 = vector.load %arg40[%c0_436, %c0_437, %c0_438] : memref<2x8x5xf32, #tpu.memory_space<vmem>>, vector<2x8x5xf32>
    tpu.vector_store %arg40[%c0_436, %c0_437, %c0_438], %1097 {strides = array<i32>} : memref<2x8x5xf32, #tpu.memory_space<vmem>>, vector<2x8x5xf32>,
    return
  }
}

</mosaic_0001>

<bundles_post_ra>
// kernel: tpu_custom_call.1
= control target key start
LH: loop header
LB: loop body
LE: loop exit
PB: predicated region body
PF: predicated region fallthrough
CT: control target
= control target key end

     0   :  { %s15149_s6 = smov 1   ;;  %s15150_s10 = smov 2   ;;  %s16764_s0 = inlined_call_operand.smem [shape: u32[41], index: -1, kind: input, shape index: {}] }
   0x1   :  { %s15233_s5 = sld [smem:[%s16764_s0]]   ;;  %s15151_s14 = smov 3  }
   0x2   :  { %s15238_s9 = sld [smem:[%s16764_s0 + %s15149_s6]]   ;;  %s15152_s18 = smov 4  }
   0x3   :  { %s15243_s13 = sld [smem:[%s16764_s0 + %s15150_s10]]   ;;  %s15153_s22 = smov 5  }
   0x4   :  { %s15248_s17 = sld [smem:[%s16764_s0 + %s15151_s14]]   ;;  %s15154_s26 = smov 6  }
   0x5   :  { %s15253_s21 = sld [smem:[%s16764_s0 + %s15152_s18]]   ;;  %s15155_s30 = smov 7  }
   0x6   :  { %s15258_s25 = sld [smem:[%s16764_s0 + %s15153_s22]]   ;;  %s15156_s4 = smov 8  }
   0x7   :  { %s15263_s29 = sld [smem:[%s16764_s0 + %s15154_s26]]   ;;  %s15157_s10 = smov 9  }
   0x8   :  { %s15268_s3 = sld [smem:[%s16764_s0 + %s15155_s30]]   ;;  %s15158_s15 = smov 10  }
   0x9   :  { %16785 = sst [smem:[#allocation41_spill]] %s15243_s13  ;;  %s15159_s20 = smov 11  }
   0xa   :  { %16786 = sst [smem:[#allocation42_spill]] %s15248_s17  ;;  %s15160_s26 = smov 12  }
   0xb   :  { %16787 = sst [smem:[#allocation43_spill]] %s15253_s21  ;;  %s15161_s1 = smov 13  }
   0xc   :  { %s15273_s8 = sld [smem:[%s16764_s0 + %s15156_s4]]   ;;  %s15162_s7 = smov 14  }
   0xd   :  { %s15278_s14 = sld [smem:[%s16764_s0 + %s15157_s10]]   ;;  %s15164_s22 = smov 16  }
   0xe   :  { %s15283_s19 = sld [smem:[%s16764_s0 + %s15158_s15]]   ;;  %s15163_s15 = smov 15  }
   0xf   :  { %s15288_s24 = sld [smem:[%s16764_s0 + %s15159_s20]]   ;;  %s15165_s28 = smov 17  }
  0x10   :  { %s15293_s30 = sld [smem:[%s16764_s0 + %s15160_s26]]  }
  0x11   :  { %s15298_s6 = sld [smem:[%s16764_s0 + %s15161_s1]]  }
  0x12   :  { %16788 = sst [smem:[#allocation44_spill]] %s15273_s8 }
  0x13   :  { %s15303_s12 = sld [smem:[%s16764_s0 + %s15162_s7]]   ;;  %s15166_s7 = smov 18  }
  0x14   :  { %16789 = sst [smem:[#allocation45_spill]] %s15283_s19 }
  0x15   :  { %s15308_s20 = sld [smem:[%s16764_s0 + %s15163_s15]]   ;;  %s15167_s15 = smov 19  }
  0x16   :  { %s15313_s27 = sld [smem:[%s16764_s0 + %s15164_s22]]   ;;  %s15168_s22 = smov 20  }
  0x17   :  { %s15318_s4 = sld [smem:[%s16764_s0 + %s15165_s28]]   ;;  %s15169_s28 = smov 21  }
  0x18   :  { %s15328_s19 = sld [smem:[%s16764_s0 + %s15167_s15]]   ;;  %s15171_s15 = smov 23  }
  0x19   :  { %16790 = sst [smem:[#allocation46_spill]] %s15303_s12 }
  0x1a   :  { %s15323_s12 = sld [smem:[%s16764_s0 + %s15166_s7]]   ;;  %s15170_s7 = smov 22  }
  0x1b   :  { %s15338_s8 = sld [smem:[%s16764_s0 + %s15169_s28]]   ;;  %s15173_s28 = smov 25  }
  0x1c   :  { %16791 = sst [smem:[#allocation47_spill]] %s15313_s27 }
  0x1d   :  { %16792 = sst [smem:[#allocation48_spill]] %s15318_s4 }
  0x1e   :  { %16793 = sst [smem:[#allocation49_spill]] %s15328_s19 }
  0x1f   :  { %s15333_s27 = sld [smem:[%s16764_s0 + %s15168_s22]]   ;;  %s15172_s22 = smov 24  }
  0x20   :  { %s15343_s21 = sld [smem:[%s16764_s0 + %s15170_s7]]   ;;  %s15174_s7 = smov 26  }
  0x21   :  { %16794 = sst [smem:[#allocation50_spill]] %s15338_s8 }
  0x22   :  { %s15348_s17 = sld [smem:[%s16764_s0 + %s15171_s15]]   ;;  %s15175_s15 = smov 27  }
  0x23   :  { %s15353_s13 = sld [smem:[%s16764_s0 + %s15172_s22]]   ;;  %s15176_s22 = smov 28  }
  0x24   :  { %s15358_s8 = sld [smem:[%s16764_s0 + %s15173_s28]]   ;;  %s15177_s28 = smov 29  }
  0x25   :  { %s15363_s19 = sld [smem:[%s16764_s0 + %s15174_s7]]   ;;  %s15178_s7 = smov 30  }
  0x26   :  { %s15378_s4 = sld [smem:[%s16764_s0 + %s15177_s28]]   ;;  %s15181_s28 = smov 33  }
  0x28   :  { %16795 = sst [smem:[#allocation51_spill]] %s15348_s17 }
  0x29   :  { %16796 = sst [smem:[#allocation52_spill]] %s15353_s13 }
  0x2a   :  { %s15368_s17 = sld [smem:[%s16764_s0 + %s15175_s15]]   ;;  %s15179_s15 = smov 31  }
  0x2b   :  { %16797 = sst [smem:[#allocation53_spill]] %s15363_s19 }
  0x2c   :  { %s15373_s13 = sld [smem:[%s16764_s0 + %s15176_s22]]   ;;  %s15180_s22 = smov 32  }
  0x2d   :  { %16800 = sst [smem:[#allocation56_spill]] %s15378_s4 }
  0x2e   :  { %s15383_s19 = sld [smem:[%s16764_s0 + %s15178_s7]]   ;;  %s15182_s7 = smov 34  }
  0x2f   :  { %s15398_s4 = sld [smem:[%s16764_s0 + %s15181_s28]]   ;;  %s15185_s28 = smov 37  }
  0x30   :  { %16798 = sst [smem:[#allocation54_spill]] %s15368_s17 }
  0x31   :  { %s15388_s17 = sld [smem:[%s16764_s0 + %s15179_s15]]   ;;  %s15183_s15 = smov 35  }
  0x32   :  { %16799 = sst [smem:[#allocation55_spill]] %s15373_s13 }
  0x33   :  { %s15393_s13 = sld [smem:[%s16764_s0 + %s15180_s22]]   ;;  %s15184_s22 = smov 36  }
  0x34   :  { %16801 = sst [smem:[#allocation57_spill]] %s15383_s19 }
  0x35   :  { %16804 = sst [smem:[#allocation60_spill]] %s15398_s4 }
  0x36   :  { %s15403_s19 = sld [smem:[%s16764_s0 + %s15182_s7]]   ;;  %s15186_s7 = smov 38  }
  0x37   :  { %16802 = sst [smem:[#allocation58_spill]] %s15388_s17 }
  0x38   :  { %s15408_s17 = sld [smem:[%s16764_s0 + %s15183_s15]]   ;;  %s15187_s15 = smov 39  }
  0x39   :  { %16803 = sst [smem:[#allocation59_spill]] %s15393_s13 }
  0x3a   :  { %s15413_s13 = sld [smem:[%s16764_s0 + %s15184_s22]]   ;;  %s15188_s22 = smov 40  }
  0x3b   :  { %s15418_s4 = sld [smem:[%s16764_s0 + %s15185_s28]]  }
  0x3c   :  { %16805 = sst [smem:[#allocation61_spill]] %s15403_s19 }
  0x3d   :  { %s15423_s19 = sld [smem:[%s16764_s0 + %s15186_s7]]  }
  0x3e   :  { %16806 = sst [smem:[#allocation62_spill]] %s15408_s17 }
  0x3f   :  { %s15428_s17 = sld [smem:[%s16764_s0 + %s15187_s15]]  }
  0x40   :  { %16807 = sst [smem:[#allocation63_spill]] %s15413_s13 }
  0x41   :  { %s15433_s13 = sld [smem:[%s16764_s0 + %s15188_s22]]  }
  0x42   :  { %86 = vsyncpa [#allocation3], 0 }
  0x43   :  { %87 = vsyncpa [#allocation5], 0 }
  0x44   :  { %88 = vsyncpa [#allocation8], 0 }
  0x45   :  { %89 = vsyncpa [#allocation11], 0 }
  0x46   :  { %90 = vsyncpa [#allocation14], 0 }
  0x47   :  { %91 = vsyncpa [#allocation17], 0 }
  0x48   :  { %92 = vsyncpa [#allocation20], 0 }
  0x49   :  { %93 = vsyncpa [#allocation23], 0 }
  0x4a   :  { %94 = vsyncpa [#allocation26], 0 }
  0x4b   :  { %95 = vsyncpa [#allocation29], 0  ;;  %s15189_s28 = smov [#allocation4]   ;;  %s14711_s2 = scalar_lea.hbm %s15238_s9, 256 }
  0x4c   :  { %s113_s1 = sshll.u32 %s15189_s28, 4  ;;  %p14712_p0 = scmp.ne.s32.totalorder %s15238_s9, %s14711_s2  ;;  %s114_s1 = int_to_ptr.vmem [resolvable:$true] %s113_s1 }
  0x4d   :  { %p14715_p1 = scmp.lt.u32.totalorder %s14711_s2, %s15238_s9 }
  0x4f   :  { %p14717_p2 = pnand %p14715_p1, %p14712_p0 }
  0x51   :  { %14720 = shalt.err (!%p14717_p2)
}
  0x52   :  { %s14721_s0 = scalar_lea.vmem %s114_s1, 256  ;;  %p14726_p4 = scmp.lt.s32.totalorder %s114_s1, %s114_s1 }
  0x53   :  { %p14722_p3 = scmp.ne.s32.totalorder %s114_s1, %s14721_s0  ;;  %p14727_p5 = scmp.lt.s32.totalorder %s14721_s0, %s14721_s0 }
  0x55   :  { %p14728_p6 = por %p14727_p5, %p14726_p4 }
  0x57   :  { %p14729_p7 = pnand %p14728_p6, %p14722_p3 }
  0x59   :  { %14732 = shalt.err (!%p14729_p7)
}
  0x5a   :  { %s15190_s7 = smov 128   ;;  %s15191_s10 = smov 8  }
  0x5b   :  { %119 = dma.hbm_to_vmem [thread:$0]  %s15238_s9, 256, %s114_s1, [#allocation5], %s15190_s7, %s15190_s7, %s15191_s10  }
  0x5c   :  { %s15192_s11 = smov [#allocation7]   ;;  %s15193_s16 = smov [#allocation10]  }
  0x5d   :  { %s143_s15 = sshll.u32 %s15192_s11, 4  ;;  %s169_s18 = sshll.u32 %s15193_s16, 4  ;;  %s144_s15 = int_to_ptr.vmem [resolvable:$true] %s143_s15  ;;  %s170_s18 = int_to_ptr.vmem [resolvable:$true] %s169_s18 }
  0x5e   :  { %s14733_s22 = scalar_lea.hbm %s15263_s29, 32 }
  0x5f   :  { %p14734_p8 = scmp.ne.s32.totalorder %s15263_s29, %s14733_s22  ;;  %p14737_p9 = scmp.lt.u32.totalorder %s14733_s22, %s15263_s29 }
  0x61   :  { %p14739_p10 = pnand %p14737_p9, %p14734_p8 }
  0x63   :  { %14742 = shalt.err (!%p14739_p10)
}
  0x64   :  { %s14743_s23 = scalar_lea.vmem %s144_s15, 32  ;;  %p14748_p12 = scmp.lt.s32.totalorder %s144_s15, %s144_s15 }
  0x65   :  { %p14744_p11 = scmp.ne.s32.totalorder %s144_s15, %s14743_s23  ;;  %p14749_p13 = scmp.lt.s32.totalorder %s14743_s23, %s14743_s23 }
  0x67   :  { %p14750_p0 = por %p14749_p13, %p14748_p12 }
  0x69   :  { %p14751_p1 = pnand %p14750_p0, %p14744_p11 }
  0x6b   :  { %14754 = shalt.err (!%p14751_p1)
}
  0x6c   :  { %s15194_s26 = smov 16   ;;  %s15195_s9 = smov 1  }
  0x6d   :  { %149 = dma.hbm_to_vmem [thread:$0]  %s15263_s29, 32, %s144_s15, [#allocation8], %s15194_s26, %s15194_s26, %s15195_s9  }
  0x6e   :  { %s14755_s28 = scalar_lea.hbm %s15278_s14, 32 }
  0x6f   :  { %p14756_p2 = scmp.ne.s32.totalorder %s15278_s14, %s14755_s28  ;;  %p14759_p3 = scmp.lt.u32.totalorder %s14755_s28, %s15278_s14 }
  0x71   :  { %p14761_p4 = pnand %p14759_p3, %p14756_p2 }
  0x73   :  { %14764 = shalt.err (!%p14761_p4)
}
  0x74   :  { %s14765_s1 = scalar_lea.vmem %s170_s18, 32  ;;  %p14770_p6 = scmp.lt.s32.totalorder %s170_s18, %s170_s18 }
  0x75   :  { %p14766_p5 = scmp.ne.s32.totalorder %s170_s18, %s14765_s1  ;;  %p14771_p7 = scmp.lt.s32.totalorder %s14765_s1, %s14765_s1 }
  0x77   :  { %p14772_p8 = por %p14771_p7, %p14770_p6 }
  0x79   :  { %p14773_p9 = pnand %p14772_p8, %p14766_p5 }
  0x7b   :  { %14776 = shalt.err (!%p14773_p9)
}
  0x7c   :  { %175 = dma.hbm_to_vmem [thread:$0]  %s15278_s14, 32, %s170_s18, [#allocation11], %s15194_s26, %s15194_s26, %s15195_s9  }
  0x7d   :  { %s15196_s29 = smov [#allocation13]   ;;  %s15197_s0 = smov [#allocation16]  }
  0x7e   :  { %s195_s2 = sshll.u32 %s15196_s29, 4  ;;  %s221_s11 = sshll.u32 %s15197_s0, 4  ;;  %s196_s2 = int_to_ptr.vmem [resolvable:$true] %s195_s2  ;;  %s222_s11 = int_to_ptr.vmem [resolvable:$true] %s221_s11 }
  0x7f   :  { %s14777_s15 = scalar_lea.hbm %s15293_s30, 32 }
  0x80   :  { %p14778_p10 = scmp.ne.s32.totalorder %s15293_s30, %s14777_s15  ;;  %p14781_p11 = scmp.lt.u32.totalorder %s14777_s15, %s15293_s30 }
  0x82   :  { %p14783_p12 = pnand %p14781_p11, %p14778_p10 }
  0x84   :  { %14786 = shalt.err (!%p14783_p12)
}
  0x85   :  { %s14787_s16 = scalar_lea.vmem %s196_s2, 32  ;;  %p14792_p0 = scmp.lt.s32.totalorder %s196_s2, %s196_s2 }
  0x86   :  { %p14788_p13 = scmp.ne.s32.totalorder %s196_s2, %s14787_s16  ;;  %p14793_p1 = scmp.lt.s32.totalorder %s14787_s16, %s14787_s16 }
  0x88   :  { %p14794_p2 = por %p14793_p1, %p14792_p0 }
  0x8a   :  { %p14795_p3 = pnand %p14794_p2, %p14788_p13 }
  0x8c   :  { %14798 = shalt.err (!%p14795_p3)
}
  0x8d   :  { %201 = dma.hbm_to_vmem [thread:$0]  %s15293_s30, 32, %s196_s2, [#allocation14], %s15194_s26, %s15194_s26, %s15195_s9  }
  0x8e   :  { %s14799_s14 = scalar_lea.hbm %s15308_s20, 32 }
  0x8f   :  { %p14800_p4 = scmp.ne.s32.totalorder %s15308_s20, %s14799_s14  ;;  %p14803_p5 = scmp.lt.u32.totalorder %s14799_s14, %s15308_s20 }
  0x91   :  { %p14805_p6 = pnand %p14803_p5, %p14800_p4 }
  0x93   :  { %14808 = shalt.err (!%p14805_p6)
}
  0x94   :  { %s14809_s18 = scalar_lea.vmem %s222_s11, 32  ;;  %p14814_p8 = scmp.lt.s32.totalorder %s222_s11, %s222_s11 }
  0x95   :  { %p14810_p7 = scmp.ne.s32.totalorder %s222_s11, %s14809_s18  ;;  %p14815_p9 = scmp.lt.s32.totalorder %s14809_s18, %s14809_s18 }
  0x97   :  { %p14816_p10 = por %p14815_p9, %p14814_p8 }
  0x99   :  { %p14817_p11 = pnand %p14816_p10, %p14810_p7 }
  0x9b   :  { %14820 = shalt.err (!%p14817_p11)
}
  0x9c   :  { %227 = dma.hbm_to_vmem [thread:$0]  %s15308_s20, 32, %s222_s11, [#allocation17], %s15194_s26, %s15194_s26, %s15195_s9  }
  0x9d   :  { %s15198_s30 = smov [#allocation19]   ;;  %s15199_s23 = smov [#allocation22]  }
  0x9e   :  { %s247_s22 = sshll.u32 %s15198_s30, 4  ;;  %s271_s28 = sshll.u32 %s15199_s23, 4  ;;  %s248_s22 = int_to_ptr.vmem [resolvable:$true] %s247_s22  ;;  %s272_s28 = int_to_ptr.vmem [resolvable:$true] %s271_s28 }
  0x9f   :  { %s14821_s1 = scalar_lea.hbm %s15323_s12, 1024 }
  0xa0   :  { %p14822_p12 = scmp.ne.s32.totalorder %s15323_s12, %s14821_s1  ;;  %p14825_p13 = scmp.lt.u32.totalorder %s14821_s1, %s15323_s12 }
  0xa2   :  { %p14827_p0 = pnand %p14825_p13, %p14822_p12 }
  0xa4   :  { %14830 = shalt.err (!%p14827_p0)
}
  0xa5   :  { %s14831_s29 = scalar_lea.vmem %s248_s22, 1024  ;;  %p14836_p2 = scmp.lt.s32.totalorder %s248_s22, %s248_s22 }
  0xa6   :  { %p14832_p1 = scmp.ne.s32.totalorder %s248_s22, %s14831_s29  ;;  %p14837_p3 = scmp.lt.s32.totalorder %s14831_s29, %s14831_s29 }
  0xa8   :  { %p14838_p4 = por %p14837_p3, %p14836_p2 }
  0xaa   :  { %p14839_p5 = pnand %p14838_p4, %p14832_p1 }
  0xac   :  { %14842 = shalt.err (!%p14839_p5)
}
  0xad   :  { %253 = dma.hbm_to_vmem [thread:$0]  %s15323_s12, 1024, %s248_s22, [#allocation20], %s15190_s7, %s15190_s7, %s15191_s10  }
  0xae   :  { %s14843_s20 = scalar_lea.hbm %s15333_s27, 1024 }
  0xaf   :  { %p14844_p6 = scmp.ne.s32.totalorder %s15333_s27, %s14843_s20  ;;  %p14847_p7 = scmp.lt.u32.totalorder %s14843_s20, %s15333_s27 }
  0xb1   :  { %p14849_p8 = pnand %p14847_p7, %p14844_p6 }
  0xb3   :  { %14852 = shalt.err (!%p14849_p8)
}
  0xb4   :  { %s14853_s2 = scalar_lea.vmem %s272_s28, 1024  ;;  %p14858_p10 = scmp.lt.s32.totalorder %s272_s28, %s272_s28 }
  0xb5   :  { %p14854_p9 = scmp.ne.s32.totalorder %s272_s28, %s14853_s2  ;;  %p14859_p11 = scmp.lt.s32.totalorder %s14853_s2, %s14853_s2 }
  0xb7   :  { %p14860_p12 = por %p14859_p11, %p14858_p10 }
  0xb9   :  { %p14861_p13 = pnand %p14860_p12, %p14854_p9 }
  0xbb   :  { %14864 = shalt.err (!%p14861_p13)
}
  0xbc   :  { %277 = dma.hbm_to_vmem [thread:$0]  %s15333_s27, 1024, %s272_s28, [#allocation23], %s15190_s7, %s15190_s7, %s15191_s10  }
  0xbd   :  { %s15200_s12 = smov [#allocation25]   ;;  %s15201_s11 = smov [#allocation28]  }
  0xbe   :  { %s295_s0 = sshll.u32 %s15200_s12, 4  ;;  %s321_s15 = sshll.u32 %s15201_s11, 4  ;;  %s296_s0 = int_to_ptr.vmem [resolvable:$true] %s295_s0  ;;  %s322_s15 = int_to_ptr.vmem [resolvable:$true] %s321_s15 }
  0xbf   :  { %s14865_s16 = scalar_lea.hbm %s15343_s21, 1024 }
  0xc0   :  { %p14866_p0 = scmp.ne.s32.totalorder %s15343_s21, %s14865_s16  ;;  %p14869_p1 = scmp.lt.u32.totalorder %s14865_s16, %s15343_s21 }
  0xc2   :  { %p14871_p2 = pnand %p14869_p1, %p14866_p0 }
  0xc4   :  { %14874 = shalt.err (!%p14871_p2)
}
  0xc5   :  { %s14875_s14 = scalar_lea.vmem %s296_s0, 1024  ;;  %p14880_p4 = scmp.lt.s32.totalorder %s296_s0, %s296_s0 }
  0xc6   :  { %p14876_p3 = scmp.ne.s32.totalorder %s296_s0, %s14875_s14  ;;  %p14881_p5 = scmp.lt.s32.totalorder %s14875_s14, %s14875_s14 }
  0xc8   :  { %p14882_p6 = por %p14881_p5, %p14880_p4 }
  0xca   :  { %p14883_p7 = pnand %p14882_p6, %p14876_p3 }
  0xcc   :  { %14886 = shalt.err (!%p14883_p7)
}
  0xcd   :  { %301 = dma.hbm_to_vmem [thread:$0]  %s15343_s21, 1024, %s296_s0, [#allocation26], %s15190_s7, %s15190_s7, %s15191_s10  }
  0xce   :  { %s14887_s27 = scalar_lea.hbm %s15358_s8, 32 }
  0xcf   :  { %p14888_p8 = scmp.ne.s32.totalorder %s15358_s8, %s14887_s27  ;;  %p14891_p9 = scmp.lt.u32.totalorder %s14887_s27, %s15358_s8 }
  0xd1   :  { %p14893_p10 = pnand %p14891_p9, %p14888_p8 }
  0xd3   :  { %14896 = shalt.err (!%p14893_p10)
}
  0xd4   :  { %s14897_s18 = scalar_lea.vmem %s322_s15, 32  ;;  %p14902_p12 = scmp.lt.s32.totalorder %s322_s15, %s322_s15 }
  0xd5   :  { %p14898_p11 = scmp.ne.s32.totalorder %s322_s15, %s14897_s18  ;;  %p14903_p13 = scmp.lt.s32.totalorder %s14897_s18, %s14897_s18 }
  0xd7   :  { %p14904_p0 = por %p14903_p13, %p14902_p12 }
  0xd9   :  { %p14905_p1 = pnand %p14904_p0, %p14898_p11 }
  0xdb   :  { %14908 = shalt.err (!%p14905_p1)
}
  0xdc   :  { %327 = dma.hbm_to_vmem [thread:$0]  %s15358_s8, 32, %s322_s15, [#allocation29], %s15194_s26, %s15194_s26, %s15195_s9  }
  0xdd   :  { %s15202_s21 = smov [#allocation2]   ;;  %s15203_s22 = smov [#allocation6]  }
  0xde   :  { %s101_s30 = sshll.u32 %s15202_s21, 4  ;;  %s131_s23 = sshll.u32 %s15203_s22, 4  ;;  %s102_s30 = int_to_ptr.vmem [resolvable:$true] %s101_s30  ;;  %s132_s23 = int_to_ptr.vmem [resolvable:$true] %s131_s23 }
  0xdf   :  { %s14909_s28 = scalar_lea.hbm %s15233_s5, 256 }
  0xe0   :  { %p14910_p2 = scmp.ne.s32.totalorder %s15233_s5, %s14909_s28  ;;  %p14913_p3 = scmp.lt.u32.totalorder %s14909_s28, %s15233_s5 }
  0xe2   :  { %p14915_p4 = pnand %p14913_p3, %p14910_p2 }
  0xe4   :  { %14918 = shalt.err (!%p14915_p4)
}
  0xe5   :  { %s14919_s1 = scalar_lea.vmem %s102_s30, 256  ;;  %p14924_p6 = scmp.lt.s32.totalorder %s102_s30, %s102_s30 }
  0xe6   :  { %p14920_p5 = scmp.ne.s32.totalorder %s102_s30, %s14919_s1  ;;  %p14925_p7 = scmp.lt.s32.totalorder %s14919_s1, %s14919_s1 }
  0xe8   :  { %p14926_p8 = por %p14925_p7, %p14924_p6 }
  0xea   :  { %p14927_p9 = pnand %p14926_p8, %p14920_p5 }
  0xec   :  { %14930 = shalt.err (!%p14927_p9)
}
  0xed   :  { %107 = dma.hbm_to_vmem [thread:$0]  %s15233_s5, 256, %s102_s30, [#allocation3], %s15190_s7, %s15190_s7, %s15191_s10  }
  0xee   :  { %s14931_s8 = scalar_lea.hbm %s15258_s25, 32 }
  0xef   :  { %p14932_p10 = scmp.ne.s32.totalorder %s15258_s25, %s14931_s8  ;;  %p14935_p11 = scmp.lt.u32.totalorder %s14931_s8, %s15258_s25 }
  0xf1   :  { %p14937_p12 = pnand %p14935_p11, %p14932_p10 }
  0xf3   :  { %14940 = shalt.err (!%p14937_p12)
}
  0xf4   :  { %s14941_s29 = scalar_lea.vmem %s132_s23, 32  ;;  %p14946_p0 = scmp.lt.s32.totalorder %s132_s23, %s132_s23 }
  0xf5   :  { %p14942_p13 = scmp.ne.s32.totalorder %s132_s23, %s14941_s29  ;;  %p14947_p1 = scmp.lt.s32.totalorder %s14941_s29, %s14941_s29 }
  0xf7   :  { %p14948_p2 = por %p14947_p1, %p14946_p0 }
  0xf9   :  { %p14949_p3 = pnand %p14948_p2, %p14942_p13 }
  0xfb   :  { %14952 = shalt.err (!%p14949_p3)
}
  0xfc   :  { %137 = dma.hbm_to_vmem [thread:$0]  %s15258_s25, 32, %s132_s23, [#allocation5], %s15194_s26, %s15194_s26, %s15195_s9  }
  0xfd   :  { %s15204_s5 = smov [#allocation9]   ;;  %s15205_s10 = smov [#allocation12]  }
  0xfe   :  { %s155_s7 = sshll.u32 %s15204_s5, 4  ;;  %s183_s20 = sshll.u32 %s15205_s10, 4  ;;  %s156_s7 = int_to_ptr.vmem [resolvable:$true] %s155_s7  ;;  %s184_s20 = int_to_ptr.vmem [resolvable:$true] %s183_s20 }
  0xff   :  { %s14953_s2 = scalar_lea.hbm %s15268_s3, 32 }
 0x100   :  { %p14954_p4 = scmp.ne.s32.totalorder %s15268_s3, %s14953_s2  ;;  %p14957_p5 = scmp.lt.u32.totalorder %s14953_s2, %s15268_s3 }
 0x102   :  { %p14959_p6 = pnand %p14957_p5, %p14954_p4 }
 0x104   :  { %14962 = shalt.err (!%p14959_p6)
}
 0x105   :  { %s14963_s12 = scalar_lea.vmem %s156_s7, 32  ;;  %p14968_p8 = scmp.lt.s32.totalorder %s156_s7, %s156_s7 }
 0x106   :  { %p14964_p7 = scmp.ne.s32.totalorder %s156_s7, %s14963_s12  ;;  %p14969_p9 = scmp.lt.s32.totalorder %s14963_s12, %s14963_s12 }
 0x108   :  { %p14970_p10 = por %p14969_p9, %p14968_p8 }
 0x10a   :  { %p14971_p11 = pnand %p14970_p10, %p14964_p7 }
 0x10c   :  { %14974 = shalt.err (!%p14971_p11)
}
 0x10d   :  { %161 = dma.hbm_to_vmem [thread:$0]  %s15268_s3, 32, %s156_s7, [#allocation8], %s15194_s26, %s15194_s26, %s15195_s9  }
 0x10e   :  { %s14975_s25 = scalar_lea.hbm %s15288_s24, 32 }
 0x10f   :  { %p14976_p12 = scmp.ne.s32.totalorder %s15288_s24, %s14975_s25  ;;  %p14979_p13 = scmp.lt.u32.totalorder %s14975_s25, %s15288_s24 }
 0x111   :  { %p14981_p0 = pnand %p14979_p13, %p14976_p12 }
 0x113   :  { %14984 = shalt.err (!%p14981_p0)
}
 0x114   :  { %s14985_s0 = scalar_lea.vmem %s184_s20, 32  ;;  %p14990_p2 = scmp.lt.s32.totalorder %s184_s20, %s184_s20 }
 0x115   :  { %p14986_p1 = scmp.ne.s32.totalorder %s184_s20, %s14985_s0  ;;  %p14991_p3 = scmp.lt.s32.totalorder %s14985_s0, %s14985_s0 }
 0x117   :  { %p14992_p4 = por %p14991_p3, %p14990_p2 }
 0x119   :  { %p14993_p5 = pnand %p14992_p4, %p14986_p1 }
 0x11b   :  { %14996 = shalt.err (!%p14993_p5)
}
 0x11c   :  { %189 = dma.hbm_to_vmem [thread:$0]  %s15288_s24, 32, %s184_s20, [#allocation11], %s15194_s26, %s15194_s26, %s15195_s9  }
 0x11d   :  { %s15206_s3 = smov [#allocation15]   ;;  %s15207_s15 = smov [#allocation18]  }
 0x11e   :  { %s207_s11 = sshll.u32 %s15206_s3, 4  ;;  %s235_s16 = sshll.u32 %s15207_s15, 4  ;;  %s208_s11 = int_to_ptr.vmem [resolvable:$true] %s207_s11  ;;  %s236_s16 = int_to_ptr.vmem [resolvable:$true] %s235_s16 }
 0x11f   :  { %s14997_s14 = scalar_lea.hbm %s15298_s6, 32 }
 0x120   :  { %p14998_p6 = scmp.ne.s32.totalorder %s15298_s6, %s14997_s14  ;;  %p15001_p7 = scmp.lt.u32.totalorder %s14997_s14, %s15298_s6 }
 0x122   :  { %p15003_p8 = pnand %p15001_p7, %p14998_p6 }
 0x124   :  { %15006 = shalt.err (!%p15003_p8)
}
 0x125   :  { %s15007_s27 = scalar_lea.vmem %s208_s11, 32  ;;  %p15012_p10 = scmp.lt.s32.totalorder %s208_s11, %s208_s11 }
 0x126   :  { %p15008_p9 = scmp.ne.s32.totalorder %s208_s11, %s15007_s27  ;;  %p15013_p11 = scmp.lt.s32.totalorder %s15007_s27, %s15007_s27 }
 0x128   :  { %p15014_p12 = por %p15013_p11, %p15012_p10 }
 0x12a   :  { %p15015_p13 = pnand %p15014_p12, %p15008_p9 }
 0x12c   :  { %15018 = shalt.err (!%p15015_p13)
}
 0x12d   :  { %s16808_s24 = sld [smem:[#allocation48_spill]] }
 0x12e   :  { %213 = dma.hbm_to_vmem [thread:$0]  %s15298_s6, 32, %s208_s11, [#allocation14], %s15194_s26, %s15194_s26, %s15195_s9  }
 0x133   :  { %s15019_s18 = scalar_lea.hbm %s16808_s24, 32 }
 0x134   :  { %p15020_p0 = scmp.ne.s32.totalorder %s16808_s24, %s15019_s18  ;;  %p15023_p1 = scmp.lt.u32.totalorder %s15019_s18, %s16808_s24 }
 0x136   :  { %p15025_p2 = pnand %p15023_p1, %p15020_p0 }
 0x138   :  { %15028 = shalt.err (!%p15025_p2)
}
 0x139   :  { %s15029_s21 = scalar_lea.vmem %s236_s16, 32  ;;  %p15034_p4 = scmp.lt.s32.totalorder %s236_s16, %s236_s16 }
 0x13a   :  { %p15030_p3 = scmp.ne.s32.totalorder %s236_s16, %s15029_s21  ;;  %p15035_p5 = scmp.lt.s32.totalorder %s15029_s21, %s15029_s21 }
 0x13c   :  { %p15036_p6 = por %p15035_p5, %p15034_p4 }
 0x13e   :  { %p15037_p7 = pnand %p15036_p6, %p15030_p3 }
 0x140   :  { %15040 = shalt.err (!%p15037_p7)
}
 0x141   :  { %s16809_s30 = sld [smem:[#allocation49_spill]]  ;;  %s15208_s6 = smov [#allocation21]  }
 0x142   :  { %241 = dma.hbm_to_vmem [thread:$0]  %s16808_s24, 32, %s236_s16, [#allocation17], %s15194_s26, %s15194_s26, %s15195_s9  }
 0x143   :  { %s259_s22 = sshll.u32 %s15208_s6, 4  ;;  %s15209_s23 = smov [#allocation24]   ;;  %s260_s22 = int_to_ptr.vmem [resolvable:$true] %s259_s22 }
 0x144   :  { %s283_s28 = sshll.u32 %s15209_s23, 4  ;;  %s284_s28 = int_to_ptr.vmem [resolvable:$true] %s283_s28 }
 0x147   :  { %s15041_s1 = scalar_lea.hbm %s16809_s30, 32 }
 0x148   :  { %p15042_p8 = scmp.ne.s32.totalorder %s16809_s30, %s15041_s1  ;;  %p15045_p9 = scmp.lt.u32.totalorder %s15041_s1, %s16809_s30 }
 0x14a   :  { %p15047_p10 = pnand %p15045_p9, %p15042_p8 }
 0x14c   :  { %15050 = shalt.err (!%p15047_p10)
}
 0x14d   :  { %s15051_s8 = scalar_lea.vmem %s260_s22, 32  ;;  %p15056_p12 = scmp.lt.s32.totalorder %s260_s22, %s260_s22 }
 0x14e   :  { %p15052_p11 = scmp.ne.s32.totalorder %s260_s22, %s15051_s8  ;;  %p15057_p13 = scmp.lt.s32.totalorder %s15051_s8, %s15051_s8 }
 0x150   :  { %p15058_p0 = por %p15057_p13, %p15056_p12 }
 0x152   :  { %p15059_p1 = pnand %p15058_p0, %p15052_p11 }
 0x154   :  { %15062 = shalt.err (!%p15059_p1)
}
 0x155   :  { %s16810_s29 = sld [smem:[#allocation50_spill]] }
 0x156   :  { %265 = dma.hbm_to_vmem [thread:$0]  %s16809_s30, 32, %s260_s22, [#allocation20], %s15194_s26, %s15194_s26, %s15195_s9  }
 0x15b   :  { %s15063_s5 = scalar_lea.hbm %s16810_s29, 32 }
 0x15c   :  { %p15064_p2 = scmp.ne.s32.totalorder %s16810_s29, %s15063_s5  ;;  %p15067_p3 = scmp.lt.u32.totalorder %s15063_s5, %s16810_s29 }
 0x15e   :  { %p15069_p4 = pnand %p15067_p3, %p15064_p2 }
 0x160   :  { %15072 = shalt.err (!%p15069_p4)
}
 0x161   :  { %s15073_s7 = scalar_lea.vmem %s284_s28, 32  ;;  %p15078_p6 = scmp.lt.s32.totalorder %s284_s28, %s284_s28 }
 0x162   :  { %p15074_p5 = scmp.ne.s32.totalorder %s284_s28, %s15073_s7  ;;  %p15079_p7 = scmp.lt.s32.totalorder %s15073_s7, %s15073_s7 }
 0x164   :  { %p15080_p8 = por %p15079_p7, %p15078_p6 }
 0x166   :  { %p15081_p9 = pnand %p15080_p8, %p15074_p5 }
 0x168   :  { %15084 = shalt.err (!%p15081_p9)
}
 0x169   :  { %s16811_s10 = sld [smem:[#allocation51_spill]]  ;;  %s15210_s20 = smov [#allocation27]  }
 0x16a   :  { %289 = dma.hbm_to_vmem [thread:$0]  %s16810_s29, 32, %s284_s28, [#allocation23], %s15194_s26, %s15194_s26, %s15195_s9  }
 0x16b   :  { %s307_s2 = sshll.u32 %s15210_s20, 4  ;;  %s15211_s12 = smov [#allocation30]   ;;  %s308_s2 = int_to_ptr.vmem [resolvable:$true] %s307_s2 }
 0x16c   :  { %s335_s25 = sshll.u32 %s15211_s12, 4  ;;  %s336_s25 = int_to_ptr.vmem [resolvable:$true] %s335_s25 }
 0x16f   :  { %s15085_s0 = scalar_lea.hbm %s16811_s10, 32 }
 0x170   :  { %p15086_p10 = scmp.ne.s32.totalorder %s16811_s10, %s15085_s0  ;;  %p15089_p11 = scmp.lt.u32.totalorder %s15085_s0, %s16811_s10 }
 0x172   :  { %p15091_p12 = pnand %p15089_p11, %p15086_p10 }
 0x174   :  { %15094 = shalt.err (!%p15091_p12)
}
 0x175   :  { %s15095_s3 = scalar_lea.vmem %s308_s2, 32  ;;  %p15100_p0 = scmp.lt.s32.totalorder %s308_s2, %s308_s2 }
 0x176   :  { %p15096_p13 = scmp.ne.s32.totalorder %s308_s2, %s15095_s3  ;;  %p15101_p1 = scmp.lt.s32.totalorder %s15095_s3, %s15095_s3 }
 0x178   :  { %p15102_p2 = por %p15101_p1, %p15100_p0 }
 0x17a   :  { %p15103_p3 = pnand %p15102_p2, %p15096_p13 }
 0x17c   :  { %15106 = shalt.err (!%p15103_p3)
}
 0x17d   :  { %s16812_s11 = sld [smem:[#allocation54_spill]] }
 0x17e   :  { %313 = dma.hbm_to_vmem [thread:$0]  %s16811_s10, 32, %s308_s2, [#allocation26], %s15194_s26, %s15194_s26, %s15195_s9  }
 0x183   :  { %s15107_s15 = scalar_lea.hbm %s16812_s11, 32 }
 0x184   :  { %p15108_p4 = scmp.ne.s32.totalorder %s16812_s11, %s15107_s15  ;;  %p15111_p5 = scmp.lt.u32.totalorder %s15107_s15, %s16812_s11 }
 0x186   :  { %p15113_p6 = pnand %p15111_p5, %p15108_p4 }
 0x188   :  { %15116 = shalt.err (!%p15113_p6)
}
 0x189   :  { %s15117_s16 = scalar_lea.vmem %s336_s25, 32  ;;  %p15122_p8 = scmp.lt.s32.totalorder %s336_s25, %s336_s25 }
 0x18a   :  { %p15118_p7 = scmp.ne.s32.totalorder %s336_s25, %s15117_s16  ;;  %p15123_p9 = scmp.lt.s32.totalorder %s15117_s16, %s15117_s16 }
 0x18c   :  { %p15124_p10 = por %p15123_p9, %p15122_p8 }
 0x18e   :  { %p15125_p11 = pnand %p15124_p10, %p15118_p7 }
 0x190   :  { %15128 = shalt.err (!%p15125_p11)
}
 0x191   :  { %341 = dma.hbm_to_vmem [thread:$0]  %s16812_s11, 32, %s336_s25, [#allocation29], %s15194_s26, %s15194_s26, %s15195_s9  }
 0x192   :  { %15129 = dma.done.wait [#allocation3], 256  }
 0x193   :  { %15130 = vsyncadd [#allocation3], 4294967040 }
 0x194   :  { %15131 = dma.done.wait [#allocation5], 288  }
 0x195   :  { %15132 = vsyncadd [#allocation5], 4294967008 }
 0x196   :  { %15133 = dma.done.wait [#allocation8], 64  }
 0x197   :  { %15134 = vsyncadd [#allocation8], 4294967232 }
 0x198   :  { %15135 = dma.done.wait [#allocation11], 64  }
 0x199   :  { %15136 = vsyncadd [#allocation11], 4294967232 }
 0x19a   :  { %15137 = dma.done.wait [#allocation14], 64  }
 0x19b   :  { %15138 = vsyncadd [#allocation14], 4294967232 }
 0x19c   :  { %15139 = dma.done.wait [#allocation17], 64  }
 0x19d   :  { %15140 = vsyncadd [#allocation17], 4294967232 }
 0x19e   :  { %15141 = dma.done.wait [#allocation20], 1056  }
 0x19f   :  { %15142 = vsyncadd [#allocation20], 4294966240 }
 0x1a0   :  { %15143 = dma.done.wait [#allocation23], 1056  }
 0x1a1   :  { %15144 = vsyncadd [#allocation23], 4294966240 }
 0x1a2   :  { %15145 = dma.done.wait [#allocation26], 1056  }
 0x1a3   :  { %15146 = vsyncadd [#allocation26], 4294966240 }
 0x1a4   :  { %15147 = dma.done.wait [#allocation29], 64  }
 0x1a5   :  { %15148 = vsyncadd [#allocation29], 4294967232  ;;  %s16813_s26 = sld [smem:[#allocation41_spill]]  ;;  %vm436_vm0 = vcmask 261120   ;;  %s16814_s9 = sld [smem:[#allocation42_spill]]  ;;  %v15572_v5 = vld [vmem:[#allocation2] sm:$0xff] }
 0x1a6   :  { %13380 = vmatprep.mubr.msk.f32.mxu0 %vm436_vm0, %v15572_v5  ;;  %v15576_v7 = vld [vmem:[#allocation2 + $0x8] sm:$0xff]  ;;  %v15212_v8 = vmov 0.0   ;;  %vm15213_vm1 = vmmov 0   ;;  %s15214_s14 = smov 96   ;;  %vm526_vm2 = vcmask 64512   ;;  %s15215_s27 = smov 64  }
 0x1a7   :  { %13383 = vmatprep.subr.mxu1 %v15212_v8  ;;  %13385 = vmatprep.mubr.msk.f32.mxu1 %vm15213_vm1, %v15212_v8  ;;  %s15216_s24 = smov 88   ;;  %s15217_s18 = smov 120   ;;  %vm2342_vm3 = vcmask 523264   ;;  %vm12613_vm5 = vcmask 39936  }
 0x1a8   :  { %s15218_s21 = smov 56   ;;  %s15219_s30 = smov 112  }
 0x1a9   :  { %s15220_s6 = smov 80   ;;  %s15221_s22 = smov 48  }
 0x1aa   :  { %s15222_s23 = smov 72   ;;  %s15223_s28 = smov 104  }
 0x1ab   :  { %v425_v0 = vld [vmem:[%s16813_s26] sm:$0xff]  ;;  %v426_v1 = vld [vmem:[%s16813_s26 + $0x8] sm:$0xff]  ;;  %v427_v2 = vld [vmem:[%s16813_s26 + $0x10] sm:$0xff]  ;;  %s16815_s1 = sld [smem:[#allocation43_spill]]  ;;  %s15224_s8 = smov 40  }
 0x1ac   :  { %v14191_v3 = vpack.c.bf16 %v426_v1, %v425_v0  ;;  %v428_v4 = vld [vmem:[%s16813_s26 + $0x18] sm:$0xff]  ;;  %v12670_v9 = vld [vmem:[%s16814_s9] ss:$0 sm:$0xff]  ;;  %s16816_s29 = sld [smem:[#allocation44_spill]]  ;;  %s16817_s5 = sld [smem:[#allocation45_spill]] }
 0x1ad   :  { %v14195_v6 = vpack.c.bf16 %v428_v4, %v427_v2  ;;  %s16818_s7 = sld [smem:[#allocation46_spill]]  ;;  %s16819_s10 = sld [smem:[#allocation47_spill]] }
 0x1ae   :  { %14192 = vmatprep.subr.bf16.mxu0 %v14191_v3  ;;  %s16820_s20 = sld [smem:[#allocation61_spill]]  ;;  %s16821_s2 = sld [smem:[#allocation62_spill]] }
 0x1af   :  { %14194 = vmatpush3.bf16.msra.mxu0 %v14191_v3  ;;  %s16822_s12 = sld [smem:[#allocation55_spill]]  ;;  %s16823_s25 = sld [smem:[#allocation56_spill]] }
 0x1b0   :  { %14196 = vmatprep.subr.bf16.mxu0 %v14195_v6  ;;  %s16824_s0 = sld [smem:[#allocation52_spill]]  ;;  %s16825_s3 = sld [smem:[#allocation53_spill]] }
 0x1b1   :  { %s16826_s11 = sld [smem:[#allocation57_spill]]  ;;  %s16827_s15 = sld [smem:[#allocation58_spill]] }
 0x1b2   :  { %s16828_s16 = sld [smem:[#allocation59_spill]] }
 0x1b3   :  { %14198 = vmatpush3.bf16.msra.mxu0 %v14195_v6 }
 0x1b4   :  { %13403 = vmatprep.subr.mxu0 %v15212_v8 }
 0x1b6   :  { %13381 = vmatmul.mubr.msk.f32.vlgmr.msra.gmra.mrb[0].mxu0 %vm436_vm0, %v15576_v7 }
 0x1b7   :  { %13405 = vmatprep.mubr.msk.f32.mxu0 %vm15213_vm1, %v15212_v8 }
 0x289   :  { %v13382_v10 = vpop.f32.mrb[0].mxu0 }
 0x28a   :  { %v509_v11 = vpop.f32.mrb[1].mxu0  ;;  %v15591_v13 = vadd.f32 %v13382_v10, %v12670_v9 }
 0x28b   :  { %v15587_v12 = vadd.f32 %v12670_v9, %v509_v11 }
 0x28d   :  { %524 = vrot.lane.b32.xlu0 %v15587_v12, %s15214_s14 }
 0x291   :  { %602 = vrot.lane.b32.xlu0 %v15591_v13, %s15214_s14 }
 0x2ff   :  { %v525_v14 = vpop.permute.xlu0 %524 }
 0x300   :  { %13384 = vmatpush3.xpose.msk.msra.mxu1 %vm526_vm2, %v525_v14 }
 0x301   :  { %13388 = vmatprep.subr.mxu1 %v15212_v8 }
 0x303   :  { %13386 = vmatmul.mubr.msk.f32.vlgmr.msra.gmra.mrb[0].mxu1 %vm526_vm2, %v15587_v12  ;;  %v603_v15 = vpop.permute.xlu0 %602 }
 0x304   :  { %13389 = vmatpush3.xpose.msk.msra.mxu1 %vm526_vm2, %v603_v15  ;;  %13390 = vmatprep.mubr.msk.f32.mxu1 %vm15213_vm1, %v15212_v8 }
 0x305   :  { %13393 = vmatprep.subr.mxu1 %v15212_v8 }
 0x307   :  { %13391 = vmatmul.mubr.msk.f32.vlgmr.msra.gmra.mrb[2].mxu1 %vm526_vm2, %v15591_v13 }
 0x308   :  { %13395 = vmatprep.mubr.msk.f32.mxu1 %vm15213_vm1, %v15212_v8 }
 0x3d6   :  { %v597_v16 = vpop.f32.mrb[0].mxu1 }
 0x3d7   :  { %v678_v17 = vmul.f32 0.35355338, %v597_v16  ;;  %v13387_v18 = vpop.f32.mrb[1].mxu1 }
 0x3d9   :  { %v680_v19 = vsel %vm526_vm2, %v678_v17, -inf }
 0x3da   :  { %681 = vmax.xlane.f32.xlu1 %v680_v19  ;;  %v674_v20 = vpop.f32.mrb[2].mxu1 }
 0x3db   :  { %v679_v21 = vmul.f32 0.35355338, %v674_v20  ;;  %v13392_v22 = vpop.f32.mrb[3].mxu1 }
 0x3dc   :  { %v519_v22 = vld [vmem:[%s16815_s1 + $0x8] sm:$0xff] }
 0x3dd   :  { %v683_v23 = vsel %vm526_vm2, %v679_v21, -inf }
 0x3de   :  { %684 = vmax.xlane.f32.xlu1 %v683_v23  ;;  %v518_v23 = vld [vmem:[%s16815_s1] sm:$0xff] }
 0x3ef   :  { %702 = vrot.lane.b32.xlu1 %v15587_v12, %s15215_s27 }
 0x3f3   :  { %778 = vrot.lane.b32.xlu1 %v15591_v13, %s15215_s27 }
 0x3f7   :  { %934 = vrot.lane.b32.xlu1 %v15591_v13, %s15216_s24 }
 0x467   :  { %v682_v24 = vpop.xlane.xlu1 %681 }
 0x468   :  { %v686_v25 = vsub.f32 %v678_v17, %v682_v24 }
 0x46a   :  { %v688_v26 = vmul.f32 1.442695, %v686_v25 }
 0x46b   :  { %v685_v27 = vpop.xlane.xlu1 %684 }
 0x46c   :  { %14471 = vpow2.f32 %v688_v26  ;;  %v687_v28 = vsub.f32 %v679_v21, %v685_v27 }
 0x46e   :  { %v690_v29 = vmul.f32 1.442695, %v687_v28 }
 0x46f   :  { %v703_v30 = vpop.permute.xlu1 %702 }
 0x470   :  { %14473 = vpow2.f32 %v690_v29  ;;  %13394 = vmatpush3.msra.mxu1 %v703_v30 }
 0x471   :  { %13398 = vmatprep.subr.mxu1 %v15212_v8 }
 0x473   :  { %v779_v35 = vpop.permute.xlu1 %778 }
 0x476   :  { %v14472_v31 = vpop.eup %14471 }
 0x477   :  { %v692_v32 = vsel %vm526_vm2, %v14472_v31, 0.0  ;;  %v935_v36 = vpop.permute.xlu1 %934 }
 0x478   :  { %693 = vadd.xlane.f32.xlu0 %v692_v32 }
 0x47a   :  { %v14474_v33 = vpop.eup %14473 }
 0x47b   :  { %v695_v34 = vsel %vm526_vm2, %v14474_v33, 0.0 }
 0x47c   :  { %696 = vadd.xlane.f32.xlu1 %v695_v34 }
 0x48d   :  { %932 = vrot.lane.b32.xlu1 %v15591_v13, %s15217_s18 }
 0x48e   :  { %856 = vrot.lane.b32.xlu0 %v15587_v12, %s15216_s24 }
 0x491   :  { %854 = vrot.lane.b32.xlu1 %v15587_v12, %s15217_s18 }
 0x505   :  { %v694_v37 = vpop.xlane.xlu0 %693 }
 0x506   :  { %14475 = vrcp.f32 %v694_v37 }
 0x509   :  { %v697_v38 = vpop.xlane.xlu1 %696  ;;  %v857_v39 = vpop.permute.xlu0 %856 }
 0x50a   :  { %14477 = vrcp.f32 %v697_v38  ;;  %13404 = vmatpush3.xpose.msk.msra.mxu0 %vm526_vm2, %v857_v39 }
 0x50b   :  { %13413 = vmatprep.subr.mxu0 %v15212_v8 }
 0x50d   :  { %v933_v40 = vpop.permute.xlu1 %932 }
 0x510   :  { %v14476_v41 = vpop.eup %14475 }
 0x511   :  { %v855_v42 = vpop.permute.xlu1 %854  ;;  %v700_v43 = vmul.f32 %v14476_v41, %v14472_v31 }
 0x512   :  { %13406 = vmatmul.mubr.msk.f32.vlgmr.msra.gmra.mrb[2].mxu0 %vm526_vm2, %v855_v42 }
 0x513   :  { %13396 = vmatmul.mubr.msk.f32.vlgmr.msra.gmra.mrb[4].mxu1 %vm526_vm2, %v700_v43  ;;  %13415 = vmatprep.mubr.msk.f32.mxu0 %vm15213_vm1, %v15212_v8 }
 0x514   :  { %v14478_v44 = vpop.eup %14477  ;;  %13399 = vmatpush3.msra.mxu1 %v779_v35  ;;  %13400 = vmatprep.mubr.msk.f32.mxu1 %vm15213_vm1, %v15212_v8 }
 0x515   :  { %v701_v45 = vmul.f32 %v14478_v44, %v14474_v33  ;;  %13408 = vmatprep.subr.mxu1 %v15212_v8 }
 0x517   :  { %13401 = vmatmul.mubr.msk.f32.vlgmr.msra.gmra.mrb[6].mxu1 %vm526_vm2, %v701_v45 }
 0x518   :  { %13410 = vmatprep.mubr.msk.f32.mxu1 %vm15213_vm1, %v15212_v8 }
 0x51b   :  { %13409 = vmatpush3.xpose.msk.msra.mxu1 %vm526_vm2, %v935_v36 }
 0x51c   :  { %13418 = vmatprep.subr.mxu1 %v15212_v8 }
 0x51e   :  { %13411 = vmatmul.mubr.msk.f32.vlgmr.msra.gmra.mrb[8].mxu1 %vm526_vm2, %v933_v40 }
 0x51f   :  { %13420 = vmatprep.mubr.msk.f32.mxu1 %vm15213_vm1, %v15212_v8 }
 0x5e5   :  { %v928_v46 = vpop.f32.mrb[2].mxu0 }
 0x5e6   :  { %v15641_v47 = vpop.f32.mrb[4].mxu1  ;;  %v13407_v48 = vpop.f32.mrb[3].mxu0  ;;  %v1010_v56 = vmul.f32 0.35355338, %v928_v46 }
 0x5e7   :  { %v13397_v49 = vpop.f32.mrb[5].mxu1  ;;  %v520_v48 = vld [vmem:[%s16815_s1 + $0x10] sm:$0xff] }
 0x5e8   :  { %v1012_v57 = vsel %vm526_vm2, %v1010_v56, -inf }
 0x5ea   :  { %v15643_v50 = vpop.f32.mrb[6].mxu1 }
 0x5eb   :  { %v13402_v51 = vpop.f32.mrb[7].mxu1 }
 0x5f1   :  { %v1006_v52 = vpop.f32.mrb[8].mxu1 }
 0x5f2   :  { %v1011_v53 = vmul.f32 0.35355338, %v1006_v52  ;;  %v13412_v54 = vpop.f32.mrb[9].mxu1 }
 0x5f4   :  { %v1015_v55 = vsel %vm526_vm2, %v1011_v53, -inf }
 0x5f5   :  { %1016 = vmax.xlane.f32.xlu1 %v1015_v55 }
 0x606   :  { %1110 = vrot.lane.b32.xlu1 %v15591_v13, %s15218_s21 }
 0x60a   :  { %1348 = vrot.lane.b32.xlu1 %v15587_v12, %s15219_s30 }
 0x60e   :  { %1428 = vrot.lane.b32.xlu1 %v15591_v13, %s15220_s6 }
 0x612   :  { %1426 = vrot.lane.b32.xlu1 %v15591_v13, %s15219_s30 }
 0x636   :  { %1013 = vmax.xlane.f32.xlu1 %v1012_v57 }
 0x682   :  { %v1017_v58 = vpop.xlane.xlu1 %1016 }
 0x683   :  { %v1019_v59 = vsub.f32 %v1011_v53, %v1017_v58 }
 0x685   :  { %v1022_v60 = vmul.f32 1.442695, %v1019_v59 }
 0x686   :  { %v1111_v61 = vpop.permute.xlu1 %1110 }
 0x687   :  { %14479 = vpow2.f32 %v1022_v60  ;;  %13419 = vmatpush3.msra.mxu1 %v1111_v61 }
 0x688   :  { %13433 = vmatprep.subr.mxu1 %v15212_v8 }
 0x68a   :  { %v1349_v0 = vpop.permute.xlu1 %1348 }
 0x68e   :  { %v1429_v1 = vpop.permute.xlu1 %1428 }
 0x691   :  { %v14480_v62 = vpop.eup %14479 }
 0x692   :  { %v1027_v63 = vsel %vm526_vm2, %v14480_v62, 0.0  ;;  %v1427_v2 = vpop.permute.xlu1 %1426 }
 0x693   :  { %1028 = vadd.xlane.f32.xlu0 %v1027_v63 }
 0x6a9   :  { %1350 = vrot.lane.b32.xlu0 %v15587_v12, %s15220_s6 }
 0x6c3   :  { %v1014_v3 = vpop.xlane.xlu1 %1013 }
 0x6c4   :  { %v1018_v4 = vsub.f32 %v1010_v56, %v1014_v3 }
 0x6c6   :  { %v1020_v6 = vmul.f32 1.442695, %v1018_v4 }
 0x6c8   :  { %14481 = vpow2.f32 %v1020_v6 }
 0x6d2   :  { %v14482_v9 = vpop.eup %14481 }
 0x6d3   :  { %v1024_v10 = vsel %vm526_vm2, %v14482_v9, 0.0 }
 0x6d4   :  { %1025 = vadd.xlane.f32.xlu0 %v1024_v10 }
 0x6ea   :  { %1034 = vrot.lane.b32.xlu0 %v15587_v12, %s15218_s21 }
 0x6ee   :  { %1604 = vrot.lane.b32.xlu0 %v15591_v13, %s15221_s22 }
 0x6f2   :  { %1765 = vrot.lane.b32.xlu0 %v15587_v12, %s15222_s23 }
 0x6f6   :  { %1843 = vrot.lane.b32.xlu0 %v15591_v13, %s15222_s23 }
 0x6fa   :  { %1763 = vrot.lane.b32.xlu0 %v15587_v12, %s15223_s28 }
 0x720   :  { %v1029_v11 = vpop.xlane.xlu0 %1028 }
 0x721   :  { %14483 = vrcp.f32 %v1029_v11 }
 0x724   :  { %v1351_v16 = vpop.permute.xlu0 %1350 }
 0x72b   :  { %v14484_v14 = vpop.eup %14483 }
 0x72c   :  { %v1033_v15 = vmul.f32 %v14484_v14, %v14480_v62 }
 0x72e   :  { %13421 = vmatmul.mubr.msk.f32.vlgmr.msra.gmra.mrb[10].mxu1 %vm526_vm2, %v1033_v15 }
 0x72f   :  { %13434 = vmatpush3.xpose.msk.msra.mxu1 %vm526_vm2, %v1351_v16  ;;  %13435 = vmatprep.mubr.msk.f32.mxu1 %vm15213_vm1, %v15212_v8 }
 0x730   :  { %13438 = vmatprep.subr.mxu1 %v15212_v8 }
 0x732   :  { %13436 = vmatmul.mubr.msk.f32.vlgmr.msra.gmra.mrb[12].mxu1 %vm526_vm2, %v1349_v0 }
 0x733   :  { %13439 = vmatpush3.xpose.msk.msra.mxu1 %vm526_vm2, %v1429_v1  ;;  %13440 = vmatprep.mubr.msk.f32.mxu1 %vm15213_vm1, %v15212_v8 }
 0x734   :  { %13448 = vmatprep.subr.mxu1 %v15212_v8 }
 0x736   :  { %13441 = vmatmul.mubr.msk.f32.vlgmr.msra.gmra.mrb[14].mxu1 %vm526_vm2, %v1427_v2 }
 0x737   :  { %13450 = vmatprep.mubr.msk.f32.mxu1 %vm15213_vm1, %v15212_v8 }
 0x761   :  { %v1026_v17 = vpop.xlane.xlu0 %1025 }
 0x762   :  { %14485 = vrcp.f32 %v1026_v17 }
 0x765   :  { %v1035_v18 = vpop.permute.xlu0 %1034 }
 0x766   :  { %13414 = vmatpush3.msra.mxu0 %v1035_v18 }
 0x767   :  { %13423 = vmatprep.subr.mxu0 %v519_v22 }
 0x769   :  { %v1605_v19 = vpop.permute.xlu0 %1604 }
 0x76a   :  { %13449 = vmatpush3.msra.mxu1 %v1605_v19 }
 0x76b   :  { %13458 = vmatprep.subr.mxu1 %v15212_v8 }
 0x76c   :  { %v14486_v20 = vpop.eup %14485 }
 0x76d   :  { %v1032_v21 = vmul.f32 %v14486_v20, %v14482_v9 }
 0x76f   :  { %13416 = vmatmul.mubr.msk.f32.vlgmr.msra.gmra.mrb[4].mxu0 %vm526_vm2, %v1032_v21 }
 0x770   :  { %13424 = vmatpush3.msra.mxu0 %v519_v22 }
 0x771   :  { %13428 = vmatprep.subr.mxu0 %v518_v23 }
 0x801   :  { %v1182_v24 = vpop.f32.mrb[10].mxu1 }
 0x802   :  { %v13422_v25 = vpop.f32.mrb[11].mxu1 }
 0x803   :  { %v521_v25 = vld [vmem:[%s16815_s1 + $0x18] sm:$0xff] }
 0x805   :  { %v1422_v26 = vpop.f32.mrb[12].mxu1 }
 0x806   :  { %v1504_v27 = vmul.f32 0.35355338, %v1422_v26  ;;  %v13437_v28 = vpop.f32.mrb[13].mxu1 }
 0x808   :  { %v1506_v29 = vsel %vm526_vm2, %v1504_v27, -inf }
 0x809   :  { %1507 = vmax.xlane.f32.xlu1 %v1506_v29  ;;  %v1500_v30 = vpop.f32.mrb[14].mxu1 }
 0x80a   :  { %v1505_v31 = vmul.f32 0.35355338, %v1500_v30  ;;  %v13442_v32 = vpop.f32.mrb[15].mxu1 }
 0x80c   :  { %v1509_v33 = vsel %vm526_vm2, %v1505_v31, -inf }
 0x80d   :  { %1510 = vmax.xlane.f32.xlu1 %v1509_v33 }
 0x842   :  { %v1106_v34 = vpop.f32.mrb[4].mxu0 }
 0x843   :  { %v13417_v35 = vpop.f32.mrb[5].mxu0  ;;  %13425 = vmatprep.mubr.msk.f32.mxu0 %vm526_vm2, %v1106_v34 }
 0x844   :  { %13426 = vmatmul.mubr.msk.f32.vlgmr.msra.gmra.mrb[6].mxu0 %vm526_vm2, %v1182_v24 }
 0x845   :  { %13430 = vmatprep.mubr.msk.f32.mxu0 %vm526_vm2, %v15641_v47  ;;  %13429 = vmatpush3.msra.mxu0 %v518_v23 }
 0x846   :  { %13443 = vmatprep.subr.mxu0 %v15212_v8 }
 0x84c   :  { %13431 = vmatmul.mubr.msk.f32.vlgmr.msra.gmra.mrb[6].mxu0 %vm526_vm2, %v15643_v50  ;;  %v1766_v50 = vpop.permute.xlu0 %1765 }
 0x84d   :  { %13445 = vmatprep.mubr.msk.f32.mxu0 %vm15213_vm1, %v15212_v8 }
 0x850   :  { %v1844_v54 = vpop.permute.xlu0 %1843 }
 0x854   :  { %v1764_v56 = vpop.permute.xlu0 %1763 }
 0x896   :  { %v1508_v36 = vpop.xlane.xlu1 %1507 }
 0x897   :  { %v1512_v37 = vsub.f32 %v1504_v27, %v1508_v36 }
 0x899   :  { %v1514_v38 = vmul.f32 1.442695, %v1512_v37 }
 0x89a   :  { %v1511_v39 = vpop.xlane.xlu1 %1510 }
 0x89b   :  { %14487 = vpow2.f32 %v1514_v38  ;;  %v1513_v40 = vsub.f32 %v1505_v31, %v1511_v39 }
 0x89d   :  { %v1516_v41 = vmul.f32 1.442695, %v1513_v40 }
 0x89f   :  { %14489 = vpow2.f32 %v1516_v41 }
 0x8a5   :  { %v14488_v42 = vpop.eup %14487 }
 0x8a6   :  { %v1518_v43 = vsel %vm526_vm2, %v14488_v42, 0.0 }
 0x8a7   :  { %1519 = vadd.xlane.f32.xlu1 %v1518_v43 }
 0x8a9   :  { %v14490_v44 = vpop.eup %14489 }
 0x8aa   :  { %v1521_v45 = vsel %vm526_vm2, %v14490_v44, 0.0 }
 0x8ab   :  { %1522 = vadd.xlane.f32.xlu1 %v1521_v45 }
 0x8bc   :  { %1528 = vrot.lane.b32.xlu1 %v15587_v12, %s15221_s22 }
 0x8c0   :  { %1841 = vrot.lane.b32.xlu1 %v15591_v13, %s15223_s28 }
 0x934   :  { %v1520_v46 = vpop.xlane.xlu1 %1519 }
 0x935   :  { %14491 = vrcp.f32 %v1520_v46 }
 0x938   :  { %v1523_v47 = vpop.xlane.xlu1 %1522 }
 0x939   :  { %14493 = vrcp.f32 %v1523_v47 }
 0x93c   :  { %v1529_v49 = vpop.permute.xlu1 %1528 }
 0x93d   :  { %13444 = vmatpush3.msra.mxu0 %v1529_v49  ;;  %v2233_v49 = vld [vmem:[%s16816_s29] sm:$0xff] }
 0x93e   :  { %13453 = vmatprep.subr.mxu0 %v520_v48 }
 0x93f   :  { %v14492_v51 = vpop.eup %14491 }
 0x940   :  { %v1526_v52 = vmul.f32 %v14492_v51, %v14488_v42  ;;  %v1842_v61 = vpop.permute.xlu1 %1841  ;;  %v2235_v51 = vld [vmem:[%s16816_s29 + $0x10] sm:$0xff] }
 0x942   :  { %13446 = vmatmul.mubr.msk.f32.vlgmr.msra.gmra.mrb[8].mxu0 %vm526_vm2, %v1526_v52 }
 0x943   :  { %v14494_v53 = vpop.eup %14493  ;;  %13454 = vmatpush3.msra.mxu0 %v520_v48 }
 0x944   :  { %v1527_v55 = vmul.f32 %v14494_v53, %v14490_v44  ;;  %13463 = vmatprep.subr.mxu0 %v15212_v8  ;;  %v2236_v53 = vld [vmem:[%s16816_s29 + $0x18] sm:$0xff] }
 0x946   :  { %13451 = vmatmul.mubr.msk.f32.vlgmr.msra.gmra.mrb[16].mxu1 %vm526_vm2, %v1527_v55  ;;  %v2238_v55 = vld [vmem:[%s16817_s5] sm:$0xff] }
 0x947   :  { %13459 = vmatpush3.xpose.msk.msra.mxu1 %vm526_vm2, %v1766_v50  ;;  %13460 = vmatprep.mubr.msk.f32.mxu1 %vm15213_vm1, %v15212_v8  ;;  %v2234_v50 = vld [vmem:[%s16816_s29 + $0x8] sm:$0xff] }
 0x948   :  { %13468 = vmatprep.subr.mxu1 %v15212_v8  ;;  %v14199_v52 = vpack.c.bf16 %v2234_v50, %v2233_v49  ;;  %v12719_v50 = vld [vmem:[%s16813_s26 + $0x38] sm:$0xff] }
 0x94a   :  { %13461 = vmatmul.mubr.msk.f32.vlgmr.msra.gmra.mrb[18].mxu1 %vm526_vm2, %v1764_v56  ;;  %v2239_v56 = vld [vmem:[%s16817_s5 + $0x8] sm:$0xff] }
 0x94b   :  { %13470 = vmatprep.mubr.msk.f32.mxu1 %vm15213_vm1, %v15212_v8 }
 0xa15   :  { %v1600_v57 = vpop.f32.mrb[8].mxu0 }
 0xa16   :  { %v13447_v58 = vpop.f32.mrb[9].mxu0  ;;  %13455 = vmatprep.mubr.msk.f32.mxu0 %vm526_vm2, %v1600_v57  ;;  %v2240_v57 = vld [vmem:[%s16817_s5 + $0x10] sm:$0xff] }
 0xa17   :  { %v14207_v58 = vpack.c.bf16 %v2239_v56, %v2238_v55 }
 0xa19   :  { %v1676_v59 = vpop.f32.mrb[16].mxu1 }
 0xa1a   :  { %v13452_v60 = vpop.f32.mrb[17].mxu1  ;;  %13456 = vmatmul.mubr.msk.f32.vlgmr.msra.gmra.mrb[6].mxu0 %vm526_vm2, %v1676_v59  ;;  %v2241_v59 = vld [vmem:[%s16817_s5 + $0x18] sm:$0xff] }
 0xa1b   :  { %13464 = vmatpush3.xpose.msk.msra.mxu0 %vm526_vm2, %v1844_v54  ;;  %13465 = vmatprep.mubr.msk.f32.mxu0 %vm15213_vm1, %v15212_v8  ;;  %v14203_v54 = vpack.c.bf16 %v2236_v53, %v2235_v51  ;;  %v14211_v60 = vpack.c.bf16 %v2241_v59, %v2240_v57  ;;  %v12714_v59 = vld [vmem:[#allocation13] ss:$0 sm:$0xff] }
 0xa1c   :  { %13473 = vmatprep.subr.mxu0 %v15212_v8 }
 0xa1d   :  { %v1837_v62 = vpop.f32.mrb[18].mxu1 }
 0xa1e   :  { %v1919_v63 = vmul.f32 0.35355338, %v1837_v62  ;;  %v13462_v0 = vpop.f32.mrb[19].mxu1  ;;  %13466 = vmatmul.mubr.msk.f32.vlgmr.msra.gmra.mrb[10].mxu0 %vm526_vm2, %v1842_v61  ;;  %v2242_v61 = vld [vmem:[%s16817_s5 + $0x20] sm:$0xff]  ;;  %v2243_v62 = vld [vmem:[%s16817_s5 + $0x28] sm:$0xff] }
 0xa1f   :  { %13475 = vmatprep.mubr.msk.f32.mxu0 %vm15213_vm1, %v15212_v8 }
 0xa20   :  { %v1921_v1 = vsel %vm526_vm2, %v1919_v63, -inf }
 0xa21   :  { %1922 = vmax.xlane.f32.xlu0 %v1921_v1 }
 0xaae   :  { %v1923_v2 = vpop.xlane.xlu0 %1922 }
 0xaaf   :  { %v1927_v3 = vsub.f32 %v1919_v63, %v1923_v2  ;;  %v14215_v63 = vpack.c.bf16 %v2243_v62, %v2242_v61 }
 0xab1   :  { %v1929_v4 = vmul.f32 1.442695, %v1927_v3 }
 0xab3   :  { %14495 = vpow2.f32 %v1929_v4 }
 0xabd   :  { %v14496_v6 = vpop.eup %14495 }
 0xabe   :  { %v1933_v9 = vsel %vm526_vm2, %v14496_v6, 0.0 }
 0xabf   :  { %1934 = vadd.xlane.f32.xlu0 %v1933_v9 }
 0xaf1   :  { %v1915_v10 = vpop.f32.mrb[10].mxu0 }
 0xaf2   :  { %v1920_v11 = vmul.f32 0.35355338, %v1915_v10  ;;  %v13467_v14 = vpop.f32.mrb[11].mxu0  ;;  %v12706_v10 = vld [vmem:[#allocation7] ss:$0 sm:$0xff] }
 0xaf4   :  { %v1924_v15 = vsel %vm526_vm2, %v1920_v11, -inf }
 0xaf5   :  { %1925 = vmax.xlane.f32.xlu1 %v1924_v15 }
 0xb06   :  { %1943 = vrot.lane.b32.xlu1 %v15587_v12, %s15224_s8 }
 0xb4c   :  { %v1935_v16 = vpop.xlane.xlu0 %1934 }
 0xb4d   :  { %14497 = vrcp.f32 %v1935_v16  ;;  %v12707_v16 = vld [vmem:[#allocation9] ss:$0 sm:$0xff] }
 0xb57   :  { %v14498_v18 = vpop.eup %14497 }
 0xb58   :  { %v1941_v22 = vmul.f32 %v14498_v18, %v14496_v6 }
 0xb82   :  { %v1926_v17 = vpop.xlane.xlu1 %1925 }
 0xb83   :  { %v1928_v19 = vsub.f32 %v1920_v11, %v1926_v17 }
 0xb85   :  { %v1931_v20 = vmul.f32 1.442695, %v1928_v19 }
 0xb86   :  { %v1944_v21 = vpop.permute.xlu1 %1943 }
 0xb87   :  { %14499 = vpow2.f32 %v1931_v20  ;;  %13469 = vmatpush3.msra.mxu1 %v1944_v21  ;;  %v2244_v21 = vld [vmem:[%s16817_s5 + $0x30] sm:$0xff] }
 0xb88   :  { %13471 = vmatmul.mubr.msk.f32.vlgmr.msra.gmra.mrb[20].mxu1 %vm526_vm2, %v1941_v22  ;;  %14200 = vmatprep.subr.bf16.mxu1 %v14199_v52  ;;  %v2245_v22 = vld [vmem:[%s16817_s5 + $0x38] sm:$0xff] }
 0xb89   :  { %14202 = vmatpush3.bf16.msra.mxu1 %v14199_v52 }
 0xb8a   :  { %14204 = vmatprep.subr.bf16.mxu1 %v14203_v54 }
 0xb8d   :  { %14206 = vmatpush3.bf16.msra.mxu1 %v14203_v54 }
 0xb91   :  { %v14500_v23 = vpop.eup %14499 }
 0xb92   :  { %v1936_v24 = vsel %vm526_vm2, %v14500_v23, 0.0 }
 0xb93   :  { %1937 = vadd.xlane.f32.xlu0 %v1936_v24  ;;  %v12708_v24 = vld [vmem:[#allocation10] ss:$0 sm:$0xff] }
 0xba9   :  { %2019 = vrot.lane.b32.xlu0 %v15591_v13, %s15224_s8  ;;  %v12705_v13 = vld [vmem:[#allocation6] ss:$0 sm:$0xff] }
 0xc20   :  { %v1938_v12 = vpop.xlane.xlu0 %1937 }
 0xc21   :  { %14501 = vrcp.f32 %v1938_v12 }
 0xc24   :  { %v2020_v26 = vpop.permute.xlu0 %2019 }
 0xc25   :  { %13474 = vmatpush3.msra.mxu0 %v2020_v26 }
 0xc26   :  { %13478 = vmatprep.subr.mxu0 %v521_v25 }
 0xc2b   :  { %v14502_v27 = vpop.eup %14501 }
 0xc2c   :  { %v1942_v28 = vmul.f32 %v14502_v27, %v14500_v23  ;;  %v14219_v23 = vpack.c.bf16 %v2245_v22, %v2244_v21 }
 0xc2e   :  { %13476 = vmatmul.mubr.msk.f32.vlgmr.msra.gmra.mrb[12].mxu0 %vm526_vm2, %v1942_v28 }
 0xc2f   :  { %13479 = vmatpush3.msra.mxu0 %v521_v25 }
 0xc30   :  { %14208 = vmatprep.subr.bf16.mxu0 %v14207_v58 }
 0xc5b   :  { %v2015_v29 = vpop.f32.mrb[20].mxu1 }
 0xc5c   :  { %v13472_v30 = vpop.f32.mrb[21].mxu1  ;;  %13480 = vmatprep.mubr.msk.f32.mxu0 %vm526_vm2, %v2015_v29 }
 0xc5d   :  { %v12711_v30 = vld [vmem:[#allocation12] ss:$0 sm:$0xff] }
 0xd01   :  { %v2091_v31 = vpop.f32.mrb[12].mxu0 }
 0xd02   :  { %v13477_v32 = vpop.f32.mrb[13].mxu0  ;;  %13481 = vmatmul.mubr.msk.f32.vlgmr.msra.gmra.mrb[6].mxu0 %vm526_vm2, %v2091_v31 }
 0xd03   :  { %14210 = vmatpush3.bf16.msra.mxu0 %v14207_v58 }
 0xd04   :  { %14212 = vmatprep.subr.bf16.mxu0 %v14211_v60 }
 0xd07   :  { %14214 = vmatpush3.bf16.msra.mxu0 %v14211_v60 }
 0xd08   :  { %14216 = vmatprep.subr.bf16.mxu0 %v14215_v63 }
 0xd0b   :  { %14218 = vmatpush3.bf16.msra.mxu0 %v14215_v63  ;;  %v12715_v63 = vld [vmem:[#allocation15] ss:$0 sm:$0xff] }
 0xd0c   :  { %14220 = vmatprep.subr.bf16.mxu0 %v14219_v23 }
 0xd0f   :  { %14222 = vmatpush3.bf16.msra.mxu0 %v14219_v23 }
 0xd10   :  { %13534 = vmatprep.subr.mxu0 %v15212_v8 }
 0xdd5   :  { %v13482_v33 = vpop.f32.mrb[6].mxu0 }
 0xdd6   :  { %v2185_v34 = vadd.f32 %v13482_v33, %v12705_v13  ;;  %v2167_v35 = vpop.f32.mrb[7].mxu0 }
 0xdd7   :  { %v2184_v36 = vadd.f32 %v12705_v13, %v2167_v35 }
 0xdd8   :  { %v2187_v37 = vadd.f32 %v2185_v34, %v15576_v7 }
 0xdd9   :  { %v2186_v38 = vadd.f32 %v2184_v36, %v15572_v5 }
 0xdda   :  { %v2193_v39 = vsel %vm436_vm0, %v2187_v37, 0.0 }
 0xddb   :  { %2194 = vadd.xlane.f32.xlu0 %v2193_v39  ;;  %v2190_v40 = vsel %vm436_vm0, %v2186_v38, 0.0 }
 0xddc   :  { %2191 = vadd.xlane.f32.xlu1 %v2190_v40 }
 0xe68   :  { %v2195_v41 = vpop.xlane.xlu0 %2194 }
 0xe69   :  { %v2198_v42 = vmul.f32 0.03125, %v2195_v41  ;;  %v2192_v43 = vpop.xlane.xlu1 %2191 }
 0xe6a   :  { %v2197_v44 = vmul.f32 0.03125, %v2192_v43 }
 0xe6b   :  { %v2200_v45 = vsub.f32 %v2187_v37, %v2198_v42 }
 0xe6c   :  { %v2199_v46 = vsub.f32 %v2186_v38, %v2197_v44 }
 0xe6d   :  { %v2202_v47 = vmul.f32 %v2200_v45, %v2200_v45 }
 0xe6e   :  { %v2201_v7 = vmul.f32 %v2199_v46, %v2199_v46 }
 0xe6f   :  { %v2206_v5 = vsel %vm436_vm0, %v2202_v47, 0.0 }
 0xe70   :  { %2207 = vadd.xlane.f32.xlu0 %v2206_v5  ;;  %v2203_v48 = vsel %vm436_vm0, %v2201_v7, 0.0  ;;  %v12716_v7 = vld [vmem:[%s16813_s26 + $0x20] sm:$0xff]  ;;  %v12717_v5 = vld [vmem:[%s16813_s26 + $0x28] sm:$0xff] }
 0xe71   :  { %2204 = vadd.xlane.f32.xlu1 %v2203_v48  ;;  %v12718_v48 = vld [vmem:[%s16813_s26 + $0x30] sm:$0xff]  ;;  %v14223_v49 = vpack.c.bf16 %v12717_v5, %v12716_v7  ;;  %s16829_s26 = sld [smem:[#allocation60_spill]] }
 0xe72   :  { %v14227_v51 = vpack.c.bf16 %v12719_v50, %v12718_v48 }
 0xe73   :  { %14224 = vmatprep.subr.bf16.mxu1 %v14223_v49 }
 0xefd   :  { %v2208_v0 = vpop.xlane.xlu0 %2207 }
 0xefe   :  { %v2210_v1 = vmul.f32 0.03125, %v2208_v0  ;;  %v2205_v2 = vpop.xlane.xlu1 %2204 }
 0xeff   :  { %v2209_v3 = vmul.f32 0.03125, %v2205_v2 }
 0xf00   :  { %v2212_v4 = vadd.f32 1e-05, %v2210_v1 }
 0xf01   :  { %v2211_v6 = vadd.f32 1e-05, %v2209_v3 }
 0xf02   :  { %14503 = vrsqrt.f32 %v2212_v4  ;;  %v12721_v4 = vld [vmem:[%s16814_s9 + $0x1] ss:$0 sm:$0xff]  ;;  %s16830_s9 = sld [smem:[#allocation63_spill]] }
 0xf03   :  { %14505 = vrsqrt.f32 %v2211_v6 }
 0xf0c   :  { %v14504_v9 = vpop.eup %14503 }
 0xf0d   :  { %v14506_v11 = vpop.eup %14505  ;;  %v2216_v14 = vmul.f32 %v14504_v9, %v2200_v45 }
 0xf0e   :  { %v2215_v15 = vmul.f32 %v14506_v11, %v2199_v46 }
 0xf0f   :  { %v2224_v17 = vmul.f32 %v12706_v10, %v2216_v14 }
 0xf10   :  { %v2223_v18 = vmul.f32 %v12706_v10, %v2215_v15 }
 0xf11   :  { %v2232_v20 = vadd.f32 %v12707_v16, %v2224_v17 }
 0xf12   :  { %v2231_v19 = vadd.f32 %v12707_v16, %v2223_v18 }
 0xf14   :  { %13491 = vmatprep.mubr.msk.f32.mxu1 %vm436_vm0, %v2231_v19 }
 0xf15   :  { %13492 = vmatmul.mubr.msk.f32.vlgmr.msra.gmra.mrb[22].mxu1 %vm436_vm0, %v2232_v20 }
 0xf16   :  { %14226 = vmatpush3.bf16.msra.mxu1 %v14223_v49 }
 0xf17   :  { %14228 = vmatprep.subr.bf16.mxu1 %v14227_v51 }
 0xf1a   :  { %14230 = vmatpush3.bf16.msra.mxu1 %v14227_v51 }
 0xf1b   :  { %13524 = vmatprep.subr.mxu1 %v15212_v8 }
 0xfe8   :  { %v13493_v12 = vpop.f32.mrb[22].mxu1 }
 0xfe9   :  { %v2331_v25 = vadd.f32 %v13493_v12, %v12708_v24  ;;  %v2325_v26 = vpop.f32.mrb[23].mxu1 }
 0xfea   :  { %v2326_v27 = vadd.f32 %v12708_v24, %v2325_v26 }
 0xfeb   :  { %v2335_v29 = vmax.f32 %v2331_v25, 0.0 }
 0xfec   :  { %v2334_v28 = vmax.f32 %v2326_v27, 0.0 }
 0xfee   :  { %13510 = vmatprep.mubr.msk.f32.mxu0 %vm2342_vm3, %v2334_v28 }
 0xfef   :  { %13511 = vmatmul.mubr.msk.f32.vlgmr.msra.gmra.mrb[14].mxu0 %vm2342_vm3, %v2335_v29 }
 0xff0   :  { %13536 = vmatprep.mubr.msk.f32.mxu0 %vm15213_vm1, %v15212_v8 }
0x10c2   :  { %v13512_v31 = vpop.f32.mrb[14].mxu0 }
0x10c3   :  { %v2421_v32 = vadd.f32 %v13512_v31, %v12711_v30  ;;  %v2415_v13 = vpop.f32.mrb[15].mxu0 }
0x10c4   :  { %v2416_v33 = vadd.f32 %v12711_v30, %v2415_v13 }
0x10c5   :  { %v2425_v34 = vadd.f32 %v2421_v32, %v2232_v20 }
0x10c6   :  { %v2424_v35 = vadd.f32 %v2416_v33, %v2231_v19 }
0x10c7   :  { %v2431_v36 = vsel %vm436_vm0, %v2425_v34, 0.0 }
0x10c8   :  { %2432 = vadd.xlane.f32.xlu0 %v2431_v36  ;;  %v2428_v37 = vsel %vm436_vm0, %v2424_v35, 0.0 }
0x10c9   :  { %2429 = vadd.xlane.f32.xlu1 %v2428_v37 }
0x1155   :  { %v2433_v38 = vpop.xlane.xlu0 %2432 }
0x1156   :  { %v2435_v39 = vmul.f32 0.03125, %v2433_v38  ;;  %v2430_v40 = vpop.xlane.xlu1 %2429 }
0x1157   :  { %v2434_v41 = vmul.f32 0.03125, %v2430_v40 }
0x1158   :  { %v2437_v42 = vsub.f32 %v2425_v34, %v2435_v39 }
0x1159   :  { %v2436_v43 = vsub.f32 %v2424_v35, %v2434_v41 }
0x115a   :  { %v2439_v44 = vmul.f32 %v2437_v42, %v2437_v42 }
0x115b   :  { %v2438_v45 = vmul.f32 %v2436_v43, %v2436_v43 }
0x115c   :  { %v2443_v46 = vsel %vm436_vm0, %v2439_v44, 0.0 }
0x115d   :  { %2444 = vadd.xlane.f32.xlu0 %v2443_v46  ;;  %v2440_v47 = vsel %vm436_vm0, %v2438_v45, 0.0 }
0x115e   :  { %2441 = vadd.xlane.f32.xlu1 %v2440_v47 }
0x11ea   :  { %v2445_v52 = vpop.xlane.xlu0 %2444 }
0x11eb   :  { %v2447_v53 = vmul.f32 0.03125, %v2445_v52  ;;  %v2442_v54 = vpop.xlane.xlu1 %2441 }
0x11ec   :  { %v2446_v55 = vmul.f32 0.03125, %v2442_v54 }
0x11ed   :  { %v2449_v56 = vadd.f32 1e-05, %v2447_v53 }
0x11ee   :  { %v2448_v57 = vadd.f32 1e-05, %v2446_v55 }
0x11ef   :  { %14507 = vrsqrt.f32 %v2449_v56 }
0x11f0   :  { %14509 = vrsqrt.f32 %v2448_v57 }
0x11f9   :  { %v14508_v58 = vpop.eup %14507 }
0x11fa   :  { %v14510_v60 = vpop.eup %14509  ;;  %v2453_v61 = vmul.f32 %v14508_v58, %v2437_v42 }
0x11fb   :  { %v2452_v62 = vmul.f32 %v14510_v60, %v2436_v43 }
0x11fc   :  { %v2461_v0 = vmul.f32 %v12714_v59, %v2453_v61 }
0x11fd   :  { %v2460_v1 = vmul.f32 %v12714_v59, %v2452_v62 }
0x11fe   :  { %v15773_v3 = vadd.f32 %v12715_v63, %v2461_v0 }
0x11ff   :  { %v15771_v2 = vadd.f32 %v12715_v63, %v2460_v1 }
0x1201   :  { %13521 = vmatprep.mubr.msk.f32.mxu1 %vm436_vm0, %v15771_v2 }
0x1202   :  { %13522 = vmatmul.mubr.msk.f32.vlgmr.msra.gmra.mrb[24].mxu1 %vm436_vm0, %v15773_v3 }
0x1203   :  { %13526 = vmatprep.mubr.msk.f32.mxu1 %vm15213_vm1, %v15212_v8 }
0x12d5   :  { %v13523_v6 = vpop.f32.mrb[24].mxu1 }
0x12d6   :  { %v15782_v9 = vadd.f32 %v13523_v6, %v12721_v4  ;;  %v2555_v10 = vpop.f32.mrb[25].mxu1 }
0x12d7   :  { %v15784_v11 = vadd.f32 %v12721_v4, %v2555_v10 }
0x12d8   :  { %2649 = vrot.lane.b32.xlu0 %v15782_v9, %s15214_s14 }
0x12d9   :  { %2572 = vrot.lane.b32.xlu1 %v15784_v11, %s15214_s14 }
0x134a   :  { %v2650_v15 = vpop.permute.xlu0 %2649 }
0x134b   :  { %v2573_v14 = vpop.permute.xlu1 %2572 }
0x134c   :  { %13525 = vmatpush3.xpose.msk.msra.mxu1 %vm526_vm2, %v2573_v14 }
0x134d   :  { %13529 = vmatprep.subr.mxu1 %v15212_v8 }
0x134f   :  { %13527 = vmatmul.mubr.msk.f32.vlgmr.msra.gmra.mrb[26].mxu1 %vm526_vm2, %v15784_v11 }
0x1350   :  { %13530 = vmatpush3.xpose.msk.msra.mxu1 %vm526_vm2, %v2650_v15  ;;  %13531 = vmatprep.mubr.msk.f32.mxu1 %vm15213_vm1, %v15212_v8 }
0x1351   :  { %13539 = vmatprep.subr.mxu1 %v15212_v8 }
0x1353   :  { %13532 = vmatmul.mubr.msk.f32.vlgmr.msra.gmra.mrb[28].mxu1 %vm526_vm2, %v15782_v9 }
0x1354   :  { %13541 = vmatprep.mubr.msk.f32.mxu1 %vm15213_vm1, %v15212_v8 }
0x1422   :  { %v2644_v16 = vpop.f32.mrb[26].mxu1 }
0x1423   :  { %v13528_v17 = vpop.f32.mrb[27].mxu1  ;;  %v2725_v22 = vmul.f32 0.35355338, %v2644_v16 }
0x1425   :  { %v2727_v23 = vsel %vm526_vm2, %v2725_v22, -inf }
0x1426   :  { %v2721_v18 = vpop.f32.mrb[28].mxu1 }
0x1427   :  { %v2726_v19 = vmul.f32 0.35355338, %v2721_v18  ;;  %v13533_v20 = vpop.f32.mrb[29].mxu1 }
0x1429   :  { %v2730_v21 = vsel %vm526_vm2, %v2726_v19, -inf }
0x142a   :  { %2731 = vmax.xlane.f32.xlu1 %v2730_v21 }
0x143b   :  { %2825 = vrot.lane.b32.xlu1 %v15782_v9, %s15215_s27 }
0x143f   :  { %2979 = vrot.lane.b32.xlu1 %v15782_v9, %s15217_s18 }
0x1463   :  { %2728 = vmax.xlane.f32.xlu1 %v2727_v23 }
0x1474   :  { %2903 = vrot.lane.b32.xlu1 %v15784_v11, %s15216_s24 }
0x1478   :  { %2901 = vrot.lane.b32.xlu1 %v15784_v11, %s15217_s18 }
0x147c   :  { %3397 = vrot.lane.b32.xlu1 %v15784_v11, %s15220_s6 }
0x14b7   :  { %v2732_v24 = vpop.xlane.xlu1 %2731 }
0x14b8   :  { %v2734_v12 = vsub.f32 %v2726_v19, %v2732_v24 }
0x14ba   :  { %v2737_v25 = vmul.f32 1.442695, %v2734_v12 }
0x14bb   :  { %v2826_v26 = vpop.permute.xlu1 %2825 }
0x14bc   :  { %14511 = vpow2.f32 %v2737_v25  ;;  %13540 = vmatpush3.msra.mxu1 %v2826_v26 }
0x14bd   :  { %13549 = vmatprep.subr.mxu1 %v15212_v8 }
0x14bf   :  { %v2980_v29 = vpop.permute.xlu1 %2979 }
0x14c6   :  { %v14512_v27 = vpop.eup %14511 }
0x14c7   :  { %v2742_v28 = vsel %vm526_vm2, %v14512_v27, 0.0 }
0x14c8   :  { %2743 = vadd.xlane.f32.xlu0 %v2742_v28 }
0x14de   :  { %2981 = vrot.lane.b32.xlu0 %v15782_v9, %s15216_s24 }
0x14f0   :  { %v2729_v30 = vpop.xlane.xlu1 %2728 }
0x14f1   :  { %v2733_v31 = vsub.f32 %v2725_v22, %v2729_v30 }
0x14f3   :  { %v2735_v32 = vmul.f32 1.442695, %v2733_v31  ;;  %v12725_v31 = vld [vmem:[%s16815_s1 + $0x28] sm:$0xff] }
0x14f4   :  { %v2904_v41 = vpop.permute.xlu1 %2903 }
0x14f5   :  { %14513 = vpow2.f32 %v2735_v32  ;;  %v12724_v32 = vld [vmem:[%s16815_s1 + $0x20] sm:$0xff] }
0x14f8   :  { %v2902_v43 = vpop.permute.xlu1 %2901 }
0x14fc   :  { %v3398_v60 = vpop.permute.xlu1 %3397 }
0x14ff   :  { %v14514_v13 = vpop.eup %14513 }
0x1500   :  { %v2739_v33 = vsel %vm526_vm2, %v14514_v13, 0.0 }
0x1501   :  { %2740 = vadd.xlane.f32.xlu0 %v2739_v33 }
0x1517   :  { %2749 = vrot.lane.b32.xlu0 %v15784_v11, %s15215_s27 }
0x1555   :  { %v2744_v34 = vpop.xlane.xlu0 %2743 }
0x1556   :  { %14515 = vrcp.f32 %v2744_v34 }
0x1559   :  { %v2982_v37 = vpop.permute.xlu0 %2981 }
0x1560   :  { %v14516_v35 = vpop.eup %14515 }
0x1561   :  { %v2748_v36 = vmul.f32 %v14516_v35, %v14512_v27 }
0x1563   :  { %13542 = vmatmul.mubr.msk.f32.vlgmr.msra.gmra.mrb[30].mxu1 %vm526_vm2, %v2748_v36 }
0x1564   :  { %13550 = vmatpush3.xpose.msk.msra.mxu1 %vm526_vm2, %v2982_v37  ;;  %13551 = vmatprep.mubr.msk.f32.mxu1 %vm15213_vm1, %v15212_v8 }
0x1565   :  { %13559 = vmatprep.subr.mxu1 %v15212_v8 }
0x1567   :  { %13552 = vmatmul.mubr.msk.f32.vlgmr.msra.gmra.mrb[32].mxu1 %vm526_vm2, %v2980_v29 }
0x1568   :  { %13561 = vmatprep.mubr.msk.f32.mxu1 %vm15213_vm1, %v15212_v8 }
0x158e   :  { %v2741_v38 = vpop.xlane.xlu0 %2740 }
0x158f   :  { %14517 = vrcp.f32 %v2741_v38 }
0x1592   :  { %v2750_v39 = vpop.permute.xlu0 %2749 }
0x1593   :  { %13535 = vmatpush3.msra.mxu0 %v2750_v39 }
0x1594   :  { %13544 = vmatprep.subr.mxu0 %v15212_v8 }
0x1599   :  { %v14518_v40 = vpop.eup %14517 }
0x159a   :  { %v2747_v42 = vmul.f32 %v14518_v40, %v14514_v13 }
0x159c   :  { %13537 = vmatmul.mubr.msk.f32.vlgmr.msra.gmra.mrb[16].mxu0 %vm526_vm2, %v2747_v42 }
0x159d   :  { %13545 = vmatpush3.xpose.msk.msra.mxu0 %vm526_vm2, %v2904_v41  ;;  %13546 = vmatprep.mubr.msk.f32.mxu0 %vm15213_vm1, %v15212_v8 }
0x159e   :  { %13554 = vmatprep.subr.mxu0 %v15212_v8 }
0x15a0   :  { %13547 = vmatmul.mubr.msk.f32.vlgmr.msra.gmra.mrb[18].mxu0 %vm526_vm2, %v2902_v43 }
0x15a1   :  { %13556 = vmatprep.mubr.msk.f32.mxu0 %vm15213_vm1, %v15212_v8 }
0x1636   :  { %v15838_v44 = vpop.f32.mrb[30].mxu1 }
0x1637   :  { %v13543_v45 = vpop.f32.mrb[31].mxu1 }
0x163a   :  { %v3053_v46 = vpop.f32.mrb[32].mxu1 }
0x163b   :  { %v3058_v47 = vmul.f32 0.35355338, %v3053_v46  ;;  %v13553_v7 = vpop.f32.mrb[33].mxu1 }
0x163d   :  { %v3062_v5 = vsel %vm526_vm2, %v3058_v47, -inf }
0x163e   :  { %3063 = vmax.xlane.f32.xlu0 %v3062_v5 }
0x1654   :  { %3157 = vrot.lane.b32.xlu0 %v15782_v9, %s15218_s21 }
0x1658   :  { %3395 = vrot.lane.b32.xlu0 %v15784_v11, %s15219_s30 }
0x165c   :  { %3473 = vrot.lane.b32.xlu0 %v15782_v9, %s15219_s30 }
0x166f   :  { %v15847_v48 = vpop.f32.mrb[16].mxu0 }
0x1670   :  { %v13538_v49 = vpop.f32.mrb[17].mxu0 }
0x1673   :  { %v2975_v50 = vpop.f32.mrb[18].mxu0 }
0x1674   :  { %v13548_v51 = vpop.f32.mrb[19].mxu0  ;;  %v3057_v58 = vmul.f32 0.35355338, %v2975_v50 }
0x1676   :  { %v3059_v59 = vsel %vm526_vm2, %v3057_v58, -inf }
0x16cb   :  { %v3064_v52 = vpop.xlane.xlu0 %3063 }
0x16cc   :  { %v3066_v53 = vsub.f32 %v3058_v47, %v3064_v52  ;;  %v12726_v47 = vld [vmem:[%s16815_s1 + $0x30] sm:$0xff] }
0x16ce   :  { %v3069_v54 = vmul.f32 1.442695, %v3066_v53 }
0x16cf   :  { %v3158_v55 = vpop.permute.xlu0 %3157 }
0x16d0   :  { %14519 = vpow2.f32 %v3069_v54  ;;  %13560 = vmatpush3.msra.mxu1 %v3158_v55 }
0x16d1   :  { %13574 = vmatprep.subr.mxu1 %v15212_v8 }
0x16d3   :  { %v3396_v0 = vpop.permute.xlu0 %3395 }
0x16d7   :  { %v3474_v4 = vpop.permute.xlu0 %3473 }
0x16da   :  { %v14520_v56 = vpop.eup %14519 }
0x16db   :  { %v3074_v57 = vsel %vm526_vm2, %v14520_v56, 0.0 }
0x16dc   :  { %3075 = vadd.xlane.f32.xlu1 %v3074_v57 }
0x16ed   :  { %3475 = vrot.lane.b32.xlu1 %v15782_v9, %s15220_s6 }
0x1711   :  { %3060 = vmax.xlane.f32.xlu1 %v3059_v59 }
0x1769   :  { %v3076_v61 = vpop.xlane.xlu1 %3075 }
0x176a   :  { %14521 = vrcp.f32 %v3076_v61 }
0x176d   :  { %v3476_v1 = vpop.permute.xlu1 %3475 }
0x1774   :  { %v14522_v62 = vpop.eup %14521 }
0x1775   :  { %v3080_v63 = vmul.f32 %v14522_v62, %v14520_v56 }
0x1777   :  { %13562 = vmatmul.mubr.msk.f32.vlgmr.msra.gmra.mrb[34].mxu1 %vm526_vm2, %v3080_v63 }
0x1778   :  { %13575 = vmatpush3.xpose.msk.msra.mxu1 %vm526_vm2, %v3398_v60  ;;  %13576 = vmatprep.mubr.msk.f32.mxu1 %vm15213_vm1, %v15212_v8 }
0x1779   :  { %13579 = vmatprep.subr.mxu1 %v15212_v8 }
0x177b   :  { %13577 = vmatmul.mubr.msk.f32.vlgmr.msra.gmra.mrb[36].mxu1 %vm526_vm2, %v3396_v0 }
0x177c   :  { %13580 = vmatpush3.xpose.msk.msra.mxu1 %vm526_vm2, %v3476_v1  ;;  %13581 = vmatprep.mubr.msk.f32.mxu1 %vm15213_vm1, %v15212_v8 }
0x177d   :  { %13589 = vmatprep.subr.mxu1 %v15212_v8 }
0x177f   :  { %13582 = vmatmul.mubr.msk.f32.vlgmr.msra.gmra.mrb[38].mxu1 %vm526_vm2, %v3474_v4 }
0x1780   :  { %13591 = vmatprep.mubr.msk.f32.mxu1 %vm15213_vm1, %v15212_v8 }
0x179e   :  { %v3061_v6 = vpop.xlane.xlu1 %3060 }
0x179f   :  { %v3065_v10 = vsub.f32 %v3057_v58, %v3061_v6 }
0x17a1   :  { %v3067_v14 = vmul.f32 1.442695, %v3065_v10 }
0x17a3   :  { %14523 = vpow2.f32 %v3067_v14 }
0x17ad   :  { %v14524_v15 = vpop.eup %14523 }
0x17ae   :  { %v3071_v16 = vsel %vm526_vm2, %v14524_v15, 0.0 }
0x17af   :  { %3072 = vadd.xlane.f32.xlu0 %v3071_v16 }
0x17c5   :  { %3081 = vrot.lane.b32.xlu0 %v15784_v11, %s15218_s21 }
0x17c9   :  { %3651 = vrot.lane.b32.xlu0 %v15782_v9, %s15221_s22 }
0x17cd   :  { %3812 = vrot.lane.b32.xlu0 %v15784_v11, %s15222_s23 }
0x17d1   :  { %3890 = vrot.lane.b32.xlu0 %v15782_v9, %s15222_s23 }
0x17d5   :  { %3810 = vrot.lane.b32.xlu0 %v15784_v11, %s15223_s28 }
0x183c   :  { %v3073_v17 = vpop.xlane.xlu0 %3072 }
0x183d   :  { %14525 = vrcp.f32 %v3073_v17 }
0x1840   :  { %v3082_v18 = vpop.permute.xlu0 %3081 }
0x1841   :  { %13555 = vmatpush3.msra.mxu0 %v3082_v18 }
0x1842   :  { %13564 = vmatprep.subr.mxu0 %v12725_v31 }
0x1844   :  { %v3652_v19 = vpop.permute.xlu0 %3651 }
0x1845   :  { %13590 = vmatpush3.msra.mxu1 %v3652_v19 }
0x1846   :  { %13599 = vmatprep.subr.mxu1 %v15212_v8 }
0x1847   :  { %v14526_v20 = vpop.eup %14525 }
0x1848   :  { %v3079_v21 = vmul.f32 %v14526_v20, %v14524_v15  ;;  %v3813_v5 = vpop.permute.xlu0 %3812 }
0x184a   :  { %13557 = vmatmul.mubr.msk.f32.vlgmr.msra.gmra.mrb[20].mxu0 %vm526_vm2, %v3079_v21  ;;  %v3229_v22 = vpop.f32.mrb[34].mxu1 }
0x184b   :  { %v13563_v23 = vpop.f32.mrb[35].mxu1  ;;  %13565 = vmatpush3.msra.mxu0 %v12725_v31 }
0x184c   :  { %13569 = vmatprep.subr.mxu0 %v12724_v32  ;;  %v3891_v51 = vpop.permute.xlu0 %3890 }
0x184e   :  { %v3469_v24 = vpop.f32.mrb[36].mxu1 }
0x184f   :  { %v3551_v12 = vmul.f32 0.35355338, %v3469_v24  ;;  %v13578_v25 = vpop.f32.mrb[37].mxu1 }
0x1850   :  { %v3811_v52 = vpop.permute.xlu0 %3810 }
0x1851   :  { %v3553_v26 = vsel %vm526_vm2, %v3551_v12, -inf }
0x1852   :  { %3554 = vmax.xlane.f32.xlu1 %v3553_v26  ;;  %v3547_v27 = vpop.f32.mrb[38].mxu1 }
0x1853   :  { %v3552_v28 = vmul.f32 0.35355338, %v3547_v27  ;;  %v13583_v29 = vpop.f32.mrb[39].mxu1 }
0x1855   :  { %v3556_v30 = vsel %vm526_vm2, %v3552_v28, -inf }
0x1856   :  { %3557 = vmax.xlane.f32.xlu1 %v3556_v30 }
0x18df   :  { %v3555_v13 = vpop.xlane.xlu1 %3554 }
0x18e0   :  { %v3559_v33 = vsub.f32 %v3551_v12, %v3555_v13  ;;  %v12727_v12 = vld [vmem:[%s16815_s1 + $0x38] sm:$0xff] }
0x18e2   :  { %v3561_v34 = vmul.f32 1.442695, %v3559_v33 }
0x18e3   :  { %v3558_v35 = vpop.xlane.xlu1 %3557 }
0x18e4   :  { %14527 = vpow2.f32 %v3561_v34  ;;  %v3560_v36 = vsub.f32 %v3552_v28, %v3558_v35 }
0x18e6   :  { %v3563_v37 = vmul.f32 1.442695, %v3560_v36 }
0x18e8   :  { %14529 = vpow2.f32 %v3563_v37 }
0x18ee   :  { %v14528_v38 = vpop.eup %14527 }
0x18ef   :  { %v3565_v39 = vsel %vm526_vm2, %v14528_v38, 0.0 }
0x18f0   :  { %3566 = vadd.xlane.f32.xlu1 %v3565_v39 }
0x18f2   :  { %v14530_v40 = vpop.eup %14529 }
0x18f3   :  { %v3568_v41 = vsel %vm526_vm2, %v14530_v40, 0.0 }
0x18f4   :  { %3569 = vadd.xlane.f32.xlu1 %v3568_v41 }
0x1905   :  { %3575 = vrot.lane.b32.xlu1 %v15784_v11, %s15221_s22 }
0x1909   :  { %3888 = vrot.lane.b32.xlu1 %v15782_v9, %s15223_s28 }
0x191d   :  { %v3153_v42 = vpop.f32.mrb[20].mxu0 }
0x191e   :  { %v13558_v43 = vpop.f32.mrb[21].mxu0  ;;  %13566 = vmatprep.mubr.msk.f32.mxu0 %vm526_vm2, %v3153_v42 }
0x191f   :  { %13567 = vmatmul.mubr.msk.f32.vlgmr.msra.gmra.mrb[22].mxu0 %vm526_vm2, %v3229_v22 }
0x1920   :  { %13571 = vmatprep.mubr.msk.f32.mxu0 %vm526_vm2, %v15847_v48  ;;  %13570 = vmatpush3.msra.mxu0 %v12724_v32 }
0x1921   :  { %13584 = vmatprep.subr.mxu0 %v15212_v8 }
0x1927   :  { %13572 = vmatmul.mubr.msk.f32.vlgmr.msra.gmra.mrb[22].mxu0 %vm526_vm2, %v15838_v44 }
0x1928   :  { %13586 = vmatprep.mubr.msk.f32.mxu0 %vm15213_vm1, %v15212_v8 }
0x197d   :  { %v3567_v45 = vpop.xlane.xlu1 %3566 }
0x197e   :  { %14531 = vrcp.f32 %v3567_v45 }
0x1981   :  { %v3570_v46 = vpop.xlane.xlu1 %3569 }
0x1982   :  { %14533 = vrcp.f32 %v3570_v46 }
0x1985   :  { %v3576_v7 = vpop.permute.xlu1 %3575 }
0x1986   :  { %13585 = vmatpush3.msra.mxu0 %v3576_v7  ;;  %v12763_v7 = vld [vmem:[%s16816_s29 + $0x20] sm:$0xff] }
0x1987   :  { %13594 = vmatprep.subr.mxu0 %v12726_v47 }
0x1988   :  { %v14532_v49 = vpop.eup %14531 }
0x1989   :  { %v3573_v48 = vmul.f32 %v14532_v49, %v14528_v38  ;;  %v3889_v57 = vpop.permute.xlu1 %3888  ;;  %v12765_v49 = vld [vmem:[%s16816_s29 + $0x30] sm:$0xff] }
0x198b   :  { %13587 = vmatmul.mubr.msk.f32.vlgmr.msra.gmra.mrb[24].mxu0 %vm526_vm2, %v3573_v48 }
0x198c   :  { %v14534_v50 = vpop.eup %14533  ;;  %13595 = vmatpush3.msra.mxu0 %v12726_v47 }
0x198d   :  { %v3574_v44 = vmul.f32 %v14534_v50, %v14530_v40  ;;  %13604 = vmatprep.subr.mxu0 %v15212_v8  ;;  %v12766_v50 = vld [vmem:[%s16816_s29 + $0x38] sm:$0xff] }
0x198f   :  { %13592 = vmatmul.mubr.msk.f32.vlgmr.msra.gmra.mrb[40].mxu1 %vm526_vm2, %v3574_v44  ;;  %v4569_v44 = vld [vmem:[%s16818_s7] sm:$0xff] }
0x1990   :  { %13600 = vmatpush3.xpose.msk.msra.mxu1 %vm526_vm2, %v3813_v5  ;;  %13601 = vmatprep.mubr.msk.f32.mxu1 %vm15213_vm1, %v15212_v8  ;;  %v12764_v5 = vld [vmem:[%s16816_s29 + $0x28] sm:$0xff] }
0x1991   :  { %13609 = vmatprep.subr.mxu1 %v15212_v8  ;;  %v14231_v48 = vpack.c.bf16 %v12764_v5, %v12763_v7 }
0x1993   :  { %13602 = vmatmul.mubr.msk.f32.vlgmr.msra.gmra.mrb[42].mxu1 %vm526_vm2, %v3811_v52  ;;  %v4570_v52 = vld [vmem:[%s16818_s7 + $0x8] sm:$0xff] }
0x1994   :  { %13611 = vmatprep.mubr.msk.f32.mxu1 %vm15213_vm1, %v15212_v8 }
0x1a5e   :  { %v3647_v53 = vpop.f32.mrb[24].mxu0 }
0x1a5f   :  { %v13588_v54 = vpop.f32.mrb[25].mxu0  ;;  %13596 = vmatprep.mubr.msk.f32.mxu0 %vm526_vm2, %v3647_v53  ;;  %v14255_v53 = vpack.c.bf16 %v4570_v52, %v4569_v44 }
0x1a60   :  { %v12767_v54 = vld [vmem:[%s16817_s5 + $0x40] sm:$0xff] }
0x1a62   :  { %v3723_v55 = vpop.f32.mrb[40].mxu1 }
0x1a63   :  { %v13593_v56 = vpop.f32.mrb[41].mxu1  ;;  %13597 = vmatmul.mubr.msk.f32.vlgmr.msra.gmra.mrb[22].mxu0 %vm526_vm2, %v3723_v55  ;;  %v12768_v55 = vld [vmem:[%s16817_s5 + $0x48] sm:$0xff] }
0x1a64   :  { %13605 = vmatpush3.xpose.msk.msra.mxu0 %vm526_vm2, %v3891_v51  ;;  %13606 = vmatprep.mubr.msk.f32.mxu0 %vm15213_vm1, %v15212_v8  ;;  %v14235_v51 = vpack.c.bf16 %v12766_v50, %v12765_v49  ;;  %v12769_v56 = vld [vmem:[%s16817_s5 + $0x50] sm:$0xff] }
0x1a65   :  { %13614 = vmatprep.subr.mxu0 %v15212_v8 }
0x1a66   :  { %v3884_v58 = vpop.f32.mrb[42].mxu1 }
0x1a67   :  { %v3966_v59 = vmul.f32 0.35355338, %v3884_v58  ;;  %v13603_v60 = vpop.f32.mrb[43].mxu1  ;;  %13607 = vmatmul.mubr.msk.f32.vlgmr.msra.gmra.mrb[26].mxu0 %vm526_vm2, %v3889_v57  ;;  %v14239_v57 = vpack.c.bf16 %v12768_v55, %v12767_v54  ;;  %v12770_v58 = vld [vmem:[%s16817_s5 + $0x58] sm:$0xff] }
0x1a68   :  { %13616 = vmatprep.mubr.msk.f32.mxu0 %vm15213_vm1, %v15212_v8  ;;  %v12771_v60 = vld [vmem:[%s16817_s5 + $0x60] sm:$0xff] }
0x1a69   :  { %v3968_v61 = vsel %vm526_vm2, %v3966_v59, -inf }
0x1a6a   :  { %3969 = vmax.xlane.f32.xlu0 %v3968_v61  ;;  %v12772_v61 = vld [vmem:[%s16817_s5 + $0x68] sm:$0xff] }
0x1af7   :  { %v3970_v62 = vpop.xlane.xlu0 %3969 }
0x1af8   :  { %v3974_v63 = vsub.f32 %v3966_v59, %v3970_v62  ;;  %v14243_v59 = vpack.c.bf16 %v12770_v58, %v12769_v56  ;;  %v14247_v62 = vpack.c.bf16 %v12772_v61, %v12771_v60 }
0x1afa   :  { %v3976_v0 = vmul.f32 1.442695, %v3974_v63 }
0x1afc   :  { %14535 = vpow2.f32 %v3976_v0 }
0x1b06   :  { %v14536_v1 = vpop.eup %14535 }
0x1b07   :  { %v3980_v4 = vsel %vm526_vm2, %v14536_v1, 0.0 }
0x1b08   :  { %3981 = vadd.xlane.f32.xlu0 %v3980_v4 }
0x1b3a   :  { %v3962_v6 = vpop.f32.mrb[26].mxu0 }
0x1b3b   :  { %v3967_v10 = vmul.f32 0.35355338, %v3962_v6  ;;  %v13608_v14 = vpop.f32.mrb[27].mxu0 }
0x1b3d   :  { %v3971_v15 = vsel %vm526_vm2, %v3967_v10, -inf }
0x1b3e   :  { %3972 = vmax.xlane.f32.xlu1 %v3971_v15  ;;  %v12761_v15 = vld [vmem:[#allocation7 + $0x1] ss:$0 sm:$0xff] }
0x1b4f   :  { %3990 = vrot.lane.b32.xlu1 %v15784_v11, %s15224_s8 }
0x1b95   :  { %v3982_v16 = vpop.xlane.xlu0 %3981 }
0x1b96   :  { %14537 = vrcp.f32 %v3982_v16 }
0x1ba0   :  { %v14538_v18 = vpop.eup %14537 }
0x1ba1   :  { %v3988_v22 = vmul.f32 %v14538_v18, %v14536_v1 }
0x1bcb   :  { %v3973_v17 = vpop.xlane.xlu1 %3972 }
0x1bcc   :  { %v3975_v19 = vsub.f32 %v3967_v10, %v3973_v17 }
0x1bce   :  { %v3978_v20 = vmul.f32 1.442695, %v3975_v19  ;;  %v12762_v19 = vld [vmem:[#allocation9 + $0x1] ss:$0 sm:$0xff] }
0x1bcf   :  { %v3991_v21 = vpop.permute.xlu1 %3990 }
0x1bd0   :  { %14539 = vpow2.f32 %v3978_v20  ;;  %13610 = vmatpush3.msra.mxu1 %v3991_v21 }
0x1bd1   :  { %13612 = vmatmul.mubr.msk.f32.vlgmr.msra.gmra.mrb[44].mxu1 %vm526_vm2, %v3988_v22  ;;  %14232 = vmatprep.subr.bf16.mxu1 %v14231_v48  ;;  %v4571_v22 = vld [vmem:[%s16818_s7 + $0x10] sm:$0xff] }
0x1bd2   :  { %14234 = vmatpush3.bf16.msra.mxu1 %v14231_v48 }
0x1bd3   :  { %14236 = vmatprep.subr.bf16.mxu1 %v14235_v51 }
0x1bd6   :  { %14238 = vmatpush3.bf16.msra.mxu1 %v14235_v51 }
0x1bd7   :  { %14256 = vmatprep.subr.bf16.mxu1 %v14255_v53 }
0x1bda   :  { %v14540_v23 = vpop.eup %14539 }
0x1bdb   :  { %v3983_v24 = vsel %vm526_vm2, %v14540_v23, 0.0 }
0x1bdc   :  { %3984 = vadd.xlane.f32.xlu0 %v3983_v24 }
0x1bf2   :  { %4066 = vrot.lane.b32.xlu0 %v15782_v9, %s15224_s8  ;;  %v12760_v9 = vld [vmem:[#allocation6 + $0x1] ss:$0 sm:$0xff] }
0x1c69   :  { %v3985_v11 = vpop.xlane.xlu0 %3984 }
0x1c6a   :  { %14541 = vrcp.f32 %v3985_v11 }
0x1c6d   :  { %v4067_v25 = vpop.permute.xlu0 %4066 }
0x1c6e   :  { %13615 = vmatpush3.msra.mxu0 %v4067_v25  ;;  %v15956_v25 = vld [vmem:[#allocation4] sm:$0xff] }
0x1c6f   :  { %13619 = vmatprep.subr.mxu0 %v12727_v12 }
0x1c74   :  { %v14542_v26 = vpop.eup %14541 }
0x1c75   :  { %v3989_v27 = vmul.f32 %v14542_v26, %v14540_v23  ;;  %v4572_v23 = vld [vmem:[%s16818_s7 + $0x18] sm:$0xff] }
0x1c76   :  { %v15964_v26 = vld [vmem:[#allocation4 + $0x8] sm:$0xff] }
0x1c77   :  { %13617 = vmatmul.mubr.msk.f32.vlgmr.msra.gmra.mrb[28].mxu0 %vm526_vm2, %v3989_v27  ;;  %v12773_v27 = vld [vmem:[%s16817_s5 + $0x70] sm:$0xff] }
0x1c78   :  { %13620 = vmatpush3.msra.mxu0 %v12727_v12  ;;  %v14259_v12 = vpack.c.bf16 %v4572_v23, %v4571_v22 }
0x1c79   :  { %14240 = vmatprep.subr.bf16.mxu0 %v14239_v57 }
0x1ca4   :  { %v4062_v28 = vpop.f32.mrb[44].mxu1 }
0x1ca5   :  { %v13613_v29 = vpop.f32.mrb[45].mxu1  ;;  %13621 = vmatprep.mubr.msk.f32.mxu0 %vm526_vm2, %v4062_v28  ;;  %v12774_v28 = vld [vmem:[%s16817_s5 + $0x78] sm:$0xff] }
0x1ca6   :  { %v14251_v29 = vpack.c.bf16 %v12774_v28, %v12773_v27 }
0x1d4a   :  { %v4138_v30 = vpop.f32.mrb[28].mxu0 }
0x1d4b   :  { %v13618_v31 = vpop.f32.mrb[29].mxu0  ;;  %13622 = vmatmul.mubr.msk.f32.vlgmr.msra.gmra.mrb[22].mxu0 %vm526_vm2, %v4138_v30  ;;  %v12775_v30 = vld [vmem:[#allocation10 + $0x1] ss:$0 sm:$0xff] }
0x1d4c   :  { %14242 = vmatpush3.bf16.msra.mxu0 %v14239_v57 }
0x1d4d   :  { %14244 = vmatprep.subr.bf16.mxu0 %v14243_v59 }
0x1d50   :  { %14246 = vmatpush3.bf16.msra.mxu0 %v14243_v59 }
0x1d51   :  { %14248 = vmatprep.subr.bf16.mxu0 %v14247_v62 }
0x1d54   :  { %14250 = vmatpush3.bf16.msra.mxu0 %v14247_v62 }
0x1d55   :  { %14252 = vmatprep.subr.bf16.mxu0 %v14251_v29 }
0x1d58   :  { %14254 = vmatpush3.bf16.msra.mxu0 %v14251_v29 }
0x1d59   :  { %13675 = vmatprep.subr.mxu0 %v15212_v8 }
0x1e1e   :  { %v13623_v32 = vpop.f32.mrb[22].mxu0 }
0x1e1f   :  { %v4232_v13 = vadd.f32 %v13623_v32, %v12760_v9  ;;  %v4214_v33 = vpop.f32.mrb[23].mxu0 }
0x1e20   :  { %v4231_v34 = vadd.f32 %v12760_v9, %v4214_v33 }
0x1e21   :  { %v4234_v35 = vadd.f32 %v4232_v13, %v15773_v3 }
0x1e22   :  { %v4233_v36 = vadd.f32 %v4231_v34, %v15771_v2 }
0x1e23   :  { %v4242_v37 = vsel %vm436_vm0, %v4234_v35, 0.0 }
0x1e24   :  { %4243 = vadd.xlane.f32.xlu0 %v4242_v37  ;;  %v4239_v38 = vsel %vm436_vm0, %v4233_v36, 0.0 }
0x1e25   :  { %4240 = vadd.xlane.f32.xlu1 %v4239_v38 }
0x1eb1   :  { %v4244_v39 = vpop.xlane.xlu0 %4243 }
0x1eb2   :  { %v4246_v40 = vmul.f32 0.03125, %v4244_v39  ;;  %v4241_v41 = vpop.xlane.xlu1 %4240 }
0x1eb3   :  { %v4245_v42 = vmul.f32 0.03125, %v4241_v41 }
0x1eb4   :  { %v4248_v43 = vsub.f32 %v4234_v35, %v4246_v40  ;;  %v12785_v35 = vld [vmem:[#allocation16] ss:$0 sm:$0xff] }
0x1eb5   :  { %v4247_v45 = vsub.f32 %v4233_v36, %v4245_v42  ;;  %v15998_v42 = vld [vmem:[#allocation12 + $0x1] ss:$0 sm:$0xff] }
0x1eb6   :  { %v4250_v46 = vmul.f32 %v4248_v43, %v4248_v43 }
0x1eb7   :  { %v4249_v3 = vmul.f32 %v4247_v45, %v4247_v45 }
0x1eb8   :  { %v4254_v2 = vsel %vm436_vm0, %v4250_v46, 0.0 }
0x1eb9   :  { %4255 = vadd.xlane.f32.xlu0 %v4254_v2  ;;  %v4251_v47 = vsel %vm436_vm0, %v4249_v3, 0.0  ;;  %v4666_v3 = vlaneseq }
0x1eba   :  { %4252 = vadd.xlane.f32.xlu1 %v4251_v47 }
0x1ebb   :  { %v4667_v2 = vshrl.u32 %v4666_v3, 7  ;;  %v4669_v47 = vand.u32 127, %v4666_v3 }
0x1ebd   :  { %vm4670_vm4 = vcmp.gt.s32.totalorder %v4669_v47, %v4667_v2 }
0x1ebe   :  { %v16006_v51 = vsel %vm4670_vm4, -1e+09, %v15212_v8 }
0x1f46   :  { %v4256_v63 = vpop.xlane.xlu0 %4255 }
0x1f47   :  { %v4258_v0 = vmul.f32 0.03125, %v4256_v63  ;;  %v4253_v1 = vpop.xlane.xlu1 %4252 }
0x1f48   :  { %v4257_v4 = vmul.f32 0.03125, %v4253_v1 }
0x1f49   :  { %v4260_v6 = vadd.f32 1e-05, %v4258_v0 }
0x1f4a   :  { %v4259_v10 = vadd.f32 1e-05, %v4257_v4 }
0x1f4b   :  { %14543 = vrsqrt.f32 %v4260_v6 }
0x1f4c   :  { %14545 = vrsqrt.f32 %v4259_v10 }
0x1f55   :  { %v14544_v14 = vpop.eup %14543 }
0x1f56   :  { %v14546_v16 = vpop.eup %14545  ;;  %v4264_v17 = vmul.f32 %v14544_v14, %v4248_v43 }
0x1f57   :  { %v4263_v18 = vmul.f32 %v14546_v16, %v4247_v45 }
0x1f58   :  { %v4272_v20 = vmul.f32 %v12761_v15, %v4264_v17 }
0x1f59   :  { %v4271_v21 = vmul.f32 %v12761_v15, %v4263_v18 }
0x1f5a   :  { %v15954_v11 = vadd.f32 %v12762_v19, %v4272_v20 }
0x1f5b   :  { %v15952_v24 = vadd.f32 %v12762_v19, %v4271_v21 }
0x1f5d   :  { %13632 = vmatprep.mubr.msk.f32.mxu1 %vm436_vm0, %v15952_v24 }
0x1f5e   :  { %13633 = vmatmul.mubr.msk.f32.vlgmr.msra.gmra.mrb[46].mxu1 %vm436_vm0, %v15954_v11 }
0x1f5f   :  { %14258 = vmatpush3.bf16.msra.mxu1 %v14255_v53  ;;  %13662 = vmatprep.mubr.msk.f32.mxu1 %vm436_vm0, %v15956_v25 }
0x1f60   :  { %14260 = vmatprep.subr.bf16.mxu1 %v14259_v12 }
0x1f63   :  { %14262 = vmatpush3.bf16.msra.mxu1 %v14259_v12 }
0x1f64   :  { %13665 = vmatprep.subr.mxu1 %v15212_v8 }
0x1f66   :  { %13663 = vmatmul.mubr.msk.f32.vlgmr.msra.gmra.mrb[48].mxu1 %vm436_vm0, %v15964_v26 }
0x1f67   :  { %13667 = vmatprep.mubr.msk.f32.mxu1 %vm15213_vm1, %v15212_v8 }
0x2031   :  { %v13634_v31 = vpop.f32.mrb[46].mxu1 }
0x2032   :  { %v4383_v9 = vadd.f32 %v13634_v31, %v12775_v30  ;;  %v4377_v32 = vpop.f32.mrb[47].mxu1 }
0x2033   :  { %v4378_v13 = vadd.f32 %v12775_v30, %v4377_v32 }
0x2034   :  { %v4387_v34 = vmax.f32 %v4383_v9, 0.0 }
0x2035   :  { %v4386_v33 = vmax.f32 %v4378_v13, 0.0 }
0x2037   :  { %13651 = vmatprep.mubr.msk.f32.mxu0 %vm2342_vm3, %v4386_v33 }
0x2038   :  { %13652 = vmatmul.mubr.msk.f32.vlgmr.msra.gmra.mrb[30].mxu0 %vm2342_vm3, %v4387_v34 }
0x2039   :  { %v13664_v36 = vpop.f32.mrb[48].mxu1  ;;  %13677 = vmatprep.mubr.msk.f32.mxu0 %vm15213_vm1, %v15212_v8 }
0x203a   :  { %v15978_v37 = vadd.f32 %v13664_v36, %v12785_v35  ;;  %v4652_v38 = vpop.f32.mrb[49].mxu1 }
0x203b   :  { %v15980_v39 = vadd.f32 %v12785_v35, %v4652_v38 }
0x203c   :  { %4750 = vrot.lane.b32.xlu0 %v15978_v37, %s15214_s14 }
0x203d   :  { %4673 = vrot.lane.b32.xlu1 %v15980_v39, %s15214_s14 }
0x20ae   :  { %v4751_v41 = vpop.permute.xlu0 %4750 }
0x20af   :  { %v4674_v40 = vpop.permute.xlu1 %4673 }
0x20b0   :  { %13666 = vmatpush3.xpose.msk.msra.mxu1 %vm526_vm2, %v4674_v40 }
0x20b1   :  { %13670 = vmatprep.subr.mxu1 %v15212_v8 }
0x20b3   :  { %13668 = vmatmul.mubr.msk.f32.vlgmr.msra.gmra.mrb[50].mxu1 %vm526_vm2, %v15980_v39 }
0x20b4   :  { %13671 = vmatpush3.xpose.msk.msra.mxu1 %vm526_vm2, %v4751_v41  ;;  %13672 = vmatprep.mubr.msk.f32.mxu1 %vm15213_vm1, %v15212_v8 }
0x20b5   :  { %13680 = vmatprep.subr.mxu1 %v15212_v8 }
0x20b7   :  { %13673 = vmatmul.mubr.msk.f32.vlgmr.msra.gmra.mrb[52].mxu1 %vm526_vm2, %v15978_v37 }
0x20b8   :  { %13682 = vmatprep.mubr.msk.f32.mxu1 %vm15213_vm1, %v15212_v8 }
0x210b   :  { %v13653_v43 = vpop.f32.mrb[30].mxu0 }
0x210c   :  { %v16001_v45 = vadd.f32 %v13653_v43, %v15998_v42  ;;  %v16003_v46 = vpop.f32.mrb[31].mxu0 }
0x2186   :  { %v4745_v7 = vpop.f32.mrb[50].mxu1 }
0x2187   :  { %v13669_v5 = vpop.f32.mrb[51].mxu1  ;;  %v4826_v53 = vmul.f32 0.35355338, %v4745_v7 }
0x2189   :  { %v4828_v54 = vadd.f32 %v4826_v53, %v16006_v51 }
0x218a   :  { %v4822_v49 = vpop.f32.mrb[52].mxu1 }
0x218b   :  { %v4827_v48 = vmul.f32 0.35355338, %v4822_v49  ;;  %v13674_v50 = vpop.f32.mrb[53].mxu1  ;;  %v4830_v55 = vsel %vm526_vm2, %v4828_v54, -inf }
0x218d   :  { %v4829_v44 = vadd.f32 %v4827_v48, %v16006_v51 }
0x218f   :  { %v4833_v52 = vsel %vm526_vm2, %v4829_v44, -inf }
0x2190   :  { %4834 = vmax.xlane.f32.xlu1 %v4833_v52 }
0x21a1   :  { %4928 = vrot.lane.b32.xlu1 %v15978_v37, %s15215_s27 }
0x21a5   :  { %5082 = vrot.lane.b32.xlu1 %v15978_v37, %s15217_s18 }
0x21c9   :  { %4831 = vmax.xlane.f32.xlu1 %v4830_v55 }
0x21da   :  { %5006 = vrot.lane.b32.xlu1 %v15980_v39, %s15216_s24 }
0x21de   :  { %5004 = vrot.lane.b32.xlu1 %v15980_v39, %s15217_s18 }
0x21e2   :  { %5502 = vrot.lane.b32.xlu1 %v15980_v39, %s15220_s6 }
0x221d   :  { %v4835_v56 = vpop.xlane.xlu1 %4834 }
0x221e   :  { %v4837_v57 = vsub.f32 %v4829_v44, %v4835_v56 }
0x2220   :  { %v4840_v58 = vmul.f32 1.442695, %v4837_v57 }
0x2221   :  { %v4929_v59 = vpop.permute.xlu1 %4928 }
0x2222   :  { %14547 = vpow2.f32 %v4840_v58  ;;  %13681 = vmatpush3.msra.mxu1 %v4929_v59 }
0x2223   :  { %13690 = vmatprep.subr.mxu1 %v15212_v8 }
0x2225   :  { %v5083_v62 = vpop.permute.xlu1 %5082 }
0x222c   :  { %v14548_v60 = vpop.eup %14547 }
0x222d   :  { %v4845_v61 = vsel %vm526_vm2, %v14548_v60, 0.0 }
0x222e   :  { %4846 = vadd.xlane.f32.xlu0 %v4845_v61 }
0x2244   :  { %5084 = vrot.lane.b32.xlu0 %v15978_v37, %s15216_s24 }
0x2256   :  { %v4832_v63 = vpop.xlane.xlu1 %4831 }
0x2257   :  { %v4836_v0 = vsub.f32 %v4828_v54, %v4832_v63 }
0x2259   :  { %v4838_v1 = vmul.f32 1.442695, %v4836_v0 }
0x225a   :  { %v5007_v20 = vpop.permute.xlu1 %5006 }
0x225b   :  { %14549 = vpow2.f32 %v4838_v1 }
0x225e   :  { %v5005_v22 = vpop.permute.xlu1 %5004 }
0x2262   :  { %v5503_v47 = vpop.permute.xlu1 %5502 }
0x2265   :  { %v14550_v4 = vpop.eup %14549 }
0x2266   :  { %v4842_v6 = vsel %vm526_vm2, %v14550_v4, 0.0 }
0x2267   :  { %4843 = vadd.xlane.f32.xlu0 %v4842_v6 }
0x227d   :  { %4852 = vrot.lane.b32.xlu0 %v15980_v39, %s15215_s27 }
0x22bb   :  { %v4847_v10 = vpop.xlane.xlu0 %4846 }
0x22bc   :  { %14551 = vrcp.f32 %v4847_v10 }
0x22bf   :  { %v5085_v16 = vpop.permute.xlu0 %5084 }
0x22c6   :  { %v14552_v14 = vpop.eup %14551 }
0x22c7   :  { %v4851_v15 = vmul.f32 %v14552_v14, %v14548_v60 }
0x22c9   :  { %13683 = vmatmul.mubr.msk.f32.vlgmr.msra.gmra.mrb[54].mxu1 %vm526_vm2, %v4851_v15 }
0x22ca   :  { %13691 = vmatpush3.xpose.msk.msra.mxu1 %vm526_vm2, %v5085_v16  ;;  %13692 = vmatprep.mubr.msk.f32.mxu1 %vm15213_vm1, %v15212_v8 }
0x22cb   :  { %13700 = vmatprep.subr.mxu1 %v15212_v8 }
0x22cd   :  { %13693 = vmatmul.mubr.msk.f32.vlgmr.msra.gmra.mrb[56].mxu1 %vm526_vm2, %v5083_v62 }
0x22ce   :  { %13702 = vmatprep.mubr.msk.f32.mxu1 %vm15213_vm1, %v15212_v8 }
0x22f4   :  { %v4844_v17 = vpop.xlane.xlu0 %4843 }
0x22f5   :  { %14553 = vrcp.f32 %v4844_v17 }
0x22f8   :  { %v4853_v18 = vpop.permute.xlu0 %4852 }
0x22f9   :  { %13676 = vmatpush3.msra.mxu0 %v4853_v18 }
0x22fa   :  { %13685 = vmatprep.subr.mxu0 %v15212_v8 }
0x22ff   :  { %v14554_v19 = vpop.eup %14553 }
0x2300   :  { %v4850_v21 = vmul.f32 %v14554_v19, %v14550_v4  ;;  %v4662_v19 = vld [vmem:[%s16819_s10 + $0x8] sm:$0xff] }
0x2302   :  { %13678 = vmatmul.mubr.msk.f32.vlgmr.msra.gmra.mrb[32].mxu0 %vm526_vm2, %v4850_v21 }
0x2303   :  { %13686 = vmatpush3.xpose.msk.msra.mxu0 %vm526_vm2, %v5007_v20  ;;  %13687 = vmatprep.mubr.msk.f32.mxu0 %vm15213_vm1, %v15212_v8  ;;  %v4661_v20 = vld [vmem:[%s16819_s10] sm:$0xff] }
0x2304   :  { %13695 = vmatprep.subr.mxu0 %v15212_v8 }
0x2306   :  { %13688 = vmatmul.mubr.msk.f32.vlgmr.msra.gmra.mrb[34].mxu0 %vm526_vm2, %v5005_v22 }
0x2307   :  { %13697 = vmatprep.mubr.msk.f32.mxu0 %vm15213_vm1, %v15212_v8 }
0x239c   :  { %v16046_v23 = vpop.f32.mrb[54].mxu1 }
0x239d   :  { %v13684_v12 = vpop.f32.mrb[55].mxu1 }
0x23a0   :  { %v5156_v27 = vpop.f32.mrb[56].mxu1 }
0x23a1   :  { %v5161_v28 = vmul.f32 0.35355338, %v5156_v27  ;;  %v13694_v29 = vpop.f32.mrb[57].mxu1 }
0x23a3   :  { %v5163_v30 = vadd.f32 %v5161_v28, %v16006_v51 }
0x23a5   :  { %v5167_v31 = vsel %vm526_vm2, %v5163_v30, -inf }
0x23a6   :  { %5168 = vmax.xlane.f32.xlu0 %v5167_v31 }
0x23bc   :  { %5262 = vrot.lane.b32.xlu0 %v15978_v37, %s15218_s21 }
0x23c0   :  { %5500 = vrot.lane.b32.xlu0 %v15980_v39, %s15219_s30 }
0x23c4   :  { %5578 = vrot.lane.b32.xlu0 %v15978_v37, %s15219_s30 }
0x23d5   :  { %v16056_v9 = vpop.f32.mrb[32].mxu0 }
0x23d6   :  { %v13679_v32 = vpop.f32.mrb[33].mxu0 }
0x23d9   :  { %v5078_v13 = vpop.f32.mrb[34].mxu0 }
0x23da   :  { %v13689_v33 = vpop.f32.mrb[35].mxu0  ;;  %v5160_v43 = vmul.f32 0.35355338, %v5078_v13 }
0x23dc   :  { %v5162_v3 = vadd.f32 %v5160_v43, %v16006_v51 }
0x23de   :  { %v5164_v2 = vsel %vm526_vm2, %v5162_v3, -inf }
0x2433   :  { %v5169_v34 = vpop.xlane.xlu0 %5168 }
0x2434   :  { %v5171_v35 = vsub.f32 %v5163_v30, %v5169_v34 }
0x2436   :  { %v5174_v36 = vmul.f32 1.442695, %v5171_v35 }
0x2437   :  { %v5263_v38 = vpop.permute.xlu0 %5262 }
0x2438   :  { %14555 = vpow2.f32 %v5174_v36  ;;  %13701 = vmatpush3.msra.mxu1 %v5263_v38  ;;  %v4663_v38 = vld [vmem:[%s16819_s10 + $0x10] sm:$0xff] }
0x2439   :  { %13715 = vmatprep.subr.mxu1 %v15212_v8 }
0x243b   :  { %v5501_v48 = vpop.permute.xlu0 %5500 }
0x243f   :  { %v5579_v44 = vpop.permute.xlu0 %5578 }
0x2442   :  { %v14556_v40 = vpop.eup %14555 }
0x2443   :  { %v5179_v41 = vsel %vm526_vm2, %v14556_v40, 0.0 }
0x2444   :  { %5180 = vadd.xlane.f32.xlu1 %v5179_v41 }
0x2455   :  { %5580 = vrot.lane.b32.xlu1 %v15978_v37, %s15220_s6 }
0x2479   :  { %5165 = vmax.xlane.f32.xlu1 %v5164_v2 }
0x24d1   :  { %v5181_v7 = vpop.xlane.xlu1 %5180 }
0x24d2   :  { %14557 = vrcp.f32 %v5181_v7 }
0x24d5   :  { %v5581_v50 = vpop.permute.xlu1 %5580 }
0x24dc   :  { %v14558_v5 = vpop.eup %14557 }
0x24dd   :  { %v5185_v49 = vmul.f32 %v14558_v5, %v14556_v40 }
0x24df   :  { %13703 = vmatmul.mubr.msk.f32.vlgmr.msra.gmra.mrb[58].mxu1 %vm526_vm2, %v5185_v49 }
0x24e0   :  { %13716 = vmatpush3.xpose.msk.msra.mxu1 %vm526_vm2, %v5503_v47  ;;  %13717 = vmatprep.mubr.msk.f32.mxu1 %vm15213_vm1, %v15212_v8 }
0x24e1   :  { %13720 = vmatprep.subr.mxu1 %v15212_v8 }
0x24e3   :  { %13718 = vmatmul.mubr.msk.f32.vlgmr.msra.gmra.mrb[60].mxu1 %vm526_vm2, %v5501_v48 }
0x24e4   :  { %13721 = vmatpush3.xpose.msk.msra.mxu1 %vm526_vm2, %v5581_v50  ;;  %13722 = vmatprep.mubr.msk.f32.mxu1 %vm15213_vm1, %v15212_v8 }
0x24e5   :  { %13730 = vmatprep.subr.mxu1 %v15212_v8 }
0x24e7   :  { %13723 = vmatmul.mubr.msk.f32.vlgmr.msra.gmra.mrb[62].mxu1 %vm526_vm2, %v5579_v44 }
0x24e8   :  { %13732 = vmatprep.mubr.msk.f32.mxu1 %vm15213_vm1, %v15212_v8 }
0x2506   :  { %v5166_v52 = vpop.xlane.xlu1 %5165 }
0x2507   :  { %v5170_v53 = vsub.f32 %v5162_v3, %v5166_v52 }
0x2509   :  { %v5172_v54 = vmul.f32 1.442695, %v5170_v53 }
0x250b   :  { %14559 = vpow2.f32 %v5172_v54 }
0x2515   :  { %v14560_v55 = vpop.eup %14559 }
0x2516   :  { %v5176_v56 = vsel %vm526_vm2, %v14560_v55, 0.0 }
0x2517   :  { %5177 = vadd.xlane.f32.xlu0 %v5176_v56 }
0x252d   :  { %5186 = vrot.lane.b32.xlu0 %v15980_v39, %s15218_s21 }
0x2531   :  { %5758 = vrot.lane.b32.xlu0 %v15978_v37, %s15221_s22 }
0x2535   :  { %5919 = vrot.lane.b32.xlu0 %v15980_v39, %s15222_s23 }
0x2539   :  { %5997 = vrot.lane.b32.xlu0 %v15978_v37, %s15222_s23 }
0x253d   :  { %5917 = vrot.lane.b32.xlu0 %v15980_v39, %s15223_s28 }
0x25a4   :  { %v5178_v57 = vpop.xlane.xlu0 %5177 }
0x25a5   :  { %14561 = vrcp.f32 %v5178_v57 }
0x25a8   :  { %v5187_v58 = vpop.permute.xlu0 %5186 }
0x25a9   :  { %13696 = vmatpush3.msra.mxu0 %v5187_v58 }
0x25aa   :  { %13705 = vmatprep.subr.mxu0 %v4662_v19 }
0x25ac   :  { %v5759_v59 = vpop.permute.xlu0 %5758 }
0x25ad   :  { %13731 = vmatpush3.msra.mxu1 %v5759_v59 }
0x25ae   :  { %13740 = vmatprep.subr.mxu1 %v15212_v8 }
0x25af   :  { %v14562_v60 = vpop.eup %14561 }
0x25b0   :  { %v5184_v61 = vmul.f32 %v14562_v60, %v14560_v55  ;;  %v5920_v41 = vpop.permute.xlu0 %5919 }
0x25b2   :  { %13698 = vmatmul.mubr.msk.f32.vlgmr.msra.gmra.mrb[36].mxu0 %vm526_vm2, %v5184_v61  ;;  %v5334_v62 = vpop.f32.mrb[58].mxu1 }
0x25b3   :  { %v13704_v63 = vpop.f32.mrb[59].mxu1  ;;  %13706 = vmatpush3.msra.mxu0 %v4662_v19 }
0x25b4   :  { %13710 = vmatprep.subr.mxu0 %v4661_v20  ;;  %v5998_v2 = vpop.permute.xlu0 %5997 }
0x25b6   :  { %v5574_v0 = vpop.f32.mrb[60].mxu1 }
0x25b7   :  { %v5656_v1 = vmul.f32 0.35355338, %v5574_v0  ;;  %v13719_v4 = vpop.f32.mrb[61].mxu1 }
0x25b8   :  { %v5918_v47 = vpop.permute.xlu0 %5917  ;;  %v4467_v4 = vadd.f32 %v15998_v42, %v16003_v46 }
0x25b9   :  { %v5658_v6 = vadd.f32 %v5656_v1, %v16006_v51 }
0x25ba   :  { %v5652_v10 = vpop.f32.mrb[62].mxu1 }
0x25bb   :  { %v5657_v14 = vmul.f32 0.35355338, %v5652_v10  ;;  %v13724_v15 = vpop.f32.mrb[63].mxu1  ;;  %v5660_v16 = vsel %vm526_vm2, %v5658_v6, -inf }
0x25bc   :  { %5661 = vmax.xlane.f32.xlu1 %v5660_v16 }
0x25bd   :  { %v5659_v17 = vadd.f32 %v5657_v14, %v16006_v51 }
0x25bf   :  { %v5663_v18 = vsel %vm526_vm2, %v5659_v17, -inf }
0x25c0   :  { %5664 = vmax.xlane.f32.xlu1 %v5663_v18 }
0x2649   :  { %v5662_v21 = vpop.xlane.xlu1 %5661 }
0x264a   :  { %v5666_v22 = vsub.f32 %v5658_v6, %v5662_v21  ;;  %v4475_v6 = vadd.f32 %v4467_v4, %v15952_v24 }
0x264c   :  { %v5668_v12 = vmul.f32 1.442695, %v5666_v22  ;;  %v4481_v10 = vsel %vm436_vm0, %v4475_v6, 0.0 }
0x264d   :  { %v5665_v27 = vpop.xlane.xlu1 %5664 }
0x264e   :  { %14563 = vpow2.f32 %v5668_v12  ;;  %v5667_v28 = vsub.f32 %v5659_v17, %v5665_v27  ;;  %v4476_v27 = vadd.f32 %v16001_v45, %v15954_v11 }
0x2650   :  { %v5670_v29 = vmul.f32 1.442695, %v5667_v28  ;;  %v4484_v28 = vsel %vm436_vm0, %v4476_v27, 0.0 }
0x2652   :  { %14565 = vpow2.f32 %v5670_v29 }
0x2658   :  { %v14564_v30 = vpop.eup %14563 }
0x2659   :  { %v5672_v31 = vsel %vm526_vm2, %v14564_v30, 0.0 }
0x265a   :  { %5673 = vadd.xlane.f32.xlu1 %v5672_v31 }
0x265c   :  { %v14566_v32 = vpop.eup %14565 }
0x265d   :  { %v5675_v13 = vsel %vm526_vm2, %v14566_v32, 0.0 }
0x265e   :  { %5676 = vadd.xlane.f32.xlu1 %v5675_v13 }
0x266f   :  { %5682 = vrot.lane.b32.xlu1 %v15980_v39, %s15221_s22 }
0x2673   :  { %5995 = vrot.lane.b32.xlu1 %v15978_v37, %s15223_s28 }
0x2685   :  { %v5258_v33 = vpop.f32.mrb[36].mxu0 }
0x2686   :  { %v13699_v34 = vpop.f32.mrb[37].mxu0  ;;  %13707 = vmatprep.mubr.msk.f32.mxu0 %vm526_vm2, %v5258_v33 }
0x2687   :  { %13708 = vmatmul.mubr.msk.f32.vlgmr.msra.gmra.mrb[38].mxu0 %vm526_vm2, %v5334_v62 }
0x2688   :  { %13712 = vmatprep.mubr.msk.f32.mxu0 %vm526_vm2, %v16056_v9  ;;  %13711 = vmatpush3.msra.mxu0 %v4661_v20 }
0x2689   :  { %13725 = vmatprep.subr.mxu0 %v15212_v8 }
0x268f   :  { %13713 = vmatmul.mubr.msk.f32.vlgmr.msra.gmra.mrb[38].mxu0 %vm526_vm2, %v16046_v23 }
0x2690   :  { %13727 = vmatprep.mubr.msk.f32.mxu0 %vm15213_vm1, %v15212_v8 }
0x26e7   :  { %v5674_v35 = vpop.xlane.xlu1 %5673 }
0x26e8   :  { %14567 = vrcp.f32 %v5674_v35 }
0x26eb   :  { %v5677_v36 = vpop.xlane.xlu1 %5676 }
0x26ec   :  { %14569 = vrcp.f32 %v5677_v36 }
0x26ef   :  { %v5683_v40 = vpop.permute.xlu1 %5682 }
0x26f0   :  { %13726 = vmatpush3.msra.mxu0 %v5683_v40  ;;  %v12781_v40 = vld [vmem:[#allocation13 + $0x1] ss:$0 sm:$0xff] }
0x26f1   :  { %13735 = vmatprep.subr.mxu0 %v4663_v38 }
0x26f2   :  { %v14568_v43 = vpop.eup %14567 }
0x26f3   :  { %v5680_v9 = vmul.f32 %v14568_v43, %v14564_v30  ;;  %v5996_v50 = vpop.permute.xlu1 %5995 }
0x26f5   :  { %13728 = vmatmul.mubr.msk.f32.vlgmr.msra.gmra.mrb[40].mxu0 %vm526_vm2, %v5680_v9 }
0x26f6   :  { %v14570_v3 = vpop.eup %14569  ;;  %13736 = vmatpush3.msra.mxu0 %v4663_v38 }
0x26f7   :  { %v5681_v23 = vmul.f32 %v14570_v3, %v14566_v32  ;;  %13745 = vmatprep.subr.mxu0 %v15212_v8  ;;  %v12782_v3 = vld [vmem:[#allocation15 + $0x1] ss:$0 sm:$0xff] }
0x26f9   :  { %13733 = vmatmul.mubr.msk.f32.vlgmr.msra.gmra.mrb[64].mxu1 %vm526_vm2, %v5681_v23 }
0x26fa   :  { %13741 = vmatpush3.xpose.msk.msra.mxu1 %vm526_vm2, %v5920_v41  ;;  %13742 = vmatprep.mubr.msk.f32.mxu1 %vm15213_vm1, %v15212_v8 }
0x26fb   :  { %13750 = vmatprep.subr.mxu1 %v15212_v8 }
0x26fd   :  { %13743 = vmatmul.mubr.msk.f32.vlgmr.msra.gmra.mrb[66].mxu1 %vm526_vm2, %v5918_v47 }
0x26fe   :  { %13752 = vmatprep.mubr.msk.f32.mxu1 %vm15213_vm1, %v15212_v8 }
0x27c8   :  { %v5754_v7 = vpop.f32.mrb[40].mxu0 }
0x27c9   :  { %v13729_v5 = vpop.f32.mrb[41].mxu0  ;;  %13737 = vmatprep.mubr.msk.f32.mxu0 %vm526_vm2, %v5754_v7  ;;  %v4664_v7 = vld [vmem:[%s16819_s10 + $0x18] sm:$0xff] }
0x27cc   :  { %v5830_v49 = vpop.f32.mrb[64].mxu1 }
0x27cd   :  { %v13734_v48 = vpop.f32.mrb[65].mxu1  ;;  %13738 = vmatmul.mubr.msk.f32.vlgmr.msra.gmra.mrb[38].mxu0 %vm526_vm2, %v5830_v49 }
0x27ce   :  { %13746 = vmatpush3.xpose.msk.msra.mxu0 %vm526_vm2, %v5998_v2  ;;  %13747 = vmatprep.mubr.msk.f32.mxu0 %vm15213_vm1, %v15212_v8 }
0x27cf   :  { %13755 = vmatprep.subr.mxu0 %v15212_v8 }
0x27d0   :  { %v5991_v44 = vpop.f32.mrb[66].mxu1 }
0x27d1   :  { %v6073_v52 = vmul.f32 0.35355338, %v5991_v44  ;;  %v13744_v53 = vpop.f32.mrb[67].mxu1  ;;  %13748 = vmatmul.mubr.msk.f32.vlgmr.msra.gmra.mrb[42].mxu0 %vm526_vm2, %v5996_v50 }
0x27d2   :  { %13757 = vmatprep.mubr.msk.f32.mxu0 %vm15213_vm1, %v15212_v8 }
0x27d3   :  { %v6075_v54 = vadd.f32 %v6073_v52, %v16006_v51 }
0x27d5   :  { %v6077_v55 = vsel %vm526_vm2, %v6075_v54, -inf }
0x27d6   :  { %6078 = vmax.xlane.f32.xlu0 %v6077_v55 }
0x2863   :  { %v6079_v56 = vpop.xlane.xlu0 %6078 }
0x2864   :  { %v6083_v57 = vsub.f32 %v6075_v54, %v6079_v56 }
0x2866   :  { %v6085_v58 = vmul.f32 1.442695, %v6083_v57 }
0x2868   :  { %14571 = vpow2.f32 %v6085_v58 }
0x2872   :  { %v14572_v59 = vpop.eup %14571 }
0x2873   :  { %v6089_v60 = vsel %vm526_vm2, %v14572_v59, 0.0 }
0x2874   :  { %6090 = vadd.xlane.f32.xlu0 %v6089_v60 }
0x28a4   :  { %v6069_v61 = vpop.f32.mrb[42].mxu0 }
0x28a5   :  { %v6074_v62 = vmul.f32 0.35355338, %v6069_v61  ;;  %v13749_v63 = vpop.f32.mrb[43].mxu0  ;;  %v12820_v61 = vld [vmem:[#allocation18] ss:$0 sm:$0xff] }
0x28a7   :  { %v6076_v0 = vadd.f32 %v6074_v62, %v16006_v51 }
0x28a9   :  { %v6080_v1 = vsel %vm526_vm2, %v6076_v0, -inf }
0x28aa   :  { %6081 = vmax.xlane.f32.xlu1 %v6080_v1 }
0x28bb   :  { %6099 = vrot.lane.b32.xlu1 %v15980_v39, %s15224_s8 }
0x28df   :  { %4482 = vadd.xlane.f32.xlu1 %v4481_v10 }
0x2901   :  { %v6091_v14 = vpop.xlane.xlu0 %6090 }
0x2902   :  { %14573 = vrcp.f32 %v6091_v14 }
0x290c   :  { %v14574_v16 = vpop.eup %14573 }
0x290d   :  { %v6097_v20 = vmul.f32 %v14574_v16, %v14572_v59 }
0x2937   :  { %v6082_v15 = vpop.xlane.xlu1 %6081 }
0x2938   :  { %v6084_v17 = vsub.f32 %v6076_v0, %v6082_v15 }
0x293a   :  { %v6087_v18 = vmul.f32 1.442695, %v6084_v17 }
0x293b   :  { %v6100_v19 = vpop.permute.xlu1 %6099 }
0x293c   :  { %14575 = vpow2.f32 %v6087_v18  ;;  %13751 = vmatpush3.msra.mxu1 %v6100_v19 }
0x293d   :  { %13753 = vmatmul.mubr.msk.f32.vlgmr.msra.gmra.mrb[68].mxu1 %vm526_vm2, %v6097_v20 }
0x2946   :  { %v14576_v39 = vpop.eup %14575 }
0x2947   :  { %v6092_v42 = vsel %vm526_vm2, %v14576_v39, 0.0 }
0x2948   :  { %6093 = vadd.xlane.f32.xlu0 %v6092_v42  ;;  %v6481_v42 = vld [vmem:[#allocation22 + $0x8] sm:$0xff] }
0x295e   :  { %6175 = vrot.lane.b32.xlu0 %v15978_v37, %s15224_s8 }
0x296c   :  { %v4483_v24 = vpop.xlane.xlu1 %4482 }
0x296d   :  { %v4487_v46 = vmul.f32 0.03125, %v4483_v24  ;;  %v6482_v24 = vld [vmem:[#allocation22 + $0x10] sm:$0xff] }
0x296f   :  { %v4489_v21 = vsub.f32 %v4475_v6, %v4487_v46  ;;  %v6483_v46 = vld [vmem:[#allocation22 + $0x18] sm:$0xff] }
0x2971   :  { %v4491_v22 = vmul.f32 %v4489_v21, %v4489_v21 }
0x2973   :  { %v4493_v12 = vsel %vm436_vm0, %v4491_v22, 0.0 }
0x2974   :  { %4494 = vadd.xlane.f32.xlu1 %v4493_v12 }
0x297d   :  { %4485 = vadd.xlane.f32.xlu0 %v4484_v28 }
0x29d5   :  { %v6094_v29 = vpop.xlane.xlu0 %6093 }
0x29d6   :  { %14577 = vrcp.f32 %v6094_v29 }
0x29d9   :  { %v6176_v30 = vpop.permute.xlu0 %6175 }
0x29da   :  { %13756 = vmatpush3.msra.mxu0 %v6176_v30 }
0x29db   :  { %13760 = vmatprep.subr.mxu0 %v4664_v7 }
0x29e0   :  { %v14578_v31 = vpop.eup %14577 }
0x29e1   :  { %v6098_v32 = vmul.f32 %v14578_v31, %v14576_v39  ;;  %v6480_v39 = vld [vmem:[#allocation22] sm:$0xff] }
0x29e3   :  { %13758 = vmatmul.mubr.msk.f32.vlgmr.msra.gmra.mrb[44].mxu0 %vm526_vm2, %v6098_v32 }
0x29e4   :  { %13761 = vmatpush3.msra.mxu0 %v4664_v7  ;;  %v6388_v7 = vld [vmem:[#allocation19] sm:$0xff] }
0x2a01   :  { %v4495_v37 = vpop.xlane.xlu1 %4494 }
0x2a02   :  { %v4499_v13 = vmul.f32 0.03125, %v4495_v37 }
0x2a04   :  { %v4501_v33 = vadd.f32 1e-05, %v4499_v13 }
0x2a06   :  { %14579 = vrsqrt.f32 %v4501_v33 }
0x2a0a   :  { %v4486_v34 = vpop.xlane.xlu0 %4485 }
0x2a0b   :  { %v4488_v35 = vmul.f32 0.03125, %v4486_v34 }
0x2a0d   :  { %v4490_v36 = vsub.f32 %v4476_v27, %v4488_v35 }
0x2a0f   :  { %v4492_v11 = vmul.f32 %v4490_v36, %v4490_v36 }
0x2a10   :  { %v14580_v45 = vpop.eup %14579  ;;  %v6171_v38 = vpop.f32.mrb[68].mxu1 }
0x2a11   :  { %v13754_v41 = vpop.f32.mrb[69].mxu1  ;;  %13762 = vmatprep.mubr.msk.f32.mxu0 %vm526_vm2, %v6171_v38  ;;  %v4496_v43 = vsel %vm436_vm0, %v4492_v11, 0.0  ;;  %v4505_v9 = vmul.f32 %v14580_v45, %v4489_v21  ;;  %v12783_v38 = vld [vmem:[%s16820_s20] ss:$0 sm:$0xff] }
0x2a12   :  { %4497 = vadd.xlane.f32.xlu0 %v4496_v43 }
0x2a13   :  { %v4513_v2 = vmul.f32 %v12781_v40, %v4505_v9  ;;  %v12784_v9 = vld [vmem:[%s16821_s2] ss:$0 sm:$0xff] }
0x2a15   :  { %v4521_v23 = vadd.f32 %v12782_v3, %v4513_v2 }
0x2a17   :  { %v4525_v47 = vsel %vm436_vm0, %v4521_v23, 0.0 }
0x2a18   :  { %4526 = vadd.xlane.f32.xlu1 %v4525_v47 }
0x2a9f   :  { %v4498_v5 = vpop.xlane.xlu0 %4497 }
0x2aa0   :  { %v4500_v49 = vmul.f32 0.03125, %v4498_v5  ;;  %v6389_v5 = vld [vmem:[#allocation19 + $0x8] sm:$0xff] }
0x2aa2   :  { %v4502_v48 = vadd.f32 1e-05, %v4500_v49  ;;  %v6390_v49 = vld [vmem:[#allocation19 + $0x10] sm:$0xff] }
0x2aa4   :  { %14581 = vrsqrt.f32 %v4502_v48  ;;  %v14263_v48 = vpack.c.bf16 %v6389_v5, %v6388_v7 }
0x2aa5   :  { %v4527_v58 = vpop.xlane.xlu1 %4526 }
0x2aa6   :  { %v4531_v60 = vmul.f32 0.03125, %v4527_v58  ;;  %14264 = vmatprep.subr.bf16.mxu1 %v14263_v48 }
0x2aa7   :  { %14266 = vmatpush3.bf16.msra.mxu1 %v14263_v48 }
0x2aa8   :  { %v4533_v4 = vsub.f32 %v4521_v23, %v4531_v60 }
0x2aaa   :  { %v4535_v18 = vmul.f32 %v4533_v4, %v4533_v4 }
0x2aac   :  { %v4537_v20 = vsel %vm436_vm0, %v4535_v18, 0.0  ;;  %v12823_v18 = vld [vmem:[#allocation21] ss:$0 sm:$0xff] }
0x2aae   :  { %v14582_v50 = vpop.eup %14581 }
0x2aaf   :  { %v4506_v44 = vmul.f32 %v14582_v50, %v4490_v36  ;;  %v6391_v50 = vld [vmem:[#allocation19 + $0x18] sm:$0xff] }
0x2ab1   :  { %v4514_v52 = vmul.f32 %v12781_v40, %v4506_v44  ;;  %v14267_v44 = vpack.c.bf16 %v6391_v50, %v6390_v49 }
0x2ab3   :  { %v4522_v53 = vadd.f32 %v12782_v3, %v4514_v52  ;;  %14268 = vmatprep.subr.bf16.mxu1 %v14267_v44 }
0x2ab4   :  { %14270 = vmatpush3.bf16.msra.mxu1 %v14267_v44 }
0x2ab5   :  { %v4528_v54 = vsel %vm436_vm0, %v4522_v53, 0.0  ;;  %13787 = vmatprep.subr.mxu1 %v15212_v8 }
0x2ab6   :  { %4529 = vadd.xlane.f32.xlu0 %v4528_v54  ;;  %v6247_v55 = vpop.f32.mrb[44].mxu0 }
0x2ab7   :  { %v13759_v56 = vpop.f32.mrb[45].mxu0  ;;  %13763 = vmatmul.mubr.msk.f32.vlgmr.msra.gmra.mrb[38].mxu0 %vm526_vm2, %v6247_v55 }
0x2b43   :  { %v4530_v57 = vpop.xlane.xlu0 %4529 }
0x2b44   :  { %v4532_v59 = vmul.f32 0.03125, %v4530_v57 }
0x2b46   :  { %v4534_v63 = vsub.f32 %v4522_v53, %v4532_v59  ;;  %v12821_v59 = vld [vmem:[%s16822_s12] ss:$0 sm:$0xff] }
0x2b48   :  { %v4536_v16 = vmul.f32 %v4534_v63, %v4534_v63 }
0x2b4a   :  { %v4540_v19 = vsel %vm436_vm0, %v4536_v16, 0.0 }
0x2b8a   :  { %v13764_v62 = vpop.f32.mrb[38].mxu0 }
0x2b8b   :  { %v6341_v0 = vadd.f32 %v13764_v62, %v12820_v61  ;;  %v6323_v1 = vpop.f32.mrb[39].mxu0 }
0x2b8c   :  { %v6340_v6 = vadd.f32 %v12820_v61, %v6323_v1 }
0x2b8d   :  { %v6343_v10 = vadd.f32 %v6341_v0, %v15964_v26  ;;  %v14271_v26 = vpack.c.bf16 %v6481_v42, %v6480_v39 }
0x2b8e   :  { %v6342_v14 = vadd.f32 %v6340_v6, %v15956_v25  ;;  %v14275_v25 = vpack.c.bf16 %v6483_v46, %v6482_v24 }
0x2b8f   :  { %v6349_v15 = vsel %vm436_vm0, %v6343_v10, 0.0  ;;  %14272 = vmatprep.subr.bf16.mxu0 %v14271_v26 }
0x2b90   :  { %6350 = vadd.xlane.f32.xlu0 %v6349_v15  ;;  %v6346_v17 = vsel %vm436_vm0, %v6342_v14, 0.0  ;;  %14274 = vmatpush3.bf16.msra.mxu0 %v14271_v26 }
0x2b91   :  { %6347 = vadd.xlane.f32.xlu1 %v6346_v17  ;;  %14276 = vmatprep.subr.bf16.mxu0 %v14275_v25 }
0x2b94   :  { %4541 = vadd.xlane.f32.xlu0 %v4540_v19  ;;  %14278 = vmatpush3.bf16.msra.mxu0 %v14275_v25 }
0x2b95   :  { %4538 = vadd.xlane.f32.xlu1 %v4537_v20  ;;  %13797 = vmatprep.subr.mxu0 %v15212_v8 }
0x2c1d   :  { %v6351_v21 = vpop.xlane.xlu0 %6350 }
0x2c1e   :  { %v6353_v22 = vmul.f32 0.03125, %v6351_v21  ;;  %v6348_v12 = vpop.xlane.xlu1 %6347 }
0x2c1f   :  { %v6352_v27 = vmul.f32 0.03125, %v6348_v12 }
0x2c20   :  { %v6355_v28 = vsub.f32 %v6343_v10, %v6353_v22  ;;  %v12826_v10 = vld [vmem:[#allocation24] ss:$0 sm:$0xff] }
0x2c21   :  { %v6354_v29 = vsub.f32 %v6342_v14, %v6352_v27  ;;  %v4542_v30 = vpop.xlane.xlu0 %4541 }
0x2c22   :  { %v4544_v31 = vmul.f32 0.03125, %v4542_v30  ;;  %v4539_v32 = vpop.xlane.xlu1 %4538  ;;  %v6357_v37 = vmul.f32 %v6355_v28, %v6355_v28 }
0x2c23   :  { %v4543_v13 = vmul.f32 0.03125, %v4539_v32  ;;  %v6356_v33 = vmul.f32 %v6354_v29, %v6354_v29 }
0x2c24   :  { %v4546_v34 = vadd.f32 1e-05, %v4544_v31  ;;  %v6361_v35 = vsel %vm436_vm0, %v6357_v37, 0.0 }
0x2c25   :  { %v4545_v36 = vadd.f32 1e-05, %v4543_v13  ;;  %6362 = vadd.xlane.f32.xlu0 %v6361_v35  ;;  %v6358_v11 = vsel %vm436_vm0, %v6356_v33, 0.0 }
0x2c26   :  { %14583 = vrsqrt.f32 %v4546_v34  ;;  %6359 = vadd.xlane.f32.xlu1 %v6358_v11 }
0x2c27   :  { %14585 = vrsqrt.f32 %v4545_v36 }
0x2c30   :  { %v14584_v45 = vpop.eup %14583 }
0x2c31   :  { %v14586_v40 = vpop.eup %14585  ;;  %v4550_v41 = vmul.f32 %v14584_v45, %v4534_v63  ;;  %v12822_v63 = vld [vmem:[%s16823_s25] ss:$0 sm:$0xff] }
0x2c32   :  { %v4549_v43 = vmul.f32 %v14586_v40, %v4533_v4 }
0x2c33   :  { %v4558_v3 = vmul.f32 %v12783_v38, %v4550_v41 }
0x2c34   :  { %v4557_v2 = vmul.f32 %v12783_v38, %v4549_v43 }
0x2c35   :  { %v16170_v47 = vadd.f32 %v12784_v9, %v4558_v3 }
0x2c36   :  { %v16168_v23 = vadd.f32 %v12784_v9, %v4557_v2 }
0x2c38   :  { %13784 = vmatprep.mubr.msk.f32.mxu0 %vm436_vm0, %v16168_v23 }
0x2c39   :  { %13785 = vmatmul.mubr.msk.f32.vlgmr.msra.gmra.mrb[46].mxu0 %vm436_vm0, %v16170_v47 }
0x2c3a   :  { %13799 = vmatprep.mubr.msk.f32.mxu0 %vm15213_vm1, %v15212_v8 }
0x2cb2   :  { %v6363_v52 = vpop.xlane.xlu0 %6362 }
0x2cb3   :  { %v6365_v53 = vmul.f32 0.03125, %v6363_v52  ;;  %v6360_v54 = vpop.xlane.xlu1 %6359 }
0x2cb4   :  { %v6364_v55 = vmul.f32 0.03125, %v6360_v54 }
0x2cb5   :  { %v6367_v56 = vadd.f32 1e-05, %v6365_v53 }
0x2cb6   :  { %v6366_v57 = vadd.f32 1e-05, %v6364_v55 }
0x2cb7   :  { %14587 = vrsqrt.f32 %v6367_v56 }
0x2cb8   :  { %14589 = vrsqrt.f32 %v6366_v57 }
0x2cc1   :  { %v14588_v58 = vpop.eup %14587 }
0x2cc2   :  { %v14590_v60 = vpop.eup %14589  ;;  %v6371_v61 = vmul.f32 %v14588_v58, %v6355_v28 }
0x2cc3   :  { %v6370_v62 = vmul.f32 %v14590_v60, %v6354_v29 }
0x2cc4   :  { %v6379_v0 = vmul.f32 %v12821_v59, %v6371_v61 }
0x2cc5   :  { %v6378_v1 = vmul.f32 %v12821_v59, %v6370_v62 }
0x2cc6   :  { %v16183_v6 = vadd.f32 %v12822_v63, %v6379_v0 }
0x2cc7   :  { %v16181_v4 = vadd.f32 %v12822_v63, %v6378_v1 }
0x2cc9   :  { %13773 = vmatprep.mubr.msk.f32.mxu1 %vm436_vm0, %v16181_v4 }
0x2cca   :  { %13774 = vmatmul.mubr.msk.f32.vlgmr.msra.gmra.mrb[70].mxu1 %vm436_vm0, %v16183_v6 }
0x2ccb   :  { %13789 = vmatprep.mubr.msk.f32.mxu1 %vm15213_vm1, %v15212_v8 }
0x2d0c   :  { %v13786_v14 = vpop.f32.mrb[46].mxu0 }
0x2d0d   :  { %v16191_v15 = vadd.f32 %v13786_v14, %v12826_v10  ;;  %v6563_v16 = vpop.f32.mrb[47].mxu0 }
0x2d0e   :  { %v16193_v17 = vadd.f32 %v12826_v10, %v6563_v16 }
0x2d10   :  { %13788 = vmatpush3.xpose.msk.msra.mxu1 %vm526_vm2, %v16193_v17 }
0x2d11   :  { %13792 = vmatprep.subr.mxu1 %v15212_v8 }
0x2d9d   :  { %v13775_v19 = vpop.f32.mrb[70].mxu1 }
0x2d9e   :  { %v6471_v20 = vpop.f32.mrb[71].mxu1  ;;  %v16206_v42 = vadd.f32 %v13775_v19, %v12823_v18 }
0x2d9f   :  { %v16198_v39 = vadd.f32 %v12823_v18, %v6471_v20 }
0x2da1   :  { %13790 = vmatmul.mubr.msk.f32.vlgmr.msra.gmra.mrb[72].mxu1 %vm526_vm2, %v16198_v39 }
0x2da2   :  { %13793 = vmatpush3.xpose.msk.msra.mxu1 %vm526_vm2, %v16191_v15  ;;  %13794 = vmatprep.mubr.msk.f32.mxu1 %vm15213_vm1, %v15212_v8 }
0x2da3   :  { %13802 = vmatprep.subr.mxu1 %v15212_v8 }
0x2da5   :  { %13795 = vmatmul.mubr.msk.f32.vlgmr.msra.gmra.mrb[74].mxu1 %vm526_vm2, %v16206_v42 }
0x2da6   :  { %13804 = vmatprep.mubr.msk.f32.mxu1 %vm15213_vm1, %v15212_v8 }
0x2e74   :  { %v6649_v24 = vpop.f32.mrb[72].mxu1 }
0x2e75   :  { %v13791_v26 = vpop.f32.mrb[73].mxu1  ;;  %v6729_v12 = vmul.f32 0.35355338, %v6649_v24 }
0x2e77   :  { %v6731_v27 = vsel %vm526_vm2, %v6729_v12, -inf }
0x2e78   :  { %v6725_v46 = vpop.f32.mrb[74].mxu1 }
0x2e79   :  { %v6730_v25 = vmul.f32 0.35355338, %v6725_v46  ;;  %v13796_v21 = vpop.f32.mrb[75].mxu1 }
0x2e7b   :  { %v6734_v22 = vsel %vm526_vm2, %v6730_v25, -inf }
0x2e7c   :  { %6735 = vmax.xlane.f32.xlu1 %v6734_v22 }
0x2e8d   :  { %6829 = vrot.lane.b32.xlu1 %v16191_v15, %s15214_s14 }
0x2e91   :  { %6983 = vrot.lane.b32.xlu1 %v16206_v42, %s15217_s18 }
0x2eb5   :  { %6732 = vmax.xlane.f32.xlu1 %v6731_v27 }
0x2ec6   :  { %6907 = vrot.lane.b32.xlu1 %v16193_v17, %s15217_s18 }
0x2eca   :  { %6905 = vrot.lane.b32.xlu1 %v16198_v39, %s15217_s18 }
0x2ece   :  { %7401 = vrot.lane.b32.xlu1 %v16193_v17, %s15219_s30 }
0x2f09   :  { %v6736_v28 = vpop.xlane.xlu1 %6735 }
0x2f0a   :  { %v6738_v29 = vsub.f32 %v6730_v25, %v6736_v28 }
0x2f0c   :  { %v6741_v30 = vmul.f32 1.442695, %v6738_v29 }
0x2f0d   :  { %v6830_v31 = vpop.permute.xlu1 %6829 }
0x2f0e   :  { %14591 = vpow2.f32 %v6741_v30  ;;  %13803 = vmatpush3.msra.mxu1 %v6830_v31 }
0x2f0f   :  { %13812 = vmatprep.subr.mxu1 %v15212_v8 }
0x2f11   :  { %v6984_v13 = vpop.permute.xlu1 %6983 }
0x2f18   :  { %v14592_v32 = vpop.eup %14591 }
0x2f19   :  { %v6746_v37 = vsel %vm526_vm2, %v14592_v32, 0.0 }
0x2f1a   :  { %6747 = vadd.xlane.f32.xlu0 %v6746_v37 }
0x2f30   :  { %6985 = vrot.lane.b32.xlu0 %v16191_v15, %s15217_s18 }
0x2f42   :  { %v6733_v33 = vpop.xlane.xlu1 %6732 }
0x2f43   :  { %v6737_v34 = vsub.f32 %v6729_v12, %v6733_v33 }
0x2f45   :  { %v6739_v35 = vmul.f32 1.442695, %v6737_v34 }
0x2f46   :  { %v6908_v2 = vpop.permute.xlu1 %6907 }
0x2f47   :  { %14593 = vpow2.f32 %v6739_v35 }
0x2f4a   :  { %v6906_v5 = vpop.permute.xlu1 %6905 }
0x2f4e   :  { %v7402_v10 = vpop.permute.xlu1 %7401 }
0x2f51   :  { %v14594_v36 = vpop.eup %14593 }
0x2f52   :  { %v6743_v11 = vsel %vm526_vm2, %v14594_v36, 0.0 }
0x2f53   :  { %6744 = vadd.xlane.f32.xlu0 %v6743_v11 }
0x2f69   :  { %6753 = vrot.lane.b32.xlu0 %v16193_v17, %s15214_s14 }
0x2fa7   :  { %v6748_v45 = vpop.xlane.xlu0 %6747 }
0x2fa8   :  { %14595 = vrcp.f32 %v6748_v45  ;;  %v6573_v45 = vld [vmem:[#allocation25 + $0x8] sm:$0xff] }
0x2fab   :  { %v6986_v41 = vpop.permute.xlu0 %6985 }
0x2fb2   :  { %v14596_v38 = vpop.eup %14595 }
0x2fb3   :  { %v6752_v40 = vmul.f32 %v14596_v38, %v14592_v32  ;;  %v6572_v38 = vld [vmem:[#allocation25] sm:$0xff] }
0x2fb5   :  { %13805 = vmatmul.mubr.msk.f32.vlgmr.msra.gmra.mrb[76].mxu1 %vm526_vm2, %v6752_v40 }
0x2fb6   :  { %13813 = vmatpush3.xpose.msk.msra.mxu1 %vm526_vm2, %v6986_v41  ;;  %13814 = vmatprep.mubr.msk.f32.mxu1 %vm15213_vm1, %v15212_v8 }
0x2fb7   :  { %13822 = vmatprep.subr.mxu1 %v15212_v8 }
0x2fb9   :  { %13815 = vmatmul.mubr.msk.f32.vlgmr.msra.gmra.mrb[78].mxu1 %vm526_vm2, %v6984_v13 }
0x2fba   :  { %13824 = vmatprep.mubr.msk.f32.mxu1 %vm15213_vm1, %v15212_v8 }
0x2fe0   :  { %v6745_v43 = vpop.xlane.xlu0 %6744 }
0x2fe1   :  { %14597 = vrcp.f32 %v6745_v43 }
0x2fe4   :  { %v6754_v9 = vpop.permute.xlu0 %6753 }
0x2fe5   :  { %13798 = vmatpush3.msra.mxu0 %v6754_v9 }
0x2fe6   :  { %13807 = vmatprep.subr.mxu0 %v15212_v8 }
0x2feb   :  { %v14598_v3 = vpop.eup %14597 }
0x2fec   :  { %v6751_v7 = vmul.f32 %v14598_v3, %v14594_v36 }
0x2fee   :  { %13800 = vmatmul.mubr.msk.f32.vlgmr.msra.gmra.mrb[48].mxu0 %vm526_vm2, %v6751_v7 }
0x2fef   :  { %13808 = vmatpush3.xpose.msk.msra.mxu0 %vm526_vm2, %v6908_v2  ;;  %13809 = vmatprep.mubr.msk.f32.mxu0 %vm15213_vm1, %v15212_v8 }
0x2ff0   :  { %13817 = vmatprep.subr.mxu0 %v15212_v8 }
0x2ff2   :  { %13810 = vmatmul.mubr.msk.f32.vlgmr.msra.gmra.mrb[50].mxu0 %vm526_vm2, %v6906_v5 }
0x2ff3   :  { %13819 = vmatprep.mubr.msk.f32.mxu0 %vm15213_vm1, %v15212_v8 }
0x3088   :  { %v16249_v49 = vpop.f32.mrb[76].mxu1 }
0x3089   :  { %v13806_v48 = vpop.f32.mrb[77].mxu1 }
0x308c   :  { %v7057_v50 = vpop.f32.mrb[78].mxu1 }
0x308d   :  { %v7062_v44 = vmul.f32 0.35355338, %v7057_v50  ;;  %v13816_v52 = vpop.f32.mrb[79].mxu1 }
0x308f   :  { %v7066_v53 = vsel %vm526_vm2, %v7062_v44, -inf }
0x3090   :  { %7067 = vmax.xlane.f32.xlu0 %v7066_v53 }
0x30a6   :  { %7161 = vrot.lane.b32.xlu0 %v16191_v15, %s15216_s24 }
0x30aa   :  { %7399 = vrot.lane.b32.xlu0 %v16198_v39, %s15219_s30 }
0x30ae   :  { %7477 = vrot.lane.b32.xlu0 %v16206_v42, %s15219_s30 }
0x30c1   :  { %v16258_v54 = vpop.f32.mrb[48].mxu0 }
0x30c2   :  { %v13801_v55 = vpop.f32.mrb[49].mxu0 }
0x30c3   :  { %v6574_v55 = vld [vmem:[#allocation25 + $0x10] sm:$0xff] }
0x30c5   :  { %v6979_v56 = vpop.f32.mrb[50].mxu0 }
0x30c6   :  { %v13811_v57 = vpop.f32.mrb[51].mxu0  ;;  %v7061_v0 = vmul.f32 0.35355338, %v6979_v56 }
0x30c8   :  { %v7063_v1 = vsel %vm526_vm2, %v7061_v0, -inf }
0x311d   :  { %v7068_v58 = vpop.xlane.xlu0 %7067 }
0x311e   :  { %v7070_v59 = vsub.f32 %v7062_v44, %v7068_v58 }
0x3120   :  { %v7073_v60 = vmul.f32 1.442695, %v7070_v59 }
0x3121   :  { %v7162_v61 = vpop.permute.xlu0 %7161 }
0x3122   :  { %14599 = vpow2.f32 %v7073_v60  ;;  %13823 = vmatpush3.msra.mxu1 %v7162_v61 }
0x3123   :  { %13837 = vmatprep.subr.mxu1 %v15212_v8 }
0x3125   :  { %v7400_v19 = vpop.permute.xlu0 %7399 }
0x3129   :  { %v7478_v24 = vpop.permute.xlu0 %7477 }
0x312c   :  { %v14600_v62 = vpop.eup %14599 }
0x312d   :  { %v7078_v63 = vsel %vm526_vm2, %v14600_v62, 0.0 }
0x312e   :  { %7079 = vadd.xlane.f32.xlu1 %v7078_v63 }
0x313f   :  { %7479 = vrot.lane.b32.xlu1 %v16191_v15, %s15219_s30 }
0x3163   :  { %7064 = vmax.xlane.f32.xlu1 %v7063_v1 }
0x31bb   :  { %v7080_v14 = vpop.xlane.xlu1 %7079 }
0x31bc   :  { %14601 = vrcp.f32 %v7080_v14 }
0x31bf   :  { %v7480_v20 = vpop.permute.xlu1 %7479 }
0x31c6   :  { %v14602_v16 = vpop.eup %14601 }
0x31c7   :  { %v7084_v18 = vmul.f32 %v14602_v16, %v14600_v62 }
0x31c9   :  { %13825 = vmatmul.mubr.msk.f32.vlgmr.msra.gmra.mrb[80].mxu1 %vm526_vm2, %v7084_v18 }
0x31ca   :  { %13838 = vmatpush3.xpose.msk.msra.mxu1 %vm526_vm2, %v7402_v10  ;;  %13839 = vmatprep.mubr.msk.f32.mxu1 %vm15213_vm1, %v15212_v8 }
0x31cb   :  { %13842 = vmatprep.subr.mxu1 %v15212_v8 }
0x31cd   :  { %13840 = vmatmul.mubr.msk.f32.vlgmr.msra.gmra.mrb[82].mxu1 %vm526_vm2, %v7400_v19 }
0x31ce   :  { %13843 = vmatpush3.xpose.msk.msra.mxu1 %vm526_vm2, %v7480_v20  ;;  %13844 = vmatprep.mubr.msk.f32.mxu1 %vm15213_vm1, %v15212_v8 }
0x31cf   :  { %13852 = vmatprep.subr.mxu1 %v15212_v8 }
0x31d1   :  { %13845 = vmatmul.mubr.msk.f32.vlgmr.msra.gmra.mrb[84].mxu1 %vm526_vm2, %v7478_v24 }
0x31d2   :  { %13854 = vmatprep.mubr.msk.f32.mxu1 %vm15213_vm1, %v15212_v8 }
0x31f0   :  { %v7065_v26 = vpop.xlane.xlu1 %7064 }
0x31f1   :  { %v7069_v46 = vsub.f32 %v7061_v0, %v7065_v26 }
0x31f3   :  { %v7071_v25 = vmul.f32 1.442695, %v7069_v46 }
0x31f5   :  { %14603 = vpow2.f32 %v7071_v25 }
0x31ff   :  { %v14604_v21 = vpop.eup %14603 }
0x3200   :  { %v7075_v22 = vsel %vm526_vm2, %v14604_v21, 0.0 }
0x3201   :  { %7076 = vadd.xlane.f32.xlu0 %v7075_v22 }
0x3217   :  { %7085 = vrot.lane.b32.xlu0 %v16193_v17, %s15216_s24 }
0x321b   :  { %7655 = vrot.lane.b32.xlu0 %v16191_v15, %s15220_s6 }
0x321f   :  { %7816 = vrot.lane.b32.xlu0 %v16193_v17, %s15223_s28 }
0x3223   :  { %7894 = vrot.lane.b32.xlu0 %v16191_v15, %s15223_s28 }
0x3227   :  { %7814 = vrot.lane.b32.xlu0 %v16198_v39, %s15223_s28 }
0x328e   :  { %v7077_v12 = vpop.xlane.xlu0 %7076 }
0x328f   :  { %14605 = vrcp.f32 %v7077_v12 }
0x3292   :  { %v7086_v27 = vpop.permute.xlu0 %7085 }
0x3293   :  { %13818 = vmatpush3.msra.mxu0 %v7086_v27 }
0x3294   :  { %13827 = vmatprep.subr.mxu0 %v6573_v45 }
0x3296   :  { %v7656_v28 = vpop.permute.xlu0 %7655 }
0x3297   :  { %13853 = vmatpush3.msra.mxu1 %v7656_v28 }
0x3298   :  { %13862 = vmatprep.subr.mxu1 %v15212_v8 }
0x3299   :  { %v14606_v29 = vpop.eup %14605 }
0x329a   :  { %v7083_v30 = vmul.f32 %v14606_v29, %v14604_v21  ;;  %v7817_v57 = vpop.permute.xlu0 %7816 }
0x329c   :  { %13820 = vmatmul.mubr.msk.f32.vlgmr.msra.gmra.mrb[52].mxu0 %vm526_vm2, %v7083_v30  ;;  %v7233_v31 = vpop.f32.mrb[80].mxu1 }
0x329d   :  { %v13826_v32 = vpop.f32.mrb[81].mxu1  ;;  %13828 = vmatpush3.msra.mxu0 %v6573_v45 }
0x329e   :  { %13832 = vmatprep.subr.mxu0 %v6572_v38  ;;  %v7895_v60 = vpop.permute.xlu0 %7894 }
0x32a0   :  { %v7473_v37 = vpop.f32.mrb[82].mxu1 }
0x32a1   :  { %v7555_v13 = vmul.f32 0.35355338, %v7473_v37  ;;  %v13841_v33 = vpop.f32.mrb[83].mxu1 }
0x32a2   :  { %v7815_v61 = vpop.permute.xlu0 %7814 }
0x32a3   :  { %v7557_v34 = vsel %vm526_vm2, %v7555_v13, -inf }
0x32a4   :  { %7558 = vmax.xlane.f32.xlu1 %v7557_v34  ;;  %v7551_v39 = vpop.f32.mrb[84].mxu1 }
0x32a5   :  { %v7556_v35 = vmul.f32 0.35355338, %v7551_v39  ;;  %v13846_v36 = vpop.f32.mrb[85].mxu1  ;;  %v6575_v39 = vld [vmem:[#allocation25 + $0x18] sm:$0xff] }
0x32a7   :  { %v7560_v11 = vsel %vm526_vm2, %v7556_v35, -inf }
0x32a8   :  { %7561 = vmax.xlane.f32.xlu1 %v7560_v11 }
0x3331   :  { %v7559_v40 = vpop.xlane.xlu1 %7558 }
0x3332   :  { %v7563_v41 = vsub.f32 %v7555_v13, %v7559_v40 }
0x3334   :  { %v7565_v43 = vmul.f32 1.442695, %v7563_v41 }
0x3335   :  { %v7562_v9 = vpop.xlane.xlu1 %7561 }
0x3336   :  { %14607 = vpow2.f32 %v7565_v43  ;;  %v7564_v3 = vsub.f32 %v7556_v35, %v7562_v9 }
0x3338   :  { %v7567_v2 = vmul.f32 1.442695, %v7564_v3 }
0x333a   :  { %14609 = vpow2.f32 %v7567_v2 }
0x3340   :  { %v14608_v7 = vpop.eup %14607 }
0x3341   :  { %v7569_v5 = vsel %vm526_vm2, %v14608_v7, 0.0 }
0x3342   :  { %7570 = vadd.xlane.f32.xlu1 %v7569_v5 }
0x3344   :  { %v14610_v48 = vpop.eup %14609 }
0x3345   :  { %v7572_v50 = vsel %vm526_vm2, %v14610_v48, 0.0 }
0x3346   :  { %7573 = vadd.xlane.f32.xlu1 %v7572_v50 }
0x3357   :  { %7579 = vrot.lane.b32.xlu1 %v16193_v17, %s15220_s6 }
0x335b   :  { %7892 = vrot.lane.b32.xlu1 %v16206_v42, %s15223_s28 }
0x336f   :  { %v7157_v44 = vpop.f32.mrb[52].mxu0 }
0x3370   :  { %v13821_v52 = vpop.f32.mrb[53].mxu0  ;;  %13829 = vmatprep.mubr.msk.f32.mxu0 %vm526_vm2, %v7157_v44 }
0x3371   :  { %13830 = vmatmul.mubr.msk.f32.vlgmr.msra.gmra.mrb[54].mxu0 %vm526_vm2, %v7233_v31 }
0x3372   :  { %13834 = vmatprep.mubr.msk.f32.mxu0 %vm526_vm2, %v16258_v54  ;;  %13833 = vmatpush3.msra.mxu0 %v6572_v38 }
0x3373   :  { %13847 = vmatprep.subr.mxu0 %v15212_v8 }
0x3379   :  { %13835 = vmatmul.mubr.msk.f32.vlgmr.msra.gmra.mrb[54].mxu0 %vm526_vm2, %v16249_v49 }
0x337a   :  { %13849 = vmatprep.mubr.msk.f32.mxu0 %vm15213_vm1, %v15212_v8 }
0x33cf   :  { %v7571_v53 = vpop.xlane.xlu1 %7570 }
0x33d0   :  { %14611 = vrcp.f32 %v7571_v53 }
0x33d3   :  { %v7574_v42 = vpop.xlane.xlu1 %7573 }
0x33d4   :  { %14613 = vrcp.f32 %v7574_v42 }
0x33d7   :  { %v7580_v56 = vpop.permute.xlu1 %7579 }
0x33d8   :  { %13848 = vmatpush3.msra.mxu0 %v7580_v56 }
0x33d9   :  { %13857 = vmatprep.subr.mxu0 %v6574_v55 }
0x33da   :  { %v14612_v58 = vpop.eup %14611 }
0x33db   :  { %v7577_v54 = vmul.f32 %v14612_v58, %v14608_v7  ;;  %v7893_v10 = vpop.permute.xlu1 %7892 }
0x33dd   :  { %13850 = vmatmul.mubr.msk.f32.vlgmr.msra.gmra.mrb[56].mxu0 %vm526_vm2, %v7577_v54  ;;  %v8283_v54 = vld [vmem:[%s16824_s0] sm:$0xff] }
0x33de   :  { %v14614_v59 = vpop.eup %14613  ;;  %13858 = vmatpush3.msra.mxu0 %v6574_v55 }
0x33df   :  { %v7578_v49 = vmul.f32 %v14614_v59, %v14610_v48  ;;  %13867 = vmatprep.subr.mxu0 %v15212_v8  ;;  %v8284_v59 = vld [vmem:[%s16824_s0 + $0x8] sm:$0xff] }
0x33e1   :  { %13855 = vmatmul.mubr.msk.f32.vlgmr.msra.gmra.mrb[86].mxu1 %vm526_vm2, %v7578_v49  ;;  %v8285_v49 = vld [vmem:[%s16824_s0 + $0x10] sm:$0xff] }
0x33e2   :  { %13863 = vmatpush3.xpose.msk.msra.mxu1 %vm526_vm2, %v7817_v57  ;;  %13864 = vmatprep.mubr.msk.f32.mxu1 %vm15213_vm1, %v15212_v8 }
0x33e3   :  { %13872 = vmatprep.subr.mxu1 %v15212_v8 }
0x33e5   :  { %13865 = vmatmul.mubr.msk.f32.vlgmr.msra.gmra.mrb[88].mxu1 %vm526_vm2, %v7815_v61  ;;  %v8286_v61 = vld [vmem:[%s16824_s0 + $0x18] sm:$0xff] }
0x33e6   :  { %13874 = vmatprep.mubr.msk.f32.mxu1 %vm15213_vm1, %v15212_v8 }
0x34b0   :  { %v7651_v62 = vpop.f32.mrb[56].mxu0 }
0x34b1   :  { %v13851_v63 = vpop.f32.mrb[57].mxu0  ;;  %13859 = vmatprep.mubr.msk.f32.mxu0 %vm526_vm2, %v7651_v62  ;;  %v14283_v62 = vpack.c.bf16 %v8286_v61, %v8285_v49  ;;  %v12874_v49 = vld [vmem:[%s16818_s7 + $0x30] sm:$0xff]  ;;  %v12875_v61 = vld [vmem:[%s16818_s7 + $0x38] sm:$0xff] }
0x34b2   :  { %v8288_v63 = vld [vmem:[%s16825_s3] sm:$0xff] }
0x34b4   :  { %v7727_v0 = vpop.f32.mrb[86].mxu1 }
0x34b5   :  { %v13856_v1 = vpop.f32.mrb[87].mxu1  ;;  %13860 = vmatmul.mubr.msk.f32.vlgmr.msra.gmra.mrb[54].mxu0 %vm526_vm2, %v7727_v0  ;;  %v8289_v0 = vld [vmem:[%s16825_s3 + $0x8] sm:$0xff] }
0x34b6   :  { %13868 = vmatpush3.xpose.msk.msra.mxu0 %vm526_vm2, %v7895_v60  ;;  %13869 = vmatprep.mubr.msk.f32.mxu0 %vm15213_vm1, %v15212_v8  ;;  %v14279_v60 = vpack.c.bf16 %v8284_v59, %v8283_v54  ;;  %v8290_v1 = vld [vmem:[%s16825_s3 + $0x10] sm:$0xff]  ;;  %v12872_v54 = vld [vmem:[%s16818_s7 + $0x20] sm:$0xff]  ;;  %v12873_v59 = vld [vmem:[%s16818_s7 + $0x28] sm:$0xff] }
0x34b7   :  { %13877 = vmatprep.subr.mxu0 %v15212_v8 }
0x34b8   :  { %v7888_v14 = vpop.f32.mrb[88].mxu1 }
0x34b9   :  { %v7970_v16 = vmul.f32 0.35355338, %v7888_v14  ;;  %v13866_v18 = vpop.f32.mrb[89].mxu1  ;;  %13870 = vmatmul.mubr.msk.f32.vlgmr.msra.gmra.mrb[58].mxu0 %vm526_vm2, %v7893_v10  ;;  %v14287_v10 = vpack.c.bf16 %v8289_v0, %v8288_v63  ;;  %v8291_v14 = vld [vmem:[%s16825_s3 + $0x18] sm:$0xff] }
0x34ba   :  { %13879 = vmatprep.mubr.msk.f32.mxu0 %vm15213_vm1, %v15212_v8  ;;  %v8292_v18 = vld [vmem:[%s16825_s3 + $0x20] sm:$0xff] }
0x34bb   :  { %v7972_v19 = vsel %vm526_vm2, %v7970_v16, -inf }
0x34bc   :  { %7973 = vmax.xlane.f32.xlu0 %v7972_v19  ;;  %v8293_v19 = vld [vmem:[%s16825_s3 + $0x28] sm:$0xff] }
0x3549   :  { %v7974_v20 = vpop.xlane.xlu0 %7973 }
0x354a   :  { %v7978_v24 = vsub.f32 %v7970_v16, %v7974_v20  ;;  %v14291_v16 = vpack.c.bf16 %v8291_v14, %v8290_v1  ;;  %v14295_v20 = vpack.c.bf16 %v8293_v19, %v8292_v18  ;;  %v12870_v19 = vld [vmem:[%s16828_s16] ss:$0 sm:$0xff] }
0x354c   :  { %v7980_v26 = vmul.f32 1.442695, %v7978_v24 }
0x354e   :  { %14615 = vpow2.f32 %v7980_v26 }
0x3558   :  { %v14616_v46 = vpop.eup %14615 }
0x3559   :  { %v7984_v25 = vsel %vm526_vm2, %v14616_v46, 0.0 }
0x355a   :  { %7985 = vadd.xlane.f32.xlu0 %v7984_v25 }
0x358c   :  { %v7966_v21 = vpop.f32.mrb[58].mxu0 }
0x358d   :  { %v7971_v22 = vmul.f32 0.35355338, %v7966_v21  ;;  %v13871_v12 = vpop.f32.mrb[59].mxu0 }
0x358f   :  { %v7975_v27 = vsel %vm526_vm2, %v7971_v22, -inf }
0x3590   :  { %7976 = vmax.xlane.f32.xlu1 %v7975_v27  ;;  %v12862_v27 = vld [vmem:[%s16826_s11] ss:$0 sm:$0xff] }
0x35a1   :  { %7994 = vrot.lane.b32.xlu1 %v16193_v17, %s15222_s23 }
0x35e7   :  { %v7986_v28 = vpop.xlane.xlu0 %7985 }
0x35e8   :  { %14617 = vrcp.f32 %v7986_v28 }
0x35f2   :  { %v14618_v30 = vpop.eup %14617 }
0x35f3   :  { %v7992_v13 = vmul.f32 %v14618_v30, %v14616_v46 }
0x361d   :  { %v7977_v29 = vpop.xlane.xlu1 %7976 }
0x361e   :  { %v7979_v31 = vsub.f32 %v7971_v22, %v7977_v29 }
0x3620   :  { %v7982_v32 = vmul.f32 1.442695, %v7979_v31  ;;  %v12863_v31 = vld [vmem:[%s16827_s15] ss:$0 sm:$0xff] }
0x3621   :  { %v7995_v37 = vpop.permute.xlu1 %7994 }
0x3622   :  { %14619 = vpow2.f32 %v7982_v32  ;;  %13873 = vmatpush3.msra.mxu1 %v7995_v37 }
0x3623   :  { %13875 = vmatmul.mubr.msk.f32.vlgmr.msra.gmra.mrb[90].mxu1 %vm526_vm2, %v7992_v13  ;;  %14280 = vmatprep.subr.bf16.mxu1 %v14279_v60 }
0x3624   :  { %14282 = vmatpush3.bf16.msra.mxu1 %v14279_v60  ;;  %v14303_v60 = vpack.c.bf16 %v12873_v59, %v12872_v54 }
0x3625   :  { %14284 = vmatprep.subr.bf16.mxu1 %v14283_v62 }
0x3628   :  { %14286 = vmatpush3.bf16.msra.mxu1 %v14283_v62  ;;  %v14307_v62 = vpack.c.bf16 %v12875_v61, %v12874_v49 }
0x3629   :  { %14304 = vmatprep.subr.bf16.mxu1 %v14303_v60 }
0x362c   :  { %v14620_v33 = vpop.eup %14619 }
0x362d   :  { %v7987_v34 = vsel %vm526_vm2, %v14620_v33, 0.0 }
0x362e   :  { %7988 = vadd.xlane.f32.xlu0 %v7987_v34  ;;  %v8294_v34 = vld [vmem:[%s16825_s3 + $0x30] sm:$0xff] }
0x3644   :  { %8070 = vrot.lane.b32.xlu0 %v16191_v15, %s15222_s23  ;;  %v12861_v15 = vld [vmem:[#allocation27] ss:$0 sm:$0xff] }
0x36bb   :  { %v7989_v17 = vpop.xlane.xlu0 %7988 }
0x36bc   :  { %14621 = vrcp.f32 %v7989_v17  ;;  %v8295_v17 = vld [vmem:[%s16825_s3 + $0x38] sm:$0xff] }
0x36bf   :  { %v8071_v35 = vpop.permute.xlu0 %8070 }
0x36c0   :  { %13878 = vmatpush3.msra.mxu0 %v8071_v35  ;;  %v12864_v35 = vld [vmem:[#allocation28] ss:$0 sm:$0xff] }
0x36c1   :  { %13882 = vmatprep.subr.mxu0 %v6575_v39 }
0x36c6   :  { %v14622_v36 = vpop.eup %14621 }
0x36c7   :  { %v7993_v11 = vmul.f32 %v14622_v36, %v14620_v33 }
0x36c9   :  { %13880 = vmatmul.mubr.msk.f32.vlgmr.msra.gmra.mrb[60].mxu0 %vm526_vm2, %v7993_v11 }
0x36ca   :  { %13883 = vmatpush3.msra.mxu0 %v6575_v39  ;;  %v14299_v39 = vpack.c.bf16 %v8295_v17, %v8294_v34 }
0x36cb   :  { %14288 = vmatprep.subr.bf16.mxu0 %v14287_v10 }
0x36f6   :  { %v8066_v45 = vpop.f32.mrb[90].mxu1 }
0x36f7   :  { %v13876_v38 = vpop.f32.mrb[91].mxu1  ;;  %13884 = vmatprep.mubr.msk.f32.mxu0 %vm526_vm2, %v8066_v45 }
0x379c   :  { %v8142_v40 = vpop.f32.mrb[60].mxu0 }
0x379d   :  { %v13881_v41 = vpop.f32.mrb[61].mxu0  ;;  %13885 = vmatmul.mubr.msk.f32.vlgmr.msra.gmra.mrb[54].mxu0 %vm526_vm2, %v8142_v40 }
0x379e   :  { %14290 = vmatpush3.bf16.msra.mxu0 %v14287_v10 }
0x379f   :  { %14292 = vmatprep.subr.bf16.mxu0 %v14291_v16 }
0x37a2   :  { %14294 = vmatpush3.bf16.msra.mxu0 %v14291_v16 }
0x37a3   :  { %14296 = vmatprep.subr.bf16.mxu0 %v14295_v20 }
0x37a6   :  { %14298 = vmatpush3.bf16.msra.mxu0 %v14295_v20 }
0x37a7   :  { %14300 = vmatprep.subr.bf16.mxu0 %v14299_v39 }
0x37aa   :  { %14302 = vmatpush3.bf16.msra.mxu0 %v14299_v39 }
0x37ab   :  { %13938 = vmatprep.subr.mxu0 %v15212_v8 }
0x3870   :  { %v13886_v43 = vpop.f32.mrb[54].mxu0 }
0x3871   :  { %v8236_v9 = vadd.f32 %v13886_v43, %v12861_v15  ;;  %v8218_v3 = vpop.f32.mrb[55].mxu0 }
0x3872   :  { %v8235_v2 = vadd.f32 %v12861_v15, %v8218_v3  ;;  %v12867_v15 = vld [vmem:[#allocation30] ss:$0 sm:$0xff] }
0x3873   :  { %v8238_v7 = vadd.f32 %v8236_v9, %v16183_v6 }
0x3874   :  { %v8237_v5 = vadd.f32 %v8235_v2, %v16181_v4 }
0x3875   :  { %v8244_v48 = vsel %vm436_vm0, %v8238_v7, 0.0 }
0x3876   :  { %8245 = vadd.xlane.f32.xlu0 %v8244_v48  ;;  %v8241_v50 = vsel %vm436_vm0, %v8237_v5, 0.0 }
0x3877   :  { %8242 = vadd.xlane.f32.xlu1 %v8241_v50 }
0x3903   :  { %v8246_v44 = vpop.xlane.xlu0 %8245 }
0x3904   :  { %v8248_v52 = vmul.f32 0.03125, %v8246_v44  ;;  %v8243_v53 = vpop.xlane.xlu1 %8242 }
0x3905   :  { %v8247_v42 = vmul.f32 0.03125, %v8243_v53 }
0x3906   :  { %v8250_v55 = vsub.f32 %v8238_v7, %v8248_v52 }
0x3907   :  { %v8249_v56 = vsub.f32 %v8237_v5, %v8247_v42 }
0x3908   :  { %v8252_v57 = vmul.f32 %v8250_v55, %v8250_v55 }
0x3909   :  { %v8251_v6 = vmul.f32 %v8249_v56, %v8249_v56 }
0x390a   :  { %v8256_v4 = vsel %vm436_vm0, %v8252_v57, 0.0 }
0x390b   :  { %8257 = vadd.xlane.f32.xlu0 %v8256_v4  ;;  %v8253_v58 = vsel %vm436_vm0, %v8251_v6, 0.0 }
0x390c   :  { %8254 = vadd.xlane.f32.xlu1 %v8253_v58 }
0x3998   :  { %v8258_v24 = vpop.xlane.xlu0 %8257 }
0x3999   :  { %v8260_v26 = vmul.f32 0.03125, %v8258_v24  ;;  %v8255_v46 = vpop.xlane.xlu1 %8254 }
0x399a   :  { %v8259_v25 = vmul.f32 0.03125, %v8255_v46  ;;  %v12871_v46 = vld [vmem:[%s16829_s26] ss:$0 sm:$0xff] }
0x399b   :  { %v8262_v21 = vadd.f32 1e-05, %v8260_v26 }
0x399c   :  { %v8261_v22 = vadd.f32 1e-05, %v8259_v25 }
0x399d   :  { %14623 = vrsqrt.f32 %v8262_v21 }
0x399e   :  { %14625 = vrsqrt.f32 %v8261_v22 }
0x39a7   :  { %v14624_v12 = vpop.eup %14623 }
0x39a8   :  { %v14626_v28 = vpop.eup %14625  ;;  %v8266_v29 = vmul.f32 %v14624_v12, %v8250_v55 }
0x39a9   :  { %v8265_v30 = vmul.f32 %v14626_v28, %v8249_v56 }
0x39aa   :  { %v8274_v32 = vmul.f32 %v12862_v27, %v8266_v29 }
0x39ab   :  { %v8273_v37 = vmul.f32 %v12862_v27, %v8265_v30  ;;  %v12876_v27 = vld [vmem:[#allocation16 + $0x1] ss:$0 sm:$0xff] }
0x39ac   :  { %v8282_v33 = vadd.f32 %v12863_v31, %v8274_v32 }
0x39ad   :  { %v8281_v13 = vadd.f32 %v12863_v31, %v8273_v37 }
0x39af   :  { %13895 = vmatprep.mubr.msk.f32.mxu1 %vm436_vm0, %v8281_v13 }
0x39b0   :  { %13896 = vmatmul.mubr.msk.f32.vlgmr.msra.gmra.mrb[92].mxu1 %vm436_vm0, %v8282_v33 }
0x39b1   :  { %14306 = vmatpush3.bf16.msra.mxu1 %v14303_v60 }
0x39b2   :  { %14308 = vmatprep.subr.bf16.mxu1 %v14307_v62 }
0x39b5   :  { %14310 = vmatpush3.bf16.msra.mxu1 %v14307_v62 }
0x39b6   :  { %13928 = vmatprep.subr.mxu1 %v15212_v8 }
0x3a83   :  { %v13897_v36 = vpop.f32.mrb[92].mxu1 }
0x3a84   :  { %v8381_v11 = vadd.f32 %v13897_v36, %v12864_v35  ;;  %v8375_v45 = vpop.f32.mrb[93].mxu1 }
0x3a85   :  { %v8376_v38 = vadd.f32 %v12864_v35, %v8375_v45 }
0x3a86   :  { %v8385_v41 = vmax.f32 %v8381_v11, 0.0 }
0x3a87   :  { %v8384_v40 = vmax.f32 %v8376_v38, 0.0 }
0x3a89   :  { %13914 = vmatprep.mubr.msk.f32.mxu0 %vm2342_vm3, %v8384_v40 }
0x3a8a   :  { %13915 = vmatmul.mubr.msk.f32.vlgmr.msra.gmra.mrb[62].mxu0 %vm2342_vm3, %v8385_v41 }
0x3a8b   :  { %13940 = vmatprep.mubr.msk.f32.mxu0 %vm15213_vm1, %v15212_v8 }
0x3b5d   :  { %v13916_v43 = vpop.f32.mrb[62].mxu0 }
0x3b5e   :  { %v8470_v9 = vadd.f32 %v13916_v43, %v12867_v15  ;;  %v8464_v3 = vpop.f32.mrb[63].mxu0 }
0x3b5f   :  { %v8465_v2 = vadd.f32 %v12867_v15, %v8464_v3 }
0x3b60   :  { %v8474_v7 = vadd.f32 %v8470_v9, %v8282_v33 }
0x3b61   :  { %v8473_v5 = vadd.f32 %v8465_v2, %v8281_v13 }
0x3b62   :  { %v8480_v48 = vsel %vm436_vm0, %v8474_v7, 0.0 }
0x3b63   :  { %8481 = vadd.xlane.f32.xlu0 %v8480_v48  ;;  %v8477_v50 = vsel %vm436_vm0, %v8473_v5, 0.0 }
0x3b64   :  { %8478 = vadd.xlane.f32.xlu1 %v8477_v50 }
0x3bf0   :  { %v8482_v44 = vpop.xlane.xlu0 %8481 }
0x3bf1   :  { %v8484_v52 = vmul.f32 0.03125, %v8482_v44  ;;  %v8479_v53 = vpop.xlane.xlu1 %8478 }
0x3bf2   :  { %v8483_v42 = vmul.f32 0.03125, %v8479_v53 }
0x3bf3   :  { %v8486_v55 = vsub.f32 %v8474_v7, %v8484_v52 }
0x3bf4   :  { %v8485_v56 = vsub.f32 %v8473_v5, %v8483_v42 }
0x3bf5   :  { %v8488_v57 = vmul.f32 %v8486_v55, %v8486_v55 }
0x3bf6   :  { %v8487_v6 = vmul.f32 %v8485_v56, %v8485_v56 }
0x3bf7   :  { %v8492_v4 = vsel %vm436_vm0, %v8488_v57, 0.0 }
0x3bf8   :  { %8493 = vadd.xlane.f32.xlu0 %v8492_v4  ;;  %v8489_v58 = vsel %vm436_vm0, %v8487_v6, 0.0 }
0x3bf9   :  { %8490 = vadd.xlane.f32.xlu1 %v8489_v58 }
0x3c85   :  { %v8494_v63 = vpop.xlane.xlu0 %8493 }
0x3c86   :  { %v8496_v0 = vmul.f32 0.03125, %v8494_v63  ;;  %v8491_v1 = vpop.xlane.xlu1 %8490 }
0x3c87   :  { %v8495_v10 = vmul.f32 0.03125, %v8491_v1 }
0x3c88   :  { %v8498_v14 = vadd.f32 1e-05, %v8496_v0 }
0x3c89   :  { %v8497_v16 = vadd.f32 1e-05, %v8495_v10 }
0x3c8a   :  { %14627 = vrsqrt.f32 %v8498_v14 }
0x3c8b   :  { %14629 = vrsqrt.f32 %v8497_v16 }
0x3c94   :  { %v14628_v18 = vpop.eup %14627 }
0x3c95   :  { %v14630_v20 = vpop.eup %14629  ;;  %v8502_v24 = vmul.f32 %v14628_v18, %v8486_v55 }
0x3c96   :  { %v8501_v26 = vmul.f32 %v14630_v20, %v8485_v56 }
0x3c97   :  { %v8510_v25 = vmul.f32 %v12870_v19, %v8502_v24 }
0x3c98   :  { %v8509_v21 = vmul.f32 %v12870_v19, %v8501_v26 }
0x3c99   :  { %v16379_v12 = vadd.f32 %v12871_v46, %v8510_v25 }
0x3c9a   :  { %v16377_v22 = vadd.f32 %v12871_v46, %v8509_v21 }
0x3c9c   :  { %13925 = vmatprep.mubr.msk.f32.mxu1 %vm436_vm0, %v16377_v22 }
0x3c9d   :  { %13926 = vmatmul.mubr.msk.f32.vlgmr.msra.gmra.mrb[94].mxu1 %vm436_vm0, %v16379_v12 }
0x3c9e   :  { %13930 = vmatprep.mubr.msk.f32.mxu1 %vm15213_vm1, %v15212_v8 }
0x3d70   :  { %v13927_v28 = vpop.f32.mrb[94].mxu1 }
0x3d71   :  { %v16387_v29 = vadd.f32 %v13927_v28, %v12876_v27  ;;  %v8604_v30 = vpop.f32.mrb[95].mxu1 }
0x3d72   :  { %v16389_v31 = vadd.f32 %v12876_v27, %v8604_v30 }
0x3d73   :  { %8698 = vrot.lane.b32.xlu0 %v16387_v29, %s15214_s14 }
0x3d74   :  { %8621 = vrot.lane.b32.xlu1 %v16389_v31, %s15214_s14 }
0x3de5   :  { %v8699_v37 = vpop.permute.xlu0 %8698 }
0x3de6   :  { %v8622_v32 = vpop.permute.xlu1 %8621 }
0x3de7   :  { %13929 = vmatpush3.xpose.msk.msra.mxu1 %vm526_vm2, %v8622_v32 }
0x3de8   :  { %13933 = vmatprep.subr.mxu1 %v15212_v8 }
0x3dea   :  { %13931 = vmatmul.mubr.msk.f32.vlgmr.msra.gmra.mrb[96].mxu1 %vm526_vm2, %v16389_v31 }
0x3deb   :  { %13934 = vmatpush3.xpose.msk.msra.mxu1 %vm526_vm2, %v8699_v37  ;;  %13935 = vmatprep.mubr.msk.f32.mxu1 %vm15213_vm1, %v15212_v8 }
0x3dec   :  { %13943 = vmatprep.subr.mxu1 %v15212_v8 }
0x3dee   :  { %13936 = vmatmul.mubr.msk.f32.vlgmr.msra.gmra.mrb[98].mxu1 %vm526_vm2, %v16387_v29 }
0x3def   :  { %13945 = vmatprep.mubr.msk.f32.mxu1 %vm15213_vm1, %v15212_v8 }
0x3ebd   :  { %v8693_v13 = vpop.f32.mrb[96].mxu1 }
0x3ebe   :  { %v13932_v33 = vpop.f32.mrb[97].mxu1  ;;  %v8774_v11 = vmul.f32 0.35355338, %v8693_v13 }
0x3ec0   :  { %v8776_v45 = vadd.f32 %v8774_v11, %v16006_v51 }
0x3ec1   :  { %v8770_v34 = vpop.f32.mrb[98].mxu1 }
0x3ec2   :  { %v8775_v17 = vmul.f32 0.35355338, %v8770_v34  ;;  %v13937_v39 = vpop.f32.mrb[99].mxu1  ;;  %v8778_v38 = vsel %vm526_vm2, %v8776_v45, -inf }
0x3ec4   :  { %v8777_v35 = vadd.f32 %v8775_v17, %v16006_v51 }
0x3ec6   :  { %v8781_v36 = vsel %vm526_vm2, %v8777_v35, -inf }
0x3ec7   :  { %8782 = vmax.xlane.f32.xlu1 %v8781_v36 }
0x3ed8   :  { %8876 = vrot.lane.b32.xlu1 %v16387_v29, %s15215_s27 }
0x3edc   :  { %9030 = vrot.lane.b32.xlu1 %v16387_v29, %s15217_s18 }
0x3f00   :  { %8779 = vmax.xlane.f32.xlu1 %v8778_v38 }
0x3f11   :  { %8954 = vrot.lane.b32.xlu1 %v16389_v31, %s15216_s24 }
0x3f15   :  { %8952 = vrot.lane.b32.xlu1 %v16389_v31, %s15217_s18 }
0x3f19   :  { %9450 = vrot.lane.b32.xlu1 %v16389_v31, %s15220_s6 }
0x3f54   :  { %v8783_v40 = vpop.xlane.xlu1 %8782 }
0x3f55   :  { %v8785_v41 = vsub.f32 %v8777_v35, %v8783_v40 }
0x3f57   :  { %v8788_v15 = vmul.f32 1.442695, %v8785_v41 }
0x3f58   :  { %v8877_v43 = vpop.permute.xlu1 %8876 }
0x3f59   :  { %14631 = vpow2.f32 %v8788_v15  ;;  %13944 = vmatpush3.msra.mxu1 %v8877_v43 }
0x3f5a   :  { %13953 = vmatprep.subr.mxu1 %v15212_v8 }
0x3f5c   :  { %v9031_v2 = vpop.permute.xlu1 %9030 }
0x3f63   :  { %v14632_v9 = vpop.eup %14631 }
0x3f64   :  { %v8793_v3 = vsel %vm526_vm2, %v14632_v9, 0.0 }
0x3f65   :  { %8794 = vadd.xlane.f32.xlu0 %v8793_v3 }
0x3f7b   :  { %9032 = vrot.lane.b32.xlu0 %v16387_v29, %s15216_s24 }
0x3f8d   :  { %v8780_v7 = vpop.xlane.xlu1 %8779 }
0x3f8e   :  { %v8784_v5 = vsub.f32 %v8776_v45, %v8780_v7 }
0x3f90   :  { %v8786_v48 = vmul.f32 1.442695, %v8784_v5 }
0x3f91   :  { %v8955_v4 = vpop.permute.xlu1 %8954 }
0x3f92   :  { %14633 = vpow2.f32 %v8786_v48 }
0x3f95   :  { %v8953_v54 = vpop.permute.xlu1 %8952 }
0x3f99   :  { %v9451_v28 = vpop.permute.xlu1 %9450 }
0x3f9c   :  { %v14634_v50 = vpop.eup %14633 }
0x3f9d   :  { %v8790_v44 = vsel %vm526_vm2, %v14634_v50, 0.0 }
0x3f9e   :  { %8791 = vadd.xlane.f32.xlu0 %v8790_v44 }
0x3fb4   :  { %8800 = vrot.lane.b32.xlu0 %v16389_v31, %s15215_s27 }
0x3ff2   :  { %v8795_v52 = vpop.xlane.xlu0 %8794 }
0x3ff3   :  { %14635 = vrcp.f32 %v8795_v52 }
0x3ff6   :  { %v9033_v55 = vpop.permute.xlu0 %9032 }
0x3ffd   :  { %v14636_v53 = vpop.eup %14635 }
0x3ffe   :  { %v8799_v42 = vmul.f32 %v14636_v53, %v14632_v9 }
0x4000   :  { %13946 = vmatmul.mubr.msk.f32.vlgmr.msra.gmra.mrb[100].mxu1 %vm526_vm2, %v8799_v42 }
0x4001   :  { %13954 = vmatpush3.xpose.msk.msra.mxu1 %vm526_vm2, %v9033_v55  ;;  %13955 = vmatprep.mubr.msk.f32.mxu1 %vm15213_vm1, %v15212_v8  ;;  %v12880_v55 = vld [vmem:[%s16819_s10 + $0x28] sm:$0xff] }
0x4002   :  { %13963 = vmatprep.subr.mxu1 %v15212_v8 }
0x4004   :  { %13956 = vmatmul.mubr.msk.f32.vlgmr.msra.gmra.mrb[102].mxu1 %vm526_vm2, %v9031_v2 }
0x4005   :  { %13965 = vmatprep.mubr.msk.f32.mxu1 %vm15213_vm1, %v15212_v8 }
0x402b   :  { %v8792_v56 = vpop.xlane.xlu0 %8791 }
0x402c   :  { %14637 = vrcp.f32 %v8792_v56  ;;  %v12879_v56 = vld [vmem:[%s16819_s10 + $0x20] sm:$0xff] }
0x402f   :  { %v8801_v57 = vpop.permute.xlu0 %8800 }
0x4030   :  { %13939 = vmatpush3.msra.mxu0 %v8801_v57 }
0x4031   :  { %13948 = vmatprep.subr.mxu0 %v15212_v8 }
0x4036   :  { %v14638_v6 = vpop.eup %14637 }
0x4037   :  { %v8798_v58 = vmul.f32 %v14638_v6, %v14634_v50 }
0x4039   :  { %13941 = vmatmul.mubr.msk.f32.vlgmr.msra.gmra.mrb[64].mxu0 %vm526_vm2, %v8798_v58 }
0x403a   :  { %13949 = vmatpush3.xpose.msk.msra.mxu0 %vm526_vm2, %v8955_v4  ;;  %13950 = vmatprep.mubr.msk.f32.mxu0 %vm15213_vm1, %v15212_v8 }
0x403b   :  { %13958 = vmatprep.subr.mxu0 %v15212_v8 }
0x403d   :  { %13951 = vmatmul.mubr.msk.f32.vlgmr.msra.gmra.mrb[66].mxu0 %vm526_vm2, %v8953_v54 }
0x403e   :  { %13960 = vmatprep.mubr.msk.f32.mxu0 %vm15213_vm1, %v15212_v8 }
0x40d3   :  { %v16445_v59 = vpop.f32.mrb[100].mxu1 }
0x40d4   :  { %v13947_v60 = vpop.f32.mrb[101].mxu1 }
0x40d7   :  { %v9104_v49 = vpop.f32.mrb[102].mxu1 }
0x40d8   :  { %v9109_v61 = vmul.f32 0.35355338, %v9104_v49  ;;  %v13957_v62 = vpop.f32.mrb[103].mxu1 }
0x40da   :  { %v9111_v63 = vadd.f32 %v9109_v61, %v16006_v51 }
0x40dc   :  { %v9115_v0 = vsel %vm526_vm2, %v9111_v63, -inf }
0x40dd   :  { %9116 = vmax.xlane.f32.xlu0 %v9115_v0 }
0x40f3   :  { %9210 = vrot.lane.b32.xlu0 %v16387_v29, %s15218_s21 }
0x40f7   :  { %9448 = vrot.lane.b32.xlu0 %v16389_v31, %s15219_s30 }
0x40fb   :  { %9526 = vrot.lane.b32.xlu0 %v16387_v29, %s15219_s30 }
0x410c   :  { %v16455_v1 = vpop.f32.mrb[64].mxu0 }
0x410d   :  { %v13942_v10 = vpop.f32.mrb[65].mxu0 }
0x4110   :  { %v9026_v14 = vpop.f32.mrb[66].mxu0 }
0x4111   :  { %v13952_v16 = vpop.f32.mrb[67].mxu0  ;;  %v9108_v25 = vmul.f32 0.35355338, %v9026_v14 }
0x4113   :  { %v9110_v21 = vadd.f32 %v9108_v25, %v16006_v51 }
0x4115   :  { %v9112_v27 = vsel %vm526_vm2, %v9110_v21, -inf }
0x416a   :  { %v9117_v18 = vpop.xlane.xlu0 %9116 }
0x416b   :  { %v9119_v19 = vsub.f32 %v9111_v63, %v9117_v18  ;;  %v12881_v18 = vld [vmem:[%s16819_s10 + $0x30] sm:$0xff] }
0x416d   :  { %v9122_v20 = vmul.f32 1.442695, %v9119_v19 }
0x416e   :  { %v9211_v24 = vpop.permute.xlu0 %9210 }
0x416f   :  { %14639 = vpow2.f32 %v9122_v20  ;;  %13964 = vmatpush3.msra.mxu1 %v9211_v24 }
0x4170   :  { %13978 = vmatprep.subr.mxu1 %v15212_v8 }
0x4172   :  { %v9449_v13 = vpop.permute.xlu0 %9448 }
0x4176   :  { %v9527_v34 = vpop.permute.xlu0 %9526 }
0x4179   :  { %v14640_v26 = vpop.eup %14639 }
0x417a   :  { %v9127_v46 = vsel %vm526_vm2, %v14640_v26, 0.0 }
0x417b   :  { %9128 = vadd.xlane.f32.xlu1 %v9127_v46 }
0x418c   :  { %9528 = vrot.lane.b32.xlu1 %v16387_v29, %s15220_s6 }
0x41b0   :  { %9113 = vmax.xlane.f32.xlu1 %v9112_v27 }
0x4208   :  { %v9129_v30 = vpop.xlane.xlu1 %9128 }
0x4209   :  { %14641 = vrcp.f32 %v9129_v30 }
0x420c   :  { %v9529_v33 = vpop.permute.xlu1 %9528 }
0x4213   :  { %v14642_v32 = vpop.eup %14641 }
0x4214   :  { %v9133_v37 = vmul.f32 %v14642_v32, %v14640_v26 }
0x4216   :  { %13966 = vmatmul.mubr.msk.f32.vlgmr.msra.gmra.mrb[104].mxu1 %vm526_vm2, %v9133_v37 }
0x4217   :  { %13979 = vmatpush3.xpose.msk.msra.mxu1 %vm526_vm2, %v9451_v28  ;;  %13980 = vmatprep.mubr.msk.f32.mxu1 %vm15213_vm1, %v15212_v8 }
0x4218   :  { %13983 = vmatprep.subr.mxu1 %v15212_v8 }
0x421a   :  { %13981 = vmatmul.mubr.msk.f32.vlgmr.msra.gmra.mrb[106].mxu1 %vm526_vm2, %v9449_v13 }
0x421b   :  { %13984 = vmatpush3.xpose.msk.msra.mxu1 %vm526_vm2, %v9529_v33  ;;  %13985 = vmatprep.mubr.msk.f32.mxu1 %vm15213_vm1, %v15212_v8 }
0x421c   :  { %13993 = vmatprep.subr.mxu1 %v15212_v8 }
0x421e   :  { %13986 = vmatmul.mubr.msk.f32.vlgmr.msra.gmra.mrb[108].mxu1 %vm526_vm2, %v9527_v34 }
0x421f   :  { %13995 = vmatprep.mubr.msk.f32.mxu1 %vm15213_vm1, %v15212_v8 }
0x423d   :  { %v9114_v17 = vpop.xlane.xlu1 %9113 }
0x423e   :  { %v9118_v39 = vsub.f32 %v9110_v21, %v9114_v17 }
0x4240   :  { %v9120_v35 = vmul.f32 1.442695, %v9118_v39 }
0x4242   :  { %14643 = vpow2.f32 %v9120_v35 }
0x424c   :  { %v14644_v36 = vpop.eup %14643 }
0x424d   :  { %v9124_v11 = vsel %vm526_vm2, %v14644_v36, 0.0 }
0x424e   :  { %9125 = vadd.xlane.f32.xlu0 %v9124_v11 }
0x4264   :  { %9134 = vrot.lane.b32.xlu0 %v16389_v31, %s15218_s21 }
0x4268   :  { %9706 = vrot.lane.b32.xlu0 %v16387_v29, %s15221_s22 }
0x426c   :  { %9867 = vrot.lane.b32.xlu0 %v16389_v31, %s15222_s23 }
0x4270   :  { %9945 = vrot.lane.b32.xlu0 %v16387_v29, %s15222_s23 }
0x4274   :  { %9865 = vrot.lane.b32.xlu0 %v16389_v31, %s15223_s28 }
0x42db   :  { %v9126_v45 = vpop.xlane.xlu0 %9125 }
0x42dc   :  { %14645 = vrcp.f32 %v9126_v45 }
0x42df   :  { %v9135_v38 = vpop.permute.xlu0 %9134 }
0x42e0   :  { %13959 = vmatpush3.msra.mxu0 %v9135_v38 }
0x42e1   :  { %13968 = vmatprep.subr.mxu0 %v12880_v55 }
0x42e3   :  { %v9707_v40 = vpop.permute.xlu0 %9706 }
0x42e4   :  { %13994 = vmatpush3.msra.mxu1 %v9707_v40 }
0x42e5   :  { %14003 = vmatprep.subr.mxu1 %v15212_v8 }
0x42e6   :  { %v14646_v41 = vpop.eup %14645 }
0x42e7   :  { %v9132_v15 = vmul.f32 %v14646_v41, %v14644_v36  ;;  %v9868_v20 = vpop.permute.xlu0 %9867 }
0x42e9   :  { %13961 = vmatmul.mubr.msk.f32.vlgmr.msra.gmra.mrb[68].mxu0 %vm526_vm2, %v9132_v15  ;;  %v9282_v43 = vpop.f32.mrb[104].mxu1 }
0x42ea   :  { %v13967_v9 = vpop.f32.mrb[105].mxu1  ;;  %13969 = vmatpush3.msra.mxu0 %v12880_v55 }
0x42eb   :  { %13973 = vmatprep.subr.mxu0 %v12879_v56  ;;  %v9946_v46 = vpop.permute.xlu0 %9945 }
0x42ed   :  { %v9522_v3 = vpop.f32.mrb[106].mxu1 }
0x42ee   :  { %v9604_v2 = vmul.f32 0.35355338, %v9522_v3  ;;  %v13982_v7 = vpop.f32.mrb[107].mxu1 }
0x42ef   :  { %v9866_v25 = vpop.permute.xlu0 %9865 }
0x42f0   :  { %v9606_v5 = vadd.f32 %v9604_v2, %v16006_v51 }
0x42f1   :  { %v9600_v48 = vpop.f32.mrb[108].mxu1 }
0x42f2   :  { %v9605_v50 = vmul.f32 0.35355338, %v9600_v48  ;;  %v13987_v44 = vpop.f32.mrb[109].mxu1  ;;  %v9608_v52 = vsel %vm526_vm2, %v9606_v5, -inf }
0x42f3   :  { %9609 = vmax.xlane.f32.xlu1 %v9608_v52  ;;  %v12882_v52 = vld [vmem:[%s16819_s10 + $0x38] sm:$0xff] }
0x42f4   :  { %v9607_v53 = vadd.f32 %v9605_v50, %v16006_v51 }
0x42f6   :  { %v9611_v42 = vsel %vm526_vm2, %v9607_v53, -inf }
0x42f7   :  { %9612 = vmax.xlane.f32.xlu1 %v9611_v42 }
0x4380   :  { %v9610_v57 = vpop.xlane.xlu1 %9609 }
0x4381   :  { %v9614_v6 = vsub.f32 %v9606_v5, %v9610_v57 }
0x4383   :  { %v9616_v4 = vmul.f32 1.442695, %v9614_v6  ;;  %v10433_v6 = vld [vmem:[#allocation22 + $0x20] sm:$0xff] }
0x4384   :  { %v9613_v58 = vpop.xlane.xlu1 %9612 }
0x4385   :  { %14647 = vpow2.f32 %v9616_v4  ;;  %v9615_v54 = vsub.f32 %v9607_v53, %v9613_v58  ;;  %v10434_v4 = vld [vmem:[#allocation22 + $0x28] sm:$0xff] }
0x4386   :  { %v14319_v58 = vpack.c.bf16 %v10434_v4, %v10433_v6 }
0x4387   :  { %v9618_v60 = vmul.f32 1.442695, %v9615_v54  ;;  %v10436_v54 = vld [vmem:[#allocation22 + $0x38] sm:$0xff] }
0x4389   :  { %14649 = vpow2.f32 %v9618_v60 }
0x438f   :  { %v14648_v49 = vpop.eup %14647 }
0x4390   :  { %v9620_v61 = vsel %vm526_vm2, %v14648_v49, 0.0 }
0x4391   :  { %9621 = vadd.xlane.f32.xlu1 %v9620_v61 }
0x4393   :  { %v14650_v62 = vpop.eup %14649 }
0x4394   :  { %v9623_v63 = vsel %vm526_vm2, %v14650_v62, 0.0 }
0x4395   :  { %9624 = vadd.xlane.f32.xlu1 %v9623_v63 }
0x43a6   :  { %9630 = vrot.lane.b32.xlu1 %v16389_v31, %s15221_s22 }
0x43aa   :  { %9943 = vrot.lane.b32.xlu1 %v16387_v29, %s15223_s28 }
0x43bc   :  { %v9206_v0 = vpop.f32.mrb[68].mxu0 }
0x43bd   :  { %v13962_v10 = vpop.f32.mrb[69].mxu0  ;;  %13970 = vmatprep.mubr.msk.f32.mxu0 %vm526_vm2, %v9206_v0 }
0x43be   :  { %13971 = vmatmul.mubr.msk.f32.vlgmr.msra.gmra.mrb[70].mxu0 %vm526_vm2, %v9282_v43 }
0x43bf   :  { %13975 = vmatprep.mubr.msk.f32.mxu0 %vm526_vm2, %v16455_v1  ;;  %13974 = vmatpush3.msra.mxu0 %v12879_v56 }
0x43c0   :  { %13988 = vmatprep.subr.mxu0 %v15212_v8 }
0x43c6   :  { %13976 = vmatmul.mubr.msk.f32.vlgmr.msra.gmra.mrb[70].mxu0 %vm526_vm2, %v16445_v59 }
0x43c7   :  { %13990 = vmatprep.mubr.msk.f32.mxu0 %vm15213_vm1, %v15212_v8 }
0x441e   :  { %v9622_v14 = vpop.xlane.xlu1 %9621 }
0x441f   :  { %14651 = vrcp.f32 %v9622_v14 }
0x4422   :  { %v9625_v16 = vpop.xlane.xlu1 %9624 }
0x4423   :  { %14653 = vrcp.f32 %v9625_v16 }
0x4426   :  { %v9631_v19 = vpop.permute.xlu1 %9630 }
0x4427   :  { %13989 = vmatpush3.msra.mxu0 %v9631_v19  ;;  %v12923_v19 = vld [vmem:[#allocation24 + $0x1] ss:$0 sm:$0xff] }
0x4428   :  { %13998 = vmatprep.subr.mxu0 %v12881_v18 }
0x4429   :  { %v14652_v24 = vpop.eup %14651 }
0x442a   :  { %v9628_v1 = vmul.f32 %v14652_v24, %v14648_v49  ;;  %v9944_v32 = vpop.permute.xlu1 %9943 }
0x442c   :  { %13991 = vmatmul.mubr.msk.f32.vlgmr.msra.gmra.mrb[72].mxu0 %vm526_vm2, %v9628_v1 }
0x442d   :  { %v14654_v26 = vpop.eup %14653  ;;  %13999 = vmatpush3.msra.mxu0 %v12881_v18 }
0x442e   :  { %v9629_v59 = vmul.f32 %v14654_v26, %v14650_v62  ;;  %14008 = vmatprep.subr.mxu0 %v15212_v8  ;;  %v12915_v62 = vld [vmem:[#allocation18 + $0x1] ss:$0 sm:$0xff] }
0x4430   :  { %13996 = vmatmul.mubr.msk.f32.vlgmr.msra.gmra.mrb[110].mxu1 %vm526_vm2, %v9629_v59 }
0x4431   :  { %14004 = vmatpush3.xpose.msk.msra.mxu1 %vm526_vm2, %v9868_v20  ;;  %14005 = vmatprep.mubr.msk.f32.mxu1 %vm15213_vm1, %v15212_v8 }
0x4432   :  { %14013 = vmatprep.subr.mxu1 %v15212_v8 }
0x4434   :  { %14006 = vmatmul.mubr.msk.f32.vlgmr.msra.gmra.mrb[112].mxu1 %vm526_vm2, %v9866_v25 }
0x4435   :  { %14015 = vmatprep.mubr.msk.f32.mxu1 %vm15213_vm1, %v15212_v8 }
0x44ff   :  { %v9702_v21 = vpop.f32.mrb[72].mxu0 }
0x4500   :  { %v13992_v27 = vpop.f32.mrb[73].mxu0  ;;  %14000 = vmatprep.mubr.msk.f32.mxu0 %vm526_vm2, %v9702_v21 }
0x4503   :  { %v9778_v28 = vpop.f32.mrb[110].mxu1 }
0x4504   :  { %v13997_v30 = vpop.f32.mrb[111].mxu1  ;;  %14001 = vmatmul.mubr.msk.f32.vlgmr.msra.gmra.mrb[70].mxu0 %vm526_vm2, %v9778_v28 }
0x4505   :  { %14009 = vmatpush3.xpose.msk.msra.mxu0 %vm526_vm2, %v9946_v46  ;;  %14010 = vmatprep.mubr.msk.f32.mxu0 %vm15213_vm1, %v15212_v8 }
0x4506   :  { %14018 = vmatprep.subr.mxu0 %v15212_v8 }
0x4507   :  { %v9939_v37 = vpop.f32.mrb[112].mxu1 }
0x4508   :  { %v10021_v13 = vmul.f32 0.35355338, %v9939_v37  ;;  %v14007_v33 = vpop.f32.mrb[113].mxu1  ;;  %14011 = vmatmul.mubr.msk.f32.vlgmr.msra.gmra.mrb[74].mxu0 %vm526_vm2, %v9944_v32  ;;  %v10339_v32 = vld [vmem:[#allocation19 + $0x20] sm:$0xff]  ;;  %v10340_v37 = vld [vmem:[#allocation19 + $0x28] sm:$0xff] }
0x4509   :  { %14020 = vmatprep.mubr.msk.f32.mxu0 %vm15213_vm1, %v15212_v8  ;;  %v10341_v33 = vld [vmem:[#allocation19 + $0x30] sm:$0xff] }
0x450a   :  { %v10023_v34 = vadd.f32 %v10021_v13, %v16006_v51  ;;  %v14311_v13 = vpack.c.bf16 %v10340_v37, %v10339_v32 }
0x450c   :  { %v10025_v17 = vsel %vm526_vm2, %v10023_v34, -inf }
0x450d   :  { %10026 = vmax.xlane.f32.xlu0 %v10025_v17 }
0x459a   :  { %v10027_v39 = vpop.xlane.xlu0 %10026 }
0x459b   :  { %v10031_v35 = vsub.f32 %v10023_v34, %v10027_v39  ;;  %v10342_v34 = vld [vmem:[#allocation19 + $0x38] sm:$0xff] }
0x459c   :  { %v14315_v17 = vpack.c.bf16 %v10342_v34, %v10341_v33 }
0x459d   :  { %v10033_v36 = vmul.f32 1.442695, %v10031_v35 }
0x459f   :  { %14655 = vpow2.f32 %v10033_v36 }
0x45a9   :  { %v14656_v11 = vpop.eup %14655 }
0x45aa   :  { %v10037_v45 = vsel %vm526_vm2, %v14656_v11, 0.0 }
0x45ab   :  { %10038 = vadd.xlane.f32.xlu0 %v10037_v45 }
0x45db   :  { %v10017_v38 = vpop.f32.mrb[74].mxu0 }
0x45dc   :  { %v10022_v40 = vmul.f32 0.35355338, %v10017_v38  ;;  %v14012_v41 = vpop.f32.mrb[75].mxu0 }
0x45dd   :  { %v12918_v41 = vld [vmem:[%s16822_s12 + $0x1] ss:$0 sm:$0xff] }
0x45de   :  { %v10024_v15 = vadd.f32 %v10022_v40, %v16006_v51 }
0x45e0   :  { %v10028_v43 = vsel %vm526_vm2, %v10024_v15, -inf }
0x45e1   :  { %10029 = vmax.xlane.f32.xlu1 %v10028_v43 }
0x45f2   :  { %10047 = vrot.lane.b32.xlu1 %v16389_v31, %s15224_s8 }
0x4638   :  { %v10039_v9 = vpop.xlane.xlu0 %10038 }
0x4639   :  { %14657 = vrcp.f32 %v10039_v9 }
0x4643   :  { %v14658_v2 = vpop.eup %14657 }
0x4644   :  { %v10045_v48 = vmul.f32 %v14658_v2, %v14656_v11 }
0x466e   :  { %v10030_v3 = vpop.xlane.xlu1 %10029 }
0x466f   :  { %v10032_v7 = vsub.f32 %v10024_v15, %v10030_v3  ;;  %v12919_v3 = vld [vmem:[%s16823_s25 + $0x1] ss:$0 sm:$0xff] }
0x4671   :  { %v10035_v5 = vmul.f32 1.442695, %v10032_v7 }
0x4672   :  { %v10048_v50 = vpop.permute.xlu1 %10047 }
0x4673   :  { %14659 = vpow2.f32 %v10035_v5  ;;  %14014 = vmatpush3.msra.mxu1 %v10048_v50 }
0x4674   :  { %14016 = vmatmul.mubr.msk.f32.vlgmr.msra.gmra.mrb[114].mxu1 %vm526_vm2, %v10045_v48  ;;  %14312 = vmatprep.subr.bf16.mxu1 %v14311_v13 }
0x4675   :  { %14314 = vmatpush3.bf16.msra.mxu1 %v14311_v13 }
0x4676   :  { %14316 = vmatprep.subr.bf16.mxu1 %v14315_v17 }
0x4679   :  { %14318 = vmatpush3.bf16.msra.mxu1 %v14315_v17 }
0x467a   :  { %14050 = vmatprep.subr.mxu1 %v15212_v8 }
0x467d   :  { %v14660_v51 = vpop.eup %14659 }
0x467e   :  { %v10040_v44 = vsel %vm526_vm2, %v14660_v51, 0.0 }
0x467f   :  { %10041 = vadd.xlane.f32.xlu0 %v10040_v44 }
0x4695   :  { %10123 = vrot.lane.b32.xlu0 %v16387_v29, %s15224_s8  ;;  %v10435_v29 = vld [vmem:[#allocation22 + $0x30] sm:$0xff] }
0x4696   :  { %v14323_v60 = vpack.c.bf16 %v10436_v54, %v10435_v29 }
0x470c   :  { %v10042_v31 = vpop.xlane.xlu0 %10041 }
0x470d   :  { %14661 = vrcp.f32 %v10042_v31 }
0x4710   :  { %v10124_v53 = vpop.permute.xlu0 %10123 }
0x4711   :  { %14019 = vmatpush3.msra.mxu0 %v10124_v53 }
0x4712   :  { %14023 = vmatprep.subr.mxu0 %v12882_v52 }
0x4717   :  { %v14662_v42 = vpop.eup %14661 }
0x4718   :  { %v10046_v55 = vmul.f32 %v14662_v42, %v14660_v51  ;;  %v12920_v51 = vld [vmem:[#allocation21 + $0x1] ss:$0 sm:$0xff] }
0x471a   :  { %14021 = vmatmul.mubr.msk.f32.vlgmr.msra.gmra.mrb[76].mxu0 %vm526_vm2, %v10046_v55 }
0x471b   :  { %14024 = vmatpush3.msra.mxu0 %v12882_v52 }
0x471c   :  { %14320 = vmatprep.subr.bf16.mxu0 %v14319_v58 }
0x4747   :  { %v10119_v56 = vpop.f32.mrb[114].mxu1 }
0x4748   :  { %v14017_v57 = vpop.f32.mrb[115].mxu1  ;;  %14025 = vmatprep.mubr.msk.f32.mxu0 %vm526_vm2, %v10119_v56 }
0x47ed   :  { %v10195_v49 = vpop.f32.mrb[76].mxu0 }
0x47ee   :  { %v14022_v61 = vpop.f32.mrb[77].mxu0  ;;  %14026 = vmatmul.mubr.msk.f32.vlgmr.msra.gmra.mrb[70].mxu0 %vm526_vm2, %v10195_v49 }
0x47ef   :  { %14322 = vmatpush3.bf16.msra.mxu0 %v14319_v58  ;;  %14047 = vmatprep.mubr.msk.f32.mxu0 %vm436_vm0, %v16168_v23 }
0x47f0   :  { %14324 = vmatprep.subr.bf16.mxu0 %v14323_v60 }
0x47f3   :  { %14326 = vmatpush3.bf16.msra.mxu0 %v14323_v60 }
0x47f4   :  { %14060 = vmatprep.subr.mxu0 %v15212_v8 }
0x47f6   :  { %14048 = vmatmul.mubr.msk.f32.vlgmr.msra.gmra.mrb[78].mxu0 %vm436_vm0, %v16170_v47 }
0x47f7   :  { %14062 = vmatprep.mubr.msk.f32.mxu0 %vm15213_vm1, %v15212_v8 }
0x48c1   :  { %v14027_v63 = vpop.f32.mrb[70].mxu0 }
0x48c2   :  { %v10289_v0 = vadd.f32 %v14027_v63, %v12915_v62  ;;  %v10271_v10 = vpop.f32.mrb[71].mxu0 }
0x48c3   :  { %v10288_v14 = vadd.f32 %v12915_v62, %v10271_v10 }
0x48c4   :  { %v10291_v16 = vadd.f32 %v10289_v0, %v16379_v12 }
0x48c5   :  { %v10290_v18 = vadd.f32 %v10288_v14, %v16377_v22 }
0x48c6   :  { %v10299_v23 = vsel %vm436_vm0, %v10291_v16, 0.0 }
0x48c7   :  { %10300 = vadd.xlane.f32.xlu0 %v10299_v23  ;;  %v10296_v20 = vsel %vm436_vm0, %v10290_v18, 0.0 }
0x48c8   :  { %10297 = vadd.xlane.f32.xlu1 %v10296_v20 }
0x48c9   :  { %v14049_v47 = vpop.f32.mrb[78].mxu0 }
0x48ca   :  { %v16556_v24 = vadd.f32 %v14049_v47, %v12923_v19  ;;  %v10511_v1 = vpop.f32.mrb[79].mxu0 }
0x48cb   :  { %v16567_v50 = vadd.f32 %v12923_v19, %v10511_v1 }
0x4954   :  { %v10301_v26 = vpop.xlane.xlu0 %10300 }
0x4955   :  { %v10303_v46 = vmul.f32 0.03125, %v10301_v26  ;;  %v10298_v59 = vpop.xlane.xlu1 %10297 }
0x4956   :  { %v10302_v25 = vmul.f32 0.03125, %v10298_v59 }
0x4957   :  { %v10305_v21 = vsub.f32 %v10291_v16, %v10303_v46 }
0x4958   :  { %v10304_v27 = vsub.f32 %v10290_v18, %v10302_v25 }
0x4959   :  { %v10307_v12 = vmul.f32 %v10305_v21, %v10305_v21 }
0x495a   :  { %v10306_v28 = vmul.f32 %v10304_v27, %v10304_v27 }
0x495b   :  { %v10311_v22 = vsel %vm436_vm0, %v10307_v12, 0.0 }
0x495c   :  { %10312 = vadd.xlane.f32.xlu0 %v10311_v22  ;;  %v10308_v30 = vsel %vm436_vm0, %v10306_v28, 0.0 }
0x495d   :  { %10309 = vadd.xlane.f32.xlu1 %v10308_v30 }
0x49e9   :  { %v10313_v39 = vpop.xlane.xlu0 %10312 }
0x49ea   :  { %v10315_v35 = vmul.f32 0.03125, %v10313_v39  ;;  %v10310_v36 = vpop.xlane.xlu1 %10309 }
0x49eb   :  { %v10314_v11 = vmul.f32 0.03125, %v10310_v36 }
0x49ec   :  { %v10317_v45 = vadd.f32 1e-05, %v10315_v35 }
0x49ed   :  { %v10316_v38 = vadd.f32 1e-05, %v10314_v11 }
0x49ee   :  { %14663 = vrsqrt.f32 %v10317_v45 }
0x49ef   :  { %14665 = vrsqrt.f32 %v10316_v38 }
0x49f8   :  { %v14664_v40 = vpop.eup %14663 }
0x49f9   :  { %v14666_v15 = vpop.eup %14665  ;;  %v10321_v43 = vmul.f32 %v14664_v40, %v10305_v21 }
0x49fa   :  { %v10320_v9 = vmul.f32 %v14666_v15, %v10304_v27 }
0x49fb   :  { %v10329_v2 = vmul.f32 %v12918_v41, %v10321_v43 }
0x49fc   :  { %v10328_v7 = vmul.f32 %v12918_v41, %v10320_v9 }
0x49fd   :  { %v16565_v48 = vadd.f32 %v12919_v3, %v10329_v2 }
0x49fe   :  { %v16563_v5 = vadd.f32 %v12919_v3, %v10328_v7 }
0x4a00   :  { %14036 = vmatprep.mubr.msk.f32.mxu1 %vm436_vm0, %v16563_v5 }
0x4a01   :  { %14037 = vmatmul.mubr.msk.f32.vlgmr.msra.gmra.mrb[116].mxu1 %vm436_vm0, %v16565_v48 }
0x4a02   :  { %14051 = vmatpush3.xpose.msk.msra.mxu1 %vm526_vm2, %v16567_v50  ;;  %14052 = vmatprep.mubr.msk.f32.mxu1 %vm15213_vm1, %v15212_v8 }
0x4a03   :  { %14055 = vmatprep.subr.mxu1 %v15212_v8 }
0x4ad4   :  { %v14038_v44 = vpop.f32.mrb[116].mxu1 }
0x4ad5   :  { %v10423_v31 = vpop.f32.mrb[117].mxu1  ;;  %v16586_v53 = vadd.f32 %v14038_v44, %v12920_v51 }
0x4ad6   :  { %v16578_v52 = vadd.f32 %v12920_v51, %v10423_v31 }
0x4ad8   :  { %14053 = vmatmul.mubr.msk.f32.vlgmr.msra.gmra.mrb[118].mxu1 %vm526_vm2, %v16578_v52 }
0x4ad9   :  { %14056 = vmatpush3.xpose.msk.msra.mxu1 %vm526_vm2, %v16556_v24  ;;  %14057 = vmatprep.mubr.msk.f32.mxu1 %vm15213_vm1, %v15212_v8 }
0x4ada   :  { %14065 = vmatprep.subr.mxu1 %v15212_v8 }
0x4adc   :  { %14058 = vmatmul.mubr.msk.f32.vlgmr.msra.gmra.mrb[120].mxu1 %vm526_vm2, %v16586_v53 }
0x4add   :  { %14067 = vmatprep.mubr.msk.f32.mxu1 %vm15213_vm1, %v15212_v8 }
0x4bab   :  { %v10599_v42 = vpop.f32.mrb[118].mxu1 }
0x4bac   :  { %v14054_v55 = vpop.f32.mrb[119].mxu1  ;;  %v10679_v58 = vmul.f32 0.35355338, %v10599_v42 }
0x4bae   :  { %v10681_v29 = vsel %vm526_vm2, %v10679_v58, -inf }
0x4baf   :  { %v10675_v56 = vpop.f32.mrb[120].mxu1 }
0x4bb0   :  { %v10680_v57 = vmul.f32 0.35355338, %v10675_v56  ;;  %v14059_v6 = vpop.f32.mrb[121].mxu1 }
0x4bb2   :  { %v10684_v4 = vsel %vm526_vm2, %v10680_v57, -inf }
0x4bb3   :  { %10685 = vmax.xlane.f32.xlu1 %v10684_v4 }
0x4bc4   :  { %10779 = vrot.lane.b32.xlu1 %v16556_v24, %s15214_s14 }
0x4bc8   :  { %10933 = vrot.lane.b32.xlu1 %v16586_v53, %s15217_s18 }
0x4bec   :  { %10682 = vmax.xlane.f32.xlu1 %v10681_v29 }
0x4bfd   :  { %10857 = vrot.lane.b32.xlu1 %v16567_v50, %s15217_s18 }
0x4c01   :  { %10855 = vrot.lane.b32.xlu1 %v16578_v52, %s15217_s18 }
0x4c05   :  { %11351 = vrot.lane.b32.xlu1 %v16567_v50, %s15219_s30 }
0x4c40   :  { %v10686_v54 = vpop.xlane.xlu1 %10685 }
0x4c41   :  { %v10688_v60 = vsub.f32 %v10680_v57, %v10686_v54 }
0x4c43   :  { %v10691_v49 = vmul.f32 1.442695, %v10688_v60 }
0x4c44   :  { %v10780_v61 = vpop.permute.xlu1 %10779 }
0x4c45   :  { %14667 = vpow2.f32 %v10691_v49  ;;  %14066 = vmatpush3.msra.mxu1 %v10780_v61 }
0x4c46   :  { %14075 = vmatprep.subr.mxu1 %v15212_v8 }
0x4c48   :  { %v10934_v0 = vpop.permute.xlu1 %10933 }
0x4c4f   :  { %v14668_v62 = vpop.eup %14667 }
0x4c50   :  { %v10696_v63 = vsel %vm526_vm2, %v14668_v62, 0.0 }
0x4c51   :  { %10697 = vadd.xlane.f32.xlu0 %v10696_v63 }
0x4c67   :  { %10935 = vrot.lane.b32.xlu0 %v16556_v24, %s15217_s18 }
0x4c79   :  { %v10683_v10 = vpop.xlane.xlu1 %10682 }
0x4c7a   :  { %v10687_v14 = vsub.f32 %v10679_v58, %v10683_v10 }
0x4c7c   :  { %v10689_v16 = vmul.f32 1.442695, %v10687_v14 }
0x4c7d   :  { %v10858_v25 = vpop.permute.xlu1 %10857 }
0x4c7e   :  { %14669 = vpow2.f32 %v10689_v16  ;;  %v10522_v16 = vld [vmem:[#allocation25 + $0x28] sm:$0xff] }
0x4c81   :  { %v10856_v27 = vpop.permute.xlu1 %10855 }
0x4c85   :  { %v11352_v15 = vpop.permute.xlu1 %11351 }
0x4c88   :  { %v14670_v18 = vpop.eup %14669 }
0x4c89   :  { %v10693_v23 = vsel %vm526_vm2, %v14670_v18, 0.0 }
0x4c8a   :  { %10694 = vadd.xlane.f32.xlu0 %v10693_v23 }
0x4ca0   :  { %10703 = vrot.lane.b32.xlu0 %v16567_v50, %s15214_s14 }
0x4cde   :  { %v10698_v19 = vpop.xlane.xlu0 %10697 }
0x4cdf   :  { %14671 = vrcp.f32 %v10698_v19 }
0x4ce2   :  { %v10936_v1 = vpop.permute.xlu0 %10935 }
0x4ce9   :  { %v14672_v20 = vpop.eup %14671 }
0x4cea   :  { %v10702_v47 = vmul.f32 %v14672_v20, %v14668_v62 }
0x4cec   :  { %14068 = vmatmul.mubr.msk.f32.vlgmr.msra.gmra.mrb[122].mxu1 %vm526_vm2, %v10702_v47 }
0x4ced   :  { %14076 = vmatpush3.xpose.msk.msra.mxu1 %vm526_vm2, %v10936_v1  ;;  %14077 = vmatprep.mubr.msk.f32.mxu1 %vm15213_vm1, %v15212_v8 }
0x4cee   :  { %14085 = vmatprep.subr.mxu1 %v15212_v8 }
0x4cf0   :  { %14078 = vmatmul.mubr.msk.f32.vlgmr.msra.gmra.mrb[124].mxu1 %vm526_vm2, %v10934_v0 }
0x4cf1   :  { %14087 = vmatprep.mubr.msk.f32.mxu1 %vm15213_vm1, %v15212_v8 }
0x4d17   :  { %v10695_v26 = vpop.xlane.xlu0 %10694 }
0x4d18   :  { %14673 = vrcp.f32 %v10695_v26 }
0x4d1b   :  { %v10704_v46 = vpop.permute.xlu0 %10703 }
0x4d1c   :  { %14061 = vmatpush3.msra.mxu0 %v10704_v46 }
0x4d1d   :  { %14070 = vmatprep.subr.mxu0 %v15212_v8 }
0x4d22   :  { %v14674_v59 = vpop.eup %14673 }
0x4d23   :  { %v10701_v21 = vmul.f32 %v14674_v59, %v14670_v18  ;;  %v10521_v18 = vld [vmem:[#allocation25 + $0x20] sm:$0xff] }
0x4d25   :  { %14063 = vmatmul.mubr.msk.f32.vlgmr.msra.gmra.mrb[80].mxu0 %vm526_vm2, %v10701_v21 }
0x4d26   :  { %14071 = vmatpush3.xpose.msk.msra.mxu0 %vm526_vm2, %v10858_v25  ;;  %14072 = vmatprep.mubr.msk.f32.mxu0 %vm15213_vm1, %v15212_v8 }
0x4d27   :  { %14080 = vmatprep.subr.mxu0 %v15212_v8 }
0x4d29   :  { %14073 = vmatmul.mubr.msk.f32.vlgmr.msra.gmra.mrb[82].mxu0 %vm526_vm2, %v10856_v27 }
0x4d2a   :  { %14082 = vmatprep.mubr.msk.f32.mxu0 %vm15213_vm1, %v15212_v8 }
0x4dbf   :  { %v16629_v12 = vpop.f32.mrb[122].mxu1 }
0x4dc0   :  { %v14069_v28 = vpop.f32.mrb[123].mxu1 }
0x4dc3   :  { %v11007_v22 = vpop.f32.mrb[124].mxu1 }
0x4dc4   :  { %v11012_v30 = vmul.f32 0.35355338, %v11007_v22  ;;  %v14079_v32 = vpop.f32.mrb[125].mxu1 }
0x4dc6   :  { %v11016_v37 = vsel %vm526_vm2, %v11012_v30, -inf }
0x4dc7   :  { %11017 = vmax.xlane.f32.xlu0 %v11016_v37 }
0x4ddd   :  { %11111 = vrot.lane.b32.xlu0 %v16556_v24, %s15216_s24 }
0x4de1   :  { %11349 = vrot.lane.b32.xlu0 %v16578_v52, %s15219_s30 }
0x4de5   :  { %11427 = vrot.lane.b32.xlu0 %v16586_v53, %s15219_s30 }
0x4df8   :  { %v16638_v13 = vpop.f32.mrb[80].mxu0 }
0x4df9   :  { %v14064_v33 = vpop.f32.mrb[81].mxu0 }
0x4dfc   :  { %v10929_v34 = vpop.f32.mrb[82].mxu0 }
0x4dfd   :  { %v14074_v17 = vpop.f32.mrb[83].mxu0  ;;  %v11011_v40 = vmul.f32 0.35355338, %v10929_v34 }
0x4dff   :  { %v11013_v41 = vsel %vm526_vm2, %v11011_v40, -inf }
0x4e54   :  { %v11018_v39 = vpop.xlane.xlu0 %11017 }
0x4e55   :  { %v11020_v35 = vsub.f32 %v11012_v30, %v11018_v39  ;;  %v10523_v30 = vld [vmem:[#allocation25 + $0x30] sm:$0xff] }
0x4e57   :  { %v11023_v36 = vmul.f32 1.442695, %v11020_v35 }
0x4e58   :  { %v11112_v11 = vpop.permute.xlu0 %11111 }
0x4e59   :  { %14675 = vpow2.f32 %v11023_v36  ;;  %14086 = vmatpush3.msra.mxu1 %v11112_v11 }
0x4e5a   :  { %14100 = vmatprep.subr.mxu1 %v15212_v8 }
0x4e5c   :  { %v11350_v2 = vpop.permute.xlu0 %11349 }
0x4e60   :  { %v11428_v51 = vpop.permute.xlu0 %11427 }
0x4e63   :  { %v14676_v45 = vpop.eup %14675 }
0x4e64   :  { %v11028_v38 = vsel %vm526_vm2, %v14676_v45, 0.0 }
0x4e65   :  { %11029 = vadd.xlane.f32.xlu1 %v11028_v38 }
0x4e76   :  { %11429 = vrot.lane.b32.xlu1 %v16556_v24, %s15219_s30 }
0x4e9a   :  { %11014 = vmax.xlane.f32.xlu1 %v11013_v41 }
0x4ef2   :  { %v11030_v43 = vpop.xlane.xlu1 %11029 }
0x4ef3   :  { %14677 = vrcp.f32 %v11030_v43 }
0x4ef6   :  { %v11430_v7 = vpop.permute.xlu1 %11429 }
0x4efd   :  { %v14678_v9 = vpop.eup %14677 }
0x4efe   :  { %v11034_v3 = vmul.f32 %v14678_v9, %v14676_v45 }
0x4f00   :  { %14088 = vmatmul.mubr.msk.f32.vlgmr.msra.gmra.mrb[126].mxu1 %vm526_vm2, %v11034_v3 }
0x4f01   :  { %14101 = vmatpush3.xpose.msk.msra.mxu1 %vm526_vm2, %v11352_v15  ;;  %14102 = vmatprep.mubr.msk.f32.mxu1 %vm15213_vm1, %v15212_v8 }
0x4f02   :  { %14105 = vmatprep.subr.mxu1 %v15212_v8 }
0x4f04   :  { %14103 = vmatmul.mubr.msk.f32.vlgmr.msra.gmra.mrb[128].mxu1 %vm526_vm2, %v11350_v2 }
0x4f05   :  { %14106 = vmatpush3.xpose.msk.msra.mxu1 %vm526_vm2, %v11430_v7  ;;  %14107 = vmatprep.mubr.msk.f32.mxu1 %vm15213_vm1, %v15212_v8 }
0x4f06   :  { %14115 = vmatprep.subr.mxu1 %v15212_v8 }
0x4f08   :  { %14108 = vmatmul.mubr.msk.f32.vlgmr.msra.gmra.mrb[130].mxu1 %vm526_vm2, %v11428_v51 }
0x4f09   :  { %14117 = vmatprep.mubr.msk.f32.mxu1 %vm15213_vm1, %v15212_v8 }
0x4f27   :  { %v11015_v44 = vpop.xlane.xlu1 %11014 }
0x4f28   :  { %v11019_v31 = vsub.f32 %v11011_v40, %v11015_v44 }
0x4f2a   :  { %v11021_v42 = vmul.f32 1.442695, %v11019_v31 }
0x4f2c   :  { %14679 = vpow2.f32 %v11021_v42 }
0x4f36   :  { %v14680_v55 = vpop.eup %14679 }
0x4f37   :  { %v11025_v56 = vsel %vm526_vm2, %v14680_v55, 0.0 }
0x4f38   :  { %11026 = vadd.xlane.f32.xlu0 %v11025_v56 }
0x4f4e   :  { %11035 = vrot.lane.b32.xlu0 %v16567_v50, %s15216_s24 }
0x4f52   :  { %11605 = vrot.lane.b32.xlu0 %v16556_v24, %s15220_s6 }
0x4f56   :  { %11766 = vrot.lane.b32.xlu0 %v16567_v50, %s15223_s28 }
0x4f5a   :  { %11844 = vrot.lane.b32.xlu0 %v16556_v24, %s15223_s28 }
0x4f5e   :  { %11764 = vrot.lane.b32.xlu0 %v16578_v52, %s15223_s28 }
0x4fc5   :  { %v11027_v57 = vpop.xlane.xlu0 %11026 }
0x4fc6   :  { %14681 = vrcp.f32 %v11027_v57 }
0x4fc9   :  { %v11036_v6 = vpop.permute.xlu0 %11035 }
0x4fca   :  { %14081 = vmatpush3.msra.mxu0 %v11036_v6 }
0x4fcb   :  { %14090 = vmatprep.subr.mxu0 %v10522_v16 }
0x4fcd   :  { %v11606_v4 = vpop.permute.xlu0 %11605 }
0x4fce   :  { %14116 = vmatpush3.msra.mxu1 %v11606_v4 }
0x4fcf   :  { %14125 = vmatprep.subr.mxu1 %v15212_v8 }
0x4fd0   :  { %v14682_v58 = vpop.eup %14681 }
0x4fd1   :  { %v11033_v29 = vmul.f32 %v14682_v58, %v14680_v55  ;;  %v11767_v37 = vpop.permute.xlu0 %11766 }
0x4fd3   :  { %14083 = vmatmul.mubr.msk.f32.vlgmr.msra.gmra.mrb[84].mxu0 %vm526_vm2, %v11033_v29  ;;  %v11183_v54 = vpop.f32.mrb[126].mxu1 }
0x4fd4   :  { %v14089_v60 = vpop.f32.mrb[127].mxu1  ;;  %14091 = vmatpush3.msra.mxu0 %v10522_v16 }
0x4fd5   :  { %14095 = vmatprep.subr.mxu0 %v10521_v18  ;;  %v11845_v17 = vpop.permute.xlu0 %11844 }
0x4fd7   :  { %v11423_v49 = vpop.f32.mrb[128].mxu1 }
0x4fd8   :  { %v11505_v61 = vmul.f32 0.35355338, %v11423_v49  ;;  %v14104_v62 = vpop.f32.mrb[129].mxu1  ;;  %v10524_v49 = vld [vmem:[#allocation25 + $0x38] sm:$0xff] }
0x4fd9   :  { %v11765_v39 = vpop.permute.xlu0 %11764 }
0x4fda   :  { %v11507_v63 = vsel %vm526_vm2, %v11505_v61, -inf }
0x4fdb   :  { %11508 = vmax.xlane.f32.xlu1 %v11507_v63  ;;  %v11501_v52 = vpop.f32.mrb[130].mxu1 }
0x4fdc   :  { %v11506_v0 = vmul.f32 0.35355338, %v11501_v52  ;;  %v14109_v10 = vpop.f32.mrb[131].mxu1 }
0x4fde   :  { %v11510_v14 = vsel %vm526_vm2, %v11506_v0, -inf }
0x4fdf   :  { %11511 = vmax.xlane.f32.xlu1 %v11510_v14 }
0x5068   :  { %v11509_v23 = vpop.xlane.xlu1 %11508 }
0x5069   :  { %v11513_v19 = vsub.f32 %v11505_v61, %v11509_v23 }
0x506b   :  { %v11515_v20 = vmul.f32 1.442695, %v11513_v19 }
0x506c   :  { %v11512_v47 = vpop.xlane.xlu1 %11511 }
0x506d   :  { %14683 = vpow2.f32 %v11515_v20  ;;  %v11514_v1 = vsub.f32 %v11506_v0, %v11512_v47 }
0x506f   :  { %v11517_v26 = vmul.f32 1.442695, %v11514_v1 }
0x5071   :  { %14685 = vpow2.f32 %v11517_v26 }
0x5077   :  { %v14684_v46 = vpop.eup %14683 }
0x5078   :  { %v11519_v59 = vsel %vm526_vm2, %v14684_v46, 0.0 }
0x5079   :  { %11520 = vadd.xlane.f32.xlu1 %v11519_v59 }
0x507b   :  { %v14686_v25 = vpop.eup %14685 }
0x507c   :  { %v11522_v21 = vsel %vm526_vm2, %v14686_v25, 0.0 }
0x507d   :  { %11523 = vadd.xlane.f32.xlu1 %v11522_v21 }
0x508e   :  { %11529 = vrot.lane.b32.xlu1 %v16567_v50, %s15220_s6 }
0x5092   :  { %11842 = vrot.lane.b32.xlu1 %v16586_v53, %s15223_s28 }
0x50a6   :  { %v11107_v27 = vpop.f32.mrb[84].mxu0 }
0x50a7   :  { %v14084_v28 = vpop.f32.mrb[85].mxu0  ;;  %14092 = vmatprep.mubr.msk.f32.mxu0 %vm526_vm2, %v11107_v27 }
0x50a8   :  { %14093 = vmatmul.mubr.msk.f32.vlgmr.msra.gmra.mrb[86].mxu0 %vm526_vm2, %v11183_v54 }
0x50a9   :  { %14097 = vmatprep.mubr.msk.f32.mxu0 %vm526_vm2, %v16638_v13  ;;  %14096 = vmatpush3.msra.mxu0 %v10521_v18 }
0x50aa   :  { %14110 = vmatprep.subr.mxu0 %v15212_v8 }
0x50b0   :  { %14098 = vmatmul.mubr.msk.f32.vlgmr.msra.gmra.mrb[86].mxu0 %vm526_vm2, %v16629_v12 }
0x50b1   :  { %14112 = vmatprep.mubr.msk.f32.mxu0 %vm15213_vm1, %v15212_v8 }
0x5106   :  { %v11521_v22 = vpop.xlane.xlu1 %11520 }
0x5107   :  { %14687 = vrcp.f32 %v11521_v22 }
0x510a   :  { %v11524_v53 = vpop.xlane.xlu1 %11523 }
0x510b   :  { %14689 = vrcp.f32 %v11524_v53 }
0x510e   :  { %v11530_v32 = vpop.permute.xlu1 %11529 }
0x510f   :  { %14111 = vmatpush3.msra.mxu0 %v11530_v32  ;;  %v12964_v32 = vld [vmem:[%s16824_s0 + $0x28] sm:$0xff] }
0x5110   :  { %14120 = vmatprep.subr.mxu0 %v10523_v30 }
0x5111   :  { %v14688_v33 = vpop.eup %14687 }
0x5112   :  { %v11527_v13 = vmul.f32 %v14688_v33, %v14684_v46  ;;  %v11843_v38 = vpop.permute.xlu1 %11842  ;;  %v12965_v33 = vld [vmem:[%s16824_s0 + $0x30] sm:$0xff] }
0x5114   :  { %14113 = vmatmul.mubr.msk.f32.vlgmr.msra.gmra.mrb[88].mxu0 %vm526_vm2, %v11527_v13  ;;  %v12966_v13 = vld [vmem:[%s16824_s0 + $0x38] sm:$0xff] }
0x5115   :  { %v14690_v34 = vpop.eup %14689  ;;  %14121 = vmatpush3.msra.mxu0 %v10523_v30  ;;  %v12963_v30 = vld [vmem:[%s16824_s0 + $0x20] sm:$0xff] }
0x5116   :  { %v11528_v12 = vmul.f32 %v14690_v34, %v14686_v25  ;;  %14130 = vmatprep.subr.mxu0 %v15212_v8  ;;  %v14331_v34 = vpack.c.bf16 %v12966_v13, %v12965_v33  ;;  %v12983_v33 = vld [vmem:[%s16828_s16 + $0x1] ss:$0 sm:$0xff] }
0x5118   :  { %14118 = vmatmul.mubr.msk.f32.vlgmr.msra.gmra.mrb[132].mxu1 %vm526_vm2, %v11528_v12  ;;  %v12968_v12 = vld [vmem:[%s16825_s3 + $0x48] sm:$0xff] }
0x5119   :  { %14126 = vmatpush3.xpose.msk.msra.mxu1 %vm526_vm2, %v11767_v37  ;;  %14127 = vmatprep.mubr.msk.f32.mxu1 %vm15213_vm1, %v15212_v8  ;;  %v14327_v37 = vpack.c.bf16 %v12964_v32, %v12963_v30 }
0x511a   :  { %14135 = vmatprep.subr.mxu1 %v15212_v8 }
0x511c   :  { %14128 = vmatmul.mubr.msk.f32.vlgmr.msra.gmra.mrb[134].mxu1 %vm526_vm2, %v11765_v39  ;;  %v12969_v39 = vld [vmem:[%s16825_s3 + $0x50] sm:$0xff] }
0x511d   :  { %14137 = vmatprep.mubr.msk.f32.mxu1 %vm15213_vm1, %v15212_v8 }
0x51e7   :  { %v11601_v35 = vpop.f32.mrb[88].mxu0 }
0x51e8   :  { %v14114_v36 = vpop.f32.mrb[89].mxu0  ;;  %14122 = vmatprep.mubr.msk.f32.mxu0 %vm526_vm2, %v11601_v35 }
0x51e9   :  { %v12970_v36 = vld [vmem:[%s16825_s3 + $0x58] sm:$0xff] }
0x51eb   :  { %v11677_v11 = vpop.f32.mrb[132].mxu1 }
0x51ec   :  { %v14119_v45 = vpop.f32.mrb[133].mxu1  ;;  %14123 = vmatmul.mubr.msk.f32.vlgmr.msra.gmra.mrb[86].mxu0 %vm526_vm2, %v11677_v11  ;;  %v14339_v11 = vpack.c.bf16 %v12970_v36, %v12969_v39 }
0x51ed   :  { %14131 = vmatpush3.xpose.msk.msra.mxu0 %vm526_vm2, %v11845_v17  ;;  %14132 = vmatprep.mubr.msk.f32.mxu0 %vm15213_vm1, %v15212_v8  ;;  %v12967_v17 = vld [vmem:[%s16825_s3 + $0x40] sm:$0xff] }
0x51ee   :  { %14140 = vmatprep.subr.mxu0 %v15212_v8  ;;  %v14335_v35 = vpack.c.bf16 %v12968_v12, %v12967_v17  ;;  %v12971_v45 = vld [vmem:[%s16825_s3 + $0x60] sm:$0xff] }
0x51ef   :  { %v11838_v40 = vpop.f32.mrb[134].mxu1  ;;  %v12984_v17 = vld [vmem:[%s16829_s26 + $0x1] ss:$0 sm:$0xff] }
0x51f0   :  { %v11920_v41 = vmul.f32 0.35355338, %v11838_v40  ;;  %v14129_v15 = vpop.f32.mrb[135].mxu1  ;;  %14133 = vmatmul.mubr.msk.f32.vlgmr.msra.gmra.mrb[90].mxu0 %vm526_vm2, %v11843_v38  ;;  %v12972_v38 = vld [vmem:[%s16825_s3 + $0x68] sm:$0xff] }
0x51f1   :  { %14142 = vmatprep.mubr.msk.f32.mxu0 %vm15213_vm1, %v15212_v8  ;;  %v14343_v40 = vpack.c.bf16 %v12972_v38, %v12971_v45 }
0x51f2   :  { %v11922_v43 = vsel %vm526_vm2, %v11920_v41, -inf }
0x51f3   :  { %11923 = vmax.xlane.f32.xlu0 %v11922_v43 }
0x5280   :  { %v11924_v9 = vpop.xlane.xlu0 %11923 }
0x5281   :  { %v11928_v3 = vsub.f32 %v11920_v41, %v11924_v9 }
0x5283   :  { %v11930_v2 = vmul.f32 1.442695, %v11928_v3 }
0x5285   :  { %14691 = vpow2.f32 %v11930_v2 }
0x528f   :  { %v14692_v7 = vpop.eup %14691 }
0x5290   :  { %v11934_v51 = vsel %vm526_vm2, %v14692_v7, 0.0 }
0x5291   :  { %11935 = vadd.xlane.f32.xlu0 %v11934_v51  ;;  %v12961_v51 = vld [vmem:[%s16826_s11 + $0x1] ss:$0 sm:$0xff] }
0x52c3   :  { %v11916_v44 = vpop.f32.mrb[90].mxu0 }
0x52c4   :  { %v11921_v31 = vmul.f32 0.35355338, %v11916_v44  ;;  %v14134_v42 = vpop.f32.mrb[91].mxu0 }
0x52c6   :  { %v11925_v55 = vsel %vm526_vm2, %v11921_v31, -inf }
0x52c7   :  { %11926 = vmax.xlane.f32.xlu1 %v11925_v55  ;;  %v12962_v55 = vld [vmem:[%s16827_s15 + $0x1] ss:$0 sm:$0xff] }
0x52d8   :  { %11944 = vrot.lane.b32.xlu1 %v16567_v50, %s15222_s23 }
0x531e   :  { %v11936_v8 = vpop.xlane.xlu0 %11935 }
0x531f   :  { %14693 = vrcp.f32 %v11936_v8 }
0x5329   :  { %v14694_v57 = vpop.eup %14693 }
0x532a   :  { %v11942_v58 = vmul.f32 %v14694_v57, %v14692_v7 }
0x5354   :  { %v11927_v56 = vpop.xlane.xlu1 %11926 }
0x5355   :  { %v11929_v6 = vsub.f32 %v11921_v31, %v11927_v56 }
0x5357   :  { %v11932_v4 = vmul.f32 1.442695, %v11929_v6 }
0x5358   :  { %v11945_v29 = vpop.permute.xlu1 %11944 }
0x5359   :  { %14695 = vpow2.f32 %v11932_v4  ;;  %14136 = vmatpush3.msra.mxu1 %v11945_v29  ;;  %v12973_v4 = vld [vmem:[%s16825_s3 + $0x70] sm:$0xff] }
0x535a   :  { %14138 = vmatmul.mubr.msk.f32.vlgmr.msra.gmra.mrb[136].mxu1 %vm526_vm2, %v11942_v58  ;;  %14328 = vmatprep.subr.bf16.mxu1 %v14327_v37  ;;  %v12974_v58 = vld [vmem:[%s16825_s3 + $0x78] sm:$0xff] }
0x535b   :  { %14330 = vmatpush3.bf16.msra.mxu1 %v14327_v37  ;;  %v14347_v29 = vpack.c.bf16 %v12974_v58, %v12973_v4 }
0x535c   :  { %14332 = vmatprep.subr.bf16.mxu1 %v14331_v34 }
0x535f   :  { %14334 = vmatpush3.bf16.msra.mxu1 %v14331_v34 }
0x5363   :  { %v14696_v54 = vpop.eup %14695 }
0x5364   :  { %v11937_v60 = vsel %vm526_vm2, %v14696_v54, 0.0 }
0x5365   :  { %11938 = vadd.xlane.f32.xlu0 %v11937_v60 }
0x537b   :  { %12020 = vrot.lane.b32.xlu0 %v16556_v24, %s15222_s23  ;;  %v12958_v24 = vld [vmem:[#allocation27 + $0x1] ss:$0 sm:$0xff] }
0x53f2   :  { %v11939_v50 = vpop.xlane.xlu0 %11938 }
0x53f3   :  { %14697 = vrcp.f32 %v11939_v50 }
0x53f6   :  { %v12021_v61 = vpop.permute.xlu0 %12020 }
0x53f7   :  { %14141 = vmatpush3.msra.mxu0 %v12021_v61 }
0x53f8   :  { %14145 = vmatprep.subr.mxu0 %v10524_v49 }
0x53fd   :  { %v14698_v62 = vpop.eup %14697 }
0x53fe   :  { %v11943_v63 = vmul.f32 %v14698_v62, %v14696_v54  ;;  %v12975_v54 = vld [vmem:[#allocation28 + $0x1] ss:$0 sm:$0xff] }
0x5400   :  { %14143 = vmatmul.mubr.msk.f32.vlgmr.msra.gmra.mrb[92].mxu0 %vm526_vm2, %v11943_v63 }
0x5401   :  { %14146 = vmatpush3.msra.mxu0 %v10524_v49 }
0x5402   :  { %14336 = vmatprep.subr.bf16.mxu0 %v14335_v35 }
0x542d   :  { %v12016_v52 = vpop.f32.mrb[136].mxu1 }
0x542e   :  { %v14139_v0 = vpop.f32.mrb[137].mxu1  ;;  %14147 = vmatprep.mubr.msk.f32.mxu0 %vm526_vm2, %v12016_v52  ;;  %v12978_v52 = vld [vmem:[#allocation30 + $0x1] ss:$0 sm:$0xff] }
0x54d3   :  { %v12092_v10 = vpop.f32.mrb[92].mxu0 }
0x54d4   :  { %v14144_v14 = vpop.f32.mrb[93].mxu0  ;;  %14148 = vmatmul.mubr.msk.f32.vlgmr.msra.gmra.mrb[86].mxu0 %vm526_vm2, %v12092_v10 }
0x54d5   :  { %14338 = vmatpush3.bf16.msra.mxu0 %v14335_v35 }
0x54d6   :  { %14340 = vmatprep.subr.bf16.mxu0 %v14339_v11 }
0x54d9   :  { %14342 = vmatpush3.bf16.msra.mxu0 %v14339_v11 }
0x54da   :  { %14344 = vmatprep.subr.bf16.mxu0 %v14343_v40 }
0x54dd   :  { %14346 = vmatpush3.bf16.msra.mxu0 %v14343_v40 }
0x54de   :  { %14348 = vmatprep.subr.bf16.mxu0 %v14347_v29 }
0x54e1   :  { %14350 = vmatpush3.bf16.msra.mxu0 %v14347_v29 }
0x55a7   :  { %v14149_v16 = vpop.f32.mrb[86].mxu0 }
0x55a8   :  { %v12186_v18 = vadd.f32 %v14149_v16, %v12958_v24  ;;  %v12168_v23 = vpop.f32.mrb[87].mxu0 }
0x55a9   :  { %v12185_v19 = vadd.f32 %v12958_v24, %v12168_v23 }
0x55aa   :  { %v12188_v20 = vadd.f32 %v12186_v18, %v16565_v48 }
0x55ab   :  { %v12187_v47 = vadd.f32 %v12185_v19, %v16563_v5 }
0x55ac   :  { %v12196_v1 = vsel %vm436_vm0, %v12188_v20, 0.0 }
0x55ad   :  { %12197 = vadd.xlane.f32.xlu0 %v12196_v1  ;;  %v12193_v26 = vsel %vm436_vm0, %v12187_v47, 0.0 }
0x55ae   :  { %12194 = vadd.xlane.f32.xlu1 %v12193_v26 }
0x563a   :  { %v12198_v46 = vpop.xlane.xlu0 %12197 }
0x563b   :  { %v12200_v59 = vmul.f32 0.03125, %v12198_v46  ;;  %v12195_v25 = vpop.xlane.xlu1 %12194 }
0x563c   :  { %v12199_v21 = vmul.f32 0.03125, %v12195_v25 }
0x563d   :  { %v12202_v27 = vsub.f32 %v12188_v20, %v12200_v59 }
0x563e   :  { %v12201_v28 = vsub.f32 %v12187_v47, %v12199_v21 }
0x563f   :  { %v12204_v22 = vmul.f32 %v12202_v27, %v12202_v27 }
0x5640   :  { %v12203_v48 = vmul.f32 %v12201_v28, %v12201_v28 }
0x5641   :  { %v12208_v5 = vsel %vm436_vm0, %v12204_v22, 0.0 }
0x5642   :  { %12209 = vadd.xlane.f32.xlu0 %v12208_v5  ;;  %v12205_v53 = vsel %vm436_vm0, %v12203_v48, 0.0 }
0x5643   :  { %12206 = vadd.xlane.f32.xlu1 %v12205_v53 }
0x56cf   :  { %v12210_v41 = vpop.xlane.xlu0 %12209 }
0x56d0   :  { %v12212_v15 = vmul.f32 0.03125, %v12210_v41  ;;  %v12207_v43 = vpop.xlane.xlu1 %12206 }
0x56d1   :  { %v12211_v9 = vmul.f32 0.03125, %v12207_v43 }
0x56d2   :  { %v12214_v3 = vadd.f32 1e-05, %v12212_v15 }
0x56d3   :  { %v12213_v2 = vadd.f32 1e-05, %v12211_v9 }
0x56d4   :  { %14699 = vrsqrt.f32 %v12214_v3 }
0x56d5   :  { %14701 = vrsqrt.f32 %v12213_v2 }
0x56de   :  { %v14700_v7 = vpop.eup %14699 }
0x56df   :  { %v14702_v44 = vpop.eup %14701  ;;  %v12218_v31 = vmul.f32 %v14700_v7, %v12202_v27 }
0x56e0   :  { %v12217_v42 = vmul.f32 %v14702_v44, %v12201_v28 }
0x56e1   :  { %v12226_v8 = vmul.f32 %v12961_v51, %v12218_v31  ;;  %v12521_v31 = vld [vmem:[%s15423_s19] sm:$0xff] }
0x56e2   :  { %v12225_v56 = vmul.f32 %v12961_v51, %v12217_v42  ;;  %v12522_v42 = vld [vmem:[%s15423_s19 + $0x8] sm:$0xff] }
0x56e3   :  { %v12234_v6 = vadd.f32 %v12962_v55, %v12226_v8  ;;  %v12523_v8 = vld [vmem:[%s15423_s19 + $0x10] sm:$0xff] }
0x56e4   :  { %v12233_v57 = vadd.f32 %v12962_v55, %v12225_v56  ;;  %v14351_v55 = vpack.c.bf16 %v12522_v42, %v12521_v31  ;;  %v12524_v56 = vld [vmem:[%s15423_s19 + $0x18] sm:$0xff] }
0x56e6   :  { %14158 = vmatprep.mubr.msk.f32.mxu1 %vm436_vm0, %v12233_v57  ;;  %14352 = vmatprep.subr.bf16.mxu1 %v14351_v55 }
0x56e7   :  { %14159 = vmatmul.mubr.msk.f32.vlgmr.msra.gmra.mrb[138].mxu1 %vm436_vm0, %v12234_v6 }
0x56e8   :  { %14354 = vmatpush3.bf16.msra.mxu1 %v14351_v55 }
0x57ba   :  { %v14160_v60 = vpop.f32.mrb[138].mxu1 }
0x57bb   :  { %v12337_v50 = vadd.f32 %v14160_v60, %v12975_v54  ;;  %v12331_v49 = vpop.f32.mrb[139].mxu1 }
0x57bc   :  { %v12332_v61 = vadd.f32 %v12975_v54, %v12331_v49  ;;  %v12985_v49 = vld [vmem:[%s16830_s9] ss:$0 sm:$0xff] }
0x57bd   :  { %v12341_v63 = vmax.f32 %v12337_v50, 0.0 }
0x57be   :  { %v12340_v62 = vmax.f32 %v12332_v61, 0.0 }
0x57c0   :  { %14177 = vmatprep.mubr.msk.f32.mxu0 %vm2342_vm3, %v12340_v62 }
0x57c1   :  { %14178 = vmatmul.mubr.msk.f32.vlgmr.msra.gmra.mrb[94].mxu0 %vm2342_vm3, %v12341_v63 }
0x5894   :  { %v14179_v0 = vpop.f32.mrb[94].mxu0 }
0x5895   :  { %v12426_v10 = vadd.f32 %v14179_v0, %v12978_v52  ;;  %v12420_v14 = vpop.f32.mrb[95].mxu0 }
0x5896   :  { %v12421_v24 = vadd.f32 %v12978_v52, %v12420_v14  ;;  %v12986_v52 = vld [vmem:[%s15418_s4] ss:$0 sm:$0xff] }
0x5897   :  { %v12430_v16 = vadd.f32 %v12426_v10, %v12234_v6 }
0x5898   :  { %v12429_v18 = vadd.f32 %v12421_v24, %v12233_v57  ;;  %v14355_v57 = vpack.c.bf16 %v12524_v56, %v12523_v8 }
0x5899   :  { %v12438_v23 = vsel %vm436_vm0, %v12430_v16, 0.0 }
0x589a   :  { %12439 = vadd.xlane.f32.xlu0 %v12438_v23  ;;  %v12435_v19 = vsel %vm436_vm0, %v12429_v18, 0.0  ;;  %14356 = vmatprep.subr.bf16.mxu1 %v14355_v57 }
0x589b   :  { %12436 = vadd.xlane.f32.xlu1 %v12435_v19  ;;  %14358 = vmatpush3.bf16.msra.mxu1 %v14355_v57 }
0x5927   :  { %v12440_v20 = vpop.xlane.xlu0 %12439 }
0x5928   :  { %v12442_v47 = vmul.f32 0.03125, %v12440_v20  ;;  %v12437_v1 = vpop.xlane.xlu1 %12436 }
0x5929   :  { %v12441_v26 = vmul.f32 0.03125, %v12437_v1 }
0x592a   :  { %v12444_v46 = vsub.f32 %v12430_v16, %v12442_v47  ;;  %v12987_v16 = vld [vmem:[%s15428_s17] ss:$0 sm:$0xff] }
0x592b   :  { %v12443_v59 = vsub.f32 %v12429_v18, %v12441_v26 }
0x592c   :  { %v12446_v25 = vmul.f32 %v12444_v46, %v12444_v46 }
0x592d   :  { %v12445_v21 = vmul.f32 %v12443_v59, %v12443_v59 }
0x592e   :  { %v12450_v27 = vsel %vm436_vm0, %v12446_v25, 0.0 }
0x592f   :  { %12451 = vadd.xlane.f32.xlu0 %v12450_v27  ;;  %v12447_v28 = vsel %vm436_vm0, %v12445_v21, 0.0 }
0x5930   :  { %12448 = vadd.xlane.f32.xlu1 %v12447_v28 }
0x59bc   :  { %v12452_v22 = vpop.xlane.xlu0 %12451 }
0x59bd   :  { %v12454_v48 = vmul.f32 0.03125, %v12452_v22  ;;  %v12449_v5 = vpop.xlane.xlu1 %12448 }
0x59be   :  { %v12453_v53 = vmul.f32 0.03125, %v12449_v5 }
0x59bf   :  { %v12456_v30 = vadd.f32 1e-05, %v12454_v48 }
0x59c0   :  { %v12455_v32 = vadd.f32 1e-05, %v12453_v53 }
0x59c1   :  { %14703 = vrsqrt.f32 %v12456_v30 }
0x59c2   :  { %14705 = vrsqrt.f32 %v12455_v32 }
0x59cb   :  { %v14704_v37 = vpop.eup %14703 }
0x59cc   :  { %v14706_v13 = vpop.eup %14705  ;;  %v12460_v34 = vmul.f32 %v14704_v37, %v12444_v46 }
0x59cd   :  { %v12459_v12 = vmul.f32 %v14706_v13, %v12443_v59 }
0x59ce   :  { %v12468_v39 = vmul.f32 %v12983_v33, %v12460_v34 }
0x59cf   :  { %v12467_v35 = vmul.f32 %v12983_v33, %v12459_v12 }
0x59d0   :  { %v12476_v36 = vadd.f32 %v12984_v17, %v12468_v39 }
0x59d1   :  { %v12475_v11 = vadd.f32 %v12984_v17, %v12467_v35 }
0x59d2   :  { %v12482_v45 = vsel %vm436_vm0, %v12476_v36, 0.0 }
0x59d3   :  { %12483 = vadd.xlane.f32.xlu0 %v12482_v45  ;;  %v12479_v38 = vsel %vm436_vm0, %v12475_v11, 0.0 }
0x59d4   :  { %12480 = vadd.xlane.f32.xlu1 %v12479_v38 }
0x5a60   :  { %v12484_v40 = vpop.xlane.xlu0 %12483 }
0x5a61   :  { %v12486_v41 = vmul.f32 0.03125, %v12484_v40  ;;  %v12481_v15 = vpop.xlane.xlu1 %12480 }
0x5a62   :  { %v12485_v43 = vmul.f32 0.03125, %v12481_v15 }
0x5a63   :  { %v12488_v9 = vsub.f32 %v12476_v36, %v12486_v41 }
0x5a64   :  { %v12487_v3 = vsub.f32 %v12475_v11, %v12485_v43 }
0x5a65   :  { %v12490_v2 = vmul.f32 %v12488_v9, %v12488_v9 }
0x5a66   :  { %v12489_v7 = vmul.f32 %v12487_v3, %v12487_v3 }
0x5a67   :  { %v12494_v51 = vsel %vm436_vm0, %v12490_v2, 0.0 }
0x5a68   :  { %12495 = vadd.xlane.f32.xlu0 %v12494_v51  ;;  %v12491_v44 = vsel %vm436_vm0, %v12489_v7, 0.0 }
0x5a69   :  { %12492 = vadd.xlane.f32.xlu1 %v12491_v44 }
0x5af5   :  { %v12496_v6 = vpop.xlane.xlu0 %12495 }
0x5af6   :  { %v12498_v4 = vmul.f32 0.03125, %v12496_v6  ;;  %v12493_v58 = vpop.xlane.xlu1 %12492 }
0x5af7   :  { %v12497_v29 = vmul.f32 0.03125, %v12493_v58 }
0x5af8   :  { %v12500_v54 = vadd.f32 1e-05, %v12498_v4 }
0x5af9   :  { %v12499_v60 = vadd.f32 1e-05, %v12497_v29 }
0x5afa   :  { %14707 = vrsqrt.f32 %v12500_v54 }
0x5afb   :  { %14709 = vrsqrt.f32 %v12499_v60 }
0x5b04   :  { %v14708_v50 = vpop.eup %14707 }
0x5b05   :  { %v14710_v61 = vpop.eup %14709  ;;  %v12504_v62 = vmul.f32 %v14708_v50, %v12488_v9 }
0x5b06   :  { %v12503_v63 = vmul.f32 %v14710_v61, %v12487_v3 }
0x5b07   :  { %v12512_v0 = vmul.f32 %v12985_v49, %v12504_v62 }
0x5b08   :  { %v12511_v10 = vmul.f32 %v12985_v49, %v12503_v63 }
0x5b09   :  { %v12520_v24 = vadd.f32 %v12986_v52, %v12512_v0 }
0x5b0a   :  { %v12519_v14 = vadd.f32 %v12986_v52, %v12511_v10 }
0x5b0c   :  { %14188 = vmatprep.mubr.msk.f32.mxu1 %vm436_vm0, %v12519_v14 }
0x5b0d   :  { %14189 = vmatmul.mubr.msk.f32.vlgmr.msra.gmra.mrb[140].mxu1 %vm436_vm0, %v12520_v24 }
0x5be0   :  { %v14190_v18 = vpop.f32.mrb[140].mxu1 }
0x5be1   :  { %v12610_v23 = vadd.f32 %v14190_v18, %v12987_v16  ;;  %v12604_v19 = vpop.f32.mrb[141].mxu1 }
0x5be2   :  { %v12605_v20 = vadd.f32 %v12987_v16, %v12604_v19 }
0x5be3   :  { %12615 = vst.msk [vmem:[%s15433_s13 + $0x8] sm:$0xff] %vm12613_vm5, %v12610_v23 }
0x5be4   :  { %12614 = vst.msk [vmem:[%s15433_s13] sm:$0xff] %vm12613_vm5, %v12605_v20 }
0x5be5   :  { %12620 = vsyncpa [#allocation3], 1 }
0x5be6   :  { %12621 = vsyncpa [#allocation5], 1 }
0x5be7   :  { %12622 = vsyncpa [#allocation8], 1 }
0x5be8   :  { %12623 = vsyncpa [#allocation11], 1 }
0x5be9   :  { %12624 = vsyncpa [#allocation14], 1 }
0x5bea   :  { %12625 = vsyncpa [#allocation17], 1 }
0x5beb   :  { %12626 = vsyncpa [#allocation20], 1 }
0x5bec   :  { %12627 = vsyncpa [#allocation23], 1 }
0x5bed   :  { %12628 = vsyncpa [#allocation26], 1 }
0x5bee   :  { %12629 = vsyncpa [#allocation29], 1 }

</bundles_post_ra>
